<compile_context>
chip_gen: v7x
topology: tpu7x:2x2x1
jax: 0.10.0
libtpu: 0.0.40
codegen_flags: <defaults>
</compile_context>

<pallas_src>
import functools
import math
from typing import NamedTuple, Optional

import numpy as np
import jax
import jax.numpy as jnp
from jax.experimental import pallas as pl
from jax.experimental.pallas import tpu as pltpu

# Explicit scoped-VMEM cap: above the 16/32 MiB defaults, below v7x's 64 MiB physical.
VMEM_LIMIT_BYTES = 48 * 1024 * 1024


def _cparams(semantics):
    return pltpu.CompilerParams(dimension_semantics=semantics,
                                vmem_limit_bytes=VMEM_LIMIT_BYTES)


class SSMConfig(NamedTuple):
    Q: int
    C: int
    H: int
    N: int
    maxlen: int
    Lh: int           # maxlen // 2 + 1 (half spectrum)


class MHS4Config(NamedTuple):
    Q: int
    proj_dim: int
    activation: str
    ssm: SSMConfig


# --------------------------- Pallas kernel A --------------------------------
# One grid point = (head q, frequency block).  Everything is computed in the
# (H, Lt, N) layout so the N-contraction is a canonical batched matmul
# ('hln,hnm->hlm') with no in-kernel transposes.
def _kernel_coeff_kernel(d_ref, invt_ref, w_ref, zre_ref, zim_ref, ure_ref, uim_ref,
                         kre_ref, kim_ref, *, C):
    invt = invt_ref[0]                      # (H, 1)
    d_q = d_ref[0]                          # (1, N)
    zre = zre_ref[...]                      # (1, Lt)
    zim = zim_ref[...]

    # zz[h, l] = z[l] / t[h]
    zz_re = invt * zre                      # (H, Lt)
    zz_im = invt * zim

    # den[h, l, n] = zz[h, l] - d[n]     (d is real)
    den_re = zz_re[:, :, None] - d_q[None, :, :]            # (H, Lt, N)
    den_im = jnp.broadcast_to(zz_im[:, :, None], den_re.shape)

    # r = 1 / den  (scaled complex reciprocal, overflow-safe for huge |z|,
    # divisions replaced by EUP approx reciprocals)
    s = pl.reciprocal(jnp.abs(den_re) + jnp.abs(den_im), approx=True)
    ar = den_re * s
    ai = den_im * s
    inv_m = pl.reciprocal(ar * ar + ai * ai, approx=True)
    r_re = (ar * s) * inv_m                                  # (H, Lt, N)
    r_im = -(ai * s) * inv_m

    # Single batched contraction over N for all (i, c') pairs at once.
    # w[h, n, m] with m = i*(C+1) + c'  (i in {0,1}: input_matrix / lowrank row).
    w = w_ref[0]                                             # (H, N, M), M = 2*(C+1)
    kcc_re = jnp.einsum('hln,hnm->hlm', r_re, w,
                        preferred_element_type=jnp.float32)  # (H, Lt, M)
    kcc_im = jnp.einsum('hln,hnm->hlm', r_im, w,
                        preferred_element_type=jnp.float32)

    # Woodbury combine:
    #   columns [0:C]      -> i=0, output channels
    #   column  [C]        -> i=0, lowrank column
    #   columns [C+1:2C+1] -> i=1, output channels
    #   column  [2C+1]     -> i=1, lowrank column
    k0_re, k0c_re = kcc_re[:, :, 0:C], kcc_re[:, :, C:C + 1]
    k1_re, k1c_re = kcc_re[:, :, C + 1:2 * C + 1], kcc_re[:, :, 2 * C + 1:2 * C + 2]
    k0_im, k0c_im = kcc_im[:, :, 0:C], kcc_im[:, :, C:C + 1]
    k1_im, k1c_im = kcc_im[:, :, C + 1:2 * C + 1], kcc_im[:, :, 2 * C + 1:2 * C + 2]

    dr = 1.0 + k1c_re
    di = k1c_im
    inv_dm = pl.reciprocal(dr * dr + di * di, approx=True)
    f_re = (k0c_re * dr + k0c_im * di) * inv_dm              # k0c / (1 + k1c)
    f_im = (k0c_im * dr - k0c_re * di) * inv_dm

    ker_re = k0_re - (k1_re * f_re - k1_im * f_im)           # (H, Lt, C)
    ker_im = k0_im - (k1_re * f_im + k1_im * f_re)

    # multiply by unit_l = 2 / (1 + omega_l)
    u_re = ure_ref[...][:, :, None]                          # (1, Lt, 1)
    u_im = uim_ref[...][:, :, None]
    o_re = u_re * ker_re - u_im * ker_im                     # (H, Lt, C)
    o_im = u_re * ker_im + u_im * ker_re

    for c in range(C):
        kre_ref[0, c, :, :] = o_re[:, :, c]                  # (H, Lt) dense store
        kim_ref[0, c, :, :] = o_im[:, :, c]


# --------------------------- Pallas kernel B --------------------------------
# Spectral complex multiply, flattened lane-dense trailing axes:
#   x_f[l, b, (c,q,h)] = k_f[l, (c,q,h)] * u_f[l, b, (q,h)]
def _spectral_mul_kernel(kre_ref, kim_ref, ure_ref, uim_ref, xre_ref, xim_ref, *, C):
    kr = kre_ref[...]                        # (Lt, 1, C*Q*H) -> broadcasts over B
    ki = kim_ref[...]
    ur = ure_ref[...]                        # (Lt, B, Q*H)
    ui = uim_ref[...]
    if C > 1:                                # tile u over channels along lanes
        ur = jnp.concatenate([ur] * C, axis=-1)
        ui = jnp.concatenate([ui] * C, axis=-1)
    xre_ref[...] = kr * ur - ki * ui
    xim_ref[...] = kr * ui + ki * ur


# --------------------------- Pallas kernel C --------------------------------
# Skip connection, updating x in place (output aliased onto input 0):
#   out[l, b, (c,q,h)] = x[l, b, (c,q,h)] + skip[(c,q,h)] * u[l, b, (q,h)]
def _skip_add_kernel(x_ref, u_ref, s_ref, o_ref, *, C):
    u = u_ref[...]                           # (Lt, B, Q*H)
    if C > 1:
        u = jnp.concatenate([u] * C, axis=-1)
    s = s_ref[...]                           # (1, C*Q*H)
    o_ref[...] = x_ref[...] + s[:, None, :] * u


# --------------------------- Pallas kernel D --------------------------------
# Plain linear layer: out = x @ w + b   (x (tm, K), w (K, Nout), b (1, Nout))
def _linear_kernel(x_ref, w_ref, b_ref, o_ref):
    o_ref[...] = jnp.dot(x_ref[...], w_ref[...],
                         preferred_element_type=jnp.float32) + b_ref[...]


def _pallas_linear(x2d, w, b):
    m, k = x2d.shape
    nout = w.shape[1]
    tm = m if m <= 256 else 256
    return pl.pallas_call(
        _linear_kernel,
        grid=(pl.cdiv(m, tm),),
        in_specs=[pl.BlockSpec((tm, k), lambda i: (i, 0)),
                  pl.BlockSpec((k, nout), lambda i: (0, 0)),
                  pl.BlockSpec((1, nout), lambda i: (0, 0))],
        out_specs=pl.BlockSpec((tm, nout), lambda i: (i, 0)),
        out_shape=jax.ShapeDtypeStruct((m, nout), jnp.float32),
        compiler_params=_cparams(("parallel",)),
    )(x2d, w, b)


# ----------------------------- parameter setup ------------------------------
def init_ssm_params(key, input_dim, hidden_dim, num_heads, channels,
                    scale=0.5, maxlen=256, timestep_min=0.01, timestep_max=0.16):
    H, N, Q, C = input_dim, hidden_dim, num_heads, channels
    ks = jax.random.split(key, 6)
    diagonal = math.log(scale) + jax.random.normal(ks[0], (Q, N), dtype=jnp.float32)
    lowrank = jax.random.normal(ks[1], (Q, N), dtype=jnp.float32)
    timestep = (jax.random.uniform(ks[2], (Q, H), dtype=jnp.float32)
                * (math.log(timestep_max) - math.log(timestep_min))
                + math.log(timestep_min))
    input_matrix = (2.0 * jax.random.uniform(ks[3], (Q, N)) - 1.0) / math.sqrt(1.0)
    output_matrix = (2.0 * jax.random.uniform(ks[4], (Q, C, H, N)) - 1.0) / math.sqrt(N)
    skip_matrix = (2.0 * jax.random.uniform(ks[5], (Q, C, H)) - 1.0) / math.sqrt(1.0)

    # ---- setup(): fold correction factor (I - dA^maxlen) into output_matrix ----
    # (init-time, @torch.no_grad() in the reference; done once in NumPy fp64)
    d = -np.exp(np.asarray(diagonal, dtype=np.float64))                 # (Q, N)
    p = np.asarray(lowrank, dtype=np.float64)                           # (Q, N)
    t = np.exp(np.asarray(timestep, dtype=np.float64))                  # (Q, H)
    eye = np.eye(N)
    transition = np.stack([np.diag(d[q]) - np.outer(p[q], p[q]) for q in range(Q)])
    A = 0.5 * t[:, :, None, None] * transition[:, None, :, :]           # (Q, H, N, N)
    dA = np.linalg.solve(eye[None, None] - A, eye[None, None] + A)
    correction = eye[None, None] - np.linalg.matrix_power(dA, maxlen)   # (Q, H, N, N)
    out_np = np.einsum('qchn,qhnk->qchk',
                       np.asarray(output_matrix, np.float64), correction)
    output_matrix = jnp.asarray(out_np, dtype=jnp.float32)

    # ---- setup_omega_z(): HALF-spectrum FFT nodes + bilinear transform ----
    # torch.fft.irfft(kernel, n=maxlen) only consumes the first maxlen//2+1 bins,
    # so computing only those bins is exactly equivalent (and half the work).
    Lh = maxlen // 2 + 1
    omega = np.exp(-2j * np.pi / maxlen) ** np.arange(Lh)               # complex128
    z = 2.0 * (1.0 - omega) / (1.0 + omega)
    unit = 2.0 / (1.0 + omega)

    params = dict(
        diagonal=diagonal, lowrank=lowrank, timestep=timestep,
        input_matrix=input_matrix.astype(jnp.float32),
        output_matrix=output_matrix,
        skip_matrix=skip_matrix.astype(jnp.float32),
        z_re=jnp.asarray(z.real, jnp.float32).reshape(1, Lh),
        z_im=jnp.asarray(z.imag, jnp.float32).reshape(1, Lh),
        unit_re=jnp.asarray(unit.real, jnp.float32).reshape(1, Lh),
        unit_im=jnp.asarray(unit.imag, jnp.float32).reshape(1, Lh))
    cfg = SSMConfig(Q=Q, C=C, H=H, N=N, maxlen=maxlen, Lh=Lh)
    return params, cfg


def init_mhs4_params(key, input_dim, output_dim=None, num_heads=1, channels=1,
                     hidden_dim=64, projection_dim=None, activation='gelu',
                     scale=0.5, maxlen=256, timestep_min=0.01, timestep_max=0.16):
    output_dim = output_dim or input_dim
    proj_dim = projection_dim or input_dim // num_heads
    assert input_dim % num_heads == 0
    ssm_channels = channels * (2 if activation == 'glu' else 1)
    ks = jax.random.split(key, 5)

    if num_heads > 1:
        bound = 1.0 / math.sqrt(proj_dim * input_dim)       # kaiming_uniform(a=sqrt(5))
        projweight = jax.random.uniform(ks[0], (num_heads, proj_dim, input_dim),
                                        minval=-bound, maxval=bound, dtype=jnp.float32)
        projbias = jax.random.uniform(ks[1], (num_heads, proj_dim),
                                      minval=-bound, maxval=bound, dtype=jnp.float32)
    else:
        projweight, projbias = None, None

    ssm_params, ssm_cfg = init_ssm_params(
        ks[2], input_dim=proj_dim, hidden_dim=hidden_dim, num_heads=num_heads,
        channels=ssm_channels, scale=scale, maxlen=maxlen,
        timestep_min=timestep_min, timestep_max=timestep_max)

    fan = proj_dim * num_heads
    bw = 1.0 / math.sqrt(fan)
    out_w = jax.random.uniform(ks[3], (output_dim, fan), minval=-bw, maxval=bw,
                               dtype=jnp.float32)
    out_b = jax.random.uniform(ks[4], (output_dim,), minval=-bw, maxval=bw,
                               dtype=jnp.float32)

    params = dict(projweight=projweight, projbias=projbias, ssm=ssm_params,
                  out_w=out_w, out_b=out_b)
    cfg = MHS4Config(Q=num_heads, proj_dim=proj_dim, activation=activation, ssm=ssm_cfg)
    return params, cfg


# --------------------------- TiedStateSpaceModel -----------------------------
def tied_ssm_forward(u, params, cfg):
    """u: (L, B, Q, H) float32 -> (L, B, Q, C, H) float32."""
    L_seq, B = u.shape[0], u.shape[1]
    Q, C, H, N, maxlen, Lh = cfg.Q, cfg.C, cfg.H, cfg.N, cfg.maxlen, cfg.Lh
    # TODO(synk): the maxlen-doubling re-setup branch of the torch forward is not implemented.
    assert L_seq <= maxlen
    M = 2 * (C + 1)

    d = -jnp.exp(params['diagonal'])                 # (Q, N)
    t = jnp.exp(params['timestep'])                  # (Q, H)
    p = params['lowrank']                            # (Q, N)
    b_in = params['input_matrix']                    # (Q, N)
    c_out = params['output_matrix']                  # (Q, C, H, N)

    # combined contraction weights W[q, h, n, m], m = i*(C+1) + c'
    p_b = jnp.broadcast_to(p[:, None, None, :], (Q, 1, H, N))
    c_cat = jnp.concatenate([c_out, p_b], axis=1)                    # (Q, C+1, H, N)
    w0 = b_in[:, None, None, :] * c_cat                              # i = 0
    w1 = p[:, None, None, :] * c_cat                                 # i = 1
    w = jnp.transpose(jnp.concatenate([w0, w1], axis=1), (0, 2, 3, 1))  # (Q, H, N, M)

    invt3 = (1.0 / t)[:, :, None]                    # (Q, H, 1)
    d3 = d[:, None, :]                               # (Q, 1, N)

    # ---- Pallas kernel A: half-spectrum SSM kernel coefficients ----
    lt_a = Lh if Lh <= 128 else 128
    kf_shape = (Q, C, H, Lh)
    kre, kim = pl.pallas_call(
        functools.partial(_kernel_coeff_kernel, C=C),
        grid=(Q, pl.cdiv(Lh, lt_a)),
        in_specs=[
            pl.BlockSpec((1, 1, N), lambda q, l: (q, 0, 0)),
            pl.BlockSpec((1, H, 1), lambda q, l: (q, 0, 0)),
            pl.BlockSpec((1, H, N, M), lambda q, l: (q, 0, 0, 0)),
            pl.BlockSpec((1, lt_a), lambda q, l: (0, l)),
            pl.BlockSpec((1, lt_a), lambda q, l: (0, l)),
            pl.BlockSpec((1, lt_a), lambda q, l: (0, l)),
            pl.BlockSpec((1, lt_a), lambda q, l: (0, l)),
        ],
        out_specs=[pl.BlockSpec((1, C, H, lt_a), lambda q, l: (q, 0, 0, l)),
                   pl.BlockSpec((1, C, H, lt_a), lambda q, l: (q, 0, 0, l))],
        out_shape=[jax.ShapeDtypeStruct(kf_shape, jnp.float32),
                   jax.ShapeDtypeStruct(kf_shape, jnp.float32)],
        compiler_params=_cparams(("parallel", "parallel")),
    )(d3, invt3, w, params['z_re'], params['z_im'],
      params['unit_re'], params['unit_im'])

    # TODO(synk): FFT (rfft/irfft) has no Pallas/Mosaic TPU primitive; kept as jnp.fft glue.
    k_freq = kre + 1j * kim                                         # (Q, C, H, Lh)
    k_time = jnp.fft.irfft(k_freq, n=maxlen, axis=-1)[..., :L_seq]  # (Q, C, H, L)
    kf = jnp.fft.rfft(k_time.astype(jnp.float32), n=2 * L_seq, axis=-1)  # (Q, C, H, Lf)
    Lf = L_seq + 1

    # lane-dense flattened layouts: kf -> (Lf, 1, C*Q*H), u_f -> (Lf, B, Q*H)
    kf_cqh = jnp.transpose(kf, (3, 1, 0, 2)).reshape(Lf, 1, C * Q * H)
    kf_re = jnp.real(kf_cqh).astype(jnp.float32)
    kf_im = jnp.imag(kf_cqh).astype(jnp.float32)

    uf = jnp.fft.rfft(u.astype(jnp.float32), n=2 * L_seq, axis=0)   # (Lf, B, Q, H)
    uf2 = uf.reshape(Lf, B, Q * H)
    uf_re = jnp.real(uf2).astype(jnp.float32)
    uf_im = jnp.imag(uf2).astype(jnp.float32)

    # ---- Pallas kernel B: complex spectral multiply (tiled over frequency) ----
    lt_b = Lf if Lf <= 128 else 128
    xf_shape = (Lf, B, C * Q * H)
    xre, xim = pl.pallas_call(
        functools.partial(_spectral_mul_kernel, C=C),
        grid=(pl.cdiv(Lf, lt_b),),
        in_specs=[pl.BlockSpec((lt_b, 1, C * Q * H), lambda l: (l, 0, 0)),
                  pl.BlockSpec((lt_b, 1, C * Q * H), lambda l: (l, 0, 0)),
                  pl.BlockSpec((lt_b, B, Q * H), lambda l: (l, 0, 0)),
                  pl.BlockSpec((lt_b, B, Q * H), lambda l: (l, 0, 0))],
        out_specs=[pl.BlockSpec((lt_b, B, C * Q * H), lambda l: (l, 0, 0)),
                   pl.BlockSpec((lt_b, B, C * Q * H), lambda l: (l, 0, 0))],
        out_shape=[jax.ShapeDtypeStruct(xf_shape, jnp.float32),
                   jax.ShapeDtypeStruct(xf_shape, jnp.float32)],
        compiler_params=_cparams(("parallel",)),
    )(kf_re, kf_im, uf_re, uf_im)

    xf = xre + 1j * xim
    x = jnp.fft.irfft(xf, n=2 * L_seq, axis=0)[:L_seq].astype(jnp.float32)  # (L, B, CQH)

    # ---- Pallas kernel C: skip connection, in-place on x ----
    skip2 = jnp.transpose(params['skip_matrix'], (1, 0, 2)).reshape(1, C * Q * H)
    u2 = u.astype(jnp.float32).reshape(L_seq, B, Q * H)
    lt_c = L_seq if L_seq <= 128 else 128
    out2 = pl.pallas_call(
        functools.partial(_skip_add_kernel, C=C),
        grid=(pl.cdiv(L_seq, lt_c),),
        in_specs=[pl.BlockSpec((lt_c, B, C * Q * H), lambda l: (l, 0, 0)),
                  pl.BlockSpec((lt_c, B, Q * H), lambda l: (l, 0, 0)),
                  pl.BlockSpec((1, C * Q * H), lambda l: (0, 0))],
        out_specs=pl.BlockSpec((lt_c, B, C * Q * H), lambda l: (l, 0, 0)),
        out_shape=jax.ShapeDtypeStruct((L_seq, B, C * Q * H), jnp.float32),
        input_output_aliases={0: 0},
        compiler_params=_cparams(("parallel",)),
    )(x, u2, skip2)

    # back to the PyTorch layout (L, B, Q, C, H)
    out = out2.reshape(L_seq, B, C, Q, H)
    return jnp.transpose(out, (0, 1, 3, 2, 4))


# --------------------------------- MHS4 --------------------------------------
def mhs4_forward(u, params, cfg):
    """u: (L, B, input_dim) -> (L, B, output_dim)."""
    L, B, n_in = u.shape
    Q, P = cfg.Q, cfg.proj_dim

    if params['projweight'] is not None:
        w2 = jnp.transpose(params['projweight'].reshape(Q * P, n_in))  # (n_in, Q*P)
        b2 = params['projbias'].reshape(1, Q * P)
        y = _pallas_linear(u.astype(jnp.float32).reshape(L * B, n_in), w2, b2)
        uq = y.reshape(L, B, Q, P)
    else:
        uq = u.astype(jnp.float32)[:, :, None, :]

    x = tied_ssm_forward(uq, params['ssm'], cfg.ssm)      # (L, B, Q, C, P)
    C = cfg.ssm.C
    feat = x.reshape(L, B, Q * C * P)

    # TODO(synk): activation + (identity) dropout are elementwise jnp glue outside Pallas.
    if cfg.activation == 'gelu':
        feat = jax.nn.gelu(feat, approximate=False)
    elif cfg.activation == 'glu':
        a, g = jnp.split(feat, 2, axis=-1)
        feat = a * jax.nn.sigmoid(g)
    elif cfg.activation == 'relu':
        feat = jax.nn.relu(feat)
    elif cfg.activation == 'swish':
        feat = jax.nn.silu(feat)

    fdim = feat.shape[-1]
    out = _pallas_linear(feat.reshape(L * B, fdim),
                         jnp.transpose(params['out_w']),
                         params['out_b'].reshape(1, -1))
    return out.reshape(L, B, -1)


if __name__ == "__main__":
    key = jax.random.PRNGKey(0)
    kp, ku = jax.random.split(key)

    # small shapes consistent with the module
    input_dim, output_dim = 32, 32
    num_heads, channels = 2, 1
    hidden_dim, maxlen = 32, 32
    L_seq, B = 16, 2
    activation = 'glu'   # doubles the SSM channel count -> exercises C > 1 paths

    params, cfg = init_mhs4_params(
        kp, input_dim=input_dim, output_dim=output_dim, num_heads=num_heads,
        channels=channels, hidden_dim=hidden_dim, activation=activation,
        scale=0.5, maxlen=maxlen, timestep_min=0.01, timestep_max=0.16)

    u = jax.random.normal(ku, (L_seq, B, input_dim), dtype=jnp.float32)

    fwd = jax.jit(functools.partial(mhs4_forward, cfg=cfg))
    out = jax.block_until_ready(fwd(u, params))

    assert out.shape == (L_seq, B, output_dim), out.shape
    assert out.dtype == jnp.float32
    assert bool(jnp.all(jnp.isfinite(out)))
    print("KERNEL_OK")
</pallas_src>

<mosaic_0001>
module attributes {stable_mosaic.version = 11 : i64} {
  func.func @_kernel_coeff_kernel(%arg0: i32, %arg1: i32, %arg2: memref<1x1x32xf32, #tpu.memory_space<vmem>>, %arg3: memref<1x16x1xf32, #tpu.memory_space<vmem>>, %arg4: memref<1x16x32x6xf32, #tpu.memory_space<vmem>>, %arg5: memref<1x17xf32, #tpu.memory_space<vmem>>, %arg6: memref<1x17xf32, #tpu.memory_space<vmem>>, %arg7: memref<1x17xf32, #tpu.memory_space<vmem>>, %arg8: memref<1x17xf32, #tpu.memory_space<vmem>>, %arg9: memref<1x2x16x17xf32, #tpu.memory_space<vmem>>, %arg10: memref<1x2x16x17xf32, #tpu.memory_space<vmem>>) attributes {dimension_semantics = [#tpu.dimension_semantics<parallel>, #tpu.dimension_semantics<parallel>], iteration_bounds = array<i64: 2, 1>, scalar_prefetch = 0 : i64, scratch_operands = 0 : i64, tpu.core_type = #tpu.core_type<tc>, window_params = [{transform_indices = @transform_0, window_bounds = array<i64: 1, 1, 32>}, {transform_indices = @transform_1, window_bounds = array<i64: 1, 16, 1>}, {transform_indices = @transform_2, window_bounds = array<i64: 1, 16, 32, 6>}, {transform_indices = @transform_3, window_bounds = array<i64: 1, 17>}, {transform_indices = @transform_4, window_bounds = array<i64: 1, 17>}, {transform_indices = @transform_5, window_bounds = array<i64: 1, 17>}, {transform_indices = @transform_6, window_bounds = array<i64: 1, 17>}, {transform_indices = @transform_7, window_bounds = array<i64: 1, 2, 16, 17>}, {transform_indices = @transform_8, window_bounds = array<i64: 1, 2, 16, 17>}]} {
    %c0 = arith.constant 0 : index
    %c0_0 = arith.constant 0 : index
    %c0_1 = arith.constant 0 : index
    %0 = vector.load %arg3[%c0, %c0_0, %c0_1] : memref<1x16x1xf32, #tpu.memory_space<vmem>>, vector<1x16x1xf32>
    %1 = vector.shape_cast %0 : vector<1x16x1xf32> to vector<16x1xf32>
    %c0_2 = arith.constant 0 : index
    %c0_3 = arith.constant 0 : index
    %c0_4 = arith.constant 0 : index
    %2 = vector.load %arg2[%c0_2, %c0_3, %c0_4] : memref<1x1x32xf32, #tpu.memory_space<vmem>>, vector<1x1x32xf32>
    %3 = vector.shape_cast %2 : vector<1x1x32xf32> to vector<1x32xf32>
    %c0_5 = arith.constant 0 : index
    %c0_6 = arith.constant 0 : index
    %4 = vector.load %arg5[%c0_5, %c0_6] : memref<1x17xf32, #tpu.memory_space<vmem>>, vector<1x17xf32>
    %c0_7 = arith.constant 0 : index
    %c0_8 = arith.constant 0 : index
    %5 = vector.load %arg6[%c0_7, %c0_8] : memref<1x17xf32, #tpu.memory_space<vmem>>, vector<1x17xf32>
    %6 = vector.broadcast %1 : vector<16x1xf32> to vector<16x17xf32>
    %7 = vector.broadcast %4 : vector<1x17xf32> to vector<16x17xf32>
    %8 = arith.mulf %6, %7 : vector<16x17xf32>
    %9 = vector.broadcast %1 : vector<16x1xf32> to vector<16x17xf32>
    %10 = vector.broadcast %5 : vector<1x17xf32> to vector<16x17xf32>
    %11 = arith.mulf %9, %10 : vector<16x17xf32>
    %12 = vector.shape_cast %8 : vector<16x17xf32> to vector<16x17x1xf32>
    %13 = vector.shape_cast %3 : vector<1x32xf32> to vector<1x1x32xf32>
    %14 = vector.broadcast %12 : vector<16x17x1xf32> to vector<16x17x32xf32>
    %15 = vector.broadcast %13 : vector<1x1x32xf32> to vector<16x17x32xf32>
    %16 = arith.subf %14, %15 : vector<16x17x32xf32>
    %17 = vector.shape_cast %11 : vector<16x17xf32> to vector<16x17x1xf32>
    %18 = vector.shape_cast %17 : vector<16x17x1xf32> to vector<16x17x1xf32>
    %19 = vector.broadcast %18 : vector<16x17x1xf32> to vector<16x17x32xf32>
    %20 = math.absf %16 : vector<16x17x32xf32>
    %21 = math.absf %19 : vector<16x17x32xf32>
    %22 = arith.addf %20, %21 : vector<16x17x32xf32>
    %23 = tpu.reciprocal %22 {approx = true} : vector<16x17x32xf32> -> vector<16x17x32xf32>
    %24 = arith.mulf %16, %23 : vector<16x17x32xf32>
    %25 = arith.mulf %19, %23 : vector<16x17x32xf32>
    %26 = arith.mulf %24, %24 : vector<16x17x32xf32>
    %27 = arith.mulf %25, %25 : vector<16x17x32xf32>
    %28 = arith.addf %26, %27 : vector<16x17x32xf32>
    %29 = tpu.reciprocal %28 {approx = true} : vector<16x17x32xf32> -> vector<16x17x32xf32>
    %30 = arith.mulf %24, %23 : vector<16x17x32xf32>
    %31 = arith.mulf %30, %29 : vector<16x17x32xf32>
    %32 = arith.mulf %25, %23 : vector<16x17x32xf32>
    %cst = arith.constant 0.000000e+00 : f32
    %33 = vector.broadcast %cst : f32 to vector<16x17x32xf32>
    %34 = arith.subf %33, %32 : vector<16x17x32xf32>
    %35 = arith.mulf %34, %29 : vector<16x17x32xf32>
    %c0_9 = arith.constant 0 : index
    %c0_10 = arith.constant 0 : index
    %c0_11 = arith.constant 0 : index
    %c0_12 = arith.constant 0 : index
    %36 = vector.load %arg4[%c0_9, %c0_10, %c0_11, %c0_12] : memref<1x16x32x6xf32, #tpu.memory_space<vmem>>, vector<1x16x32x6xf32>
    %37 = vector.shape_cast %36 : vector<1x16x32x6xf32> to vector<16x32x6xf32>
    "tpu.trace_start"() <{level = 10 : i32, message = "hln,hnm->hlm"}> : () -> ()
    %cst_13 = arith.constant dense<0.000000e+00> : vector<16x17x6xf32>
    %38 = tpu.matmul %31, %37, %cst_13 {dimension_numbers = #tpu.dot_dimension_numbers<[2], [1], [1], [2], [0, 0, 0, 1, 1, 2], [0], [0]>} : vector<16x17x32xf32>, vector<16x32x6xf32>, vector<16x17x6xf32> -> vector<16x17x6xf32>
    %cst_14 = arith.constant dense<0.000000e+00> : vector<16x17x6xf32>
    %39 = tpu.matmul %35, %37, %cst_14 {dimension_numbers = #tpu.dot_dimension_numbers<[2], [1], [1], [2], [0, 0, 0, 1, 1, 2], [0], [0]>} : vector<16x17x32xf32>, vector<16x32x6xf32>, vector<16x17x6xf32> -> vector<16x17x6xf32>
    "tpu.trace_stop"() : () -> ()
    %40 = vector.extract_strided_slice %38 {offsets = [0, 0, 0], sizes = [16, 17, 2], strides = [1, 1, 1]} : vector<16x17x6xf32> to vector<16x17x2xf32>
    %41 = vector.extract_strided_slice %38 {offsets = [0, 0, 2], sizes = [16, 17, 1], strides = [1, 1, 1]} : vector<16x17x6xf32> to vector<16x17x1xf32>
    %42 = vector.extract_strided_slice %38 {offsets = [0, 0, 3], sizes = [16, 17, 2], strides = [1, 1, 1]} : vector<16x17x6xf32> to vector<16x17x2xf32>
    %43 = vector.extract_strided_slice %38 {offsets = [0, 0, 5], sizes = [16, 17, 1], strides = [1, 1, 1]} : vector<16x17x6xf32> to vector<16x17x1xf32>
    %44 = vector.extract_strided_slice %39 {offsets = [0, 0, 0], sizes = [16, 17, 2], strides = [1, 1, 1]} : vector<16x17x6xf32> to vector<16x17x2xf32>
    %45 = vector.extract_strided_slice %39 {offsets = [0, 0, 2], sizes = [16, 17, 1], strides = [1, 1, 1]} : vector<16x17x6xf32> to vector<16x17x1xf32>
    %46 = vector.extract_strided_slice %39 {offsets = [0, 0, 3], sizes = [16, 17, 2], strides = [1, 1, 1]} : vector<16x17x6xf32> to vector<16x17x2xf32>
    %47 = vector.extract_strided_slice %39 {offsets = [0, 0, 5], sizes = [16, 17, 1], strides = [1, 1, 1]} : vector<16x17x6xf32> to vector<16x17x1xf32>
    %cst_15 = arith.constant 1.000000e+00 : f32
    %48 = vector.broadcast %cst_15 : f32 to vector<16x17x1xf32>
    %49 = arith.addf %48, %43 : vector<16x17x1xf32>
    %50 = arith.mulf %49, %49 : vector<16x17x1xf32>
    %51 = arith.mulf %47, %47 : vector<16x17x1xf32>
    %52 = arith.addf %50, %51 : vector<16x17x1xf32>
    %53 = tpu.reciprocal %52 {approx = true} : vector<16x17x1xf32> -> vector<16x17x1xf32>
    %54 = arith.mulf %41, %49 : vector<16x17x1xf32>
    %55 = arith.mulf %45, %47 : vector<16x17x1xf32>
    %56 = arith.addf %54, %55 : vector<16x17x1xf32>
    %57 = arith.mulf %56, %53 : vector<16x17x1xf32>
    %58 = arith.mulf %45, %49 : vector<16x17x1xf32>
    %59 = arith.mulf %41, %47 : vector<16x17x1xf32>
    %60 = arith.subf %58, %59 : vector<16x17x1xf32>
    %61 = arith.mulf %60, %53 : vector<16x17x1xf32>
    %62 = vector.broadcast %57 : vector<16x17x1xf32> to vector<16x17x2xf32>
    %63 = arith.mulf %42, %62 : vector<16x17x2xf32>
    %64 = vector.broadcast %61 : vector<16x17x1xf32> to vector<16x17x2xf32>
    %65 = arith.mulf %46, %64 : vector<16x17x2xf32>
    %66 = arith.subf %63, %65 : vector<16x17x2xf32>
    %67 = arith.subf %40, %66 : vector<16x17x2xf32>
    %68 = vector.broadcast %61 : vector<16x17x1xf32> to vector<16x17x2xf32>
    %69 = arith.mulf %42, %68 : vector<16x17x2xf32>
    %70 = vector.broadcast %57 : vector<16x17x1xf32> to vector<16x17x2xf32>
    %71 = arith.mulf %46, %70 : vector<16x17x2xf32>
    %72 = arith.addf %69, %71 : vector<16x17x2xf32>
    %73 = arith.subf %44, %72 : vector<16x17x2xf32>
    %c0_16 = arith.constant 0 : index
    %c0_17 = arith.constant 0 : index
    %74 = vector.load %arg7[%c0_16, %c0_17] : memref<1x17xf32, #tpu.memory_space<vmem>>, vector<1x17xf32>
    %75 = vector.shape_cast %74 : vector<1x17xf32> to vector<1x17x1xf32>
    %c0_18 = arith.constant 0 : index
    %c0_19 = arith.constant 0 : index
    %76 = vector.load %arg8[%c0_18, %c0_19] : memref<1x17xf32, #tpu.memory_space<vmem>>, vector<1x17xf32>
    %77 = vector.shape_cast %76 : vector<1x17xf32> to vector<1x17x1xf32>
    %78 = vector.broadcast %75 : vector<1x17x1xf32> to vector<16x17x2xf32>
    %79 = arith.mulf %78, %67 : vector<16x17x2xf32>
    %80 = vector.broadcast %77 : vector<1x17x1xf32> to vector<16x17x2xf32>
    %81 = arith.mulf %80, %73 : vector<16x17x2xf32>
    %82 = arith.subf %79, %81 : vector<16x17x2xf32>
    %83 = vector.broadcast %75 : vector<1x17x1xf32> to vector<16x17x2xf32>
    %84 = arith.mulf %83, %73 : vector<16x17x2xf32>
    %85 = vector.broadcast %77 : vector<1x17x1xf32> to vector<16x17x2xf32>
    %86 = arith.mulf %85, %67 : vector<16x17x2xf32>
    %87 = arith.addf %84, %86 : vector<16x17x2xf32>
    %88 = vector.extract_strided_slice %82 {offsets = [0, 0, 0], sizes = [16, 17, 1], strides = [1, 1, 1]} : vector<16x17x2xf32> to vector<16x17x1xf32>
    %89 = vector.shape_cast %88 : vector<16x17x1xf32> to vector<16x17xf32>
    %c0_20 = arith.constant 0 : index
    %c0_21 = arith.constant 0 : index
    %c0_22 = arith.constant 0 : index
    %c0_23 = arith.constant 0 : index
    %90 = vector.load %arg9[%c0_20, %c0_21, %c0_22, %c0_23] : memref<1x2x16x17xf32, #tpu.memory_space<vmem>>, vector<1x1x16x17xf32>
    %91 = vector.shape_cast %90 : vector<1x1x16x17xf32> to vector<16x17xf32>
    %92 = vector.shape_cast %89 : vector<16x17xf32> to vector<1x1x16x17xf32>
    tpu.vector_store %arg9[%c0_20, %c0_21, %c0_22, %c0_23], %92 {strides = array<i32>} : memref<1x2x16x17xf32, #tpu.memory_space<vmem>>, vector<1x1x16x17xf32>,
    %93 = vector.extract_strided_slice %87 {offsets = [0, 0, 0], sizes = [16, 17, 1], strides = [1, 1, 1]} : vector<16x17x2xf32> to vector<16x17x1xf32>
    %94 = vector.shape_cast %93 : vector<16x17x1xf32> to vector<16x17xf32>
    %c0_24 = arith.constant 0 : index
    %c0_25 = arith.constant 0 : index
    %c0_26 = arith.constant 0 : index
    %c0_27 = arith.constant 0 : index
    %95 = vector.load %arg10[%c0_24, %c0_25, %c0_26, %c0_27] : memref<1x2x16x17xf32, #tpu.memory_space<vmem>>, vector<1x1x16x17xf32>
    %96 = vector.shape_cast %95 : vector<1x1x16x17xf32> to vector<16x17xf32>
    %97 = vector.shape_cast %94 : vector<16x17xf32> to vector<1x1x16x17xf32>
    tpu.vector_store %arg10[%c0_24, %c0_25, %c0_26, %c0_27], %97 {strides = array<i32>} : memref<1x2x16x17xf32, #tpu.memory_space<vmem>>, vector<1x1x16x17xf32>,
    %98 = vector.extract_strided_slice %82 {offsets = [0, 0, 1], sizes = [16, 17, 1], strides = [1, 1, 1]} : vector<16x17x2xf32> to vector<16x17x1xf32>
    %99 = vector.shape_cast %98 : vector<16x17x1xf32> to vector<16x17xf32>
    %c0_28 = arith.constant 0 : index
    %c1 = arith.constant 1 : index
    %c0_29 = arith.constant 0 : index
    %c0_30 = arith.constant 0 : index
    %100 = vector.load %arg9[%c0_28, %c1, %c0_29, %c0_30] : memref<1x2x16x17xf32, #tpu.memory_space<vmem>>, vector<1x1x16x17xf32>
    %101 = vector.shape_cast %100 : vector<1x1x16x17xf32> to vector<16x17xf32>
    %102 = vector.shape_cast %99 : vector<16x17xf32> to vector<1x1x16x17xf32>
    tpu.vector_store %arg9[%c0_28, %c1, %c0_29, %c0_30], %102 {strides = array<i32>} : memref<1x2x16x17xf32, #tpu.memory_space<vmem>>, vector<1x1x16x17xf32>,
    %103 = vector.extract_strided_slice %87 {offsets = [0, 0, 1], sizes = [16, 17, 1], strides = [1, 1, 1]} : vector<16x17x2xf32> to vector<16x17x1xf32>
    %104 = vector.shape_cast %103 : vector<16x17x1xf32> to vector<16x17xf32>
    %c0_31 = arith.constant 0 : index
    %c1_32 = arith.constant 1 : index
    %c0_33 = arith.constant 0 : index
    %c0_34 = arith.constant 0 : index
    %105 = vector.load %arg10[%c0_31, %c1_32, %c0_33, %c0_34] : memref<1x2x16x17xf32, #tpu.memory_space<vmem>>, vector<1x1x16x17xf32>
    %106 = vector.shape_cast %105 : vector<1x1x16x17xf32> to vector<16x17xf32>
    %107 = vector.shape_cast %104 : vector<16x17xf32> to vector<1x1x16x17xf32>
    tpu.vector_store %arg10[%c0_31, %c1_32, %c0_33, %c0_34], %107 {strides = array<i32>} : memref<1x2x16x17xf32, #tpu.memory_space<vmem>>, vector<1x1x16x17xf32>,
    return
  }
  func.func @transform_0(%arg0: i32, %arg1: i32) -> (i32, i32, i32) {
    %c0_i32 = arith.constant 0 : i32
    %c0_i32_0 = arith.constant 0 : i32
    %c0_i32_1 = arith.constant 0 : i32
    return %arg0, %c0_i32, %c0_i32_0 : i32, i32, i32
  }
  func.func @transform_1(%arg0: i32, %arg1: i32) -> (i32, i32, i32) {
    %c0_i32 = arith.constant 0 : i32
    %c0_i32_0 = arith.constant 0 : i32
    %c0_i32_1 = arith.constant 0 : i32
    return %arg0, %c0_i32, %c0_i32_0 : i32, i32, i32
  }
  func.func @transform_2(%arg0: i32, %arg1: i32) -> (i32, i32, i32, i32) {
    %c0_i32 = arith.constant 0 : i32
    %c0_i32_0 = arith.constant 0 : i32
    %c0_i32_1 = arith.constant 0 : i32
    %c0_i32_2 = arith.constant 0 : i32
    return %arg0, %c0_i32, %c0_i32_0, %c0_i32_1 : i32, i32, i32, i32
  }
  func.func @transform_3(%arg0: i32, %arg1: i32) -> (i32, i32) {
    %c0_i32 = arith.constant 0 : i32
    %c0_i32_0 = arith.constant 0 : i32
    return %c0_i32, %arg1 : i32, i32
  }
  func.func @transform_4(%arg0: i32, %arg1: i32) -> (i32, i32) {
    %c0_i32 = arith.constant 0 : i32
    %c0_i32_0 = arith.constant 0 : i32
    return %c0_i32, %arg1 : i32, i32
  }
  func.func @transform_5(%arg0: i32, %arg1: i32) -> (i32, i32) {
    %c0_i32 = arith.constant 0 : i32
    %c0_i32_0 = arith.constant 0 : i32
    return %c0_i32, %arg1 : i32, i32
  }
  func.func @transform_6(%arg0: i32, %arg1: i32) -> (i32, i32) {
    %c0_i32 = arith.constant 0 : i32
    %c0_i32_0 = arith.constant 0 : i32
    return %c0_i32, %arg1 : i32, i32
  }
  func.func @transform_7(%arg0: i32, %arg1: i32) -> (i32, i32, i32, i32) {
    %c0_i32 = arith.constant 0 : i32
    %c0_i32_0 = arith.constant 0 : i32
    %c0_i32_1 = arith.constant 0 : i32
    return %arg0, %c0_i32, %c0_i32_0, %arg1 : i32, i32, i32, i32
  }
  func.func @transform_8(%arg0: i32, %arg1: i32) -> (i32, i32, i32, i32) {
    %c0_i32 = arith.constant 0 : i32
    %c0_i32_0 = arith.constant 0 : i32
    %c0_i32_1 = arith.constant 0 : i32
    return %arg0, %c0_i32, %c0_i32_0, %arg1 : i32, i32, i32, i32
  }
}

module attributes {stable_mosaic.version = 11 : i64} {
  func.func @_linear_kernel(%arg0: i32, %arg1: memref<32x32xf32, #tpu.memory_space<vmem>>, %arg2: memref<32x32xf32, #tpu.memory_space<vmem>>, %arg3: memref<1x32xf32, #tpu.memory_space<vmem>>, %arg4: memref<32x32xf32, #tpu.memory_space<vmem>>) attributes {dimension_semantics = [#tpu.dimension_semantics<parallel>], iteration_bounds = array<i64: 1>, scalar_prefetch = 0 : i64, scratch_operands = 0 : i64, tpu.core_type = #tpu.core_type<tc>, window_params = [{transform_indices = @transform_0, window_bounds = array<i64: 32, 32>}, {pipeline_mode = #tpu.pipeline_mode<synchronous>, transform_indices = @transform_1, window_bounds = array<i64: 32, 32>}, {pipeline_mode = #tpu.pipeline_mode<synchronous>, transform_indices = @transform_2, window_bounds = array<i64: 1, 32>}, {transform_indices = @transform_3, window_bounds = array<i64: 32, 32>}]} {
    %c0 = arith.constant 0 : index
    %c0_0 = arith.constant 0 : index
    %0 = vector.load %arg1[%c0, %c0_0] : memref<32x32xf32, #tpu.memory_space<vmem>>, vector<32x32xf32>
    %c0_1 = arith.constant 0 : index
    %c0_2 = arith.constant 0 : index
    %1 = vector.load %arg2[%c0_1, %c0_2] : memref<32x32xf32, #tpu.memory_space<vmem>>, vector<32x32xf32>
    %cst = arith.constant dense<0.000000e+00> : vector<32x32xf32>
    %2 = tpu.matmul %0, %1, %cst {dimension_numbers = #tpu.dot_dimension_numbers<[1], [0], [0], [1], [0, 0, 1, 1], [], []>} : vector<32x32xf32>, vector<32x32xf32>, vector<32x32xf32> -> vector<32x32xf32>
    %c0_3 = arith.constant 0 : index
    %c0_4 = arith.constant 0 : index
    %3 = vector.load %arg3[%c0_3, %c0_4] : memref<1x32xf32, #tpu.memory_space<vmem>>, vector<1x32xf32>
    %4 = vector.broadcast %3 : vector<1x32xf32> to vector<32x32xf32>
    %5 = arith.addf %2, %4 : vector<32x32xf32>
    %c0_5 = arith.constant 0 : index
    %c0_6 = arith.constant 0 : index
    %6 = vector.load %arg4[%c0_5, %c0_6] : memref<32x32xf32, #tpu.memory_space<vmem>>, vector<32x32xf32>
    tpu.vector_store %arg4[%c0_5, %c0_6], %5 {strides = array<i32>} : memref<32x32xf32, #tpu.memory_space<vmem>>, vector<32x32xf32>,
    return
  }
  func.func @transform_0(%arg0: i32) -> (i32, i32) {
    %c0_i32 = arith.constant 0 : i32
    %c0_i32_0 = arith.constant 0 : i32
    return %arg0, %c0_i32 : i32, i32
  }
  func.func @transform_1(%arg0: i32) -> (i32, i32) {
    %c0_i32 = arith.constant 0 : i32
    %c0_i32_0 = arith.constant 0 : i32
    %c0_i32_1 = arith.constant 0 : i32
    return %c0_i32, %c0_i32_0 : i32, i32
  }
  func.func @transform_2(%arg0: i32) -> (i32, i32) {
    %c0_i32 = arith.constant 0 : i32
    %c0_i32_0 = arith.constant 0 : i32
    %c0_i32_1 = arith.constant 0 : i32
    return %c0_i32, %c0_i32_0 : i32, i32
  }
  func.func @transform_3(%arg0: i32) -> (i32, i32) {
    %c0_i32 = arith.constant 0 : i32
    %c0_i32_0 = arith.constant 0 : i32
    return %arg0, %c0_i32 : i32, i32
  }
}

module attributes {stable_mosaic.version = 11 : i64} {
  func.func @_spectral_mul_kernel(%arg0: i32, %arg1: memref<17x1x64xf32, #tpu.memory_space<vmem>>, %arg2: memref<17x1x64xf32, #tpu.memory_space<vmem>>, %arg3: memref<17x2x32xf32, #tpu.memory_space<vmem>>, %arg4: memref<17x2x32xf32, #tpu.memory_space<vmem>>, %arg5: memref<17x2x64xf32, #tpu.memory_space<vmem>>, %arg6: memref<17x2x64xf32, #tpu.memory_space<vmem>>) attributes {dimension_semantics = [#tpu.dimension_semantics<parallel>], iteration_bounds = array<i64: 1>, scalar_prefetch = 0 : i64, scratch_operands = 0 : i64, tpu.core_type = #tpu.core_type<tc>, window_params = [{transform_indices = @transform_0, window_bounds = array<i64: 17, 1, 64>}, {transform_indices = @transform_1, window_bounds = array<i64: 17, 1, 64>}, {transform_indices = @transform_2, window_bounds = array<i64: 17, 2, 32>}, {transform_indices = @transform_3, window_bounds = array<i64: 17, 2, 32>}, {transform_indices = @transform_4, window_bounds = array<i64: 17, 2, 64>}, {transform_indices = @transform_5, window_bounds = array<i64: 17, 2, 64>}]} {
    %c0 = arith.constant 0 : index
    %c0_0 = arith.constant 0 : index
    %c0_1 = arith.constant 0 : index
    %0 = vector.load %arg1[%c0, %c0_0, %c0_1] : memref<17x1x64xf32, #tpu.memory_space<vmem>>, vector<17x1x64xf32>
    %c0_2 = arith.constant 0 : index
    %c0_3 = arith.constant 0 : index
    %c0_4 = arith.constant 0 : index
    %1 = vector.load %arg2[%c0_2, %c0_3, %c0_4] : memref<17x1x64xf32, #tpu.memory_space<vmem>>, vector<17x1x64xf32>
    %c0_5 = arith.constant 0 : index
    %c0_6 = arith.constant 0 : index
    %c0_7 = arith.constant 0 : index
    %2 = vector.load %arg3[%c0_5, %c0_6, %c0_7] : memref<17x2x32xf32, #tpu.memory_space<vmem>>, vector<17x2x32xf32>
    %c0_8 = arith.constant 0 : index
    %c0_9 = arith.constant 0 : index
    %c0_10 = arith.constant 0 : index
    %3 = vector.load %arg4[%c0_8, %c0_9, %c0_10] : memref<17x2x32xf32, #tpu.memory_space<vmem>>, vector<17x2x32xf32>
    %4 = tpu.concatenate %2, %2 in 2 : vector<17x2x32xf32>, vector<17x2x32xf32> -> vector<17x2x64xf32>
    %5 = tpu.concatenate %3, %3 in 2 : vector<17x2x32xf32>, vector<17x2x32xf32> -> vector<17x2x64xf32>
    %6 = vector.broadcast %0 : vector<17x1x64xf32> to vector<17x2x64xf32>
    %7 = arith.mulf %6, %4 : vector<17x2x64xf32>
    %8 = vector.broadcast %1 : vector<17x1x64xf32> to vector<17x2x64xf32>
    %9 = arith.mulf %8, %5 : vector<17x2x64xf32>
    %10 = arith.subf %7, %9 : vector<17x2x64xf32>
    %c0_11 = arith.constant 0 : index
    %c0_12 = arith.constant 0 : index
    %c0_13 = arith.constant 0 : index
    %11 = vector.load %arg5[%c0_11, %c0_12, %c0_13] : memref<17x2x64xf32, #tpu.memory_space<vmem>>, vector<17x2x64xf32>
    tpu.vector_store %arg5[%c0_11, %c0_12, %c0_13], %10 {strides = array<i32>} : memref<17x2x64xf32, #tpu.memory_space<vmem>>, vector<17x2x64xf32>,
    %12 = vector.broadcast %0 : vector<17x1x64xf32> to vector<17x2x64xf32>
    %13 = arith.mulf %12, %5 : vector<17x2x64xf32>
    %14 = vector.broadcast %1 : vector<17x1x64xf32> to vector<17x2x64xf32>
    %15 = arith.mulf %14, %4 : vector<17x2x64xf32>
    %16 = arith.addf %13, %15 : vector<17x2x64xf32>
    %c0_14 = arith.constant 0 : index
    %c0_15 = arith.constant 0 : index
    %c0_16 = arith.constant 0 : index
    %17 = vector.load %arg6[%c0_14, %c0_15, %c0_16] : memref<17x2x64xf32, #tpu.memory_space<vmem>>, vector<17x2x64xf32>
    tpu.vector_store %arg6[%c0_14, %c0_15, %c0_16], %16 {strides = array<i32>} : memref<17x2x64xf32, #tpu.memory_space<vmem>>, vector<17x2x64xf32>,
    return
  }
  func.func @transform_0(%arg0: i32) -> (i32, i32, i32) {
    %c0_i32 = arith.constant 0 : i32
    %c0_i32_0 = arith.constant 0 : i32
    %c0_i32_1 = arith.constant 0 : i32
    return %arg0, %c0_i32, %c0_i32_0 : i32, i32, i32
  }
  func.func @transform_1(%arg0: i32) -> (i32, i32, i32) {
    %c0_i32 = arith.constant 0 : i32
    %c0_i32_0 = arith.constant 0 : i32
    %c0_i32_1 = arith.constant 0 : i32
    return %arg0, %c0_i32, %c0_i32_0 : i32, i32, i32
  }
  func.func @transform_2(%arg0: i32) -> (i32, i32, i32) {
    %c0_i32 = arith.constant 0 : i32
    %c0_i32_0 = arith.constant 0 : i32
    %c0_i32_1 = arith.constant 0 : i32
    return %arg0, %c0_i32, %c0_i32_0 : i32, i32, i32
  }
  func.func @transform_3(%arg0: i32) -> (i32, i32, i32) {
    %c0_i32 = arith.constant 0 : i32
    %c0_i32_0 = arith.constant 0 : i32
    %c0_i32_1 = arith.constant 0 : i32
    return %arg0, %c0_i32, %c0_i32_0 : i32, i32, i32
  }
  func.func @transform_4(%arg0: i32) -> (i32, i32, i32) {
    %c0_i32 = arith.constant 0 : i32
    %c0_i32_0 = arith.constant 0 : i32
    %c0_i32_1 = arith.constant 0 : i32
    return %arg0, %c0_i32, %c0_i32_0 : i32, i32, i32
  }
  func.func @transform_5(%arg0: i32) -> (i32, i32, i32) {
    %c0_i32 = arith.constant 0 : i32
    %c0_i32_0 = arith.constant 0 : i32
    %c0_i32_1 = arith.constant 0 : i32
    return %arg0, %c0_i32, %c0_i32_0 : i32, i32, i32
  }
}

module attributes {stable_mosaic.version = 11 : i64} {
  func.func @_skip_add_kernel(%arg0: i32, %arg1: memref<16x2x64xf32, #tpu.memory_space<vmem>>, %arg2: memref<16x2x32xf32, #tpu.memory_space<vmem>>, %arg3: memref<1x64xf32, #tpu.memory_space<vmem>>, %arg4: memref<16x2x64xf32, #tpu.memory_space<vmem>>) attributes {dimension_semantics = [#tpu.dimension_semantics<parallel>], iteration_bounds = array<i64: 1>, scalar_prefetch = 0 : i64, scratch_operands = 0 : i64, tpu.core_type = #tpu.core_type<tc>, window_params = [{transform_indices = @transform_0, window_bounds = array<i64: 16, 2, 64>}, {transform_indices = @transform_1, window_bounds = array<i64: 16, 2, 32>}, {pipeline_mode = #tpu.pipeline_mode<synchronous>, transform_indices = @transform_2, window_bounds = array<i64: 1, 64>}, {transform_indices = @transform_3, window_bounds = array<i64: 16, 2, 64>}]} {
    %c0 = arith.constant 0 : index
    %c0_0 = arith.constant 0 : index
    %c0_1 = arith.constant 0 : index
    %0 = vector.load %arg2[%c0, %c0_0, %c0_1] : memref<16x2x32xf32, #tpu.memory_space<vmem>>, vector<16x2x32xf32>
    %1 = tpu.concatenate %0, %0 in 2 : vector<16x2x32xf32>, vector<16x2x32xf32> -> vector<16x2x64xf32>
    %c0_2 = arith.constant 0 : index
    %c0_3 = arith.constant 0 : index
    %2 = vector.load %arg3[%c0_2, %c0_3] : memref<1x64xf32, #tpu.memory_space<vmem>>, vector<1x64xf32>
    %c0_4 = arith.constant 0 : index
    %c0_5 = arith.constant 0 : index
    %c0_6 = arith.constant 0 : index
    %3 = vector.load %arg1[%c0_4, %c0_5, %c0_6] : memref<16x2x64xf32, #tpu.memory_space<vmem>>, vector<16x2x64xf32>
    %4 = vector.shape_cast %2 : vector<1x64xf32> to vector<1x1x64xf32>
    %5 = vector.broadcast %4 : vector<1x1x64xf32> to vector<16x2x64xf32>
    %6 = arith.mulf %5, %1 : vector<16x2x64xf32>
    %7 = arith.addf %3, %6 : vector<16x2x64xf32>
    %c0_7 = arith.constant 0 : index
    %c0_8 = arith.constant 0 : index
    %c0_9 = arith.constant 0 : index
    %8 = vector.load %arg4[%c0_7, %c0_8, %c0_9] : memref<16x2x64xf32, #tpu.memory_space<vmem>>, vector<16x2x64xf32>
    tpu.vector_store %arg4[%c0_7, %c0_8, %c0_9], %7 {strides = array<i32>} : memref<16x2x64xf32, #tpu.memory_space<vmem>>, vector<16x2x64xf32>,
    return
  }
  func.func @transform_0(%arg0: i32) -> (i32, i32, i32) {
    %c0_i32 = arith.constant 0 : i32
    %c0_i32_0 = arith.constant 0 : i32
    %c0_i32_1 = arith.constant 0 : i32
    return %arg0, %c0_i32, %c0_i32_0 : i32, i32, i32
  }
  func.func @transform_1(%arg0: i32) -> (i32, i32, i32) {
    %c0_i32 = arith.constant 0 : i32
    %c0_i32_0 = arith.constant 0 : i32
    %c0_i32_1 = arith.constant 0 : i32
    return %arg0, %c0_i32, %c0_i32_0 : i32, i32, i32
  }
  func.func @transform_2(%arg0: i32) -> (i32, i32) {
    %c0_i32 = arith.constant 0 : i32
    %c0_i32_0 = arith.constant 0 : i32
    %c0_i32_1 = arith.constant 0 : i32
    return %c0_i32, %c0_i32_0 : i32, i32
  }
  func.func @transform_3(%arg0: i32) -> (i32, i32, i32) {
    %c0_i32 = arith.constant 0 : i32
    %c0_i32_0 = arith.constant 0 : i32
    %c0_i32_1 = arith.constant 0 : i32
    return %arg0, %c0_i32, %c0_i32_0 : i32, i32, i32
  }
}

module attributes {stable_mosaic.version = 11 : i64} {
  func.func @_linear_kernel(%arg0: i32, %arg1: memref<32x32xf32, #tpu.memory_space<vmem>>, %arg2: memref<32x32xf32, #tpu.memory_space<vmem>>, %arg3: memref<1x32xf32, #tpu.memory_space<vmem>>, %arg4: memref<32x32xf32, #tpu.memory_space<vmem>>) attributes {dimension_semantics = [#tpu.dimension_semantics<parallel>], iteration_bounds = array<i64: 1>, scalar_prefetch = 0 : i64, scratch_operands = 0 : i64, tpu.core_type = #tpu.core_type<tc>, window_params = [{transform_indices = @transform_0, window_bounds = array<i64: 32, 32>}, {pipeline_mode = #tpu.pipeline_mode<synchronous>, transform_indices = @transform_1, window_bounds = array<i64: 32, 32>}, {pipeline_mode = #tpu.pipeline_mode<synchronous>, transform_indices = @transform_2, window_bounds = array<i64: 1, 32>}, {transform_indices = @transform_3, window_bounds = array<i64: 32, 32>}]} {
    %c0 = arith.constant 0 : index
    %c0_0 = arith.constant 0 : index
    %0 = vector.load %arg1[%c0, %c0_0] : memref<32x32xf32, #tpu.memory_space<vmem>>, vector<32x32xf32>
    %c0_1 = arith.constant 0 : index
    %c0_2 = arith.constant 0 : index
    %1 = vector.load %arg2[%c0_1, %c0_2] : memref<32x32xf32, #tpu.memory_space<vmem>>, vector<32x32xf32>
    %cst = arith.constant dense<0.000000e+00> : vector<32x32xf32>
    %2 = tpu.matmul %0, %1, %cst {dimension_numbers = #tpu.dot_dimension_numbers<[1], [0], [0], [1], [0, 0, 1, 1], [], []>} : vector<32x32xf32>, vector<32x32xf32>, vector<32x32xf32> -> vector<32x32xf32>
    %c0_3 = arith.constant 0 : index
    %c0_4 = arith.constant 0 : index
    %3 = vector.load %arg3[%c0_3, %c0_4] : memref<1x32xf32, #tpu.memory_space<vmem>>, vector<1x32xf32>
    %4 = vector.broadcast %3 : vector<1x32xf32> to vector<32x32xf32>
    %5 = arith.addf %2, %4 : vector<32x32xf32>
    %c0_5 = arith.constant 0 : index
    %c0_6 = arith.constant 0 : index
    %6 = vector.load %arg4[%c0_5, %c0_6] : memref<32x32xf32, #tpu.memory_space<vmem>>, vector<32x32xf32>
    tpu.vector_store %arg4[%c0_5, %c0_6], %5 {strides = array<i32>} : memref<32x32xf32, #tpu.memory_space<vmem>>, vector<32x32xf32>,
    return
  }
  func.func @transform_0(%arg0: i32) -> (i32, i32) {
    %c0_i32 = arith.constant 0 : i32
    %c0_i32_0 = arith.constant 0 : i32
    return %arg0, %c0_i32 : i32, i32
  }
  func.func @transform_1(%arg0: i32) -> (i32, i32) {
    %c0_i32 = arith.constant 0 : i32
    %c0_i32_0 = arith.constant 0 : i32
    %c0_i32_1 = arith.constant 0 : i32
    return %c0_i32, %c0_i32_0 : i32, i32
  }
  func.func @transform_2(%arg0: i32) -> (i32, i32) {
    %c0_i32 = arith.constant 0 : i32
    %c0_i32_0 = arith.constant 0 : i32
    %c0_i32_1 = arith.constant 0 : i32
    return %c0_i32, %c0_i32_0 : i32, i32
  }
  func.func @transform_3(%arg0: i32) -> (i32, i32) {
    %c0_i32 = arith.constant 0 : i32
    %c0_i32_0 = arith.constant 0 : i32
    return %arg0, %c0_i32 : i32, i32
  }
}

</mosaic_0001>

<bundles_post_ra>
// kernel: reverse.2
= control target key start
LH: loop header
LB: loop body
LE: loop exit
PB: predicated region body
PF: predicated region fallthrough
CT: control target
= control target key end

     0   :  { %v2_v0 = vlaneseq  ;;  %s244_s0 = inlined_call_operand.vmem [shape: f32[2,2,16,15], index: 0, kind: input, shape index: {}]   ;;  %s245_s1 = inlined_call_operand.vmem [shape: f32[2,2,16,15], index: 1, kind: output, shape index: {}]  }
   0x1   :  { %v50_v2 = vld [vmem:[%s244_s0 + $0x10] sm:$0xff]  ;;  %v46_v3 = vld [vmem:[%s244_s0] sm:$0xff]  ;;  %v52_v4 = vld [vmem:[%s244_s0 + $0x18] sm:$0xff] }
   0x2   :  { %v3_v1 = vsub.s32 14, %v2_v0  ;;  %v48_v5 = vld [vmem:[%s244_s0 + $0x8] sm:$0xff]  ;;  %v54_v7 = vld [vmem:[%s244_s0 + $0x20] sm:$0xff]  ;;  %v60_v8 = vld [vmem:[%s244_s0 + $0x38] sm:$0xff] }
   0x3   :  { %v56_v6 = vld [vmem:[%s244_s0 + $0x28] sm:$0xff]  ;;  %v58_v9 = vld [vmem:[%s244_s0 + $0x30] sm:$0xff] }
   0x4   :  { %4 = vset.pattern.permute.xlu0 %v3_v1  ;;  %185 = vset.pattern.permute.xlu1 %v3_v1 }
   0x5   :  { %78 = vperm.xlu1 %185, %v50_v2   ;;  %66 = vperm.xlu0 %4, %v46_v3  }
   0x9   :  { %84 = vperm.xlu1 %185, %v52_v4   ;;  %72 = vperm.xlu0 %4, %v48_v5  }
   0xd   :  { %96 = vperm.xlu1 %185, %v56_v6   ;;  %90 = vperm.xlu0 %4, %v54_v7  }
  0x11   :  { %108 = vperm.xlu1 %185, %v60_v8   ;;  %102 = vperm.xlu0 %4, %v58_v9  }
  0x84   :  { %v79_v10 = vpop.permute.xlu1 %78  ;;  %v67_v11 = vpop.permute.xlu0 %66 }
  0x85   :  { %157 = vst [vmem:[%s245_s1 + $0x10] sm:$0xff] %v79_v10  ;;  %153 = vst [vmem:[%s245_s1] sm:$0xff] %v67_v11 }
  0x88   :  { %v85_v12 = vpop.permute.xlu1 %84  ;;  %v73_v13 = vpop.permute.xlu0 %72 }
  0x89   :  { %159 = vst [vmem:[%s245_s1 + $0x18] sm:$0xff] %v85_v12  ;;  %155 = vst [vmem:[%s245_s1 + $0x8] sm:$0xff] %v73_v13 }
  0x8c   :  { %v97_v14 = vpop.permute.xlu1 %96  ;;  %v91_v15 = vpop.permute.xlu0 %90 }
  0x8d   :  { %163 = vst [vmem:[%s245_s1 + $0x28] sm:$0xff] %v97_v14  ;;  %161 = vst [vmem:[%s245_s1 + $0x20] sm:$0xff] %v91_v15 }
  0x90   :  { %v109_v16 = vpop.permute.xlu1 %108  ;;  %v103_v17 = vpop.permute.xlu0 %102 }
  0x91   :  { %167 = vst [vmem:[%s245_s1 + $0x38] sm:$0xff] %v109_v16  ;;  %165 = vst [vmem:[%s245_s1 + $0x30] sm:$0xff] %v103_v17 }

// kernel: mhs4_forward.6
= control target key start
LH: loop header
LB: loop body
LE: loop exit
PB: predicated region body
PF: predicated region fallthrough
CT: control target
= control target key end

     0   :  { %vm29_vm0 = vcmask 261120   ;;  %s241_s1 = inlined_call_operand.vmem [shape: f32[32,32], index: 1, kind: input, shape index: {}]   ;;  %s242_s0 = inlined_call_operand.vmem [shape: f32[32,32], index: 0, kind: input, shape index: {}]   ;;  %s243_s2 = inlined_call_operand.vmem [shape: f32[1,32], index: 2, kind: input, shape index: {}]   ;;  %s244_s3 = inlined_call_operand.vmem [shape: f32[32,32], index: 3, kind: output, shape index: {}]  }
   0x1   :  { %v18_v0 = vld [vmem:[%s241_s1] sm:$0xff]  ;;  %v19_v1 = vld [vmem:[%s241_s1 + $0x8] sm:$0xff]  ;;  %v20_v2 = vld [vmem:[%s241_s1 + $0x10] sm:$0xff] }
   0x2   :  { %v162_v3 = vpack.c.bf16 %v19_v1, %v18_v0  ;;  %v21_v4 = vld [vmem:[%s241_s1 + $0x18] sm:$0xff]  ;;  %v14_v5 = vld [vmem:[%s242_s0] sm:$0xff]  ;;  %v16_v6 = vld [vmem:[%s242_s0 + $0x10] sm:$0xff] }
   0x3   :  { %v166_v7 = vpack.c.bf16 %v21_v4, %v20_v2  ;;  %156 = vmatprep.mubr.msk.f32.mxu0 %vm29_vm0, %v14_v5  ;;  %159 = vmatprep.mubr.msk.f32.mxu1 %vm29_vm0, %v16_v6  ;;  %v15_v8 = vld [vmem:[%s242_s0 + $0x8] sm:$0xff]  ;;  %v17_v9 = vld [vmem:[%s242_s0 + $0x18] sm:$0xff]  ;;  %v135_v10 = vld [vmem:[%s243_s2] ss:$0 sm:$0xff] }
   0x4   :  { %163 = vmatprep.subr.bf16.mxu0 %v162_v3  ;;  %170 = vmatprep.subr.bf16.mxu1 %v162_v3 }
   0x5   :  { %165 = vmatpush3.bf16.msra.mxu0 %v162_v3  ;;  %172 = vmatpush3.bf16.msra.mxu1 %v162_v3 }
   0x6   :  { %167 = vmatprep.subr.bf16.mxu0 %v166_v7  ;;  %171 = vmatprep.subr.bf16.mxu1 %v166_v7 }
   0x9   :  { %169 = vmatpush3.bf16.msra.mxu0 %v166_v7  ;;  %173 = vmatpush3.bf16.msra.mxu1 %v166_v7 }
   0xc   :  { %157 = vmatmul.mubr.msk.f32.vlgmr.msra.gmra.mrb[0].mxu0 %vm29_vm0, %v15_v8  ;;  %160 = vmatmul.mubr.msk.f32.vlgmr.msra.gmra.mrb[0].mxu1 %vm29_vm0, %v17_v9 }
  0xdf   :  { %v158_v11 = vpop.f32.mrb[0].mxu0  ;;  %v161_v12 = vpop.f32.mrb[0].mxu1 }
  0xe0   :  { %v114_v13 = vadd.f32 %v158_v11, %v135_v10  ;;  %v124_v14 = vadd.f32 %v161_v12, %v135_v10  ;;  %v108_v15 = vpop.f32.mrb[1].mxu0  ;;  %v118_v16 = vpop.f32.mrb[1].mxu1 }
  0xe1   :  { %v109_v17 = vadd.f32 %v135_v10, %v108_v15  ;;  %v119_v18 = vadd.f32 %v135_v10, %v118_v16 }
  0xe2   :  { %128 = vst.msk [vmem:[%s244_s3 + $0x8] sm:$0xff] %vm29_vm0, %v114_v13  ;;  %130 = vst.msk [vmem:[%s244_s3 + $0x18] sm:$0xff] %vm29_vm0, %v124_v14 }
  0xe3   :  { %127 = vst.msk [vmem:[%s244_s3] sm:$0xff] %vm29_vm0, %v109_v17  ;;  %129 = vst.msk [vmem:[%s244_s3 + $0x10] sm:$0xff] %vm29_vm0, %v119_v18 }

// kernel: reverse.3
= control target key start
LH: loop header
LB: loop body
LE: loop exit
PB: predicated region body
PF: predicated region fallthrough
CT: control target
= control target key end

     0   :  { %s188_s0 = inlined_call_operand.vmem [shape: f32[2,64,15], index: 0, kind: input, shape index: {}]   ;;  %s189_s1 = inlined_call_operand.vmem [shape: f32[2,64,15], index: 1, kind: output, shape index: {}]  }
   0x1   :  { %v60_v0 = vld [vmem:[%s188_s0 + $0x1c] sm:$0x3]  ;;  %v61_v1 = vld [vmem:[%s188_s0 + $0x1a] sm:$0x3]  ;;  %v63_v2 = vld [vmem:[%s188_s0 + $0x18] sm:$0x3] }
   0x2   :  { %4 = vst [vmem:[%s189_s1] sm:$0x3] %v60_v0  ;;  %62 = vst [vmem:[%s189_s1 + $0x2] sm:$0x3] %v61_v1  ;;  %v65_v3 = vld [vmem:[%s188_s0 + $0x16] sm:$0x3] }
   0x3   :  { %64 = vst [vmem:[%s189_s1 + $0x4] sm:$0x3] %v63_v2  ;;  %v67_v4 = vld [vmem:[%s188_s0 + $0x14] sm:$0x3]  ;;  %v69_v5 = vld [vmem:[%s188_s0 + $0x12] sm:$0x3] }
   0x4   :  { %66 = vst [vmem:[%s189_s1 + $0x6] sm:$0x3] %v65_v3  ;;  %68 = vst [vmem:[%s189_s1 + $0x8] sm:$0x3] %v67_v4  ;;  %v71_v6 = vld [vmem:[%s188_s0 + $0x10] sm:$0x3] }
   0x5   :  { %70 = vst [vmem:[%s189_s1 + $0xa] sm:$0x3] %v69_v5  ;;  %v73_v7 = vld [vmem:[%s188_s0 + $0xe] sm:$0x3]  ;;  %v75_v8 = vld [vmem:[%s188_s0 + $0xc] sm:$0x3] }
   0x6   :  { %72 = vst [vmem:[%s189_s1 + $0xc] sm:$0x3] %v71_v6  ;;  %74 = vst [vmem:[%s189_s1 + $0xe] sm:$0x3] %v73_v7  ;;  %v77_v9 = vld [vmem:[%s188_s0 + $0xa] sm:$0x3] }
   0x7   :  { %76 = vst [vmem:[%s189_s1 + $0x10] sm:$0x3] %v75_v8  ;;  %v79_v10 = vld [vmem:[%s188_s0 + $0x8] sm:$0x3]  ;;  %v81_v11 = vld [vmem:[%s188_s0 + $0x6] sm:$0x3] }
   0x8   :  { %78 = vst [vmem:[%s189_s1 + $0x12] sm:$0x3] %v77_v9  ;;  %80 = vst [vmem:[%s189_s1 + $0x14] sm:$0x3] %v79_v10  ;;  %v83_v12 = vld [vmem:[%s188_s0 + $0x4] sm:$0x3] }
   0x9   :  { %82 = vst [vmem:[%s189_s1 + $0x16] sm:$0x3] %v81_v11  ;;  %v85_v13 = vld [vmem:[%s188_s0 + $0x2] sm:$0x3]  ;;  %v57_v14 = vld [vmem:[%s188_s0] sm:$0x3] }
   0xa   :  { %84 = vst [vmem:[%s189_s1 + $0x18] sm:$0x3] %v83_v12  ;;  %86 = vst [vmem:[%s189_s1 + $0x1a] sm:$0x3] %v85_v13 }
   0xb   :  { %87 = vst [vmem:[%s189_s1 + $0x1c] sm:$0x3] %v57_v14 }

// kernel: mhs4_forward.7
= control target key start
LH: loop header
LB: loop body
LE: loop exit
PB: predicated region body
PF: predicated region fallthrough
CT: control target
= control target key end

     0   :  { %s642_s22 = smov 32   ;;  %vm155_vm0 = vcmask 261120   ;;  %vm513_vm1 = vcmask 517120   ;;  %s1247_s2 = inlined_call_operand.vmem [shape: f32[17,2,32], index: 2, kind: input, shape index: {}]   ;;  %s1248_s3 = inlined_call_operand.vmem [shape: f32[17,2,32], index: 3, kind: input, shape index: {}]   ;;  %s1249_s0 = inlined_call_operand.vmem [shape: f32[17,1,64], index: 0, kind: input, shape index: {}]   ;;  %s1250_s1 = inlined_call_operand.vmem [shape: f32[17,1,64], index: 1, kind: input, shape index: {}]   ;;  %s1251_s4 = inlined_call_operand.vmem [shape: f32[17,2,64], index: 4, kind: output, shape index: {0}]   ;;  %s1252_s5 = inlined_call_operand.vmem [shape: f32[17,2,64], index: 5, kind: output, shape index: {1}]  }
   0x1   :  { %v676_v0 = vld [vmem:[%s1247_s2 + $0x4] sm:$0x3]  ;;  %v681_v1 = vld [vmem:[%s1247_s2] sm:$0x3]  ;;  %v690_v2 = vld [vmem:[%s1247_s2 + $0x6] sm:$0x3] }
   0x2   :  { %108 = vrot.lane.b32.xlu1 %v676_v0, %s642_s22  ;;  %104 = vrot.lane.b32.xlu0 %v681_v1, %s642_s22  ;;  %v695_v3 = vld [vmem:[%s1247_s2 + $0x2] sm:$0x3]  ;;  %v704_v4 = vld [vmem:[%s1247_s2 + $0xa] sm:$0x3] }
   0x3   :  { %v709_v5 = vld [vmem:[%s1247_s2 + $0x8] sm:$0x3]  ;;  %v718_v6 = vld [vmem:[%s1247_s2 + $0xe] sm:$0x3]  ;;  %v723_v7 = vld [vmem:[%s1247_s2 + $0xc] sm:$0x3] }
   0x4   :  { %v732_v8 = vld [vmem:[%s1247_s2 + $0x12] sm:$0x3]  ;;  %v737_v9 = vld [vmem:[%s1247_s2 + $0x10] sm:$0x3]  ;;  %v746_v10 = vld [vmem:[%s1247_s2 + $0x16] sm:$0x3] }
   0x5   :  { %v751_v11 = vld [vmem:[%s1247_s2 + $0x14] sm:$0x3]  ;;  %v760_v12 = vld [vmem:[%s1247_s2 + $0x1a] sm:$0x3]  ;;  %v765_v13 = vld [vmem:[%s1247_s2 + $0x18] sm:$0x3] }
   0x6   :  { %110 = vrot.lane.b32.xlu1 %v690_v2, %s642_s22  ;;  %106 = vrot.lane.b32.xlu0 %v695_v3, %s642_s22  ;;  %v774_v14 = vld [vmem:[%s1247_s2 + $0x1e] sm:$0x3]  ;;  %v779_v15 = vld [vmem:[%s1247_s2 + $0x1c] sm:$0x3] }
   0x7   :  { %v788_v16 = vld [vmem:[%s1248_s3] sm:$0x3]  ;;  %v802_v18 = vld [vmem:[%s1248_s3 + $0x4] sm:$0x3]  ;;  %v807_v19 = vld [vmem:[%s1248_s3 + $0x2] sm:$0x3] }
   0x8   :  { %v793_v17 = vld [vmem:[%s1247_s2 + $0x20] sm:$0x3]  ;;  %v816_v20 = vld [vmem:[%s1248_s3 + $0x8] sm:$0x3]  ;;  %v821_v21 = vld [vmem:[%s1248_s3 + $0x6] sm:$0x3] }
   0x9   :  { %v830_v22 = vld [vmem:[%s1248_s3 + $0xc] sm:$0x3]  ;;  %v835_v23 = vld [vmem:[%s1248_s3 + $0xa] sm:$0x3]  ;;  %v844_v24 = vld [vmem:[%s1248_s3 + $0x10] sm:$0x3] }
   0xa   :  { %114 = vrot.lane.b32.xlu1 %v704_v4, %s642_s22  ;;  %112 = vrot.lane.b32.xlu0 %v709_v5, %s642_s22  ;;  %v849_v25 = vld [vmem:[%s1248_s3 + $0xe] sm:$0x3]  ;;  %v858_v26 = vld [vmem:[%s1248_s3 + $0x14] sm:$0x3] }
   0xb   :  { %v863_v27 = vld [vmem:[%s1248_s3 + $0x12] sm:$0x3]  ;;  %v872_v28 = vld [vmem:[%s1248_s3 + $0x18] sm:$0x3]  ;;  %v877_v29 = vld [vmem:[%s1248_s3 + $0x16] sm:$0x3] }
   0xc   :  { %v886_v30 = vld [vmem:[%s1248_s3 + $0x1c] sm:$0x3]  ;;  %v891_v31 = vld [vmem:[%s1248_s3 + $0x1a] sm:$0x3]  ;;  %v900_v32 = vld [vmem:[%s1248_s3 + $0x20] sm:$0x3] }
   0xd   :  { %1257 = vst [vmem:[#allocation2_spill] sm:$0xff] %v886_v30  ;;  %1258 = vst [vmem:[#allocation3_spill] sm:$0xff] %v891_v31  ;;  %v905_v33 = vld [vmem:[%s1248_s3 + $0x1e] sm:$0x3]  ;;  %v607_v50 = vld [vmem:[%s1249_s0] ss:$0 sm:$0xff] }
   0xe   :  { %118 = vrot.lane.b32.xlu1 %v718_v6, %s642_s22  ;;  %116 = vrot.lane.b32.xlu0 %v723_v7, %s642_s22  ;;  %1259 = vst [vmem:[#allocation4_spill] sm:$0xff] %v900_v32  ;;  %1260 = vst [vmem:[#allocation5_spill] sm:$0xff] %v905_v33  ;;  %v624_v51 = vld [vmem:[%s1250_s1] ss:$0 sm:$0xff]  ;;  %v609_v53 = vld [vmem:[%s1249_s0 + $0x2] ss:$0 sm:$0xff] }
   0xf   :  { %v626_v54 = vld [vmem:[%s1250_s1 + $0x2] ss:$0 sm:$0xff]  ;;  %v608_v58 = vld [vmem:[%s1249_s0 + $0x1] ss:$0 sm:$0xff] }
  0x10   :  { %v625_v63 = vld [vmem:[%s1250_s1 + $0x1] ss:$0 sm:$0xff] }
  0x12   :  { %122 = vrot.lane.b32.xlu1 %v732_v8, %s642_s22  ;;  %120 = vrot.lane.b32.xlu0 %v737_v9, %s642_s22 }
  0x16   :  { %126 = vrot.lane.b32.xlu1 %v746_v10, %s642_s22  ;;  %124 = vrot.lane.b32.xlu0 %v751_v11, %s642_s22 }
  0x1a   :  { %130 = vrot.lane.b32.xlu1 %v760_v12, %s642_s22  ;;  %128 = vrot.lane.b32.xlu0 %v765_v13, %s642_s22 }
  0x1e   :  { %134 = vrot.lane.b32.xlu1 %v774_v14, %s642_s22  ;;  %132 = vrot.lane.b32.xlu0 %v779_v15, %s642_s22 }
  0x22   :  { %190 = vrot.lane.b32.xlu1 %v788_v16, %s642_s22  ;;  %136 = vrot.lane.b32.xlu0 %v793_v17, %s642_s22 }
  0x26   :  { %194 = vrot.lane.b32.xlu1 %v802_v18, %s642_s22  ;;  %192 = vrot.lane.b32.xlu0 %v807_v19, %s642_s22 }
  0x2a   :  { %198 = vrot.lane.b32.xlu1 %v816_v20, %s642_s22  ;;  %196 = vrot.lane.b32.xlu0 %v821_v21, %s642_s22 }
  0x2e   :  { %202 = vrot.lane.b32.xlu1 %v830_v22, %s642_s22  ;;  %200 = vrot.lane.b32.xlu0 %v835_v23, %s642_s22 }
  0x32   :  { %206 = vrot.lane.b32.xlu1 %v844_v24, %s642_s22  ;;  %204 = vrot.lane.b32.xlu0 %v849_v25, %s642_s22 }
  0x36   :  { %210 = vrot.lane.b32.xlu1 %v858_v26, %s642_s22  ;;  %208 = vrot.lane.b32.xlu0 %v863_v27, %s642_s22 }
  0x3a   :  { %214 = vrot.lane.b32.xlu1 %v872_v28, %s642_s22  ;;  %212 = vrot.lane.b32.xlu0 %v877_v29, %s642_s22 }
  0x3e   :  { %218 = vrot.lane.b32.xlu1 %v886_v30, %s642_s22  ;;  %216 = vrot.lane.b32.xlu0 %v891_v31, %s642_s22  ;;  %v611_v30 = vld [vmem:[%s1249_s0 + $0x4] ss:$0 sm:$0xff] }
  0x42   :  { %222 = vrot.lane.b32.xlu1 %v900_v32, %s642_s22  ;;  %220 = vrot.lane.b32.xlu0 %v905_v33, %s642_s22  ;;  %v610_v33 = vld [vmem:[%s1249_s0 + $0x3] ss:$0 sm:$0xff] }
  0x74   :  { %v109_v34 = vpop.permute.xlu1 %108  ;;  %v105_v35 = vpop.permute.xlu0 %104 }
  0x75   :  { %v156_v52 = vsel %vm155_vm0, %v681_v1, %v105_v35  ;;  %v158_v55 = vsel %vm155_vm0, %v676_v0, %v109_v34 }
  0x76   :  { %v360_v61 = vmul.f32 %v607_v50, %v156_v52  ;;  %v548_v62 = vmul.f32 %v624_v51, %v156_v52  ;;  %v362_v34 = vmul.f32 %v609_v53, %v158_v55  ;;  %v550_v35 = vmul.f32 %v626_v54, %v158_v55 }
  0x78   :  { %v111_v36 = vpop.permute.xlu1 %110  ;;  %v107_v37 = vpop.permute.xlu0 %106 }
  0x79   :  { %v157_v59 = vsel %vm155_vm0, %v695_v3, %v107_v37  ;;  %v627_v3 = vld [vmem:[%s1250_s1 + $0x3] ss:$0 sm:$0xff] }
  0x7a   :  { %v361_v37 = vmul.f32 %v608_v58, %v157_v59 }
  0x7c   :  { %v115_v38 = vpop.permute.xlu1 %114  ;;  %v113_v39 = vpop.permute.xlu0 %112 }
  0x7d   :  { %v160_v55 = vsel %vm155_vm0, %v709_v5, %v113_v39 }
  0x80   :  { %v911_v40 = vpop.permute.xlu1 %118  ;;  %v117_v41 = vpop.permute.xlu0 %116 }
  0x84   :  { %v913_v42 = vpop.permute.xlu1 %122  ;;  %v915_v43 = vpop.permute.xlu0 %120 }
  0x88   :  { %v917_v44 = vpop.permute.xlu1 %126  ;;  %v919_v45 = vpop.permute.xlu0 %124 }
  0x8c   :  { %v921_v46 = vpop.permute.xlu1 %130  ;;  %v923_v47 = vpop.permute.xlu0 %128 }
  0x90   :  { %v925_v48 = vpop.permute.xlu1 %134  ;;  %v927_v49 = vpop.permute.xlu0 %132 }
  0x94   :  { %v191_v56 = vpop.permute.xlu1 %190  ;;  %v945_v57 = vpop.permute.xlu0 %136 }
  0x95   :  { %v241_v60 = vsel %vm155_vm0, %v788_v16, %v191_v56  ;;  %v159_v16 = vsel %vm155_vm0, %v690_v2, %v111_v36  ;;  %v628_v2 = vld [vmem:[%s1250_s1 + $0x4] ss:$0 sm:$0xff] }
  0x96   :  { %v479_v0 = vmul.f32 %v624_v51, %v241_v60  ;;  %v531_v1 = vmul.f32 %v607_v50, %v241_v60  ;;  %v549_v50 = vmul.f32 %v625_v63, %v157_v59  ;;  %v363_v36 = vmul.f32 %v610_v33, %v159_v16 }
  0x97   :  { %v551_v39 = vmul.f32 %v627_v3, %v159_v16  ;;  %v161_v59 = vsel %vm155_vm0, %v704_v4, %v115_v38 }
  0x98   :  { %v496_v52 = vsub.f32 %v360_v61, %v479_v0  ;;  %v565_v56 = vadd.f32 %v548_v62, %v531_v1  ;;  %v195_v32 = vpop.permute.xlu1 %194  ;;  %v193_v51 = vpop.permute.xlu0 %192  ;;  %v162_v61 = vsel %vm155_vm0, %v723_v7, %v117_v41  ;;  %v612_v62 = vld [vmem:[%s1249_s0 + $0x5] ss:$0 sm:$0xff]  ;;  %v364_v1 = vmul.f32 %v611_v30, %v160_v55 }
  0x99   :  { %v243_v60 = vsel %vm155_vm0, %v802_v18, %v195_v32  ;;  %v242_v31 = vsel %vm155_vm0, %v807_v19, %v193_v51  ;;  %v629_v0 = vld [vmem:[%s1250_s1 + $0x5] ss:$0 sm:$0xff]  ;;  %v552_v7 = vmul.f32 %v628_v2, %v160_v55  ;;  %v163_v51 = vsel %vm155_vm0, %v718_v6, %v911_v40  ;;  %v614_v55 = vld [vmem:[%s1249_s0 + $0x7] ss:$0 sm:$0xff] }
  0x9a   :  { %514 = vst.msk [vmem:[%s1251_s4] sm:$0x3] %vm513_vm1, %v496_v52  ;;  %582 = vst.msk [vmem:[%s1252_s5] sm:$0x3] %vm513_vm1, %v565_v56  ;;  %v481_v5 = vmul.f32 %v626_v54, %v243_v60  ;;  %v533_v18 = vmul.f32 %v609_v53, %v243_v60  ;;  %v480_v19 = vmul.f32 %v625_v63, %v242_v31  ;;  %v630_v52 = vld [vmem:[%s1250_s1 + $0x6] ss:$0 sm:$0xff] }
  0x9b   :  { %v532_v32 = vmul.f32 %v608_v58, %v242_v31  ;;  %v613_v31 = vld [vmem:[%s1249_s0 + $0x6] ss:$0 sm:$0xff]  ;;  %v553_v56 = vmul.f32 %v629_v0, %v161_v59  ;;  %v631_v60 = vld [vmem:[%s1250_s1 + $0x7] ss:$0 sm:$0xff]  ;;  %v164_v6 = vsel %vm155_vm0, %v737_v9, %v915_v43 }
  0x9c   :  { %v498_v53 = vsub.f32 %v362_v34, %v481_v5  ;;  %v567_v54 = vadd.f32 %v550_v35, %v533_v18  ;;  %v497_v58 = vsub.f32 %v361_v37, %v480_v19  ;;  %v199_v4 = vpop.permute.xlu1 %198  ;;  %v197_v38 = vpop.permute.xlu0 %196  ;;  %v365_v37 = vmul.f32 %v612_v62, %v161_v59  ;;  %v615_v59 = vld [vmem:[%s1249_s0 + $0x8] ss:$0 sm:$0xff] }
  0x9d   :  { %v566_v63 = vadd.f32 %v549_v50, %v532_v32  ;;  %v245_v41 = vsel %vm155_vm0, %v816_v20, %v199_v4  ;;  %v244_v16 = vsel %vm155_vm0, %v821_v21, %v197_v38  ;;  %v366_v50 = vmul.f32 %v613_v31, %v162_v61 }
  0x9e   :  { %516 = vst.msk [vmem:[%s1251_s4 + $0x4] sm:$0x3] %vm513_vm1, %v498_v53  ;;  %584 = vst.msk [vmem:[%s1252_s5 + $0x4] sm:$0x3] %vm513_vm1, %v567_v54  ;;  %v483_v20 = vmul.f32 %v628_v2, %v245_v41  ;;  %v535_v21 = vmul.f32 %v611_v30, %v245_v41  ;;  %v482_v34 = vmul.f32 %v627_v3, %v244_v16  ;;  %v634_v41 = vld [vmem:[%s1250_s1 + $0xa] ss:$0 sm:$0xff] }
  0x9f   :  { %515 = vst.msk [vmem:[%s1251_s4 + $0x2] sm:$0x3] %vm513_vm1, %v497_v58  ;;  %583 = vst.msk [vmem:[%s1252_s5 + $0x2] sm:$0x3] %vm513_vm1, %v566_v63  ;;  %v534_v35 = vmul.f32 %v610_v33, %v244_v16  ;;  %v554_v19 = vmul.f32 %v630_v52, %v162_v61  ;;  %v555_v61 = vmul.f32 %v631_v60, %v163_v51  ;;  %v616_v58 = vld [vmem:[%s1249_s0 + $0x9] ss:$0 sm:$0xff] }
  0xa0   :  { %v500_v5 = vsub.f32 %v364_v1, %v483_v20  ;;  %v569_v2 = vadd.f32 %v552_v7, %v535_v21  ;;  %v499_v30 = vsub.f32 %v363_v36, %v482_v34  ;;  %v203_v33 = vpop.permute.xlu1 %202  ;;  %v201_v18 = vpop.permute.xlu0 %200  ;;  %v632_v36 = vld [vmem:[%s1250_s1 + $0x8] ss:$0 sm:$0xff]  ;;  %v165_v53 = vsel %vm155_vm0, %v732_v8, %v913_v42 }
  0xa1   :  { %v568_v3 = vadd.f32 %v551_v39, %v534_v35  ;;  %v247_v40 = vsel %vm155_vm0, %v830_v22, %v203_v33  ;;  %v246_v32 = vsel %vm155_vm0, %v835_v23, %v201_v18  ;;  %v367_v39 = vmul.f32 %v614_v55, %v163_v51  ;;  %v619_v33 = vld [vmem:[%s1249_s0 + $0xc] ss:$0 sm:$0xff] }
  0xa2   :  { %518 = vst.msk [vmem:[%s1251_s4 + $0x8] sm:$0x3] %vm513_vm1, %v500_v5  ;;  %586 = vst.msk [vmem:[%s1252_s5 + $0x8] sm:$0x3] %vm513_vm1, %v569_v2  ;;  %v485_v9 = vmul.f32 %v630_v52, %v247_v40  ;;  %v537_v22 = vmul.f32 %v613_v31, %v247_v40  ;;  %v484_v23 = vmul.f32 %v629_v0, %v246_v32  ;;  %v633_v31 = vld [vmem:[%s1250_s1 + $0x9] ss:$0 sm:$0xff] }
  0xa3   :  { %517 = vst.msk [vmem:[%s1251_s4 + $0x6] sm:$0x3] %vm513_vm1, %v499_v30  ;;  %585 = vst.msk [vmem:[%s1252_s5 + $0x6] sm:$0x3] %vm513_vm1, %v568_v3  ;;  %v536_v43 = vmul.f32 %v612_v62, %v246_v32  ;;  %v166_v54 = vsel %vm155_vm0, %v751_v11, %v919_v45  ;;  %v617_v62 = vld [vmem:[%s1249_s0 + $0xa] ss:$0 sm:$0xff]  ;;  %v368_v1 = vmul.f32 %v615_v59, %v164_v6 }
  0xa4   :  { %v502_v0 = vsub.f32 %v366_v50, %v485_v9  ;;  %v571_v63 = vadd.f32 %v554_v19, %v537_v22  ;;  %v501_v4 = vsub.f32 %v365_v37, %v484_v23  ;;  %v207_v42 = vpop.permute.xlu1 %206  ;;  %v205_v38 = vpop.permute.xlu0 %204  ;;  %v556_v11 = vmul.f32 %v632_v36, %v164_v6  ;;  %v618_v37 = vld [vmem:[%s1249_s0 + $0xb] ss:$0 sm:$0xff]  ;;  %v636_v18 = vld [vmem:[%s1250_s1 + $0xc] ss:$0 sm:$0xff]  ;;  %v621_v9 = vld [vmem:[%s1249_s0 + $0xe] ss:$0 sm:$0xff] }
  0xa5   :  { %v570_v8 = vadd.f32 %v553_v56, %v536_v43  ;;  %v249_v45 = vsel %vm155_vm0, %v844_v24, %v207_v42  ;;  %v248_v7 = vsel %vm155_vm0, %v849_v25, %v205_v38  ;;  %v369_v20 = vmul.f32 %v616_v58, %v165_v53  ;;  %v635_v56 = vld [vmem:[%s1250_s1 + $0xb] ss:$0 sm:$0xff]  ;;  %v639_v42 = vld [vmem:[%s1250_s1 + $0xf] ss:$0 sm:$0xff] }
  0xa6   :  { %520 = vst.msk [vmem:[%s1251_s4 + $0xc] sm:$0x3] %vm513_vm1, %v502_v0  ;;  %588 = vst.msk [vmem:[%s1252_s5 + $0xc] sm:$0x3] %vm513_vm1, %v571_v63  ;;  %v487_v24 = vmul.f32 %v632_v36, %v249_v45  ;;  %v539_v25 = vmul.f32 %v615_v59, %v249_v45  ;;  %v486_v16 = vmul.f32 %v631_v60, %v248_v7  ;;  %v620_v59 = vld [vmem:[%s1249_s0 + $0xd] ss:$0 sm:$0xff] }
  0xa7   :  { %519 = vst.msk [vmem:[%s1251_s4 + $0xa] sm:$0x3] %vm513_vm1, %v501_v4  ;;  %587 = vst.msk [vmem:[%s1252_s5 + $0xa] sm:$0x3] %vm513_vm1, %v570_v8  ;;  %v538_v52 = vmul.f32 %v614_v55, %v248_v7  ;;  %v557_v21 = vmul.f32 %v633_v31, %v165_v53  ;;  %v167_v34 = vsel %vm155_vm0, %v746_v10, %v917_v44  ;;  %v637_v36 = vld [vmem:[%s1250_s1 + $0xd] ss:$0 sm:$0xff] }
  0xa8   :  { %v370_v35 = vmul.f32 %v617_v62, %v166_v54  ;;  %v504_v51 = vsub.f32 %v368_v1, %v487_v24  ;;  %v573_v50 = vadd.f32 %v556_v11, %v539_v25  ;;  %v503_v5 = vsub.f32 %v367_v39, %v486_v16  ;;  %v211_v55 = vpop.permute.xlu1 %210  ;;  %v209_v2 = vpop.permute.xlu0 %208  ;;  %v622_v8 = vld [vmem:[%s1249_s0 + $0xf] ss:$0 sm:$0xff] }
  0xa9   :  { %v572_v60 = vadd.f32 %v555_v61, %v538_v52  ;;  %v558_v30 = vmul.f32 %v634_v41, %v166_v54  ;;  %v168_v10 = vsel %vm155_vm0, %v765_v13, %v923_v47  ;;  %v251_v44 = vsel %vm155_vm0, %v858_v26, %v211_v55  ;;  %v638_v54 = vld [vmem:[%s1250_s1 + $0xe] ss:$0 sm:$0xff] }
  0xaa   :  { %v250_v3 = vsel %vm155_vm0, %v863_v27, %v209_v2  ;;  %522 = vst.msk [vmem:[%s1251_s4 + $0x10] sm:$0x3] %vm513_vm1, %v504_v51  ;;  %590 = vst.msk [vmem:[%s1252_s5 + $0x10] sm:$0x3] %vm513_vm1, %v573_v50  ;;  %v489_v13 = vmul.f32 %v634_v41, %v251_v44  ;;  %v541_v26 = vmul.f32 %v617_v62, %v251_v44  ;;  %v1262_v16 = vld [vmem:[#allocation3_spill] sm:$0xff]  ;;  %v1263_v44 = vld [vmem:[#allocation4_spill] sm:$0xff] }
  0xab   :  { %521 = vst.msk [vmem:[%s1251_s4 + $0xe] sm:$0x3] %vm513_vm1, %v503_v5  ;;  %589 = vst.msk [vmem:[%s1252_s5 + $0xe] sm:$0x3] %vm513_vm1, %v572_v60  ;;  %v488_v27 = vmul.f32 %v633_v31, %v250_v3  ;;  %v540_v47 = vmul.f32 %v616_v58, %v250_v3  ;;  %v371_v19 = vmul.f32 %v618_v37, %v167_v34 }
  0xac   :  { %v559_v6 = vmul.f32 %v635_v56, %v167_v34  ;;  %v169_v40 = vsel %vm155_vm0, %v760_v12, %v921_v46  ;;  %v170_v32 = vsel %vm155_vm0, %v779_v15, %v927_v49  ;;  %v506_v22 = vsub.f32 %v370_v35, %v489_v13  ;;  %v215_v46 = vpop.permute.xlu1 %214  ;;  %v213_v39 = vpop.permute.xlu0 %212 }
  0xad   :  { %v575_v23 = vadd.f32 %v558_v30, %v541_v26  ;;  %v505_v43 = vsub.f32 %v369_v20, %v488_v27  ;;  %v574_v12 = vadd.f32 %v557_v21, %v540_v47  ;;  %v372_v61 = vmul.f32 %v619_v33, %v168_v10  ;;  %v623_v20 = vld [vmem:[%s1249_s0 + $0x10] ss:$0 sm:$0xff] }
  0xae   :  { %v560_v15 = vmul.f32 %v636_v18, %v168_v10  ;;  %v253_v49 = vsel %vm155_vm0, %v872_v28, %v215_v46  ;;  %v252_v53 = vsel %vm155_vm0, %v877_v29, %v213_v39  ;;  %524 = vst.msk [vmem:[%s1251_s4 + $0x14] sm:$0x3] %vm513_vm1, %v506_v22  ;;  %v373_v62 = vmul.f32 %v620_v59, %v169_v40  ;;  %v640_v21 = vld [vmem:[%s1250_s1 + $0x10] ss:$0 sm:$0xff] }
  0xaf   :  { %592 = vst.msk [vmem:[%s1252_s5 + $0x14] sm:$0x3] %vm513_vm1, %v575_v23  ;;  %523 = vst.msk [vmem:[%s1251_s4 + $0x12] sm:$0x3] %vm513_vm1, %v505_v43  ;;  %v491_v28 = vmul.f32 %v636_v18, %v253_v49  ;;  %v543_v29 = vmul.f32 %v619_v33, %v253_v49  ;;  %v490_v58 = vmul.f32 %v635_v56, %v252_v53  ;;  %v1264_v33 = vld [vmem:[#allocation5_spill] sm:$0xff] }
  0xb0   :  { %591 = vst.msk [vmem:[%s1252_s5 + $0x12] sm:$0x3] %vm513_vm1, %v574_v12  ;;  %v542_v31 = vmul.f32 %v618_v37, %v252_v53  ;;  %v561_v0 = vmul.f32 %v637_v36, %v169_v40  ;;  %v171_v63 = vsel %vm155_vm0, %v774_v14, %v925_v48  ;;  %v374_v4 = vmul.f32 %v621_v9, %v170_v32  ;;  %v219_v7 = vpop.permute.xlu1 %218  ;;  %v217_v41 = vpop.permute.xlu0 %216  ;;  %v1261_v48 = vld [vmem:[#allocation2_spill] sm:$0xff] }
  0xb1   :  { %v508_v38 = vsub.f32 %v372_v61, %v491_v28  ;;  %v577_v1 = vadd.f32 %v560_v15, %v543_v29  ;;  %v507_v11 = vsub.f32 %v371_v19, %v490_v58  ;;  %v562_v24 = vmul.f32 %v638_v54, %v170_v32 }
  0xb2   :  { %v576_v45 = vadd.f32 %v559_v6, %v542_v31  ;;  %v172_v14 = vsel %vm155_vm0, %v793_v17, %v945_v57  ;;  %v255_v25 = vsel %vm155_vm0, %v1261_v48, %v219_v7  ;;  %v254_v52 = vsel %vm155_vm0, %v1262_v16, %v217_v41 }
  0xb3   :  { %526 = vst.msk [vmem:[%s1251_s4 + $0x18] sm:$0x3] %vm513_vm1, %v508_v38  ;;  %594 = vst.msk [vmem:[%s1252_s5 + $0x18] sm:$0x3] %vm513_vm1, %v577_v1  ;;  %v493_v17 = vmul.f32 %v638_v54, %v255_v25  ;;  %v545_v57 = vmul.f32 %v621_v9, %v255_v25  ;;  %v492_v34 = vmul.f32 %v637_v36, %v254_v52 }
  0xb4   :  { %525 = vst.msk [vmem:[%s1251_s4 + $0x16] sm:$0x3] %vm513_vm1, %v507_v11  ;;  %593 = vst.msk [vmem:[%s1252_s5 + $0x16] sm:$0x3] %vm513_vm1, %v576_v45  ;;  %v544_v35 = vmul.f32 %v620_v59, %v254_v52  ;;  %v375_v37 = vmul.f32 %v622_v8, %v171_v63  ;;  %v563_v56 = vmul.f32 %v639_v42, %v171_v63  ;;  %v223_v55 = vpop.permute.xlu1 %222  ;;  %v221_v2 = vpop.permute.xlu0 %220 }
  0xb5   :  { %v510_v51 = vsub.f32 %v374_v4, %v493_v17  ;;  %v579_v50 = vadd.f32 %v562_v24, %v545_v57  ;;  %v509_v5 = vsub.f32 %v373_v62, %v492_v34  ;;  %v376_v30 = vmul.f32 %v623_v20, %v172_v14 }
  0xb6   :  { %v578_v60 = vadd.f32 %v561_v0, %v544_v35  ;;  %v564_v10 = vmul.f32 %v640_v21, %v172_v14  ;;  %v257_v3 = vsel %vm155_vm0, %v1263_v44, %v223_v55  ;;  %v256_v18 = vsel %vm155_vm0, %v1264_v33, %v221_v2 }
  0xb7   :  { %528 = vst.msk [vmem:[%s1251_s4 + $0x1c] sm:$0x3] %vm513_vm1, %v510_v51  ;;  %596 = vst.msk [vmem:[%s1252_s5 + $0x1c] sm:$0x3] %vm513_vm1, %v579_v50  ;;  %v495_v13 = vmul.f32 %v640_v21, %v257_v3  ;;  %v547_v26 = vmul.f32 %v623_v20, %v257_v3  ;;  %v494_v27 = vmul.f32 %v639_v42, %v256_v18 }
  0xb8   :  { %527 = vst.msk [vmem:[%s1251_s4 + $0x1a] sm:$0x3] %vm513_vm1, %v509_v5  ;;  %595 = vst.msk [vmem:[%s1252_s5 + $0x1a] sm:$0x3] %vm513_vm1, %v578_v60  ;;  %v546_v47 = vmul.f32 %v622_v8, %v256_v18 }
  0xb9   :  { %v512_v19 = vsub.f32 %v376_v30, %v495_v13  ;;  %v581_v6 = vadd.f32 %v564_v10, %v547_v26  ;;  %v511_v40 = vsub.f32 %v375_v37, %v494_v27 }
  0xba   :  { %v580_v32 = vadd.f32 %v563_v56, %v546_v47 }
  0xbb   :  { %530 = vst.msk [vmem:[%s1251_s4 + $0x20] sm:$0x3] %vm513_vm1, %v512_v19  ;;  %598 = vst.msk [vmem:[%s1252_s5 + $0x20] sm:$0x3] %vm513_vm1, %v581_v6 }
  0xbc   :  { %529 = vst.msk [vmem:[%s1251_s4 + $0x1e] sm:$0x3] %vm513_vm1, %v511_v40  ;;  %597 = vst.msk [vmem:[%s1252_s5 + $0x1e] sm:$0x3] %vm513_vm1, %v580_v32 }

// kernel: mhs4_forward.8
= control target key start
LH: loop header
LB: loop body
LE: loop exit
PB: predicated region body
PF: predicated region fallthrough
CT: control target
= control target key end

     0   :  { %s189_s16 = smov 32   ;;  %vm94_vm0 = vcmask 261120   ;;  %vm166_vm1 = vcmask 517120   ;;  %s447_s1 = inlined_call_operand.vmem [shape: f32[16,2,32], index: 1, kind: input, shape index: {}]   ;;  %s448_s2 = inlined_call_operand.vmem [shape: f32[1,64], index: 2, kind: input, shape index: {}]   ;;  %s449_s0 = inlined_call_operand.vmem [shape: f32[16,2,64], index: 0, kind: input, shape index: {}, may-alias: {0,3}]   ;;  %s450_s3 = inlined_call_operand.vmem [shape: f32[16,2,64], index: 3, kind: output, shape index: {}, may-alias: {0,3}]  }
   0x1   :  { %v16_v0 = vld [vmem:[%s447_s1 + $0x4] sm:$0x3]  ;;  %v14_v1 = vld [vmem:[%s447_s1] sm:$0x3]  ;;  %v17_v2 = vld [vmem:[%s447_s1 + $0x6] sm:$0x3] }
   0x2   :  { %50 = vrot.lane.b32.xlu1 %v16_v0, %s189_s16  ;;  %46 = vrot.lane.b32.xlu0 %v14_v1, %s189_s16  ;;  %v15_v3 = vld [vmem:[%s447_s1 + $0x2] sm:$0x3]  ;;  %v19_v4 = vld [vmem:[%s447_s1 + $0xa] sm:$0x3] }
   0x3   :  { %v18_v5 = vld [vmem:[%s447_s1 + $0x8] sm:$0x3]  ;;  %v231_v6 = vld [vmem:[%s447_s1 + $0xe] sm:$0x3]  ;;  %v236_v7 = vld [vmem:[%s447_s1 + $0xc] sm:$0x3] }
   0x4   :  { %v243_v8 = vld [vmem:[%s447_s1 + $0x12] sm:$0x3]  ;;  %v248_v9 = vld [vmem:[%s447_s1 + $0x10] sm:$0x3]  ;;  %v255_v10 = vld [vmem:[%s447_s1 + $0x16] sm:$0x3] }
   0x5   :  { %v260_v11 = vld [vmem:[%s447_s1 + $0x14] sm:$0x3]  ;;  %v267_v12 = vld [vmem:[%s447_s1 + $0x1a] sm:$0x3]  ;;  %v272_v13 = vld [vmem:[%s447_s1 + $0x18] sm:$0x3] }
   0x6   :  { %52 = vrot.lane.b32.xlu1 %v17_v2, %s189_s16  ;;  %48 = vrot.lane.b32.xlu0 %v15_v3, %s189_s16  ;;  %v279_v14 = vld [vmem:[%s447_s1 + $0x1e] sm:$0x3]  ;;  %v284_v15 = vld [vmem:[%s447_s1 + $0x1c] sm:$0x3] }
   0x7   :  { %v291_v16 = vld [vmem:[%s448_s2] ss:$0 sm:$0xff]  ;;  %v114_v20 = vld [vmem:[%s449_s0 + $0x4] sm:$0x3]  ;;  %v115_v30 = vld [vmem:[%s449_s0 + $0x6] sm:$0x3] }
   0x8   :  { %v112_v22 = vld [vmem:[%s449_s0] sm:$0x3]  ;;  %v113_v32 = vld [vmem:[%s449_s0 + $0x2] sm:$0x3] }
   0xa   :  { %56 = vrot.lane.b32.xlu1 %v19_v4, %s189_s16  ;;  %54 = vrot.lane.b32.xlu0 %v18_v5, %s189_s16 }
   0xe   :  { %60 = vrot.lane.b32.xlu1 %v231_v6, %s189_s16  ;;  %58 = vrot.lane.b32.xlu0 %v236_v7, %s189_s16 }
  0x12   :  { %64 = vrot.lane.b32.xlu1 %v243_v8, %s189_s16  ;;  %62 = vrot.lane.b32.xlu0 %v248_v9, %s189_s16 }
  0x16   :  { %68 = vrot.lane.b32.xlu1 %v255_v10, %s189_s16  ;;  %66 = vrot.lane.b32.xlu0 %v260_v11, %s189_s16 }
  0x1a   :  { %72 = vrot.lane.b32.xlu1 %v267_v12, %s189_s16  ;;  %70 = vrot.lane.b32.xlu0 %v272_v13, %s189_s16 }
  0x1e   :  { %76 = vrot.lane.b32.xlu1 %v279_v14, %s189_s16  ;;  %74 = vrot.lane.b32.xlu0 %v284_v15, %s189_s16 }
  0x74   :  { %v51_v17 = vpop.permute.xlu1 %50  ;;  %v47_v18 = vpop.permute.xlu0 %46 }
  0x75   :  { %v97_v19 = vsel %vm94_vm0, %v16_v0, %v51_v17  ;;  %v95_v21 = vsel %vm94_vm0, %v14_v1, %v47_v18 }
  0x76   :  { %v136_v23 = vmul.f32 %v291_v16, %v97_v19  ;;  %v134_v24 = vmul.f32 %v291_v16, %v95_v21 }
  0x78   :  { %v152_v25 = vadd.f32 %v136_v23, %v114_v20  ;;  %v150_v26 = vadd.f32 %v134_v24, %v112_v22  ;;  %v53_v27 = vpop.permute.xlu1 %52  ;;  %v49_v28 = vpop.permute.xlu0 %48 }
  0x79   :  { %v98_v29 = vsel %vm94_vm0, %v17_v2, %v53_v27  ;;  %v96_v31 = vsel %vm94_vm0, %v15_v3, %v49_v28 }
  0x7a   :  { %169 = vst.msk [vmem:[%s450_s3 + $0x4] sm:$0x3] %vm166_vm1, %v152_v25  ;;  %167 = vst.msk [vmem:[%s450_s3] sm:$0x3] %vm166_vm1, %v150_v26  ;;  %v137_v33 = vmul.f32 %v291_v16, %v98_v29  ;;  %v135_v34 = vmul.f32 %v291_v16, %v96_v31 }
  0x7c   :  { %v153_v35 = vadd.f32 %v137_v33, %v115_v30  ;;  %v151_v36 = vadd.f32 %v135_v34, %v113_v32  ;;  %v57_v37 = vpop.permute.xlu1 %56  ;;  %v55_v38 = vpop.permute.xlu0 %54 }
  0x7d   :  { %v100_v39 = vsel %vm94_vm0, %v19_v4, %v57_v37  ;;  %v99_v41 = vsel %vm94_vm0, %v18_v5, %v55_v38 }
  0x7e   :  { %v139_v43 = vmul.f32 %v291_v16, %v100_v39  ;;  %v138_v44 = vmul.f32 %v291_v16, %v99_v41 }
  0x80   :  { %v61_v47 = vpop.permute.xlu1 %60  ;;  %v59_v48 = vpop.permute.xlu0 %58 }
  0x81   :  { %v117_v40 = vld [vmem:[%s449_s0 + $0xa] sm:$0x3]  ;;  %v116_v42 = vld [vmem:[%s449_s0 + $0x8] sm:$0x3]  ;;  %v102_v49 = vsel %vm94_vm0, %v231_v6, %v61_v47  ;;  %v101_v51 = vsel %vm94_vm0, %v236_v7, %v59_v48 }
  0x82   :  { %170 = vst.msk [vmem:[%s450_s3 + $0x6] sm:$0x3] %vm166_vm1, %v153_v35  ;;  %168 = vst.msk [vmem:[%s450_s3 + $0x2] sm:$0x3] %vm166_vm1, %v151_v36  ;;  %v155_v45 = vadd.f32 %v139_v43, %v117_v40  ;;  %v154_v46 = vadd.f32 %v138_v44, %v116_v42  ;;  %v141_v53 = vmul.f32 %v291_v16, %v102_v49 }
  0x83   :  { %v140_v54 = vmul.f32 %v291_v16, %v101_v51 }
  0x84   :  { %v65_v57 = vpop.permute.xlu1 %64  ;;  %v63_v58 = vpop.permute.xlu0 %62 }
  0x85   :  { %v104_v59 = vsel %vm94_vm0, %v243_v8, %v65_v57  ;;  %v103_v61 = vsel %vm94_vm0, %v248_v9, %v63_v58 }
  0x86   :  { %v143_v63 = vmul.f32 %v291_v16, %v104_v59  ;;  %v142_v0 = vmul.f32 %v291_v16, %v103_v61 }
  0x88   :  { %v69_v3 = vpop.permute.xlu1 %68  ;;  %v67_v4 = vpop.permute.xlu0 %66 }
  0x89   :  { %v119_v50 = vld [vmem:[%s449_s0 + $0xe] sm:$0x3]  ;;  %v118_v52 = vld [vmem:[%s449_s0 + $0xc] sm:$0x3]  ;;  %v106_v5 = vsel %vm94_vm0, %v255_v10, %v69_v3  ;;  %v105_v7 = vsel %vm94_vm0, %v260_v11, %v67_v4 }
  0x8a   :  { %172 = vst.msk [vmem:[%s450_s3 + $0xa] sm:$0x3] %vm166_vm1, %v155_v45  ;;  %171 = vst.msk [vmem:[%s450_s3 + $0x8] sm:$0x3] %vm166_vm1, %v154_v46  ;;  %v157_v55 = vadd.f32 %v141_v53, %v119_v50  ;;  %v156_v56 = vadd.f32 %v140_v54, %v118_v52  ;;  %v145_v9 = vmul.f32 %v291_v16, %v106_v5 }
  0x8b   :  { %v144_v10 = vmul.f32 %v291_v16, %v105_v7 }
  0x8c   :  { %v73_v18 = vpop.permute.xlu1 %72  ;;  %v71_v19 = vpop.permute.xlu0 %70 }
  0x8d   :  { %v108_v20 = vsel %vm94_vm0, %v267_v12, %v73_v18  ;;  %v107_v22 = vsel %vm94_vm0, %v272_v13, %v71_v19 }
  0x8e   :  { %v147_v12 = vmul.f32 %v291_v16, %v108_v20  ;;  %v146_v24 = vmul.f32 %v291_v16, %v107_v22 }
  0x90   :  { %v77_v26 = vpop.permute.xlu1 %76  ;;  %v75_v27 = vpop.permute.xlu0 %74 }
  0x91   :  { %v121_v60 = vld [vmem:[%s449_s0 + $0x12] sm:$0x3]  ;;  %v120_v62 = vld [vmem:[%s449_s0 + $0x10] sm:$0x3]  ;;  %v110_v28 = vsel %vm94_vm0, %v279_v14, %v77_v26  ;;  %v109_v30 = vsel %vm94_vm0, %v284_v15, %v75_v27 }
  0x92   :  { %174 = vst.msk [vmem:[%s450_s3 + $0xe] sm:$0x3] %vm166_vm1, %v157_v55  ;;  %173 = vst.msk [vmem:[%s450_s3 + $0xc] sm:$0x3] %vm166_vm1, %v156_v56  ;;  %v159_v1 = vadd.f32 %v143_v63, %v121_v60  ;;  %v158_v2 = vadd.f32 %v142_v0, %v120_v62  ;;  %v149_v14 = vmul.f32 %v291_v16, %v110_v28 }
  0x93   :  { %v148_v32 = vmul.f32 %v291_v16, %v109_v30 }
  0x99   :  { %v123_v6 = vld [vmem:[%s449_s0 + $0x16] sm:$0x3]  ;;  %v122_v8 = vld [vmem:[%s449_s0 + $0x14] sm:$0x3] }
  0x9a   :  { %176 = vst.msk [vmem:[%s450_s3 + $0x12] sm:$0x3] %vm166_vm1, %v159_v1  ;;  %175 = vst.msk [vmem:[%s450_s3 + $0x10] sm:$0x3] %vm166_vm1, %v158_v2  ;;  %v161_v17 = vadd.f32 %v145_v9, %v123_v6  ;;  %v160_v11 = vadd.f32 %v144_v10, %v122_v8 }
  0xa1   :  { %v125_v21 = vld [vmem:[%s449_s0 + $0x1a] sm:$0x3]  ;;  %v124_v23 = vld [vmem:[%s449_s0 + $0x18] sm:$0x3] }
  0xa2   :  { %178 = vst.msk [vmem:[%s450_s3 + $0x16] sm:$0x3] %vm166_vm1, %v161_v17  ;;  %177 = vst.msk [vmem:[%s450_s3 + $0x14] sm:$0x3] %vm166_vm1, %v160_v11  ;;  %v163_v25 = vadd.f32 %v147_v12, %v125_v21  ;;  %v162_v13 = vadd.f32 %v146_v24, %v124_v23 }
  0xa9   :  { %v127_v29 = vld [vmem:[%s449_s0 + $0x1e] sm:$0x3]  ;;  %v126_v31 = vld [vmem:[%s449_s0 + $0x1c] sm:$0x3] }
  0xaa   :  { %180 = vst.msk [vmem:[%s450_s3 + $0x1a] sm:$0x3] %vm166_vm1, %v163_v25  ;;  %179 = vst.msk [vmem:[%s450_s3 + $0x18] sm:$0x3] %vm166_vm1, %v162_v13  ;;  %v165_v33 = vadd.f32 %v149_v14, %v127_v29  ;;  %v164_v15 = vadd.f32 %v148_v32, %v126_v31 }
  0xac   :  { %182 = vst.msk [vmem:[%s450_s3 + $0x1e] sm:$0x3] %vm166_vm1, %v165_v33  ;;  %181 = vst.msk [vmem:[%s450_s3 + $0x1c] sm:$0x3] %vm166_vm1, %v164_v15 }

// kernel: mhs4_forward.9
= control target key start
LH: loop header
LB: loop body
LE: loop exit
PB: predicated region body
PF: predicated region fallthrough
CT: control target
= control target key end

     0   :  { %vm30_vm0 = vcmask 261120   ;;  %s284_s0 = inlined_call_operand.vmem [shape: f32[32,32], index: 0, kind: input, shape index: {}]   ;;  %s285_s1 = inlined_call_operand.vmem [shape: f32[32,32], index: 1, kind: input, shape index: {}]   ;;  %s286_s2 = inlined_call_operand.vmem [shape: f32[1,32], index: 2, kind: input, shape index: {}]   ;;  %s287_s3 = inlined_call_operand.hbm [shape: f32[32,32], index: 3, kind: output, shape index: {}]  }
   0x1   :  { %v19_v0 = vld [vmem:[%s285_s1] sm:$0xff]  ;;  %v20_v1 = vld [vmem:[%s285_s1 + $0x8] sm:$0xff]  ;;  %v21_v2 = vld [vmem:[%s285_s1 + $0x10] sm:$0xff] }
   0x2   :  { %v175_v3 = vpack.c.bf16 %v20_v1, %v19_v0  ;;  %v22_v4 = vld [vmem:[%s285_s1 + $0x18] sm:$0xff]  ;;  %v15_v5 = vld [vmem:[%s284_s0] sm:$0xff]  ;;  %v17_v6 = vld [vmem:[%s284_s0 + $0x10] sm:$0xff] }
   0x3   :  { %v179_v7 = vpack.c.bf16 %v22_v4, %v21_v2  ;;  %169 = vmatprep.mubr.msk.f32.mxu0 %vm30_vm0, %v15_v5  ;;  %172 = vmatprep.mubr.msk.f32.mxu1 %vm30_vm0, %v17_v6 }
   0x4   :  { %8 = vsyncpa [#allocation3], 0  ;;  %176 = vmatprep.subr.bf16.mxu0 %v175_v3  ;;  %183 = vmatprep.subr.bf16.mxu1 %v175_v3  ;;  %v16_v8 = vld [vmem:[%s284_s0 + $0x8] sm:$0xff]  ;;  %v18_v9 = vld [vmem:[%s284_s0 + $0x18] sm:$0xff]  ;;  %s214_s29 = smov [#allocation2]  }
   0x5   :  { %178 = vmatpush3.bf16.msra.mxu0 %v175_v3  ;;  %185 = vmatpush3.bf16.msra.mxu1 %v175_v3  ;;  %v148_v10 = vld [vmem:[%s286_s2] ss:$0 sm:$0xff]  ;;  %s137_s30 = sshll.u32 %s214_s29, 4  ;;  %s138_s30 = int_to_ptr.vmem [resolvable:$true] %s137_s30 }
   0x6   :  { %180 = vmatprep.subr.bf16.mxu0 %v179_v7  ;;  %184 = vmatprep.subr.bf16.mxu1 %v179_v7  ;;  %s190_s0 = scalar_lea.vmem %s138_s30, 512  ;;  %p195_p1 = scmp.lt.s32.totalorder %s138_s30, %s138_s30 }
   0x7   :  { %p191_p0 = scmp.ne.s32.totalorder %s138_s30, %s190_s0  ;;  %p196_p2 = scmp.lt.s32.totalorder %s190_s0, %s190_s0 }
   0x9   :  { %182 = vmatpush3.bf16.msra.mxu0 %v179_v7  ;;  %186 = vmatpush3.bf16.msra.mxu1 %v179_v7  ;;  %p197_p3 = por %p196_p2, %p195_p1 }
   0xb   :  { %p198_p4 = pnand %p197_p3, %p191_p0 }
   0xc   :  { %170 = vmatmul.mubr.msk.f32.vlgmr.msra.gmra.mrb[0].mxu0 %vm30_vm0, %v16_v8  ;;  %173 = vmatmul.mubr.msk.f32.vlgmr.msra.gmra.mrb[0].mxu1 %vm30_vm0, %v18_v9 }
  0xdf   :  { %v171_v11 = vpop.f32.mrb[0].mxu0  ;;  %v174_v12 = vpop.f32.mrb[0].mxu1 }
  0xe0   :  { %v115_v13 = vadd.f32 %v171_v11, %v148_v10  ;;  %v125_v14 = vadd.f32 %v174_v12, %v148_v10  ;;  %v109_v15 = vpop.f32.mrb[1].mxu0  ;;  %v119_v16 = vpop.f32.mrb[1].mxu1 }
  0xe1   :  { %v110_v17 = vadd.f32 %v148_v10, %v109_v15  ;;  %v120_v18 = vadd.f32 %v148_v10, %v119_v16 }
  0xe2   :  { %129 = vst.msk [vmem:[#allocation2 + $0x8] sm:$0xff] %vm30_vm0, %v115_v13  ;;  %131 = vst.msk [vmem:[#allocation2 + $0x18] sm:$0xff] %vm30_vm0, %v125_v14 }
  0xe3   :  { %128 = vst.msk [vmem:[#allocation2] sm:$0xff] %vm30_vm0, %v110_v17  ;;  %130 = vst.msk [vmem:[#allocation2 + $0x10] sm:$0xff] %vm30_vm0, %v120_v18 }
  0xe4   :  { %201 = shalt.err (!%p198_p4)
}
  0xe5   :  { %s202_s5 = scalar_lea.hbm %s287_s3, 512 }
  0xe6   :  { %p203_p5 = scmp.ne.s32.totalorder %s287_s3, %s202_s5  ;;  %p206_p6 = scmp.lt.u32.totalorder %s202_s5, %s287_s3 }
  0xe8   :  { %p208_p7 = pnand %p206_p6, %p203_p5 }
  0xea   :  { %211 = shalt.err (!%p208_p7)
}
  0xeb   :  { %s215_s10 = smov 128   ;;  %s216_s11 = smov 8  }
  0xec   :  { %143 = dma.vmem_to_hbm [thread:$0]  %s138_s30, 512, %s287_s3, [#allocation3], %s215_s10, %s215_s10, %s216_s11  }
  0xed   :  { %212 = dma.done.wait [#allocation3], 512  }
  0xee   :  { %213 = vsyncadd [#allocation3], 4294966784 }
  0xef   :  { %147 = vsyncpa [#allocation3], 1 }

// kernel: mhs4_forward.5
= control target key start
LH: loop header
LB: loop body
LE: loop exit
PB: predicated region body
PF: predicated region fallthrough
CT: control target
= control target key end

     0   :  { %s10743_s27 = smov 0   ;;  %s10745_s28 = smov 0   ;;  %s17481_s0 = inlined_call_operand.vmem [shape: f32[2,1,32], index: 0, kind: input, shape index: {}]   ;;  %s17482_s1 = inlined_call_operand.vmem [shape: f32[2,16,1], index: 1, kind: input, shape index: {}]   ;;  %s17483_s2 = inlined_call_operand.vmem [shape: f32[2,16,32,6], index: 2, kind: input, shape index: {}]   ;;  %s17484_s3 = inlined_call_operand.vmem [shape: f32[1,17], index: 3, kind: input, shape index: {}]   ;;  %s17485_s4 = inlined_call_operand.vmem [shape: f32[1,17], index: 4, kind: input, shape index: {}]   ;;  %s17486_s5 = inlined_call_operand.vmem [shape: f32[1,17], index: 5, kind: input, shape index: {}]   ;;  %s17487_s6 = inlined_call_operand.vmem [shape: f32[1,17], index: 6, kind: input, shape index: {}]   ;;  %s17488_s7 = inlined_call_operand.vmem [shape: f32[2,2,16,17], index: 7, kind: output, shape index: {0}]   ;;  %s17489_s8 = inlined_call_operand.vmem [shape: f32[2,2,16,17], index: 8, kind: output, shape index: {1}]  }
   0x1   :  { %s10747_s29 = smov 0  }
   0x2 LB: > { %s31_s30 = sadd.s32 1, %s10685_s28  ;;  %p9261_p0 = scmp.ge.s32.totalorder %s10689_s29, 1  ;;  %s10689_s29 = sphi %s10747_s29, %s19_s29   ;;  %s10685_s28 = sphi %s10745_s28, %s19494_s28   ;;  %s10681_s27 = sphi %s10743_s27, %s19493_s27  }
   0x3   : > { %p33_p1 = scmp.ge.s32.totalorder %s31_s30, 2  ;;  %p331_p2 = scmp.lt.s32.totalorder %s10689_s29, 3 }
   0x5   : > { %s19496_s30 = smov (%p33_p1, %s31_s30), 0  ;;  %p332_p3 = pnand %p9261_p0, %p331_p2 }
   0x7   : > { %335 = sbr.rel (%p332_p3) target bundleno = 1884 (0x75c), region = 48 }
   0xe   : > { %p396_p4 = scmp.lt.s32.totalorder %s10681_s27, 1  ;;  %v17491_v0 = vmov 0   ;;  %v17490_v3 = vlaneseq  ;;  %v9270_v5 = vld [vmem:[%s17484_s3] ss:$0 sm:$0xff]  ;;  %v17493_v48 = vmov 0.0|0.0   ;;  %vm10693_vm0 = vmmov 0  }
   0xf   : > { %10372 = vset.pattern.permute.xlu0 %v17491_v0  ;;  %v10822_v33 = vld [vmem:[%s17485_s4] ss:$0 sm:$0xff]  ;;  %10149 = vmatprep.subr.bf16.mxu0 %v17493_v48  ;;  %v17495_v58 = vmov 0.0   ;;  %vm1786_vm1 = vcmask 261120   ;;  %s10695_s10 = smov 125   ;;  %vm7606_vm2 = vcmask 130112  }
  0x10   : > { %s19498_s27 = smov (!%p396_p4, %s10681_s27), 1  ;;  %v10769_v4 = vshrl.u32 %v17490_v3, 7  ;;  %10155 = vmatprep.subr.bf16.mxu1 %v17493_v48  ;;  %9613 = vmatprep.mubr.msk.f32.mxu0 %vm10693_vm0, %v17495_v58  ;;  %vm7613_vm3 = vcmask 195712   ;;  %vm7825_vm4 = vcmask 1041409   ;;  %vm7827_vm5 = vcmask 1042434  }
  0x11   : > { %s9377_s9 = sshll.u32 %s19498_s27, 4  ;;  %s9378_s17 = sshll.u32 %s19498_s27, 9  ;;  %9630 = vmatprep.mubr.msk.f32.mxu1 %vm10693_vm0, %v17495_v58  ;;  %vm7829_vm6 = vcmask 1043459   ;;  %vm7831_vm7 = vcmask 1044484   ;;  %vm7833_vm8 = vcmask 1045509   ;;  %vm7835_vm9 = vcmask 1046534  }
  0x12   : > { %s403_s12 = scalar_lea.vmem %s17482_s1, %s9377_s9  ;;  %18221 = vst [vmem:[#allocation2_spill] sm:$0xff] %v10769_v4  ;;  %v10775_v6 = vsub.s32 0, %v10769_v4  ;;  %v10782_v10 = vsub.s32 1, %v10769_v4  ;;  %v10786_v12 = vsub.s32 2, %v10769_v4  ;;  %v10790_v14 = vsub.s32 3, %v10769_v4  ;;  %s10847_s20 = scalar_lea.vmem %s17483_s2, %s9378_s17 }
  0x13   : > { %v437_v1 = vld [vmem:[%s403_s12] sm:$0xff]  ;;  %v438_v2 = vld [vmem:[%s403_s12 + $0x8] sm:$0xff]  ;;  %v10794_v16 = vsub.s32 4, %v10769_v4  ;;  %v10798_v18 = vsub.s32 5, %v10769_v4  ;;  %v10802_v20 = vsub.s32 6, %v10769_v4  ;;  %v10806_v22 = vsub.s32 7, %v10769_v4  ;;  %s398_s23 = scalar_lea.vmem %s17481_s0, %s19498_s27 }
  0x14   : > { %444 = vperm.xlu0 %10372, %v437_v1   ;;  %v1722_v45 = vld [vmem:[%s10847_s20] sm:$0xff]  ;;  %v1723_v46 = vld [vmem:[%s10847_s20 + $0x8] sm:$0xff]  ;;  %v1724_v52 = vld [vmem:[%s10847_s20 + $0x10] sm:$0xff]  ;;  %vm7837_vm10 = vcmask 1047559   ;;  %vm7848_vm11 = vcmask 138240   ;;  %s9379_s11 = sshll.u32 %s19498_s27, 5 }
  0x15   : > { %v10855_v47 = vpack.c.bf16 %v1723_v46, %v1722_v45  ;;  %v1725_v53 = vld [vmem:[%s10847_s20 + $0x18] sm:$0xff]  ;;  %v1726_v61 = vld [vmem:[%s10847_s20 + $0x20] sm:$0xff]  ;;  %v1727_v62 = vld [vmem:[%s10847_s20 + $0x28] sm:$0xff]  ;;  %s16942_s14 = scalar_lea.vmem %s17488_s7, %s9379_s11  ;;  %s16966_s17 = scalar_lea.vmem %s17489_s8, %s9379_s11 }
  0x16   : > { %v10869_v54 = vpack.c.bf16 %v1725_v53, %v1724_v52  ;;  %v10889_v63 = vpack.c.bf16 %v1727_v62, %v1726_v61  ;;  %v1732_v4 = vld [vmem:[%s10847_s20 + $0x50] sm:$0xff] }
  0x17   : > { %18222 = vst [vmem:[#allocation3_spill] sm:$0xff] %v10855_v47  ;;  %10151 = vmatpush3.bf16.msra.mxu0 %v10855_v47 }
  0x18   : > { %449 = vperm.xlu0 %10372, %v438_v2   ;;  %10152 = vmatprep.subr.bf16.mxu0 %v17493_v48  ;;  %18223 = vst [vmem:[#allocation4_spill] sm:$0xff] %v10869_v54  ;;  %18224 = vst [vmem:[#allocation5_spill] sm:$0xff] %v10889_v63 }
  0x19   : > { %10157 = vmatpush3.bf16.msra.mxu1 %v10889_v63  ;;  %v1736_v63 = vld [vmem:[%s10847_s20 + $0x70] sm:$0xff] }
  0x1a   : > { %10158 = vmatprep.subr.bf16.mxu1 %v17493_v48 }
  0x1b   : > { %10154 = vmatpush3.bf16.msra.mxu0 %v10869_v54 }
  0x1c   : > { %10161 = vmatprep.subr.bf16.mxu0 %v17493_v48 }
  0x93   : > { %v10777_v7 = vpop.permute.xlu0 %444 }
  0x94   : > { %v458_v8 = vmul.f32 %v9270_v5, %v10777_v7  ;;  %v10826_v34 = vmul.f32 %v10822_v33, %v10777_v7 }
  0x96   : > { %v471_v9 = vrot.slane %v458_v8, %v10775_v6  ;;  %v486_v11 = vrot.slane %v458_v8, %v10782_v10  ;;  %v501_v13 = vrot.slane %v458_v8, %v10786_v12  ;;  %v516_v15 = vrot.slane %v458_v8, %v10790_v14 }
  0x97   : > { %v531_v17 = vrot.slane %v458_v8, %v10794_v16  ;;  %v546_v19 = vrot.slane %v458_v8, %v10798_v18  ;;  %v561_v21 = vrot.slane %v458_v8, %v10802_v20  ;;  %v10808_v23 = vpop.permute.xlu0 %449  ;;  %v576_v25 = vrot.slane %v458_v8, %v10806_v22 }
  0x98   : > { %481 = vbcast.lane.b32.xlu0 %v471_v9, 272  ;;  %473 = vbcast.lane.b32.xlu1 %v471_v9, 256  ;;  %v459_v24 = vmul.f32 %v9270_v5, %v10808_v23  ;;  %v765_v36 = vrot.slane %v10826_v34, %v10775_v6  ;;  %v780_v37 = vrot.slane %v10826_v34, %v10782_v10 }
  0x99   : > { %v795_v38 = vrot.slane %v10826_v34, %v10786_v12  ;;  %v810_v39 = vrot.slane %v10826_v34, %v10790_v14  ;;  %v825_v42 = vrot.slane %v10826_v34, %v10794_v16  ;;  %v840_v51 = vrot.slane %v10826_v34, %v10798_v18 }
  0x9a   : > { %v591_v26 = vrot.slane %v459_v24, %v10775_v6  ;;  %v606_v27 = vrot.slane %v459_v24, %v10782_v10  ;;  %v621_v28 = vrot.slane %v459_v24, %v10786_v12  ;;  %v636_v29 = vrot.slane %v459_v24, %v10790_v14 }
  0x9b   : > { %v651_v30 = vrot.slane %v459_v24, %v10794_v16  ;;  %v666_v31 = vrot.slane %v459_v24, %v10798_v18  ;;  %v681_v32 = vrot.slane %v459_v24, %v10802_v20  ;;  %v696_v35 = vrot.slane %v459_v24, %v10806_v22 }
  0x9c   : > { %492 = vbcast.lane.b32.xlu0 %v486_v11, 264  ;;  %477 = vbcast.lane.b32.xlu1 %v471_v9, 264  ;;  %v855_v57 = vrot.slane %v10826_v34, %v10802_v20  ;;  %v10893_v1 = vmul.f32 %v10822_v33, %v10808_v23  ;;  %v870_v7 = vrot.slane %v10826_v34, %v10806_v22 }
  0x9e   : > { %v945_v33 = vrot.slane %v10893_v1, %v10794_v16 }
  0xa0   : > { %503 = vbcast.lane.b32.xlu0 %v501_v13, 256  ;;  %488 = vbcast.lane.b32.xlu1 %v486_v11, 256 }
  0xa4   : > { %511 = vbcast.lane.b32.xlu0 %v501_v13, 272  ;;  %496 = vbcast.lane.b32.xlu1 %v486_v11, 272  ;;  %v885_v11 = vrot.slane %v10893_v1, %v10775_v6 }
  0xa8   : > { %522 = vbcast.lane.b32.xlu0 %v516_v15, 264  ;;  %507 = vbcast.lane.b32.xlu1 %v501_v13, 264 }
  0xac   : > { %533 = vbcast.lane.b32.xlu0 %v531_v17, 256  ;;  %518 = vbcast.lane.b32.xlu1 %v516_v15, 256 }
  0xb0   : > { %541 = vbcast.lane.b32.xlu0 %v531_v17, 272  ;;  %526 = vbcast.lane.b32.xlu1 %v516_v15, 272 }
  0xb4   : > { %552 = vbcast.lane.b32.xlu0 %v546_v19, 264  ;;  %537 = vbcast.lane.b32.xlu1 %v531_v17, 264  ;;  %v1728_v17 = vld [vmem:[%s10847_s20 + $0x30] sm:$0xff] }
  0xb8   : > { %563 = vbcast.lane.b32.xlu0 %v561_v21, 256  ;;  %548 = vbcast.lane.b32.xlu1 %v546_v19, 256 }
  0xbc   : > { %571 = vbcast.lane.b32.xlu0 %v561_v21, 272  ;;  %556 = vbcast.lane.b32.xlu1 %v546_v19, 272  ;;  %v1729_v19 = vld [vmem:[%s10847_s20 + $0x38] sm:$0xff] }
  0xc0   : > { %582 = vbcast.lane.b32.xlu0 %v576_v25, 264  ;;  %567 = vbcast.lane.b32.xlu1 %v561_v21, 264  ;;  %v10915_v21 = vpack.c.bf16 %v1729_v19, %v1728_v17 }
  0xc2   : > { %18225 = vst [vmem:[#allocation6_spill] sm:$0xff] %v10915_v21  ;;  %10160 = vmatpush3.bf16.msra.mxu1 %v10915_v21  ;;  %v1733_v21 = vld [vmem:[%s10847_s20 + $0x58] sm:$0xff] }
  0xc3   : > { %10167 = vmatprep.subr.bf16.mxu1 %v17493_v48 }
  0xc4   : > { %578 = vbcast.lane.b32.xlu1 %v576_v25, 256  ;;  %593 = vbcast.lane.b32.xlu0 %v591_v26, 256 }
  0xc8   : > { %586 = vbcast.lane.b32.xlu1 %v576_v25, 272  ;;  %601 = vbcast.lane.b32.xlu0 %v591_v26, 272  ;;  %v900_v25 = vrot.slane %v10893_v1, %v10782_v10 }
  0xcc   : > { %597 = vbcast.lane.b32.xlu1 %v591_v26, 264  ;;  %612 = vbcast.lane.b32.xlu0 %v606_v27, 264 }
  0xd0   : > { %608 = vbcast.lane.b32.xlu1 %v606_v27, 256  ;;  %623 = vbcast.lane.b32.xlu0 %v621_v28, 256 }
  0xd4   : > { %616 = vbcast.lane.b32.xlu1 %v606_v27, 272  ;;  %631 = vbcast.lane.b32.xlu0 %v621_v28, 272  ;;  %v915_v27 = vrot.slane %v10893_v1, %v10786_v12 }
  0xd8   : > { %627 = vbcast.lane.b32.xlu1 %v621_v28, 264  ;;  %642 = vbcast.lane.b32.xlu0 %v636_v29, 264 }
  0xdc   : > { %638 = vbcast.lane.b32.xlu1 %v636_v29, 256  ;;  %653 = vbcast.lane.b32.xlu0 %v651_v30, 256 }
  0xe0   : > { %646 = vbcast.lane.b32.xlu1 %v636_v29, 272  ;;  %661 = vbcast.lane.b32.xlu0 %v651_v30, 272 }
  0xe4   : > { %657 = vbcast.lane.b32.xlu1 %v651_v30, 264  ;;  %672 = vbcast.lane.b32.xlu0 %v666_v31, 264 }
  0xe8   : > { %668 = vbcast.lane.b32.xlu1 %v666_v31, 256  ;;  %683 = vbcast.lane.b32.xlu0 %v681_v32, 256 }
  0xec   : > { %676 = vbcast.lane.b32.xlu1 %v666_v31, 272  ;;  %691 = vbcast.lane.b32.xlu0 %v681_v32, 272  ;;  %v930_v31 = vrot.slane %v10893_v1, %v10790_v14 }
  0xf0   : > { %687 = vbcast.lane.b32.xlu1 %v681_v32, 264  ;;  %702 = vbcast.lane.b32.xlu0 %v696_v35, 264 }
  0xf4   : > { %698 = vbcast.lane.b32.xlu1 %v696_v35, 256  ;;  %767 = vbcast.lane.b32.xlu0 %v765_v36, 256 }
  0xf8   : > { %706 = vbcast.lane.b32.xlu1 %v696_v35, 272  ;;  %775 = vbcast.lane.b32.xlu0 %v765_v36, 272 }
  0xfc   : > { %771 = vbcast.lane.b32.xlu1 %v765_v36, 264  ;;  %786 = vbcast.lane.b32.xlu0 %v780_v37, 264 }
 0x100   : > { %782 = vbcast.lane.b32.xlu1 %v780_v37, 256  ;;  %797 = vbcast.lane.b32.xlu0 %v795_v38, 256 }
 0x104   : > { %790 = vbcast.lane.b32.xlu1 %v780_v37, 272  ;;  %805 = vbcast.lane.b32.xlu0 %v795_v38, 272  ;;  %v960_v37 = vrot.slane %v10893_v1, %v10798_v18 }
 0x108   : > { %801 = vbcast.lane.b32.xlu1 %v795_v38, 264  ;;  %816 = vbcast.lane.b32.xlu0 %v810_v39, 264 }
 0x10a   : > { %v10838_v40 = vpop.permute.xlu1 %473  ;;  %v10840_v41 = vpop.permute.xlu0 %481 }
 0x10c   : > { %812 = vbcast.lane.b32.xlu1 %v810_v39, 256  ;;  %827 = vbcast.lane.b32.xlu0 %v825_v42, 256 }
 0x10e   : > { %v10849_v43 = vpop.permute.xlu1 %477  ;;  %v10851_v44 = vpop.permute.xlu0 %492 }
 0x110   : > { %820 = vbcast.lane.b32.xlu1 %v810_v39, 272  ;;  %835 = vbcast.lane.b32.xlu0 %v825_v42, 272  ;;  %v975_v39 = vrot.slane %v10893_v1, %v10802_v20 }
 0x112   : > { %v10859_v49 = vpop.permute.xlu1 %488  ;;  %v10861_v50 = vpop.permute.xlu0 %503 }
 0x114   : > { %831 = vbcast.lane.b32.xlu1 %v825_v42, 264  ;;  %846 = vbcast.lane.b32.xlu0 %v840_v51, 264 }
 0x116   : > { %v10871_v55 = vpop.permute.xlu1 %496  ;;  %v10873_v56 = vpop.permute.xlu0 %511 }
 0x118   : > { %842 = vbcast.lane.b32.xlu1 %v840_v51, 256  ;;  %857 = vbcast.lane.b32.xlu0 %v855_v57, 256 }
 0x11a   : > { %v10883_v59 = vpop.permute.xlu1 %507  ;;  %v10885_v60 = vpop.permute.xlu0 %522 }
 0x11c   : > { %850 = vbcast.lane.b32.xlu1 %v840_v51, 272  ;;  %865 = vbcast.lane.b32.xlu0 %v855_v57, 272  ;;  %v990_v51 = vrot.slane %v10893_v1, %v10806_v22  ;;  %v10989_v22 = vld [vmem:[%s398_s23] ss:$0 sm:$0xff] }
 0x11d   : > { %18226 = vst [vmem:[#allocation7_spill] sm:$0xff] %v10989_v22  ;;  %v11001_v17 = vsub.f32 %v10840_v41, %v10989_v22  ;;  %v11005_v19 = vsub.f32 %v10849_v43, %v10989_v22  ;;  %v11021_v41 = vsub.f32 %v10871_v55, %v10989_v22  ;;  %v11025_v43 = vsub.f32 %v10873_v56, %v10989_v22 }
 0x11e   : > { %v10895_v2 = vpop.permute.xlu1 %518  ;;  %v10897_v5 = vpop.permute.xlu0 %533  ;;  %v11040_v55 = vsub.f32 %v10885_v60, %v10989_v22 }
 0x11f   : > { %v11044_v56 = vsub.f32 %v10895_v2, %v10989_v22 }
 0x120   : > { %861 = vbcast.lane.b32.xlu1 %v855_v57, 264  ;;  %876 = vbcast.lane.b32.xlu0 %v870_v7, 264 }
 0x122   : > { %v10903_v8 = vpop.permute.xlu1 %526  ;;  %v10905_v9 = vpop.permute.xlu0 %541 }
 0x123   : > { %v11057_v48 = vsub.f32 %v10903_v8, %v10989_v22  ;;  %v11061_v2 = vsub.f32 %v10905_v9, %v10989_v22 }
 0x124   : > { %872 = vbcast.lane.b32.xlu1 %v870_v7, 256  ;;  %887 = vbcast.lane.b32.xlu0 %v885_v11, 256 }
 0x125   : > { %18229 = vst [vmem:[#allocation10_spill] sm:$0xff] %v11057_v48  ;;  %18230 = vst [vmem:[#allocation11_spill] sm:$0xff] %v11061_v2 }
 0x126   : > { %v10909_v13 = vpop.permute.xlu1 %537  ;;  %v10911_v15 = vpop.permute.xlu0 %552 }
 0x127   : > { %v11070_v60 = vsub.f32 %v10909_v13, %v10989_v22  ;;  %v11074_v8 = vsub.f32 %v10911_v15, %v10989_v22  ;;  %v1730_v13 = vld [vmem:[%s10847_s20 + $0x40] sm:$0xff] }
 0x128   : > { %880 = vbcast.lane.b32.xlu1 %v870_v7, 272  ;;  %895 = vbcast.lane.b32.xlu0 %v885_v11, 272 }
 0x129   : > { %18232 = vst [vmem:[#allocation13_spill] sm:$0xff] %v11074_v8 }
 0x12a   : > { %v10917_v23 = vpop.permute.xlu1 %548  ;;  %v10919_v24 = vpop.permute.xlu0 %563 }
 0x12c   : > { %891 = vbcast.lane.b32.xlu1 %v885_v11, 264  ;;  %906 = vbcast.lane.b32.xlu0 %v900_v25, 264  ;;  %v10997_v11 = vsub.f32 %v10838_v40, %v10989_v22  ;;  %v11017_v40 = vsub.f32 %v10861_v50, %v10989_v22  ;;  %v1004_v50 = vand.u32 2147483647, %v11001_v17 }
 0x12e   : > { %v10925_v6 = vpop.permute.xlu1 %556  ;;  %v10927_v26 = vpop.permute.xlu0 %571  ;;  %v18252_v47 = vand.u32 2147483647, %v11017_v40 }
 0x130   : > { %902 = vbcast.lane.b32.xlu1 %v900_v25, 256  ;;  %917 = vbcast.lane.b32.xlu0 %v915_v27, 256 }
 0x132   : > { %v10931_v28 = vpop.permute.xlu1 %567  ;;  %v10933_v29 = vpop.permute.xlu0 %582 }
 0x133   : > { %v11104_v54 = vsub.f32 %v10931_v28, %v10989_v22 }
 0x134   : > { %910 = vbcast.lane.b32.xlu1 %v900_v25, 272  ;;  %925 = vbcast.lane.b32.xlu0 %v915_v27, 272  ;;  %v11009_v25 = vsub.f32 %v10851_v44, %v10989_v22 }
 0x136   : > { %v10935_v10 = vpop.permute.xlu1 %578  ;;  %v10937_v30 = vpop.permute.xlu0 %593 }
 0x138   : > { %921 = vbcast.lane.b32.xlu1 %v915_v27, 264  ;;  %936 = vbcast.lane.b32.xlu0 %v930_v31, 264  ;;  %v11013_v27 = vsub.f32 %v10859_v49, %v10989_v22  ;;  %v11034_v49 = vsub.f32 %v10883_v59, %v10989_v22  ;;  %v11051_v59 = vsub.f32 %v10897_v5, %v10989_v22 }
 0x139   : > { %v11085_v5 = vsub.f32 %v10919_v24, %v10989_v22  ;;  %v1737_v24 = vld [vmem:[%s10847_s20 + $0x78] sm:$0xff] }
 0x13a   : > { %v10941_v32 = vpop.permute.xlu1 %586  ;;  %v10943_v12 = vpop.permute.xlu0 %601  ;;  %18228 = vst [vmem:[#allocation9_spill] sm:$0xff] %v11051_v59 }
 0x13c   : > { %932 = vbcast.lane.b32.xlu1 %v930_v31, 256  ;;  %947 = vbcast.lane.b32.xlu0 %v945_v33, 256 }
 0x13e   : > { %v10947_v34 = vpop.permute.xlu1 %597  ;;  %v10949_v35 = vpop.permute.xlu0 %612 }
 0x140   : > { %940 = vbcast.lane.b32.xlu1 %v930_v31, 272  ;;  %955 = vbcast.lane.b32.xlu0 %v945_v33, 272 }
 0x142   : > { %v10951_v36 = vpop.permute.xlu1 %608  ;;  %v10953_v14 = vpop.permute.xlu0 %623 }
 0x144   : > { %951 = vbcast.lane.b32.xlu1 %v945_v33, 264  ;;  %966 = vbcast.lane.b32.xlu0 %v960_v37, 264  ;;  %v1002_v33 = vand.u32 2147483647, %v10997_v11 }
 0x146   : > { %v10957_v38 = vpop.permute.xlu1 %616  ;;  %v10959_v16 = vpop.permute.xlu0 %631 }
 0x148   : > { %962 = vbcast.lane.b32.xlu1 %v960_v37, 256  ;;  %977 = vbcast.lane.b32.xlu0 %v975_v39, 256 }
 0x14a   : > { %v10963_v42 = vpop.permute.xlu1 %627  ;;  %v10965_v45 = vpop.permute.xlu0 %642 }
 0x14c   : > { %970 = vbcast.lane.b32.xlu1 %v960_v37, 272  ;;  %985 = vbcast.lane.b32.xlu0 %v975_v39, 272  ;;  %v11091_v37 = vsub.f32 %v10925_v6, %v10989_v22  ;;  %v11108_v6 = vsub.f32 %v10933_v29, %v10989_v22  ;;  %v11135_v29 = vsub.f32 %v10935_v10, %v10989_v22 }
 0x14d   : > { %v11153_v10 = vsub.f32 %v10943_v12, %v10989_v22  ;;  %v18247_v12 = vand.u32 2147483647, %v11005_v19 }
 0x14e   : > { %v10967_v46 = vpop.permute.xlu1 %638  ;;  %v10969_v18 = vpop.permute.xlu0 %653  ;;  %18233 = vst [vmem:[#allocation14_spill] sm:$0xff] %v11108_v6  ;;  %18238 = vst [vmem:[#allocation19_spill] sm:$0xff] %v11135_v29 }
 0x14f   : > { %18241 = vst [vmem:[#allocation22_spill] sm:$0xff] %v11153_v10 }
 0x150   : > { %981 = vbcast.lane.b32.xlu1 %v975_v39, 264  ;;  %996 = vbcast.lane.b32.xlu0 %v990_v51, 264  ;;  %v11081_v39 = vsub.f32 %v10917_v23, %v10989_v22  ;;  %v1731_v23 = vld [vmem:[%s10847_s20 + $0x48] sm:$0xff] }
 0x152   : > { %v10973_v52 = vpop.permute.xlu1 %646  ;;  %v10975_v20 = vpop.permute.xlu0 %661 }
 0x154   : > { %992 = vbcast.lane.b32.xlu1 %v990_v51, 256 }
 0x156   : > { %v10977_v53 = vpop.permute.xlu1 %657  ;;  %v10979_v57 = vpop.permute.xlu0 %672 }
 0x158   : > { %1000 = vbcast.lane.b32.xlu1 %v990_v51, 272  ;;  %v11095_v51 = vsub.f32 %v10927_v26, %v10989_v22 }
 0x15a   : > { %v10985_v61 = vpop.permute.xlu1 %668  ;;  %v10987_v62 = vpop.permute.xlu0 %683 }
 0x15e   : > { %v10991_v1 = vpop.permute.xlu1 %676  ;;  %v10993_v7 = vpop.permute.xlu0 %691 }
 0x162   : > { %v11027_v31 = vpop.permute.xlu1 %687  ;;  %v11029_v44 = vpop.permute.xlu0 %702 }
 0x163   : > { %18227 = vst [vmem:[#allocation8_spill] sm:$0xff] %v11029_v44 }
 0x166   : > { %v11063_v58 = vpop.permute.xlu1 %698  ;;  %v11065_v3 = vpop.permute.xlu0 %767 }
 0x167   : > { %18231 = vst [vmem:[#allocation12_spill] sm:$0xff] %v11063_v58  ;;  %v1050_v9 = vand.u32 2147483647, %v11065_v3  ;;  %v11121_v58 = vpack.c.bf16 %v1731_v23, %v1730_v13 }
 0x169   : > { %v1098_v0 = vadd.f32 %v1050_v9, %v1002_v33  ;;  %v1734_v33 = vld [vmem:[%s10847_s20 + $0x60] sm:$0xff]  ;;  %v1735_v9 = vld [vmem:[%s10847_s20 + $0x68] sm:$0xff]  ;;  %18235 = vst [vmem:[#allocation16_spill] sm:$0xff] %v11121_v58 }
 0x16a   : > { %v11110_v15 = vpop.permute.xlu1 %706  ;;  %v11112_v26 = vpop.permute.xlu0 %775  ;;  %v11127_v44 = vpack.c.bf16 %v1735_v9, %v1734_v33  ;;  %v11161_v9 = vsub.f32 %v10949_v35, %v10989_v22 }
 0x16b   : > { %18234 = vst [vmem:[#allocation15_spill] sm:$0xff] %v11110_v15  ;;  %10379 = vrcp.f32 %v1098_v0  ;;  %v1052_v28 = vand.u32 2147483647, %v11112_v26  ;;  %v11123_v15 = vpack.c.bf16 %v1733_v21, %v1732_v4  ;;  %v11139_v4 = vsub.f32 %v10937_v30, %v10989_v22 }
 0x16c   : > { %18237 = vst [vmem:[#allocation18_spill] sm:$0xff] %v11127_v44  ;;  %v11157_v30 = vsub.f32 %v10947_v34, %v10989_v22  ;;  %18243 = vst [vmem:[#allocation24_spill] sm:$0xff] %v11161_v9  ;;  %v18248_v34 = vand.u32 2147483647, %v11009_v25 }
 0x16d   : > { %18236 = vst [vmem:[#allocation17_spill] sm:$0xff] %v11123_v15  ;;  %v1100_v59 = vadd.f32 %v1052_v28, %v1004_v50  ;;  %18239 = vst [vmem:[#allocation20_spill] sm:$0xff] %v11139_v4  ;;  %v11147_v50 = vsub.f32 %v10941_v32, %v10989_v22  ;;  %v11163_v28 = vpack.c.bf16 %v1737_v24, %v1736_v63  ;;  %v18263_v4 = vand.u32 2147483647, %v11034_v49 }
 0x16e   : > { %v11141_v21 = vpop.permute.xlu1 %771  ;;  %v11143_v13 = vpop.permute.xlu0 %786  ;;  %18242 = vst [vmem:[#allocation23_spill] sm:$0xff] %v11157_v30  ;;  %v11167_v32 = vsub.f32 %v10951_v36, %v10989_v22  ;;  %v11181_v63 = vsub.f32 %v10957_v38, %v10989_v22  ;;  %v11185_v36 = vsub.f32 %v10959_v16, %v10989_v22  ;;  %v1738_v38 = vld [vmem:[%s10847_s20 + $0x80] sm:$0xff] }
 0x16f   : > { %18240 = vst [vmem:[#allocation21_spill] sm:$0xff] %v11147_v50  ;;  %10381 = vrcp.f32 %v1100_v59  ;;  %v1051_v23 = vand.u32 2147483647, %v11141_v21  ;;  %v1054_v33 = vand.u32 2147483647, %v11143_v13  ;;  %18244 = vst [vmem:[#allocation25_spill] sm:$0xff] %v11163_v28  ;;  %v11171_v59 = vsub.f32 %v10953_v14, %v10989_v22 }
 0x170   : > { %18245 = vst [vmem:[#allocation26_spill] sm:$0xff] %v11167_v32  ;;  %18249 = vst [vmem:[#allocation28_spill] sm:$0xff] %v11181_v63  ;;  %v18256_v63 = vand.u32 2147483647, %v11025_v43 }
 0x171   : > { %18246 = vst [vmem:[#allocation27_spill] sm:$0xff] %v11171_v59  ;;  %v1099_v8 = vadd.f32 %v1051_v23, %v18247_v12  ;;  %v1102_v0 = vadd.f32 %v1054_v33, %v18248_v34  ;;  %18250 = vst [vmem:[#allocation29_spill] sm:$0xff] %v11185_v36 }
 0x172   : > { %v11187_v14 = vpop.permute.xlu1 %782  ;;  %v11189_v24 = vpop.permute.xlu0 %797 }
 0x173   : > { %10383 = vrcp.f32 %v1099_v8  ;;  %v1053_v33 = vand.u32 2147483647, %v11187_v14  ;;  %v1056_v12 = vand.u32 2147483647, %v11189_v24  ;;  %v18251_v8 = vand.u32 2147483647, %v11013_v27 }
 0x174   : > { %10385 = vrcp.f32 %v1102_v0 }
 0x175   : > { %v11197_v35 = vpop.eup %10379  ;;  %v1101_v2 = vadd.f32 %v1053_v33, %v18251_v8  ;;  %v1104_v50 = vadd.f32 %v1056_v12, %v18252_v47  ;;  %v1739_v33 = vld [vmem:[%s10847_s20 + $0x88] sm:$0xff]  ;;  %v11221_v47 = vsub.f32 %v10963_v42, %v10989_v22  ;;  %v11234_v42 = vsub.f32 %v10965_v45, %v10989_v22 }
 0x176   : > { %v11209_v16 = vmul.f32 %v11197_v35, %v10997_v11  ;;  %v1242_v0 = vmul.f32 %v11197_v35, %v11065_v3  ;;  %v11213_v48 = vpop.permute.xlu1 %790  ;;  %v11215_v23 = vpop.permute.xlu0 %805  ;;  %v11240_v32 = vpack.c.bf16 %v1739_v33, %v1738_v38  ;;  %v1741_v33 = vld [vmem:[%s10847_s20 + $0x98] sm:$0xff] }
 0x177   : > { %18253 = vst [vmem:[#allocation30_spill] sm:$0xff] %v11221_v47  ;;  %10387 = vrcp.f32 %v1101_v2  ;;  %v1055_v12 = vand.u32 2147483647, %v11213_v48  ;;  %v1058_v8 = vand.u32 2147483647, %v11215_v23  ;;  %18254 = vst [vmem:[#allocation31_spill] sm:$0xff] %v11234_v42 }
 0x178   : > { %v1290_v11 = vmul.f32 %v11209_v16, %v11209_v16  ;;  %v1338_v10 = vmul.f32 %v1242_v0, %v1242_v0  ;;  %v11228_v3 = vmul.f32 %v11197_v35, %v1242_v0  ;;  %10389 = vrcp.f32 %v1104_v50  ;;  %18257 = vst [vmem:[#allocation32_spill] sm:$0xff] %v11240_v32 }
 0x179   : > { %v11230_v34 = vpop.eup %10381  ;;  %v18255_v2 = vand.u32 2147483647, %v11021_v41  ;;  %v1106_v59 = vadd.f32 %v1058_v8, %v18256_v63  ;;  %v11244_v0 = vsub.f32 %v10967_v46, %v10989_v22  ;;  %v11248_v50 = vsub.f32 %v10969_v18, %v10989_v22  ;;  %v1740_v18 = vld [vmem:[%s10847_s20 + $0x90] sm:$0xff] }
 0x17a   : > { %v1386_v45 = vadd.f32 %v1338_v10, %v1290_v11  ;;  %v1244_v9 = vmul.f32 %v11230_v34, %v11112_v26  ;;  %v11258_v63 = vsub.f32 %v10973_v52, %v10989_v22  ;;  %v11267_v26 = vsub.f32 %v10975_v20, %v10989_v22  ;;  %v1742_v11 = vld [vmem:[%s10847_s20 + $0xa0] sm:$0xff]  ;;  %v1743_v52 = vld [vmem:[%s10847_s20 + $0xa8] sm:$0xff] }
 0x17b   : > { %v1103_v36 = vadd.f32 %v1055_v12, %v18255_v2  ;;  %18258 = vst [vmem:[#allocation33_spill] sm:$0xff] %v11244_v0  ;;  %18259 = vst [vmem:[#allocation34_spill] sm:$0xff] %v11248_v50  ;;  %v11252_v12 = vpop.permute.xlu1 %801  ;;  %v11254_v2 = vpop.permute.xlu0 %816  ;;  %v18264_v47 = vand.u32 2147483647, %v11040_v55 }
 0x17c   : > { %18260 = vst [vmem:[#allocation35_spill] sm:$0xff] %v11258_v63  ;;  %v1057_v46 = vand.u32 2147483647, %v11252_v12  ;;  %v1060_v38 = vand.u32 2147483647, %v11254_v2  ;;  %18261 = vst [vmem:[#allocation36_spill] sm:$0xff] %v11267_v26  ;;  %v11270_v8 = vmul.f32 %v11230_v34, %v1244_v9  ;;  %v1340_v42 = vmul.f32 %v1244_v9, %v1244_v9 }
 0x17d   : > { %10391 = vrcp.f32 %v1103_v36  ;;  %v11274_v30 = vpop.eup %10383 }
 0x17e   : > { %10393 = vrcp.f32 %v1386_v45  ;;  %18262 = vst [vmem:[#allocation37_spill] sm:$0xff] %v11270_v8  ;;  %v1105_v10 = vadd.f32 %v1057_v46, %v18263_v4  ;;  %v1108_v20 = vadd.f32 %v1060_v38, %v18264_v47  ;;  %v11281_v29 = vpop.eup %10385  ;;  %v1243_v6 = vmul.f32 %v11274_v30, %v11141_v21  ;;  %v1744_v38 = vld [vmem:[%s10847_s20 + $0xb0] sm:$0xff]  ;;  %v1745_v8 = vld [vmem:[%s10847_s20 + $0xb8] sm:$0xff] }
 0x17f   : > { %10395 = vrcp.f32 %v1106_v59  ;;  %v11287_v32 = vpop.permute.xlu1 %812  ;;  %v11289_v36 = vpop.permute.xlu0 %827  ;;  %v11291_v59 = vpack.c.bf16 %v1741_v33, %v1740_v18  ;;  %v11296_v47 = vmul.f32 %v11281_v29, %v11143_v13  ;;  %v11298_v46 = vpack.c.bf16 %v1743_v52, %v1742_v11 }
 0x180   : > { %10397 = vrcp.f32 %v1105_v10  ;;  %v11305_v21 = vsub.f32 %v10977_v53, %v10989_v22  ;;  %v11309_v18 = vmul.f32 %v11230_v34, %v11001_v17  ;;  %v11312_v33 = vmul.f32 %v11274_v30, %v1243_v6 }
 0x181   : > { %18265 = vst [vmem:[#allocation38_spill] sm:$0xff] %v11291_v59  ;;  %18266 = vst [vmem:[#allocation39_spill] sm:$0xff] %v11298_v46  ;;  %v11314_v13 = vpop.eup %10387  ;;  %v11318_v10 = vsub.f32 %v10979_v57, %v10989_v22  ;;  %v11322_v11 = vmul.f32 %v11274_v30, %v11005_v19  ;;  %v11326_v53 = vmul.f32 %v11281_v29, %v11296_v47  ;;  %10399 = vrcp.f32 %v1108_v20 }
 0x182   : > { %18267 = vst [vmem:[#allocation40_spill] sm:$0xff] %v11305_v21  ;;  %18268 = vst [vmem:[#allocation41_spill] sm:$0xff] %v11312_v33  ;;  %v11328_v17 = vpop.eup %10389  ;;  %v11332_v52 = vsub.f32 %v10985_v61, %v10989_v22  ;;  %v11336_v45 = vmul.f32 %v11314_v13, %v11013_v27  ;;  %v1245_v57 = vmul.f32 %v11314_v13, %v11187_v14  ;;  %v1059_v33 = vand.u32 2147483647, %v11287_v32 }
 0x183   : > { %18269 = vst [vmem:[#allocation42_spill] sm:$0xff] %v11318_v10  ;;  %18270 = vst [vmem:[#allocation43_spill] sm:$0xff] %v11326_v53  ;;  %v11340_v19 = vpop.permute.xlu1 %820  ;;  %v11342_v4 = vpack.c.bf16 %v1745_v8, %v1744_v38  ;;  %v1626_v53 = vsub.f32 0.0, %v11228_v3  ;;  %v11347_v20 = vmul.f32 %v11328_v17, %v11017_v40  ;;  %v1248_v61 = vmul.f32 %v11328_v17, %v11189_v24  ;;  %v11359_v3 = vpop.permute.xlu0 %835 }
 0x184   : > { %18271 = vst [vmem:[#allocation44_spill] sm:$0xff] %v11332_v52  ;;  %v1292_v27 = vmul.f32 %v11309_v18, %v11309_v18  ;;  %v1293_v14 = vmul.f32 %v11336_v45, %v11336_v45  ;;  %v1341_v26 = vmul.f32 %v1245_v57, %v1245_v57  ;;  %v11357_v8 = vmul.f32 %v11314_v13, %v1245_v57 }
 0x185   : > { %18272 = vst [vmem:[#allocation45_spill] sm:$0xff] %v11342_v4  ;;  %v1291_v40 = vmul.f32 %v11322_v11, %v11322_v11  ;;  %v1339_v24 = vmul.f32 %v1243_v6, %v1243_v6  ;;  %v1296_v63 = vmul.f32 %v11347_v20, %v11347_v20  ;;  %v1344_v50 = vmul.f32 %v1248_v61, %v1248_v61 }
 0x186   : > { %v11371_v4 = vmul.f32 %v11281_v29, %v11009_v25  ;;  %v1389_v57 = vadd.f32 %v1341_v26, %v1293_v14  ;;  %v11374_v46 = vmul.f32 %v11328_v17, %v1248_v61  ;;  %v18276_v25 = vand.u32 2147483647, %v11044_v56 }
 0x187   : > { %v11361_v38 = vpop.eup %10391  ;;  %v11376_v59 = vpop.permute.xlu1 %831  ;;  %v1392_v44 = vadd.f32 %v1344_v50, %v1296_v63  ;;  %v11391_v61 = vsub.f32 %v10987_v62, %v10989_v22  ;;  %v11395_v14 = vsub.f32 %v10991_v1, %v10989_v22  ;;  %v1746_v1 = vld [vmem:[%s10847_s20 + $0xc0] sm:$0xff] }
 0x188   : > { %18273 = vst [vmem:[#allocation46_spill] sm:$0xff] %v11361_v38  ;;  %v11367_v0 = vpop.eup %10393  ;;  %v11385_v9 = vmul.f32 %v11361_v38, %v11213_v48  ;;  %v1107_v26 = vadd.f32 %v1059_v33, %v18276_v25  ;;  %10401 = vrcp.f32 %v1389_v57  ;;  %v1387_v48 = vadd.f32 %v1339_v24, %v1291_v40  ;;  %v1747_v33 = vld [vmem:[%s10847_s20 + $0xc8] sm:$0xff] }
 0x189   : > { %v11378_v28 = vpop.eup %10395  ;;  %v11381_v6 = vmul.f32 %v11367_v0, %v1626_v53  ;;  %18277 = vst [vmem:[#allocation49_spill] sm:$0xff] %v11391_v61  ;;  %18278 = vst [vmem:[#allocation50_spill] sm:$0xff] %v11395_v14  ;;  %v11399_v53 = vsub.f32 %v10993_v7, %v10989_v22  ;;  %10403 = vrcp.f32 %v1392_v44  ;;  %v11419_v44 = vpop.permute.xlu0 %846  ;;  %v1388_v24 = vadd.f32 %v1340_v42, %v1292_v27  ;;  %v18288_v27 = vld [vmem:[#allocation9_spill] sm:$0xff] }
 0x18a   : > { %18274 = vst [vmem:[#allocation47_spill] sm:$0xff] %v11378_v28  ;;  %v11401_v50 = vpop.eup %10397  ;;  %v11405_v63 = vmul.f32 %v11361_v38, %v11385_v9  ;;  %v11409_v62 = vmul.f32 %v11378_v28, %v11215_v23  ;;  %10405 = vrcp.f32 %v1107_v26  ;;  %v1294_v23 = vmul.f32 %v11371_v4, %v11371_v4  ;;  %v18285_v26 = vld [vmem:[#allocation8_spill] sm:$0xff] }
 0x18b   : > { %18275 = vst [vmem:[#allocation48_spill] sm:$0xff] %v11381_v6  ;;  %18279 = vst [vmem:[#allocation51_spill] sm:$0xff] %v11399_v53  ;;  %v11417_v57 = vmul.f32 %v11401_v50, %v11252_v12  ;;  %v11421_v40 = vpop.eup %10399  ;;  %v11431_v7 = vpop.permute.xlu1 %842  ;;  %v11439_v42 = vpack.c.bf16 %v1747_v33, %v1746_v1  ;;  %10407 = vrcp.f32 %v1387_v48  ;;  %v11449_v12 = vsub.f32 %v11027_v31, %v10989_v22 }
 0x18c   : > { %18280 = vst [vmem:[#allocation52_spill] sm:$0xff] %v11405_v63  ;;  %v1342_v63 = vmul.f32 %v11296_v47, %v11296_v47  ;;  %v11429_v25 = vmul.f32 %v11378_v28, %v11409_v62  ;;  %v11453_v61 = vsub.f32 %v18285_v26, %v10989_v22  ;;  %v1062_v1 = vand.u32 2147483647, %v11289_v36 }
 0x18d   : > { %v11437_v6 = vmul.f32 %v11401_v50, %v11417_v57  ;;  %18283 = vst [vmem:[#allocation55_spill] sm:$0xff] %v11439_v42  ;;  %18284 = vst [vmem:[#allocation56_spill] sm:$0xff] %v11449_v12  ;;  %v1482_v33 = vmul.f32 %v11197_v35, %v11209_v16  ;;  %10409 = vrcp.f32 %v1388_v24  ;;  %v1629_v31 = vsub.f32 0.0, %v11357_v8  ;;  %v11468_v52 = vpop.permute.xlu0 %857 }
 0x18e   : > { %18281 = vst [vmem:[#allocation53_spill] sm:$0xff] %v11429_v25  ;;  %v11445_v25 = vmul.f32 %v11421_v40, %v11254_v2  ;;  %18286 = vst [vmem:[#allocation8_spill] sm:$0xff] %v11453_v61  ;;  %v1390_v47 = vadd.f32 %v1342_v63, %v1294_v23  ;;  %v1061_v2 = vand.u32 2147483647, %v11340_v19  ;;  %v1064_v26 = vand.u32 2147483647, %v11359_v3 }
 0x18f   : > { %18282 = vst [vmem:[#allocation54_spill] sm:$0xff] %v11437_v6  ;;  %v18289_v6 = vand.u32 2147483647, %v18288_v27  ;;  %v1063_v14 = vand.u32 2147483647, %v11376_v59  ;;  %v1632_v35 = vsub.f32 0.0, %v11374_v46  ;;  %v11473_v16 = vmul.f32 %v11361_v38, %v11021_v41 }
 0x190   : > { %v11460_v48 = vmul.f32 %v11421_v40, %v11445_v25  ;;  %v18291_v63 = vld [vmem:[#allocation10_spill] sm:$0xff]  ;;  %v1066_v8 = vand.u32 2147483647, %v11419_v44  ;;  %v18295_v42 = vand.u32 2147483647, %v11070_v60  ;;  %v1530_v22 = vmul.f32 %v11367_v0, %v1482_v33 }
 0x191   : > { %v1110_v53 = vadd.f32 %v1062_v1, %v18289_v6  ;;  %18290 = vst [vmem:[#allocation9_spill] sm:$0xff] %v11473_v16  ;;  %v18292_v24 = vand.u32 2147483647, %v18291_v63  ;;  %v18293_v1 = vld [vmem:[#allocation11_spill] sm:$0xff]  ;;  %v1068_v0 = vand.u32 2147483647, %v11468_v52  ;;  %v1488_v12 = vmul.f32 %v11328_v17, %v11347_v20 }
 0x192   : > { %18287 = vst [vmem:[#allocation57_spill] sm:$0xff] %v11460_v48  ;;  %v11478_v48 = vpop.permute.xlu1 %850  ;;  %v11480_v6 = vpop.eup %10401  ;;  %v18294_v10 = vand.u32 2147483647, %v18293_v1  ;;  %v1111_v46 = vadd.f32 %v1063_v14, %v18295_v42  ;;  %9614 = vmatmul.mubr.msk.f32.vlgmr.msra.gmra.mrb[0].mxu0 %vm1786_vm1, %v1530_v22  ;;  %v11516_v22 = vmul.f32 %v11378_v28, %v11025_v43  ;;  %v1346_v20 = vmul.f32 %v11409_v62, %v11409_v62 }
 0x193   : > { %v1109_v23 = vadd.f32 %v1061_v2, %v18292_v24  ;;  %10411 = vrcp.f32 %v1110_v53  ;;  %v11487_v41 = vpop.eup %10403  ;;  %v11491_v2 = vmul.f32 %v11480_v6, %v1629_v31  ;;  %v1065_v24 = vand.u32 2147483647, %v11431_v7  ;;  %10163 = vmatpush3.bf16.msra.mxu0 %v11121_v58 }
 0x194   : > { %v1112_v21 = vadd.f32 %v1064_v26, %v18294_v10  ;;  %10413 = vrcp.f32 %v1390_v47  ;;  %v11494_v63 = vpop.eup %10405  ;;  %v11497_v53 = vmul.f32 %v11487_v41, %v1632_v35  ;;  %v18298_v10 = vld [vmem:[#allocation13_spill] sm:$0xff]  ;;  %v1295_v47 = vmul.f32 %v11473_v16, %v11473_v16 }
 0x195   : > { %18296 = vst [vmem:[#allocation11_spill] sm:$0xff] %v11491_v2  ;;  %10415 = vrcp.f32 %v1109_v23  ;;  %v18299_v14 = vand.u32 2147483647, %v18298_v10  ;;  %v11507_v33 = vmul.f32 %v11494_v63, %v11044_v56  ;;  %v1251_v31 = vmul.f32 %v11494_v63, %v11287_v32  ;;  %v11524_v32 = vpop.eup %10407 }
 0x196   : > { %18297 = vst [vmem:[#allocation58_spill] sm:$0xff] %v11497_v53  ;;  %10417 = vrcp.f32 %v1112_v21  ;;  %v18300_v26 = vmov 0.0   ;;  %v18301_v35 = vand.u32 2147483647, %v11081_v39  ;;  %v1067_v56 = vand.u32 2147483647, %v11478_v48  ;;  %v11533_v53 = vpop.permute.xlu1 %861 }
 0x197   : > { %v1114_v42 = vadd.f32 %v1066_v8, %v18299_v14  ;;  %9616 = vmatprep.mubr.msk.f32.mxu0 %vm10693_vm0, %v18300_v26  ;;  %10419 = vrcp.f32 %v1111_v46  ;;  %v11521_v8 = vpop.permute.xlu0 %865  ;;  %v18302_v14 = vmov 0.0|0.0   ;;  %18303 = vst [vmem:[#allocation13_spill] sm:$0xff] %v11524_v32  ;;  %v1343_v21 = vmul.f32 %v11385_v9, %v11385_v9  ;;  %v11543_v58 = vpop.eup %10409 }
 0x198   : > { %v1113_v23 = vadd.f32 %v1065_v24, %v18301_v35  ;;  %10164 = vmatprep.subr.bf16.mxu0 %v18302_v14  ;;  %v1299_v38 = vmul.f32 %v11507_v33, %v11507_v33  ;;  %v1347_v43 = vmul.f32 %v1251_v31, %v1251_v31  ;;  %v11531_v46 = vmul.f32 %v11494_v63, %v1251_v31 }
 0x199   : > { %v11537_v24 = vmul.f32 %v11401_v50, %v11034_v49  ;;  %10421 = vrcp.f32 %v1114_v42  ;;  %v18304_v35 = vand.u32 2147483647, %v11085_v5  ;;  %v1483_v9 = vmul.f32 %v11274_v30, %v11322_v11  ;;  %18305 = vst [vmem:[#allocation59_spill] sm:$0xff] %v11543_v58  ;;  %10166 = vmatpush3.bf16.msra.mxu0 %v11123_v15 }
 0x19a   : > { %v1395_v31 = vadd.f32 %v1347_v43, %v1299_v38  ;;  %v1070_v28 = vand.u32 2147483647, %v11521_v8  ;;  %v1484_v16 = vmul.f32 %v11230_v34, %v11309_v18  ;;  %10423 = vrcp.f32 %v1113_v23  ;;  %10173 = vmatprep.subr.bf16.mxu0 %v18302_v14 }
 0x19b   : > { %v1116_v2 = vadd.f32 %v1068_v0, %v18304_v35  ;;  %v18306_v49 = vand.u32 2147483647, %v11091_v37  ;;  %v1531_v0 = vmul.f32 %v11524_v32, %v1483_v9  ;;  %v1069_v30 = vand.u32 2147483647, %v11533_v53  ;;  %v11592_v35 = vpop.permute.xlu0 %876 }
 0x19c   : > { %v11556_v11 = vadd.f32 %v1343_v21, %v1295_v47  ;;  %v1298_v17 = vmul.f32 %v11516_v22, %v11516_v22  ;;  %10425 = vrcp.f32 %v1395_v31  ;;  %v1485_v34 = vmul.f32 %v11314_v13, %v11336_v45 }
 0x19d   : > { %v1115_v42 = vadd.f32 %v1067_v56, %v18306_v49  ;;  %v11562_v18 = vpop.eup %10411  ;;  %v1297_v38 = vmul.f32 %v11537_v24, %v11537_v24  ;;  %v1345_v23 = vmul.f32 %v11417_v57, %v11417_v57  ;;  %10427 = vrcp.f32 %v1116_v2  ;;  %9617 = vmatmul.mubr.msk.f32.gmra.mrb[2].mxu0 %vm1786_vm1, %v1531_v0 }
 0x19e   : > { %v11571_v47 = vpop.eup %10413  ;;  %v11575_v56 = vmul.f32 %v11562_v18, %v18288_v27  ;;  %v1254_v45 = vmul.f32 %v11562_v18, %v11289_v36  ;;  %v18308_v13 = vand.u32 2147483647, %v11095_v51  ;;  %9619 = vmatprep.mubr.msk.f32.mxu0 %vm10693_vm0, %v18300_v26  ;;  %v1533_v57 = vmul.f32 %v11480_v6, %v1485_v34 }
 0x19f   : > { %18307 = vst [vmem:[#allocation60_spill] sm:$0xff] %v11571_v47  ;;  %v11584_v2 = vpop.eup %10415  ;;  %v11588_v21 = vmul.f32 %v11421_v40, %v11040_v55  ;;  %10429 = vrcp.f32 %v1115_v42  ;;  %v18310_v27 = vand.u32 2147483647, %v11104_v54  ;;  %v1532_v36 = vmul.f32 %v11543_v58, %v1484_v16  ;;  %v18336_v58 = vld [vmem:[#allocation19_spill] sm:$0xff] }
 0x1a0   : > { %v1118_v62 = vadd.f32 %v1070_v28, %v18308_v13  ;;  %18309 = vst [vmem:[#allocation61_spill] sm:$0xff] %v11584_v2  ;;  %v11595_v28 = vpop.eup %10417  ;;  %v1302_v9 = vmul.f32 %v11575_v56, %v11575_v56  ;;  %v1350_v6 = vmul.f32 %v1254_v45, %v1254_v45  ;;  %v11600_v31 = vmul.f32 %v11562_v18, %v1254_v45  ;;  %v1751_v45 = vld [vmem:[%s10847_s20 + $0xe8] sm:$0xff] }
 0x1a1   : > { %v1117_v43 = vadd.f32 %v1069_v30, %v18310_v27  ;;  %18311 = vst [vmem:[#allocation62_spill] sm:$0xff] %v11595_v28  ;;  %9631 = vmatmul.mubr.msk.f32.vlgmr.msra.gmra.mrb[0].mxu1 %vm1786_vm1, %v1533_v57  ;;  %v1486_v55 = vmul.f32 %v11281_v29, %v11371_v4  ;;  %v11605_v49 = vpop.eup %10419  ;;  %v1394_v42 = vadd.f32 %v1346_v20, %v1298_v17  ;;  %v18313_v4 = vld [vmem:[#allocation18_spill] sm:$0xff]  ;;  %v11621_v17 = vpop.permute.xlu1 %872  ;;  %v1749_v57 = vld [vmem:[%s10847_s20 + $0xd8] sm:$0xff]  ;;  %v18337_v32 = vand.u32 2147483647, %v18336_v58 }
 0x1a2   : > { %18312 = vst [vmem:[#allocation63_spill] sm:$0xff] %v11605_v49  ;;  %v1393_v0 = vadd.f32 %v1345_v23, %v1297_v38  ;;  %v11609_v16 = vmul.f32 %v11584_v2, %v11340_v19  ;;  %v11613_v30 = vmul.f32 %v11595_v28, %v11359_v3  ;;  %9620 = vmatmul.mubr.msk.f32.gmra.mrb[4].mxu0 %vm1786_vm1, %v1532_v36  ;;  %10431 = vrcp.f32 %v1118_v62  ;;  %v1750_v23 = vld [vmem:[%s10847_s20 + $0xe0] sm:$0xff]  ;;  %v1748_v62 = vld [vmem:[%s10847_s20 + $0xd0] sm:$0xff]  ;;  %v18317_v36 = vld [vmem:[#allocation7_spill] sm:$0xff] }
 0x1a3   : > { %v1398_v34 = vadd.f32 %v1350_v6, %v1302_v9  ;;  %v11618_v29 = vmul.f32 %v11605_v49, %v11376_v59  ;;  %10169 = vmatpush3.bf16.msra.mxu1 %v18313_v4  ;;  %9633 = vmatprep.mubr.msk.f32.mxu1 %vm10693_vm0, %v18300_v26  ;;  %v1534_v19 = vmul.f32 %v11571_v47, %v1486_v55  ;;  %v11626_v3 = vpop.eup %10421  ;;  %10433 = vrcp.f32 %v1117_v43  ;;  %v18318_v9 = vld [vmem:[#allocation12_spill] sm:$0xff]  ;;  %v18321_v43 = vld [vmem:[#allocation15_spill] sm:$0xff] }
 0x1a4   : > { %18314 = vst [vmem:[#allocation64_spill] sm:$0xff] %v11626_v3  ;;  %v1536_v20 = vmul.f32 %v11487_v41, %v1488_v12  ;;  %v1300_v59 = vmul.f32 %v11588_v21, %v11588_v21  ;;  %v11633_v38 = vmul.f32 %v11584_v2, %v11609_v16  ;;  %9647 = vmatprep.mubr.msk.f32.mxu0 %vm10693_vm0, %v18300_v26  ;;  %v1072_v41 = vand.u32 2147483647, %v11592_v35  ;;  %v11650_v27 = vpop.eup %10423 }
 0x1a5   : > { %v1348_v13 = vmul.f32 %v11445_v25, %v11445_v25  ;;  %10435 = vrcp.f32 %v1398_v34  ;;  %v11643_v12 = vmul.f32 %v11595_v28, %v11613_v30  ;;  %9634 = vmatmul.mubr.msk.f32.gmra.mrb[2].mxu1 %vm1786_vm1, %v1534_v19  ;;  %10170 = vmatprep.subr.bf16.mxu1 %v18302_v14  ;;  %v11655_v25 = vsub.f32 %v18318_v9, %v18317_v36  ;;  %v11662_v34 = vpop.permute.xlu0 %887  ;;  %v18323_v9 = vld [vmem:[#allocation25_spill] sm:$0xff]  ;;  %v11699_v4 = vpop.permute.xlu1 %880 }
 0x1a6   : > { %18315 = vst [vmem:[#allocation65_spill] sm:$0xff] %v11633_v38  ;;  %v1635_v6 = vsub.f32 0.0, %v11531_v46  ;;  %v11660_v55 = vmul.f32 %v11605_v49, %v11618_v29  ;;  %9648 = vmatmul.mubr.msk.f32.vlgmr.msra.gmra.mrb[6].mxu0 %vm1786_vm1, %v1536_v20  ;;  %9636 = vmatprep.mubr.msk.f32.mxu1 %vm10693_vm0, %v18300_v26  ;;  %v11667_v19 = vpop.eup %10425  ;;  %10437 = vrcp.f32 %v11556_v11  ;;  %v11676_v46 = vmul.f32 %v11626_v3, %v11419_v44 }
 0x1a7   : > { %18316 = vst [vmem:[#allocation66_spill] sm:$0xff] %v11643_v12  ;;  %18319 = vst [vmem:[#allocation7_spill] sm:$0xff] %v11655_v25  ;;  %v11671_v12 = vsub.f32 %v18321_v43, %v18317_v36  ;;  %10172 = vmatpush3.bf16.msra.mxu1 %v18323_v9  ;;  %9650 = vmatprep.mubr.msk.f32.mxu0 %vm10693_vm0, %v18300_v26  ;;  %v11681_v20 = vpack.c.bf16 %v1751_v45, %v1750_v23  ;;  %10439 = vrcp.f32 %v1394_v42  ;;  %v18326_v43 = vld [vmem:[#allocation10_spill] sm:$0xff]  ;;  %v18327_v36 = vld [vmem:[#allocation32_spill] sm:$0xff] }
 0x1a8   : > { %18320 = vst [vmem:[#allocation12_spill] sm:$0xff] %v11660_v55  ;;  %v11683_v55 = vpop.eup %10427  ;;  %v11686_v38 = vmul.f32 %v11667_v19, %v1635_v6  ;;  %v11690_v11 = vmul.f32 %v11584_v2, %v18326_v43  ;;  %10175 = vmatpush3.bf16.msra.mxu0 %v18327_v36  ;;  %10179 = vmatprep.subr.bf16.mxu1 %v18302_v14  ;;  %10441 = vrcp.f32 %v1393_v0  ;;  %v18329_v23 = vld [vmem:[#allocation14_spill] sm:$0xff]  ;;  %v1071_v42 = vand.u32 2147483647, %v11621_v17  ;;  %v1753_v2 = vld [vmem:[%s10847_s20 + $0xf8] sm:$0xff] }
 0x1a9   : > { %18322 = vst [vmem:[#allocation15_spill] sm:$0xff] %v11671_v12  ;;  %18324 = vst [vmem:[#allocation67_spill] sm:$0xff] %v11681_v20  ;;  %v11694_v44 = vpack.c.bf16 %v1749_v57, %v1748_v62  ;;  %v1396_v9 = vadd.f32 %v1348_v13, %v1300_v59  ;;  %v18330_v45 = vand.u32 2147483647, %v18329_v23  ;;  %10176 = vmatprep.subr.bf16.mxu0 %v18302_v14  ;;  %v11702_v6 = vpop.eup %10429  ;;  %v1074_v59 = vand.u32 2147483647, %v11662_v34 }
 0x1aa   : > { %18325 = vst [vmem:[#allocation68_spill] sm:$0xff] %v11686_v38  ;;  %18331 = vst [vmem:[#allocation14_spill] sm:$0xff] %v11702_v6  ;;  %v11706_v43 = vmul.f32 %v11626_v3, %v11676_v46  ;;  %v11710_v62 = vmul.f32 %v11650_v27, %v11081_v39  ;;  %v1257_v0 = vmul.f32 %v11650_v27, %v11431_v7  ;;  %v11735_v38 = vpop.permute.xlu0 %895 }
 0x1ab   : > { %18328 = vst [vmem:[#allocation10_spill] sm:$0xff] %v11694_v44  ;;  %v1120_v47 = vadd.f32 %v1072_v41, %v18330_v45  ;;  %v11717_v13 = vmul.f32 %v11595_v28, %v18293_v1  ;;  %v11721_v41 = vmul.f32 %v11605_v49, %v11070_v60  ;;  %v11725_v57 = vmul.f32 %v11683_v55, %v11085_v5  ;;  %v18334_v60 = vld [vmem:[#allocation38_spill] sm:$0xff]  ;;  %v1752_v49 = vld [vmem:[%s10847_s20 + $0xf0] sm:$0xff] }
 0x1ac   : > { %18332 = vst [vmem:[#allocation69_spill] sm:$0xff] %v11706_v43  ;;  %v1260_v39 = vmul.f32 %v11683_v55, %v11468_v52  ;;  %v1301_v7 = vmul.f32 %v11690_v11, %v11690_v11  ;;  %v1349_v45 = vmul.f32 %v11609_v16, %v11609_v16  ;;  %v1305_v1 = vmul.f32 %v11710_v62, %v11710_v62  ;;  %v11738_v36 = vpop.eup %10431 }
 0x1ad   : > { %18333 = vst [vmem:[#allocation70_spill] sm:$0xff] %v11717_v13  ;;  %v1353_v43 = vmul.f32 %v1257_v0, %v1257_v0  ;;  %10178 = vmatpush3.bf16.msra.mxu0 %v18334_v60  ;;  %18335 = vst [vmem:[#allocation71_spill] sm:$0xff] %v11738_v36  ;;  %v11741_v5 = vmul.f32 %v11650_v27, %v1257_v0  ;;  %v1308_v52 = vmul.f32 %v11725_v57, %v11725_v57  ;;  %v11748_v61 = vpop.eup %10433 }
 0x1ae   : > { %v1356_v15 = vmul.f32 %v1260_v39, %v1260_v39  ;;  %v1119_v16 = vadd.f32 %v1071_v42, %v18337_v32  ;;  %10185 = vmatprep.subr.bf16.mxu0 %v18302_v14  ;;  %v1638_v60 = vsub.f32 0.0, %v11600_v31  ;;  %v11752_v25 = vmul.f32 %v11683_v55, %v1260_v39 }
 0x1af   : > { %v1401_v12 = vadd.f32 %v1353_v43, %v1305_v1  ;;  %v11756_v0 = vmul.f32 %v11702_v6, %v11478_v48  ;;  %v11758_v20 = vpop.eup %10435  ;;  %v1304_v32 = vmul.f32 %v11717_v13, %v11717_v13  ;;  %v1352_v42 = vmul.f32 %v11613_v30, %v11613_v30  ;;  %v11766_v43 = vpop.permute.xlu1 %891 }
 0x1b0   : > { %v1303_v28 = vmul.f32 %v11721_v41, %v11721_v41  ;;  %v1404_v31 = vadd.f32 %v1356_v15, %v1308_v52  ;;  %v11769_v39 = vmul.f32 %v11758_v20, %v1638_v60  ;;  %v1397_v1 = vadd.f32 %v1349_v45, %v1301_v7  ;;  %v11775_v13 = vpop.eup %10437 }
 0x1b1   : > { %v1351_v48 = vmul.f32 %v11618_v29, %v11618_v29  ;;  %10443 = vrcp.f32 %v1401_v12  ;;  %18339 = vst [vmem:[#allocation72_spill] sm:$0xff] %v11775_v13  ;;  %v11779_v30 = vmul.f32 %v11626_v3, %v18298_v10  ;;  %v11783_v15 = vmul.f32 %v11702_v6, %v11756_v0  ;;  %v11789_v45 = vpop.eup %10439  ;;  %v18343_v10 = vld [vmem:[#allocation20_spill] sm:$0xff] }
 0x1b2   : > { %18338 = vst [vmem:[#allocation19_spill] sm:$0xff] %v11769_v39  ;;  %10445 = vrcp.f32 %v1404_v31  ;;  %v11787_v7 = vmul.f32 %v11738_v36, %v11521_v8  ;;  %18342 = vst [vmem:[#allocation75_spill] sm:$0xff] %v11789_v45  ;;  %v1491_v29 = vmul.f32 %v11494_v63, %v11507_v33  ;;  %v11795_v12 = vmul.f32 %v11748_v61, %v11533_v53  ;;  %v11799_v31 = vpop.permute.xlu0 %906 }
 0x1b3   : > { %18340 = vst [vmem:[#allocation73_spill] sm:$0xff] %v11779_v30  ;;  %18341 = vst [vmem:[#allocation74_spill] sm:$0xff] %v11783_v15  ;;  %10447 = vrcp.f32 %v1120_v47  ;;  %v18344_v60 = vand.u32 2147483647, %v18343_v10  ;;  %v11801_v15 = vpop.eup %10441  ;;  %v1494_v8 = vmul.f32 %v11562_v18, %v11575_v56  ;;  %v11809_v63 = vpack.c.bf16 %v1753_v2, %v1752_v49  ;;  %v11825_v2 = vpop.permute.xlu1 %902 }
 0x1b4   : > { %18345 = vst [vmem:[#allocation20_spill] sm:$0xff] %v11801_v15  ;;  %10449 = vrcp.f32 %v1396_v9  ;;  %v11807_v39 = vmul.f32 %v11738_v36, %v11787_v7  ;;  %v11812_v53 = vmul.f32 %v11667_v19, %v1491_v29  ;;  %v11814_v33 = vadd.f32 %v1352_v42, %v1304_v32 }
 0x1b5   : > { %v1122_v52 = vadd.f32 %v1074_v59, %v18344_v60  ;;  %18347 = vst [vmem:[#allocation77_spill] sm:$0xff] %v11809_v63  ;;  %v11818_v47 = vmul.f32 %v11748_v61, %v11795_v12  ;;  %10451 = vrcp.f32 %v1119_v16  ;;  %v11820_v9 = vadd.f32 %v1351_v48, %v1303_v28  ;;  %v18349_v16 = vld [vmem:[#allocation21_spill] sm:$0xff]  ;;  %v18352_v48 = vld [vmem:[#allocation46_spill] sm:$0xff] }
 0x1b6   : > { %18346 = vst [vmem:[#allocation76_spill] sm:$0xff] %v11807_v39  ;;  %10453 = vrcp.f32 %v1397_v1  ;;  %v1306_v18 = vmul.f32 %v11779_v30, %v11779_v30  ;;  %v1073_v56 = vand.u32 2147483647, %v11699_v4  ;;  %v1354_v49 = vmul.f32 %v11676_v46, %v11676_v46  ;;  %v18351_v1 = vld [vmem:[#allocation9_spill] sm:$0xff]  ;;  %v11849_v63 = vpop.permute.xlu0 %917 }
 0x1b7   : > { %18348 = vst [vmem:[#allocation78_spill] sm:$0xff] %v11818_v47  ;;  %v11831_v19 = vmul.f32 %v11702_v6, %v11091_v37  ;;  %10455 = vrcp.f32 %v1122_v52  ;;  %v1076_v59 = vand.u32 2147483647, %v11735_v38  ;;  %v1641_v28 = vsub.f32 0.0, %v11741_v5  ;;  %v18353_v37 = vld [vmem:[#allocation22_spill] sm:$0xff] }
 0x1b8   : > { %v18350_v32 = vand.u32 2147483647, %v18349_v16  ;;  %v1487_v29 = vmul.f32 %v18352_v48, %v18351_v1  ;;  %v1489_v60 = vmul.f32 %v11401_v50, %v11537_v24  ;;  %v11843_v46 = vmul.f32 %v11738_v36, %v11095_v51  ;;  %v18355_v51 = vld [vmem:[#allocation23_spill] sm:$0xff] }
 0x1b9   : > { %v18354_v47 = vand.u32 2147483647, %v18353_v37  ;;  %v1075_v39 = vand.u32 2147483647, %v11766_v43  ;;  %v1078_v5 = vand.u32 2147483647, %v11799_v31  ;;  %v11863_v30 = vadd.f32 %v1354_v49, %v1306_v18 }
 0x1ba   : > { %v1121_v42 = vadd.f32 %v1073_v56, %v18350_v32  ;;  %v1644_v56 = vsub.f32 0.0, %v11752_v25  ;;  %v1535_v32 = vmul.f32 %v11775_v13, %v1487_v29  ;;  %v1537_v50 = vmul.f32 %v11801_v15, %v1489_v60  ;;  %v11873_v60 = vpop.permute.xlu1 %910 }
 0x1bb   : > { %v1124_v52 = vadd.f32 %v1076_v59, %v18354_v47  ;;  %v11854_v24 = vpop.eup %10443  ;;  %v18356_v1 = vand.u32 2147483647, %v18355_v51  ;;  %v18357_v47 = vld [vmem:[#allocation24_spill] sm:$0xff]  ;;  %v1077_v6 = vand.u32 2147483647, %v11825_v2  ;;  %v11882_v18 = vmul.f32 %v11748_v61, %v11104_v54  ;;  %v18365_v54 = vld [vmem:[#allocation27_spill] sm:$0xff] }
 0x1bc   : > { %10457 = vrcp.f32 %v1121_v42  ;;  %v18358_v59 = vand.u32 2147483647, %v18357_v47  ;;  %v11861_v3 = vpop.eup %10445  ;;  %v11866_v25 = vmul.f32 %v11854_v24, %v1641_v28  ;;  %9637 = vmatmul.mubr.msk.f32.gmra.mrb[4].mxu1 %vm1786_vm1, %v1535_v32  ;;  %9651 = vmatmul.mubr.msk.f32.gmra.mrb[8].mxu0 %vm1786_vm1, %v1537_v50  ;;  %v18360_v42 = vld [vmem:[#allocation47_spill] sm:$0xff] }
 0x1bd   : > { %10459 = vrcp.f32 %v1124_v52  ;;  %v1123_v48 = vadd.f32 %v1075_v39, %v18356_v1  ;;  %v1490_v29 = vmul.f32 %v18360_v42, %v11516_v22  ;;  %v1080_v39 = vand.u32 2147483647, %v11849_v63  ;;  %v11875_v52 = vpop.eup %10447  ;;  %9653 = vmatprep.mubr.msk.f32.mxu0 %vm10693_vm0, %v18300_v26  ;;  %9664 = vmatprep.mubr.msk.f32.mxu1 %vm10693_vm0, %v18300_v26  ;;  %v18362_v22 = vld [vmem:[#allocation26_spill] sm:$0xff] }
 0x1be   : > { %v1126_v36 = vadd.f32 %v1078_v5, %v18358_v59  ;;  %18359 = vst [vmem:[#allocation21_spill] sm:$0xff] %v11866_v25  ;;  %v11878_v5 = vmul.f32 %v11861_v3, %v1644_v56  ;;  %v18363_v49 = vand.u32 2147483647, %v18362_v22  ;;  %v11890_v32 = vpop.eup %10449  ;;  %v1264_v56 = vmul.f32 %v11875_v52, %v11592_v35 }
 0x1bf   : > { %10461 = vrcp.f32 %v1123_v48  ;;  %18364 = vst [vmem:[#allocation46_spill] sm:$0xff] %v11890_v32  ;;  %v1538_v50 = vmul.f32 %v11789_v45, %v1490_v29  ;;  %v18366_v1 = vand.u32 2147483647, %v18365_v54  ;;  %v11897_v59 = vpop.eup %10451  ;;  %v1542_v42 = vmul.f32 %v11758_v20, %v1494_v8 }
 0x1c0   : > { %18361 = vst [vmem:[#allocation9_spill] sm:$0xff] %v11878_v5  ;;  %v1125_v28 = vadd.f32 %v1077_v6, %v18363_v49  ;;  %10463 = vrcp.f32 %v1126_v36  ;;  %v1307_v5 = vmul.f32 %v11831_v19, %v11831_v19  ;;  %v1355_v6 = vmul.f32 %v11756_v0, %v11756_v0  ;;  %v11906_v35 = vpop.eup %10453  ;;  %9665 = vmatmul.mubr.msk.f32.vlgmr.msra.gmra.mrb[6].mxu1 %vm1786_vm1, %v11812_v53  ;;  %v11944_v53 = vpop.permute.xlu1 %921 }
 0x1c1   : > { %v1128_v48 = vadd.f32 %v1080_v39, %v18366_v1  ;;  %v1310_v49 = vmul.f32 %v11843_v46, %v11843_v46  ;;  %18367 = vst [vmem:[#allocation22_spill] sm:$0xff] %v11906_v35  ;;  %v11910_v36 = vmul.f32 %v11875_v52, %v18329_v23  ;;  %v11913_v29 = vmul.f32 %v11875_v52, %v1264_v56  ;;  %v11922_v8 = vpop.eup %10455 }
 0x1c2   : > { %v11917_v20 = vmul.f32 %v11897_v59, %v18336_v58  ;;  %9654 = vmatmul.mubr.msk.f32.gmra.mrb[10].mxu0 %vm1786_vm1, %v1538_v50  ;;  %v1492_v0 = vmul.f32 %v11421_v40, %v11588_v21  ;;  %v1358_v39 = vmul.f32 %v11787_v7, %v11787_v7  ;;  %v1309_v23 = vmul.f32 %v11882_v18, %v11882_v18  ;;  %v11934_v58 = vpop.permute.xlu0 %925  ;;  %v18369_v7 = vld [vmem:[#allocation39_spill] sm:$0xff] }
 0x1c3   : > { %18368 = vst [vmem:[#allocation23_spill] sm:$0xff] %v11913_v29  ;;  %v1263_v1 = vmul.f32 %v11897_v59, %v11621_v17  ;;  %10465 = vrcp.f32 %v1125_v28  ;;  %9681 = vmatprep.mubr.msk.f32.mxu0 %vm10693_vm0, %v18300_v26  ;;  %v1357_v40 = vmul.f32 %v11795_v12, %v11795_v12  ;;  %10181 = vmatpush3.bf16.msra.mxu1 %v18369_v7 }
 0x1c4   : > { %v1311_v21 = vmul.f32 %v11917_v20, %v11917_v20  ;;  %10467 = vrcp.f32 %v1128_v48  ;;  %9667 = vmatprep.mubr.msk.f32.mxu1 %vm10693_vm0, %v18300_v26  ;;  %v1540_v17 = vmul.f32 %v11890_v32, %v1492_v0  ;;  %v11951_v12 = vmul.f32 %v11922_v8, %v18343_v10  ;;  %10182 = vmatprep.subr.bf16.mxu1 %v18302_v14 }
 0x1c5   : > { %v1359_v28 = vmul.f32 %v1263_v1, %v1263_v1  ;;  %v11947_v50 = vmul.f32 %v11897_v59, %v1263_v1  ;;  %v1266_v25 = vmul.f32 %v11922_v8, %v11662_v34  ;;  %10469 = vrcp.f32 %v11814_v33  ;;  %v1754_v33 = vld [vmem:[%s10847_s20 + $0x100] sm:$0xff] }
 0x1c6   : > { %v11956_v48 = vpop.eup %10457  ;;  %v1403_v0 = vadd.f32 %v1355_v6, %v1307_v5  ;;  %v1312_v1 = vmul.f32 %v11910_v36, %v11910_v36  ;;  %v1360_v7 = vmul.f32 %v1264_v56, %v1264_v56  ;;  %9682 = vmatmul.mubr.msk.f32.vlgmr.msra.gmra.mrb[12].mxu0 %vm1786_vm1, %v1542_v42  ;;  %10471 = vrcp.f32 %v11820_v9  ;;  %9668 = vmatmul.mubr.msk.f32.gmra.mrb[8].mxu1 %vm1786_vm1, %v1540_v17  ;;  %v1755_v5 = vld [vmem:[%s10847_s20 + $0x108] sm:$0xff]  ;;  %v18372_v6 = vld [vmem:[#allocation45_spill] sm:$0xff] }
 0x1c7   : > { %18370 = vst [vmem:[#allocation24_spill] sm:$0xff] %v11956_v48  ;;  %v11962_v10 = vpop.eup %10459  ;;  %v1407_v32 = vadd.f32 %v1359_v28, %v1311_v21  ;;  %v1314_v34 = vmul.f32 %v11951_v12, %v11951_v12  ;;  %v1362_v45 = vmul.f32 %v1266_v25, %v1266_v25  ;;  %9684 = vmatprep.mubr.msk.f32.mxu0 %vm10693_vm0, %v18300_v26  ;;  %10473 = vrcp.f32 %v11863_v30 }
 0x1c8   : > { %18371 = vst [vmem:[#allocation47_spill] sm:$0xff] %v11962_v10  ;;  %v1406_v56 = vadd.f32 %v1358_v39, %v1310_v49  ;;  %v11974_v42 = vmul.f32 %v11922_v8, %v1266_v25  ;;  %v11978_v9 = vmul.f32 %v11956_v48, %v11699_v4  ;;  %10184 = vmatpush3.bf16.msra.mxu1 %v18372_v6  ;;  %v11989_v25 = vpop.permute.xlu0 %936  ;;  %v18374_v4 = vld [vmem:[#allocation55_spill] sm:$0xff]  ;;  %v1756_v49 = vld [vmem:[%s10847_s20 + $0x110] sm:$0xff] }
 0x1c9   : > { %v11981_v21 = vpop.eup %10461  ;;  %v1405_v17 = vadd.f32 %v1357_v40, %v1309_v23  ;;  %10475 = vrcp.f32 %v1407_v32  ;;  %v1410_v28 = vadd.f32 %v1362_v45, %v1314_v34  ;;  %v11985_v30 = vmul.f32 %v11962_v10, %v11735_v38  ;;  %9670 = vmatprep.mubr.msk.f32.mxu1 %vm10693_vm0, %v18300_v26  ;;  %10187 = vmatpush3.bf16.msra.mxu0 %v18374_v4  ;;  %v12003_v38 = vpop.permute.xlu1 %932  ;;  %v1758_v40 = vld [vmem:[%s10847_s20 + $0x120] sm:$0xff]  ;;  %v1759_v34 = vld [vmem:[%s10847_s20 + $0x128] sm:$0xff]  ;;  %v1757_v4 = vld [vmem:[%s10847_s20 + $0x118] sm:$0xff] }
 0x1ca   : > { %18373 = vst [vmem:[#allocation26_spill] sm:$0xff] %v11981_v21  ;;  %v11993_v39 = vpop.eup %10463  ;;  %v1497_v32 = vmul.f32 %v11650_v27, %v11710_v62  ;;  %10477 = vrcp.f32 %v1403_v0  ;;  %v11999_v45 = vmul.f32 %v11956_v48, %v11978_v9  ;;  %10191 = vmatprep.subr.bf16.mxu1 %v18302_v14  ;;  %10188 = vmatprep.subr.bf16.mxu0 %v18302_v14  ;;  %v1079_v62 = vand.u32 2147483647, %v11873_v60 }
 0x1cb   : > { %18375 = vst [vmem:[#allocation27_spill] sm:$0xff] %v11993_v39  ;;  %v12005_v23 = vpack.c.bf16 %v1755_v5, %v1754_v33  ;;  %v1408_v6 = vadd.f32 %v1360_v7, %v1312_v1  ;;  %10479 = vrcp.f32 %v1410_v28  ;;  %v12012_v27 = vmul.f32 %v11962_v10, %v11985_v30 }
 0x1cc   : > { %18376 = vst [vmem:[#allocation79_spill] sm:$0xff] %v11999_v45  ;;  %v1500_v0 = vmul.f32 %v11683_v55, %v11725_v57  ;;  %10481 = vrcp.f32 %v1406_v56  ;;  %v12019_v15 = vmul.f32 %v11981_v21, %v11766_v43  ;;  %v1082_v33 = vand.u32 2147483647, %v11934_v58 }
 0x1cd   : > { %18377 = vst [vmem:[#allocation80_spill] sm:$0xff] %v12005_v23  ;;  %18378 = vst [vmem:[#allocation81_spill] sm:$0xff] %v12012_v27  ;;  %v12022_v5 = vpop.eup %10465  ;;  %10483 = vrcp.f32 %v1405_v17  ;;  %v12026_v7 = vmul.f32 %v11993_v39, %v11799_v31  ;;  %10190 = vmatpush3.bf16.msra.mxu0 %v11694_v44  ;;  %v12029_v1 = vpack.c.bf16 %v1759_v34, %v1758_v40  ;;  %v12074_v13 = vpop.permute.xlu1 %940 }
 0x1ce   : > { %v12031_v28 = vpack.c.bf16 %v1757_v4, %v1756_v49  ;;  %v12033_v55 = vpop.eup %10467  ;;  %v12036_v57 = vmul.f32 %v11854_v24, %v1497_v32  ;;  %v12039_v43 = vmul.f32 %v11861_v3, %v1500_v0  ;;  %v12043_v56 = vmul.f32 %v11956_v48, %v18349_v16  ;;  %10197 = vmatprep.subr.bf16.mxu0 %v18302_v14  ;;  %v18385_v3 = vld [vmem:[#allocation28_spill] sm:$0xff]  ;;  %v12060_v16 = vpop.permute.xlu0 %947  ;;  %v18391_v0 = vld [vmem:[#allocation61_spill] sm:$0xff] }
 0x1cf   : > { %18379 = vst [vmem:[#allocation82_spill] sm:$0xff] %v12029_v1  ;;  %18381 = vst [vmem:[#allocation84_spill] sm:$0xff] %v12033_v55  ;;  %v12047_v31 = vmul.f32 %v11981_v21, %v12019_v15  ;;  %10485 = vrcp.f32 %v1408_v6  ;;  %v12052_v17 = vmul.f32 %v11897_v59, %v11917_v20  ;;  %v12056_v24 = vmul.f32 %v11993_v39, %v12026_v7  ;;  %v12062_v32 = vpop.eup %10469  ;;  %v18389_v59 = vld [vmem:[#allocation29_spill] sm:$0xff] }
 0x1d0   : > { %18380 = vst [vmem:[#allocation83_spill] sm:$0xff] %v12031_v28  ;;  %18382 = vst [vmem:[#allocation85_spill] sm:$0xff] %v12043_v56  ;;  %v18386_v4 = vand.u32 2147483647, %v18385_v3  ;;  %v12066_v40 = vmul.f32 %v12022_v5, %v18362_v22  ;;  %v1269_v6 = vmul.f32 %v12022_v5, %v11825_v2  ;;  %v18390_v20 = vand.u32 2147483647, %v18389_v59 }
 0x1d1   : > { %18383 = vst [vmem:[#allocation86_spill] sm:$0xff] %v12047_v31  ;;  %18384 = vst [vmem:[#allocation87_spill] sm:$0xff] %v12056_v24  ;;  %v1493_v44 = vmul.f32 %v18391_v0, %v11690_v11  ;;  %v12084_v22 = vmul.f32 %v12033_v55, %v18365_v54  ;;  %v1272_v2 = vmul.f32 %v12033_v55, %v11849_v63  ;;  %v1647_v11 = vsub.f32 0.0, %v11947_v50 }
 0x1d2   : > { %v1127_v49 = vadd.f32 %v1079_v62, %v18386_v4  ;;  %18387 = vst [vmem:[#allocation28_spill] sm:$0xff] %v12060_v16  ;;  %18388 = vst [vmem:[#allocation88_spill] sm:$0xff] %v12062_v32  ;;  %v1130_v34 = vadd.f32 %v1082_v33, %v18390_v20  ;;  %v12076_v62 = vpop.eup %10471  ;;  %v12080_v4 = vmul.f32 %v11962_v10, %v18353_v37  ;;  %v18396_v33 = vld [vmem:[#allocation63_spill] sm:$0xff]  ;;  %v1650_v10 = vsub.f32 0.0, %v11974_v42  ;;  %v12123_v1 = vpop.permute.xlu0 %955 }
 0x1d3   : > { %18392 = vst [vmem:[#allocation29_spill] sm:$0xff] %v12074_v13  ;;  %18393 = vst [vmem:[#allocation61_spill] sm:$0xff] %v12076_v62  ;;  %v1495_v20 = vmul.f32 %v18396_v33, %v11721_v41  ;;  %v12090_v24 = vpop.eup %10473  ;;  %v1313_v0 = vmul.f32 %v12043_v56, %v12043_v56  ;;  %v1317_v37 = vmul.f32 %v12066_v40, %v12066_v40 }
 0x1d4   : > { %18394 = vst [vmem:[#allocation89_spill] sm:$0xff] %v12080_v4  ;;  %18395 = vst [vmem:[#allocation90_spill] sm:$0xff] %v12084_v22  ;;  %v1365_v31 = vmul.f32 %v1269_v6, %v1269_v6  ;;  %v12097_v27 = vpop.eup %10475  ;;  %v1361_v54 = vmul.f32 %v11978_v9, %v11978_v9  ;;  %v12102_v63 = vmul.f32 %v12022_v5, %v1269_v6  ;;  %10487 = vrcp.f32 %v1127_v49 }
 0x1d5   : > { %18397 = vst [vmem:[#allocation63_spill] sm:$0xff] %v12090_v24  ;;  %v1320_v41 = vmul.f32 %v12084_v22, %v12084_v22  ;;  %v1368_v33 = vmul.f32 %v1272_v2, %v1272_v2  ;;  %v12106_v50 = vpop.eup %10477  ;;  %v12109_v45 = vmul.f32 %v12097_v27, %v1647_v11  ;;  %v12113_v29 = vmul.f32 %v11922_v8, %v11951_v12 }
 0x1d6   : > { %18398 = vst [vmem:[#allocation91_spill] sm:$0xff] %v12106_v50  ;;  %v1413_v48 = vadd.f32 %v1365_v31, %v1317_v37  ;;  %v12116_v9 = vpop.eup %10479  ;;  %v1316_v6 = vmul.f32 %v12080_v4, %v12080_v4  ;;  %v12121_v22 = vmul.f32 %v12033_v55, %v1272_v2  ;;  %v1364_v12 = vmul.f32 %v11985_v30, %v11985_v30  ;;  %v12133_v31 = vpop.permute.xlu1 %951 }
 0x1d7   : > { %18399 = vst [vmem:[#allocation92_spill] sm:$0xff] %v12109_v45  ;;  %v1416_v56 = vadd.f32 %v1368_v33, %v1320_v41  ;;  %v12125_v11 = vpop.eup %10481  ;;  %v12128_v8 = vmul.f32 %v12116_v9, %v1650_v10  ;;  %v1541_v42 = vmul.f32 %v11906_v35, %v1493_v44  ;;  %v12137_v2 = vadd.f32 %v1361_v54, %v1313_v0  ;;  %v18406_v54 = vld [vmem:[#allocation70_spill] sm:$0xff]  ;;  %v18408_v45 = vld [vmem:[#allocation31_spill] sm:$0xff] }
 0x1d8   : > { %18400 = vst [vmem:[#allocation93_spill] sm:$0xff] %v12125_v11  ;;  %10489 = vrcp.f32 %v1413_v48  ;;  %v12135_v37 = vpop.eup %10483  ;;  %v1543_v49 = vmul.f32 %v12076_v62, %v1495_v20  ;;  %v1081_v41 = vand.u32 2147483647, %v11944_v53  ;;  %v12143_v10 = vmul.f32 %v11981_v21, %v18355_v51  ;;  %v18407_v51 = vld [vmem:[#allocation62_spill] sm:$0xff] }
 0x1d9   : > { %18401 = vst [vmem:[#allocation94_spill] sm:$0xff] %v12128_v8  ;;  %18402 = vst [vmem:[#allocation95_spill] sm:$0xff] %v12135_v37  ;;  %10491 = vrcp.f32 %v1416_v56  ;;  %9671 = vmatmul.mubr.msk.f32.gmra.mrb[10].mxu1 %vm1786_vm1, %v1541_v42  ;;  %v1084_v44 = vand.u32 2147483647, %v11989_v25  ;;  %v1083_v48 = vand.u32 2147483647, %v12003_v38  ;;  %v12148_v30 = vpop.eup %10485  ;;  %v1496_v33 = vmul.f32 %v18407_v51, %v18406_v54 }
 0x1da   : > { %10493 = vrcp.f32 %v1130_v34  ;;  %18403 = vst [vmem:[#allocation96_spill] sm:$0xff] %v12148_v30  ;;  %9685 = vmatmul.mubr.msk.f32.gmra.mrb[14].mxu0 %vm1786_vm1, %v1543_v49  ;;  %v18404_v56 = vld [vmem:[#allocation30_spill] sm:$0xff]  ;;  %9698 = vmatprep.mubr.msk.f32.mxu1 %vm10693_vm0, %v18300_v26  ;;  %v1086_v34 = vand.u32 2147483647, %v12060_v16  ;;  %v1085_v42 = vand.u32 2147483647, %v12074_v13  ;;  %v12161_v8 = vmul.f32 %v11993_v39, %v18357_v47  ;;  %v12175_v16 = vpop.permute.xlu0 %966 }
 0x1db   : > { %v18405_v0 = vand.u32 2147483647, %v18404_v56  ;;  %v18409_v62 = vand.u32 2147483647, %v18408_v45  ;;  %9687 = vmatprep.mubr.msk.f32.mxu0 %vm10693_vm0, %v18300_v26  ;;  %v1088_v4 = vand.u32 2147483647, %v12123_v1  ;;  %v1544_v54 = vmul.f32 %v12062_v32, %v1496_v33 }
 0x1dc   : > { %v18412_v51 = vld [vmem:[#allocation34_spill] sm:$0xff]  ;;  %v18414_v13 = vld [vmem:[#allocation73_spill] sm:$0xff]  ;;  %v18415_v47 = vld [vmem:[#allocation64_spill] sm:$0xff] }
 0x1dd   : > { %v1129_v20 = vadd.f32 %v1081_v41, %v18405_v0  ;;  %v1132_v49 = vadd.f32 %v1084_v44, %v18409_v62  ;;  %v18410_v41 = vld [vmem:[#allocation33_spill] sm:$0xff]  ;;  %v18413_v21 = vand.u32 2147483647, %v18412_v51  ;;  %v1498_v39 = vmul.f32 %v18415_v47, %v18414_v13  ;;  %9699 = vmatmul.mubr.msk.f32.vlgmr.msra.gmra.mrb[12].mxu1 %vm1786_vm1, %v12036_v57 }
 0x1de   : > { %v18411_v0 = vand.u32 2147483647, %v18410_v41  ;;  %v12177_v62 = vadd.f32 %v1364_v12, %v1316_v6  ;;  %v1315_v44 = vmul.f32 %v12143_v10, %v12143_v10  ;;  %9688 = vmatmul.mubr.msk.f32.gmra.mrb[16].mxu0 %vm1786_vm1, %v1544_v54  ;;  %v18417_v6 = vld [vmem:[#allocation35_spill] sm:$0xff]  ;;  %9701 = vmatprep.mubr.msk.f32.mxu1 %vm10693_vm0, %v18300_v26  ;;  %v12202_v54 = vpop.eup %10487  ;;  %v1501_v47 = vmul.f32 %v11748_v61, %v11882_v18  ;;  %v18423_v18 = vld [vmem:[#allocation77_spill] sm:$0xff] }
 0x1df   : > { %10495 = vrcp.f32 %v1129_v20  ;;  %v1134_v55 = vadd.f32 %v1086_v34, %v18413_v21  ;;  %v12185_v20 = vpop.permute.xlu1 %962  ;;  %v18416_v21 = vld [vmem:[#allocation67_spill] sm:$0xff]  ;;  %v1546_v13 = vmul.f32 %v12090_v24, %v1498_v39  ;;  %v18418_v12 = vand.u32 2147483647, %v18417_v6  ;;  %9715 = vmatprep.mubr.msk.f32.mxu0 %vm10693_vm0, %v18300_v26 }
 0x1e0   : > { %v1131_v35 = vadd.f32 %v1083_v48, %v18411_v0  ;;  %v1363_v48 = vmul.f32 %v12019_v15, %v12019_v15  ;;  %10497 = vrcp.f32 %v1132_v49  ;;  %10193 = vmatpush3.bf16.msra.mxu1 %v18416_v21  ;;  %v1087_v34 = vand.u32 2147483647, %v12133_v31  ;;  %v18419_v15 = vld [vmem:[#allocation36_spill] sm:$0xff]  ;;  %v18421_v0 = vld [vmem:[#allocation14_spill] sm:$0xff] }
 0x1e1   : > { %v1133_v33 = vadd.f32 %v1085_v42, %v18418_v12  ;;  %v18420_v57 = vand.u32 2147483647, %v18419_v15  ;;  %v1090_v39 = vand.u32 2147483647, %v12175_v16  ;;  %v1318_v42 = vmul.f32 %v12161_v8, %v12161_v8  ;;  %10194 = vmatprep.subr.bf16.mxu1 %v18302_v14  ;;  %9702 = vmatmul.mubr.msk.f32.gmra.mrb[14].mxu1 %vm1786_vm1, %v1546_v13 }
 0x1e2   : > { %10499 = vrcp.f32 %v1131_v35  ;;  %v1499_v35 = vmul.f32 %v18421_v0, %v11831_v19  ;;  %v1089_v12 = vand.u32 2147483647, %v12185_v20  ;;  %v1366_v19 = vmul.f32 %v12026_v7, %v12026_v7  ;;  %9716 = vmatmul.mubr.msk.f32.vlgmr.msra.gmra.mrb[18].mxu0 %vm1786_vm1, %v12039_v43  ;;  %9704 = vmatprep.mubr.msk.f32.mxu1 %vm10693_vm0, %v18300_v26  ;;  %v18427_v43 = vld [vmem:[#allocation42_spill] sm:$0xff] }
 0x1e3   : > { %10501 = vrcp.f32 %v1134_v55  ;;  %v1136_v49 = vadd.f32 %v1088_v4, %v18420_v57  ;;  %v1653_v55 = vsub.f32 0.0, %v12102_v63  ;;  %v12211_v4 = vpop.eup %10489  ;;  %v1656_v57 = vsub.f32 0.0, %v12121_v22  ;;  %v18424_v22 = vld [vmem:[#allocation40_spill] sm:$0xff]  ;;  %9718 = vmatprep.mubr.msk.f32.mxu0 %vm10693_vm0, %v18300_v26  ;;  %10199 = vmatpush3.bf16.msra.mxu0 %v12005_v23 }
 0x1e4   : > { %v1271_v0 = vmul.f32 %v12202_v54, %v11873_v60  ;;  %v1547_v63 = vmul.f32 %v12106_v50, %v1499_v35  ;;  %v12220_v21 = vpop.eup %10491  ;;  %10503 = vrcp.f32 %v1133_v33  ;;  %10196 = vmatpush3.bf16.msra.mxu1 %v18423_v18  ;;  %v1549_v7 = vmul.f32 %v12135_v37, %v1501_v47  ;;  %v18429_v47 = vld [vmem:[#allocation7_spill] sm:$0xff]  ;;  %10200 = vmatprep.subr.bf16.mxu0 %v18302_v14  ;;  %v18446_v18 = vld [vmem:[#allocation84_spill] sm:$0xff] }
 0x1e5   : > { %v12223_v61 = vmul.f32 %v12211_v4, %v1653_v55  ;;  %v18425_v24 = vand.u32 2147483647, %v18424_v22  ;;  %v12231_v32 = vpop.eup %10493  ;;  %v12234_v13 = vmul.f32 %v12220_v21, %v1656_v57  ;;  %v12238_v35 = vmul.f32 %v12202_v54, %v18385_v3  ;;  %v18431_v3 = vld [vmem:[#allocation44_spill] sm:$0xff]  ;;  %10203 = vmatprep.subr.bf16.mxu1 %v18302_v14 }
 0x1e6   : > { %10505 = vrcp.f32 %v1136_v49  ;;  %v18428_v33 = vand.u32 2147483647, %v18427_v43  ;;  %v18432_v49 = vand.u32 2147483647, %v18431_v3  ;;  %9705 = vmatmul.mubr.msk.f32.gmra.mrb[16].mxu1 %vm1786_vm1, %v1547_v63  ;;  %v1411_v23 = vadd.f32 %v1363_v48, %v1315_v44  ;;  %9719 = vmatmul.mubr.msk.f32.gmra.mrb[20].mxu0 %vm1786_vm1, %v1549_v7 }
 0x1e7   : > { %18422 = vst [vmem:[#allocation30_spill] sm:$0xff] %v12223_v61  ;;  %v1135_v60 = vadd.f32 %v1087_v34, %v18425_v24  ;;  %18426 = vst [vmem:[#allocation70_spill] sm:$0xff] %v12234_v13  ;;  %v12246_v24 = vmul.f32 %v12202_v54, %v1271_v0  ;;  %v1274_v34 = vmul.f32 %v12231_v32, %v11934_v58  ;;  %10507 = vrcp.f32 %v12137_v2  ;;  %v18433_v58 = vld [vmem:[#allocation71_spill] sm:$0xff] }
 0x1e8   : > { %v1138_v55 = vadd.f32 %v1090_v39, %v18428_v33  ;;  %v1137_v57 = vadd.f32 %v1089_v12, %v18432_v49  ;;  %v1551_v13 = vmul.f32 %v12097_v27, %v12052_v17  ;;  %v12260_v39 = vmul.f32 %v12231_v32, %v18389_v59  ;;  %9732 = vmatprep.mubr.msk.f32.mxu1 %vm10693_vm0, %v18300_v26 }
 0x1e9   : > { %18430 = vst [vmem:[#allocation62_spill] sm:$0xff] %v12246_v24  ;;  %v1502_v33 = vmul.f32 %v18433_v58, %v11843_v46  ;;  %v12266_v61 = vpop.eup %10495  ;;  %v1414_v12 = vadd.f32 %v1366_v19, %v1318_v42  ;;  %v12269_v49 = vmul.f32 %v12231_v32, %v1274_v34  ;;  %10509 = vrcp.f32 %v1135_v60  ;;  %9721 = vmatprep.mubr.msk.f32.mxu0 %vm10693_vm0, %v18300_v26  ;;  %v18437_v60 = vld [vmem:[#allocation82_spill] sm:$0xff] }
 0x1ea   : > { %v12274_v27 = vpop.eup %10497  ;;  %v12278_v17 = vmul.f32 %v12022_v5, %v12066_v40  ;;  %v1273_v46 = vmul.f32 %v12266_v61, %v11944_v53  ;;  %10511 = vrcp.f32 %v1138_v55  ;;  %v1319_v44 = vmul.f32 %v12238_v35, %v12238_v35  ;;  %10202 = vmatpush3.bf16.msra.mxu0 %v12031_v28  ;;  %9733 = vmatmul.mubr.msk.f32.vlgmr.msra.gmra.mrb[18].mxu1 %vm1786_vm1, %v1551_v13  ;;  %v12338_v55 = vpop.permute.xlu1 %970 }
 0x1eb   : > { %18434 = vst [vmem:[#allocation31_spill] sm:$0xff] %v12269_v49  ;;  %v1550_v59 = vmul.f32 %v12125_v11, %v1502_v33  ;;  %v1367_v48 = vmul.f32 %v1271_v0, %v1271_v0  ;;  %v1276_v5 = vmul.f32 %v12274_v27, %v11989_v25  ;;  %10513 = vrcp.f32 %v1137_v57  ;;  %10205 = vmatpush3.bf16.msra.mxu1 %v18437_v60  ;;  %v18442_v60 = vld [vmem:[#allocation29_spill] sm:$0xff]  ;;  %v1763_v49 = vld [vmem:[%s10847_s20 + $0x148] sm:$0xff] }
 0x1ec   : > { %v12286_v2 = vpop.eup %10499  ;;  %v1322_v40 = vmul.f32 %v12260_v39, %v12260_v39  ;;  %v12298_v42 = vmul.f32 %v12266_v61, %v1273_v46  ;;  %v1504_v25 = vmul.f32 %v11875_v52, %v11910_v36  ;;  %10515 = vrcp.f32 %v12177_v62  ;;  %v12321_v36 = vpop.permute.xlu0 %977  ;;  %9735 = vmatprep.mubr.msk.f32.mxu1 %vm10693_vm0, %v18300_v26  ;;  %10206 = vmatprep.subr.bf16.mxu1 %v18302_v14 }
 0x1ed   : > { %v12293_v53 = vpop.eup %10501  ;;  %v12302_v19 = vmul.f32 %v12286_v2, %v18410_v41  ;;  %v1370_v0 = vmul.f32 %v1274_v34, %v1274_v34  ;;  %v12310_v63 = vmul.f32 %v12266_v61, %v18404_v56  ;;  %v12313_v7 = vmul.f32 %v12274_v27, %v1276_v5  ;;  %9722 = vmatmul.mubr.msk.f32.gmra.mrb[22].mxu0 %vm1786_vm1, %v1550_v59 }
 0x1ee   : > { %18435 = vst [vmem:[#allocation33_spill] sm:$0xff] %v12298_v42  ;;  %10517 = vrcp.f32 %v1411_v23  ;;  %v1275_v41 = vmul.f32 %v12286_v2, %v12003_v38  ;;  %9749 = vmatprep.mubr.msk.f32.mxu0 %vm10693_vm0, %v18300_v26  ;;  %v1552_v56 = vmul.f32 %v12148_v30, %v1504_v25  ;;  %v12328_v62 = vpop.eup %10503  ;;  %v1554_v23 = vmul.f32 %v12116_v9, %v12113_v29  ;;  %v18440_v9 = vld [vmem:[#allocation28_spill] sm:$0xff] }
 0x1ef   : > { %18436 = vst [vmem:[#allocation34_spill] sm:$0xff] %v12313_v7  ;;  %v1323_v52 = vmul.f32 %v12302_v19, %v12302_v19  ;;  %18438 = vst [vmem:[#allocation73_spill] sm:$0xff] %v12328_v62  ;;  %10519 = vrcp.f32 %v1414_v12  ;;  %v12334_v38 = vmul.f32 %v12274_v27, %v18408_v45  ;;  %v1230_v13 = vmul.f32 %v12293_v53, %v18412_v51 }
 0x1f0   : > { %10209 = vmatprep.subr.bf16.mxu0 %v18302_v14  ;;  %v12342_v34 = vpop.eup %10505  ;;  %v1415_v57 = vadd.f32 %v1367_v48, %v1319_v44  ;;  %v1371_v58 = vmul.f32 %v1275_v41, %v1275_v41  ;;  %v12345_v29 = vmul.f32 %v12286_v2, %v1275_v41  ;;  %v1278_v45 = vmul.f32 %v12293_v53, %v18440_v9 }
 0x1f1   : > { %18439 = vst [vmem:[#allocation64_spill] sm:$0xff] %v12342_v34  ;;  %9736 = vmatmul.mubr.msk.f32.gmra.mrb[20].mxu1 %vm1786_vm1, %v1552_v56  ;;  %v1321_v51 = vmul.f32 %v12310_v63, %v12310_v63  ;;  %v1369_v33 = vmul.f32 %v1273_v46, %v1273_v46  ;;  %v1326_v12 = vmul.f32 %v1230_v13, %v1230_v13  ;;  %v1092_v59 = vand.u32 2147483647, %v12321_v36  ;;  %v12356_v44 = vpop.eup %10507 }
 0x1f2   : > { %9750 = vmatmul.mubr.msk.f32.vlgmr.msra.gmra.mrb[24].mxu0 %vm1786_vm1, %v1554_v23  ;;  %9738 = vmatprep.mubr.msk.f32.mxu1 %vm10693_vm0, %v18300_v26  ;;  %v1418_v48 = vadd.f32 %v1370_v0, %v1322_v40  ;;  %v1419_v25 = vadd.f32 %v1371_v58, %v1323_v52  ;;  %v1374_v41 = vmul.f32 %v1278_v45, %v1278_v45  ;;  %v18444_v52 = vld [vmem:[#allocation15_spill] sm:$0xff] }
 0x1f3   : > { %v12359_v9 = vmul.f32 %v12293_v53, %v1278_v45  ;;  %9752 = vmatprep.mubr.msk.f32.mxu0 %vm10693_vm0, %v18300_v26  ;;  %v12363_v46 = vpop.eup %10509  ;;  %v1324_v56 = vmul.f32 %v12334_v38, %v12334_v38  ;;  %v1372_v23 = vmul.f32 %v1276_v5, %v1276_v5  ;;  %v1277_v28 = vmul.f32 %v12328_v62, %v18442_v60  ;;  %v18445_v45 = vld [vmem:[#allocation90_spill] sm:$0xff] }
 0x1f4   : > { %18441 = vst [vmem:[#allocation35_spill] sm:$0xff] %v12363_v46  ;;  %v1280_v40 = vmul.f32 %v12342_v34, %v12123_v1  ;;  %v12371_v0 = vpop.eup %10511  ;;  %v1512_v37 = vmul.f32 %v18446_v18, %v18445_v45  ;;  %10521 = vrcp.f32 %v1419_v25  ;;  %v1422_v50 = vadd.f32 %v1374_v41, %v1326_v12  ;;  %v12385_v1 = vpop.permute.xlu1 %981 }
 0x1f5   : > { %18443 = vst [vmem:[#allocation36_spill] sm:$0xff] %v12371_v0  ;;  %v12376_v30 = vpop.eup %10513  ;;  %v12380_v5 = vmul.f32 %v12211_v4, %v12278_v17  ;;  %10523 = vrcp.f32 %v1415_v57  ;;  %v1417_v60 = vadd.f32 %v1369_v33, %v1321_v51  ;;  %v12383_v11 = vmul.f32 %v12328_v62, %v1277_v28  ;;  %v18451_v51 = vld [vmem:[#allocation49_spill] sm:$0xff] }
 0x1f6   : > { %18447 = vst [vmem:[#allocation14_spill] sm:$0xff] %v12376_v30  ;;  %10525 = vrcp.f32 %v1422_v50  ;;  %v12389_v58 = vmul.f32 %v12328_v62, %v18417_v6  ;;  %v12392_v18 = vmul.f32 %v12342_v34, %v1280_v40  ;;  %v1279_v12 = vmul.f32 %v12363_v46, %v12133_v31  ;;  %v12396_v4 = vpop.eup %10515 }
 0x1f7   : > { %18448 = vst [vmem:[#allocation40_spill] sm:$0xff] %v12383_v11  ;;  %v12399_v17 = vmul.f32 %v12220_v21, %v1512_v37  ;;  %10527 = vrcp.f32 %v1418_v48  ;;  %v12401_v57 = vadd.f32 %v1372_v23, %v1324_v56  ;;  %v18452_v50 = vand.u32 2147483647, %v18451_v51  ;;  %v12420_v21 = vpop.permute.xlu0 %985  ;;  %v18461_v11 = vld [vmem:[#allocation50_spill] sm:$0xff] }
 0x1f8   : > { %18449 = vst [vmem:[#allocation42_spill] sm:$0xff] %v12389_v58  ;;  %18450 = vst [vmem:[#allocation7_spill] sm:$0xff] %v12392_v18  ;;  %v12405_v25 = vpop.eup %10517  ;;  %v12409_v6 = vmul.f32 %v12286_v2, %v12302_v19  ;;  %v12413_v31 = vmul.f32 %v12342_v34, %v18419_v15  ;;  %v12416_v41 = vmul.f32 %v12363_v46, %v1279_v12  ;;  %10529 = vrcp.f32 %v1417_v60  ;;  %v12452_v45 = vpop.permute.xlu1 %992 }
 0x1f9   : > { %v1140_v33 = vadd.f32 %v1092_v59, %v18452_v50  ;;  %18453 = vst [vmem:[#allocation44_spill] sm:$0xff] %v12405_v25  ;;  %v1282_v37 = vmul.f32 %v12371_v0, %v12175_v16  ;;  %v12422_v59 = vpop.eup %10519  ;;  %v12425_v2 = vmul.f32 %v12293_v53, %v1230_v13  ;;  %v12429_v15 = vmul.f32 %v12376_v30, %v18431_v3 }
 0x1fa   : > { %18454 = vst [vmem:[#allocation71_spill] sm:$0xff] %v12413_v31  ;;  %18455 = vst [vmem:[#allocation28_spill] sm:$0xff] %v12416_v41  ;;  %v1281_v19 = vmul.f32 %v12376_v30, %v12185_v20  ;;  %v1659_v48 = vsub.f32 0.0, %v12345_v29  ;;  %v1662_v16 = vsub.f32 0.0, %v12359_v9  ;;  %v1325_v56 = vmul.f32 %v12389_v58, %v12389_v58  ;;  %v1760_v29 = vld [vmem:[%s10847_s20 + $0x130] sm:$0xff]  ;;  %v1761_v9 = vld [vmem:[%s10847_s20 + $0x138] sm:$0xff] }
 0x1fb   : > { %18456 = vst [vmem:[#allocation29_spill] sm:$0xff] %v12425_v2  ;;  %18457 = vst [vmem:[#allocation15_spill] sm:$0xff] %v12429_v15  ;;  %v12439_v23 = vmul.f32 %v12363_v46, %v18424_v22  ;;  %v12443_v53 = vmul.f32 %v12371_v0, %v18427_v43  ;;  %v12446_v3 = vmul.f32 %v12371_v0, %v1282_v37  ;;  %v1091_v43 = vand.u32 2147483647, %v12338_v55 }
 0x1fc   : > { %v1329_v20 = vmul.f32 %v12429_v15, %v12429_v15  ;;  %v1377_v13 = vmul.f32 %v1281_v19, %v1281_v19  ;;  %v1373_v60 = vmul.f32 %v1277_v28, %v1277_v28  ;;  %v1328_v22 = vmul.f32 %v12413_v31, %v12413_v31 }
 0x1fd   : > { %18458 = vst [vmem:[#allocation90_spill] sm:$0xff] %v12439_v23  ;;  %18459 = vst [vmem:[#allocation84_spill] sm:$0xff] %v12443_v53  ;;  %v12457_v50 = vmul.f32 %v12376_v30, %v1281_v19  ;;  %v1376_v0 = vmul.f32 %v1280_v40, %v1280_v40  ;;  %10531 = vrcp.f32 %v1140_v33  ;;  %v1094_v34 = vand.u32 2147483647, %v12420_v21  ;;  %v12467_v19 = vpop.permute.xlu0 %996 }
 0x1fe   : > { %18460 = vst [vmem:[#allocation49_spill] sm:$0xff] %v12446_v3  ;;  %v1425_v3 = vadd.f32 %v1377_v13, %v1329_v20  ;;  %v10522_v41 = vpop.eup %10521  ;;  %v1327_v18 = vmul.f32 %v12439_v23, %v12439_v23  ;;  %v1375_v28 = vmul.f32 %v1279_v12, %v1279_v12  ;;  %v18462_v7 = vand.u32 2147483647, %v18461_v11  ;;  %v18465_v20 = vld [vmem:[#allocation51_spill] sm:$0xff]  ;;  %v1762_v12 = vld [vmem:[%s10847_s20 + $0x140] sm:$0xff] }
 0x1ff   : > { %v12465_v42 = vpack.c.bf16 %v1761_v9, %v1760_v29  ;;  %v12469_v30 = vpop.eup %10523  ;;  %v12471_v40 = vmul.f32 %v10522_v41, %v1659_v48  ;;  %v1330_v33 = vmul.f32 %v12443_v53, %v12443_v53  ;;  %v18466_v13 = vand.u32 2147483647, %v18465_v20  ;;  %v18469_v29 = vld [vmem:[#allocation24_spill] sm:$0xff]  ;;  %v18470_v9 = vld [vmem:[#allocation26_spill] sm:$0xff] }
 0x200   : > { %v1139_v31 = vadd.f32 %v1091_v43, %v18462_v7  ;;  %10533 = vrcp.f32 %v1425_v3  ;;  %v12479_v24 = vpop.eup %10525  ;;  %v18468_v7 = vld [vmem:[#allocation85_spill] sm:$0xff]  ;;  %v1507_v43 = vmul.f32 %v18470_v9, %v12143_v10  ;;  %v1093_v3 = vand.u32 2147483647, %v12385_v1  ;;  %v18472_v9 = vld [vmem:[#allocation56_spill] sm:$0xff] }
 0x201   : > { %18463 = vst [vmem:[#allocation50_spill] sm:$0xff] %v12465_v42  ;;  %18464 = vst [vmem:[#allocation97_spill] sm:$0xff] %v12471_v40  ;;  %v1142_v15 = vadd.f32 %v1094_v34, %v18466_v13  ;;  %10208 = vmatpush3.bf16.msra.mxu1 %v12465_v42  ;;  %v1505_v48 = vmul.f32 %v18469_v29, %v18468_v7  ;;  %v12487_v40 = vpop.eup %10527  ;;  %v12490_v34 = vmul.f32 %v12479_v24, %v1662_v16  ;;  %v1766_v42 = vld [vmem:[%s10847_s20 + $0x160] sm:$0xff]  ;;  %v12495_v7 = vpop.permute.xlu1 %1000  ;;  %v1767_v16 = vld [vmem:[%s10847_s20 + $0x168] sm:$0xff] }
 0x202   : > { %18467 = vst [vmem:[#allocation51_spill] sm:$0xff] %v12479_v24  ;;  %10535 = vrcp.f32 %v1139_v31  ;;  %v1378_v13 = vmul.f32 %v1282_v37, %v1282_v37  ;;  %v1096_v31 = vand.u32 2147483647, %v12467_v19  ;;  %10215 = vmatprep.subr.bf16.mxu1 %v18302_v14  ;;  %v1555_v10 = vmul.f32 %v12405_v25, %v1507_v43  ;;  %v1765_v37 = vld [vmem:[%s10847_s20 + $0x158] sm:$0xff]  ;;  %v18475_v24 = vld [vmem:[#allocation8_spill] sm:$0xff] }
 0x203   : > { %18471 = vst [vmem:[#allocation85_spill] sm:$0xff] %v12490_v34  ;;  %10537 = vrcp.f32 %v1142_v15  ;;  %v1553_v29 = vmul.f32 %v12356_v44, %v1505_v48  ;;  %v18473_v53 = vand.u32 2147483647, %v18472_v9  ;;  %v12501_v58 = vpack.c.bf16 %v1763_v49, %v1762_v12  ;;  %v1764_v34 = vld [vmem:[%s10847_s20 + $0x150] sm:$0xff]  ;;  %v12506_v15 = vpop.eup %10529  ;;  %v18477_v49 = vld [vmem:[#allocation89_spill] sm:$0xff] }
 0x204   : > { %v12508_v46 = vadd.f32 %v1373_v60, %v1325_v56  ;;  %v12510_v23 = vadd.f32 %v1376_v0, %v1328_v22  ;;  %v18476_v2 = vand.u32 2147483647, %v18475_v24  ;;  %v1095_v43 = vand.u32 2147483647, %v12452_v45  ;;  %9753 = vmatmul.mubr.msk.f32.gmra.mrb[26].mxu0 %vm1786_vm1, %v1555_v10 }
 0x205   : > { %v1141_v62 = vadd.f32 %v1093_v3, %v18473_v53  ;;  %18474 = vst [vmem:[#allocation24_spill] sm:$0xff] %v12501_v58  ;;  %v12515_v25 = vadd.f32 %v1375_v28, %v1327_v18  ;;  %9739 = vmatmul.mubr.msk.f32.gmra.mrb[22].mxu1 %vm1786_vm1, %v1553_v29  ;;  %v18478_v53 = vld [vmem:[#allocation47_spill] sm:$0xff]  ;;  %v1097_v60 = vand.u32 2147483647, %v12495_v7  ;;  %10211 = vmatpush3.bf16.msra.mxu0 %v12501_v58  ;;  %v18480_v18 = vand.u32 2147483647, %v18429_v47 }
 0x206   : > { %v1144_v48 = vadd.f32 %v1096_v31, %v18476_v2  ;;  %v1508_v56 = vmul.f32 %v18478_v53, %v18477_v49  ;;  %9755 = vmatprep.mubr.msk.f32.mxu0 %vm10693_vm0, %v18300_v26  ;;  %v12525_v0 = vpack.c.bf16 %v1767_v16, %v1766_v42  ;;  %v12529_v22 = vpack.c.bf16 %v1765_v37, %v1764_v34  ;;  %v1769_v28 = vld [vmem:[%s10847_s20 + $0x178] sm:$0xff]  ;;  %v1770_v16 = vld [vmem:[%s10847_s20 + $0x180] sm:$0xff]  ;;  %v1771_v37 = vld [vmem:[%s10847_s20 + $0x188] sm:$0xff] }
 0x207   : > { %10539 = vrcp.f32 %v1141_v62  ;;  %v1143_v2 = vadd.f32 %v1095_v43, %v18480_v18  ;;  %v1768_v62 = vld [vmem:[%s10847_s20 + $0x170] sm:$0xff]  ;;  %v12533_v12 = vadd.f32 %v1378_v13, %v1330_v33  ;;  %9766 = vmatprep.mubr.msk.f32.mxu1 %vm10693_vm0, %v18300_v26  ;;  %10212 = vmatprep.subr.bf16.mxu0 %v18302_v14  ;;  %v18482_v42 = vand.u32 2147483647, %v18444_v52  ;;  %v12541_v29 = vpop.eup %10531  ;;  %v18483_v33 = vld [vmem:[#allocation27_spill] sm:$0xff]  ;;  %v1774_v18 = vld [vmem:[%s10847_s20 + $0x1a0] sm:$0xff] }
 0x208   : > { %10541 = vrcp.f32 %v1144_v48  ;;  %18479 = vst [vmem:[#allocation26_spill] sm:$0xff] %v12525_v0  ;;  %18481 = vst [vmem:[#allocation56_spill] sm:$0xff] %v12529_v22  ;;  %v1556_v3 = vmul.f32 %v12396_v4, %v1508_v56  ;;  %v12544_v10 = vmul.f32 %v10522_v41, %v12409_v6  ;;  %v1665_v34 = vsub.f32 0.0, %v12457_v50  ;;  %v1784_v58 = vld [vmem:[%s10847_s20 + $0x1f0] sm:$0xff] }
 0x209   : > { %v1145_v31 = vadd.f32 %v1097_v60, %v18482_v42  ;;  %10543 = vrcp.f32 %v1143_v2  ;;  %v1510_v13 = vmul.f32 %v18483_v33, %v12161_v8  ;;  %v12553_v48 = vmul.f32 %v12541_v29, %v18451_v51  ;;  %9767 = vmatmul.mubr.msk.f32.vlgmr.msra.gmra.mrb[24].mxu1 %vm1786_vm1, %v12380_v5  ;;  %10214 = vmatpush3.bf16.msra.mxu0 %v12529_v22  ;;  %v1775_v2 = vld [vmem:[%s10847_s20 + $0x1a8] sm:$0xff] }
 0x20a   : > { %v1284_v43 = vmul.f32 %v12541_v29, %v12321_v36  ;;  %9756 = vmatmul.mubr.msk.f32.gmra.mrb[28].mxu0 %vm1786_vm1, %v1556_v3  ;;  %v12560_v6 = vpack.c.bf16 %v1769_v28, %v1768_v62  ;;  %v12562_v41 = vpop.eup %10533  ;;  %10217 = vmatpush3.bf16.msra.mxu1 %v12525_v0  ;;  %v1511_v36 = vmul.f32 %v12202_v54, %v12238_v35  ;;  %v18513_v22 = vld [vmem:[#allocation7_spill] sm:$0xff] }
 0x20b   : > { %10545 = vrcp.f32 %v1145_v31  ;;  %v1558_v8 = vmul.f32 %v12422_v59, %v1510_v13  ;;  %v1513_v51 = vmul.f32 %v12266_v61, %v12310_v63  ;;  %v12574_v50 = vmul.f32 %v12562_v41, %v1665_v34  ;;  %9769 = vmatprep.mubr.msk.f32.mxu1 %vm10693_vm0, %v18300_v26  ;;  %9783 = vmatprep.mubr.msk.f32.mxu0 %vm10693_vm0, %v18300_v26 }
 0x20c   : > { %18484 = vst [vmem:[#allocation8_spill] sm:$0xff] %v12560_v6  ;;  %v12571_v5 = vpop.eup %10535  ;;  %v1332_v49 = vmul.f32 %v12553_v48, %v12553_v48  ;;  %v1380_v53 = vmul.f32 %v1284_v43, %v1284_v43  ;;  %v12580_v56 = vpack.c.bf16 %v1771_v37, %v1770_v16  ;;  %v12585_v54 = vmul.f32 %v12541_v29, %v1284_v43 }
 0x20d   : > { %18485 = vst [vmem:[#allocation89_spill] sm:$0xff] %v12574_v50  ;;  %v12582_v60 = vpop.eup %10537  ;;  %v12589_v61 = vmul.f32 %v12571_v5, %v18461_v11  ;;  %v1283_v35 = vmul.f32 %v12571_v5, %v12338_v55  ;;  %v1514_v63 = vmul.f32 %v12231_v32, %v12260_v39  ;;  %9770 = vmatmul.mubr.msk.f32.gmra.mrb[26].mxu1 %vm1786_vm1, %v1558_v8  ;;  %10547 = vrcp.f32 %v12401_v57  ;;  %v18506_v50 = vld [vmem:[#allocation62_spill] sm:$0xff] }
 0x20e   : > { %18486 = vst [vmem:[#allocation47_spill] sm:$0xff] %v12580_v56  ;;  %v1428_v62 = vadd.f32 %v1380_v53, %v1332_v49  ;;  %v1286_v28 = vmul.f32 %v12582_v60, %v12420_v21  ;;  %9784 = vmatmul.mubr.msk.f32.vlgmr.msra.gmra.mrb[30].mxu0 %vm1786_vm1, %v12399_v17  ;;  %v1561_v11 = vmul.f32 %v12506_v15, %v1513_v51 }
 0x20f   : > { %v12607_v55 = vmul.f32 %v12571_v5, %v1283_v35  ;;  %10218 = vmatprep.subr.bf16.mxu1 %v18302_v14  ;;  %9772 = vmatprep.mubr.msk.f32.mxu1 %vm10693_vm0, %v18300_v26  ;;  %v1559_v32 = vmul.f32 %v12469_v30, %v1511_v36  ;;  %v1562_v39 = vmul.f32 %v12487_v40, %v1514_v63 }
 0x210   : > { %10549 = vrcp.f32 %v1428_v62  ;;  %v12618_v17 = vmul.f32 %v12582_v60, %v18465_v20  ;;  %v12621_v57 = vmul.f32 %v12582_v60, %v1286_v28  ;;  %10220 = vmatpush3.bf16.msra.mxu1 %v12560_v6  ;;  %9786 = vmatprep.mubr.msk.f32.mxu0 %vm10693_vm0, %v18300_v26  ;;  %v12626_v3 = vpack.c.bf16 %v1775_v2, %v1774_v18  ;;  %v1773_v18 = vld [vmem:[%s10847_s20 + $0x198] sm:$0xff] }
 0x211   : > { %v12614_v21 = vpop.eup %10539  ;;  %10551 = vrcp.f32 %v12515_v25  ;;  %v1331_v31 = vmul.f32 %v12589_v61, %v12589_v61  ;;  %10221 = vmatprep.subr.bf16.mxu0 %v18302_v14  ;;  %10227 = vmatprep.subr.bf16.mxu1 %v18302_v14  ;;  %v1379_v33 = vmul.f32 %v1283_v35, %v1283_v35  ;;  %v1668_v62 = vsub.f32 0.0, %v12585_v54 }
 0x212   : > { %18487 = vst [vmem:[#allocation27_spill] sm:$0xff] %v12626_v3  ;;  %v12628_v42 = vpop.eup %10541  ;;  %v12635_v20 = vmul.f32 %v12614_v21, %v18472_v9  ;;  %v1285_v34 = vmul.f32 %v12614_v21, %v12385_v1  ;;  %9773 = vmatmul.mubr.msk.f32.gmra.mrb[28].mxu1 %vm1786_vm1, %v1559_v32  ;;  %9787 = vmatmul.mubr.msk.f32.gmra.mrb[32].mxu0 %vm1786_vm1, %v1561_v11  ;;  %10553 = vrcp.f32 %v12508_v46 }
 0x213   : > { %v12643_v13 = vmul.f32 %v12628_v42, %v18475_v24  ;;  %v1288_v25 = vmul.f32 %v12628_v42, %v12467_v19  ;;  %v12649_v9 = vpop.eup %10543  ;;  %10223 = vmatpush3.bf16.msra.mxu0 %v12580_v56  ;;  %9789 = vmatprep.mubr.msk.f32.mxu0 %vm10693_vm0, %v18300_v26  ;;  %v1334_v19 = vmul.f32 %v12618_v17, %v12618_v17  ;;  %10555 = vrcp.f32 %v12510_v23  ;;  %v18511_v56 = vld [vmem:[#allocation34_spill] sm:$0xff] }
 0x214   : > { %v1333_v1 = vmul.f32 %v12635_v20, %v12635_v20  ;;  %v1381_v16 = vmul.f32 %v1285_v34, %v1285_v34  ;;  %v12655_v37 = vmul.f32 %v12614_v21, %v1285_v34  ;;  %v1382_v46 = vmul.f32 %v1286_v28, %v1286_v28  ;;  %9800 = vmatprep.mubr.msk.f32.mxu1 %vm10693_vm0, %v18300_v26 }
 0x215   : > { %v12660_v24 = vpop.eup %10545  ;;  %v12665_v43 = vmul.f32 %v12628_v42, %v1288_v25  ;;  %10224 = vmatprep.subr.bf16.mxu0 %v18302_v14  ;;  %v1336_v8 = vmul.f32 %v12643_v13, %v12643_v13  ;;  %v1384_v36 = vmul.f32 %v1288_v25, %v1288_v25  ;;  %v12674_v51 = vmul.f32 %v12649_v9, %v18429_v47  ;;  %v1772_v47 = vld [vmem:[%s10847_s20 + $0x190] sm:$0xff] }
 0x216   : > { %18488 = vst [vmem:[#allocation98_spill] sm:$0xff] %v12660_v24  ;;  %v1287_v49 = vmul.f32 %v12649_v9, %v12452_v45  ;;  %v1429_v53 = vadd.f32 %v1381_v16, %v1333_v1  ;;  %v12681_v35 = vmul.f32 %v12660_v24, %v18444_v52  ;;  %v1289_v63 = vmul.f32 %v12660_v24, %v12495_v7  ;;  %v1776_v52 = vld [vmem:[%s10847_s20 + $0x1b0] sm:$0xff]  ;;  %v1777_v7 = vld [vmem:[%s10847_s20 + $0x1b8] sm:$0xff]  ;;  %v1778_v16 = vld [vmem:[%s10847_s20 + $0x1c0] sm:$0xff] }
 0x217   : > { %9790 = vmatmul.mubr.msk.f32.gmra.mrb[34].mxu0 %vm1786_vm1, %v1562_v39  ;;  %9801 = vmatmul.mubr.msk.f32.vlgmr.msra.gmra.mrb[30].mxu1 %vm1786_vm1, %v12544_v10  ;;  %10557 = vrcp.f32 %v12533_v12  ;;  %v1427_v45 = vadd.f32 %v1379_v33, %v1331_v31  ;;  %v1335_v23 = vmul.f32 %v12674_v51, %v12674_v51  ;;  %v12707_v11 = vpop.eup %10547  ;;  %v1430_v32 = vadd.f32 %v1382_v46, %v1334_v19  ;;  %v12725_v19 = vld [vmem:[%s17486_s5] ss:$0 sm:$0xff] }
 0x218   : > { %18489 = vst [vmem:[#allocation99_spill] sm:$0xff] %v12681_v35  ;;  %v1383_v2 = vmul.f32 %v1287_v49, %v1287_v49  ;;  %10229 = vmatpush3.bf16.msra.mxu1 %v12626_v3  ;;  %9803 = vmatprep.mubr.msk.f32.mxu1 %vm10693_vm0, %v18300_v26  ;;  %v12700_v10 = vmul.f32 %v12649_v9, %v1287_v49  ;;  %10559 = vrcp.f32 %v1429_v53  ;;  %v1779_v49 = vld [vmem:[%s10847_s20 + $0x1c8] sm:$0xff]  ;;  %v18510_v3 = vld [vmem:[#allocation33_spill] sm:$0xff]  ;;  %v1660_v6 = vsub.f32 0.0, %v18511_v56 }
 0x219   : > { %v1337_v12 = vmul.f32 %v12681_v35, %v12681_v35  ;;  %v1385_v28 = vmul.f32 %v1289_v63, %v1289_v63  ;;  %9817 = vmatprep.mubr.msk.f32.mxu0 %vm10693_vm0, %v18300_v26  ;;  %10230 = vmatprep.subr.bf16.mxu1 %v18302_v14  ;;  %v12710_v54 = vmul.f32 %v12660_v24, %v1289_v63  ;;  %v18492_v63 = vld [vmem:[#allocation76_spill] sm:$0xff]  ;;  %v18517_v24 = vld [vmem:[#allocation49_spill] sm:$0xff]  ;;  %v1667_v35 = vsub.f32 0.0, %v12607_v55 }
 0x21a   : > { %v1431_v39 = vadd.f32 %v1383_v2, %v1335_v23  ;;  %v12712_v31 = vpack.c.bf16 %v1773_v18, %v1772_v47  ;;  %v12714_v34 = vpop.eup %10549  ;;  %v1432_v33 = vadd.f32 %v1384_v36, %v1336_v8  ;;  %v1516_v25 = vmul.f32 %v12274_v27, %v12334_v38  ;;  %7093 = vbcast.lane.b32.xlu0 %v12725_v19, 264  ;;  %v18494_v27 = vld [vmem:[#allocation29_spill] sm:$0xff]  ;;  %v18495_v38 = vld [vmem:[#allocation51_spill] sm:$0xff]  ;;  %v18496_v23 = vld [vmem:[#allocation90_spill] sm:$0xff] }
 0x21b   : > { %v12718_v1 = vpack.c.bf16 %v1777_v7, %v1776_v52  ;;  %v12727_v46 = vpop.eup %10551  ;;  %v12731_v18 = vmul.f32 %v12714_v34, %v1668_v62  ;;  %v1433_v8 = vadd.f32 %v1385_v28, %v1337_v12  ;;  %v1566_v36 = vmul.f32 %v18495_v38, %v18494_v27  ;;  %v18497_v2 = vld [vmem:[#allocation35_spill] sm:$0xff]  ;;  %v18501_v27 = vld [vmem:[#allocation81_spill] sm:$0xff]  ;;  %v18518_v55 = vld [vmem:[#allocation84_spill] sm:$0xff]  ;;  %7089 = vbcast.lane.b32.xlu1 %v12725_v19, 256 }
 0x21c   : > { %18490 = vst [vmem:[#allocation100_spill] sm:$0xff] %v12712_v31  ;;  %10561 = vrcp.f32 %v1431_v39  ;;  %10226 = vmatpush3.bf16.msra.mxu0 %v12712_v31  ;;  %v1564_v53 = vmul.f32 %v12707_v11, %v1516_v25  ;;  %v1519_v52 = vmul.f32 %v18497_v2, %v18496_v23  ;;  %v12742_v7 = vpop.eup %10553  ;;  %v18498_v62 = vld [vmem:[#allocation23_spill] sm:$0xff]  ;;  %v12746_v47 = vpack.c.bf16 %v1779_v49, %v1778_v16  ;;  %v1781_v25 = vld [vmem:[%s10847_s20 + $0x1d8] sm:$0xff]  ;;  %v18502_v23 = vld [vmem:[#allocation42_spill] sm:$0xff] }
 0x21d   : > { %18491 = vst [vmem:[#allocation101_spill] sm:$0xff] %v12718_v1  ;;  %18493 = vst [vmem:[#allocation76_spill] sm:$0xff] %v12731_v18  ;;  %10563 = vrcp.f32 %v1427_v45  ;;  %10232 = vmatpush3.bf16.msra.mxu1 %v12718_v1  ;;  %10233 = vmatprep.subr.bf16.mxu0 %v18302_v14  ;;  %v18499_v28 = vld [vmem:[#allocation79_spill] sm:$0xff]  ;;  %v1780_v45 = vld [vmem:[%s10847_s20 + $0x1d0] sm:$0xff]  ;;  %v1657_v31 = vsub.f32 0.0, %v18510_v3 }
 0x21e   : > { %10565 = vrcp.f32 %v1430_v32  ;;  %18500 = vst [vmem:[#allocation29_spill] sm:$0xff] %v12746_v47  ;;  %10239 = vmatprep.subr.bf16.mxu1 %v18302_v14  ;;  %9804 = vmatmul.mubr.msk.f32.gmra.mrb[32].mxu1 %vm1786_vm1, %v1564_v53  ;;  %v18503_v2 = vld [vmem:[#allocation73_spill] sm:$0xff]  ;;  %v1567_v32 = vmul.f32 %v12727_v46, %v1519_v52  ;;  %v18504_v16 = vld [vmem:[#allocation86_spill] sm:$0xff]  ;;  %v18505_v39 = vld [vmem:[#allocation87_spill] sm:$0xff]  ;;  %v12773_v18 = vpack.c.bf16 %v1781_v25, %v1780_v45 }
 0x21f   : > { %10567 = vrcp.f32 %v1432_v33  ;;  %9818 = vmatmul.mubr.msk.f32.vlgmr.msra.gmra.mrb[36].mxu0 %vm1786_vm1, %v1566_v36  ;;  %v1517_v12 = vmul.f32 %v18503_v2, %v18502_v23  ;;  %v1651_v49 = vsub.f32 0.0, %v18504_v16  ;;  %9806 = vmatprep.mubr.msk.f32.mxu1 %vm10693_vm0, %v18300_v26  ;;  %v12764_v33 = vpop.eup %10555  ;;  %v18507_v36 = vld [vmem:[#allocation31_spill] sm:$0xff]  ;;  %v18509_v2 = vld [vmem:[#allocation14_spill] sm:$0xff]  ;;  %v18512_v53 = vld [vmem:[#allocation40_spill] sm:$0xff]  ;;  %v1524_v45 = vmul.f32 %v12541_v29, %v12553_v48 }
 0x220   : > { %10569 = vrcp.f32 %v1433_v8  ;;  %9820 = vmatprep.mubr.msk.f32.mxu0 %vm10693_vm0, %v18300_v26  ;;  %v18508_v23 = vld [vmem:[#allocation15_spill] sm:$0xff]  ;;  %10235 = vmatpush3.bf16.msra.mxu0 %v12746_v47  ;;  %v1782_v1 = vld [vmem:[%s10847_s20 + $0x1e0] sm:$0xff]  ;;  %v1661_v0 = vsub.f32 0.0, %v18512_v53  ;;  %v18516_v25 = vld [vmem:[#allocation64_spill] sm:$0xff] }
 0x221   : > { %v1521_v52 = vmul.f32 %v18509_v2, %v18508_v23  ;;  %v1565_v16 = vmul.f32 %v12742_v7, %v1517_v12  ;;  %v1783_v8 = vld [vmem:[%s10847_s20 + $0x1e8] sm:$0xff]  ;;  %v12775_v38 = vpop.eup %10557  ;;  %v1664_v23 = vsub.f32 0.0, %v18513_v22  ;;  %10236 = vmatprep.subr.bf16.mxu0 %v18302_v14  ;;  %v18514_v12 = vld [vmem:[#allocation28_spill] sm:$0xff]  ;;  %v1785_v53 = vld [vmem:[%s10847_s20 + $0x1f8] sm:$0xff]  ;;  %v1666_v22 = vsub.f32 0.0, %v18517_v24  ;;  %7097 = vbcast.lane.b32.xlu1 %v12725_v19, 272 }
 0x222   : > { %v1663_v2 = vsub.f32 0.0, %v18514_v12  ;;  %v18515_v3 = vld [vmem:[#allocation71_spill] sm:$0xff]  ;;  %v1527_v12 = vmul.f32 %v12649_v9, %v12674_v51  ;;  %v12800_v29 = vpack.c.bf16 %v1783_v8, %v1782_v1  ;;  %v10560_v48 = vpop.eup %10559  ;;  %v1525_v1 = vmul.f32 %v12614_v21, %v12635_v20  ;;  %v12834_v20 = vld [vmem:[%s17487_s6] ss:$0 sm:$0xff] }
 0x223   : > { %v1569_v47 = vmul.f32 %v12562_v41, %v1521_v52  ;;  %9807 = vmatmul.mubr.msk.f32.gmra.mrb[34].mxu1 %vm1786_vm1, %v1565_v16  ;;  %9821 = vmatmul.mubr.msk.f32.gmra.mrb[38].mxu0 %vm1786_vm1, %v1567_v32  ;;  %v1520_v56 = vmul.f32 %v18516_v25, %v18515_v3  ;;  %v1572_v41 = vmul.f32 %v12714_v34, %v1524_v45  ;;  %v1671_v32 = vsub.f32 0.0, %v12700_v10  ;;  %v18519_v52 = vld [vmem:[#allocation36_spill] sm:$0xff]  ;;  %v18521_v34 = vld [vmem:[#allocation93_spill] sm:$0xff]  ;;  %v18538_v19 = vld [vmem:[#allocation6_spill] sm:$0xff] }
 0x224   : > { %9823 = vmatprep.mubr.msk.f32.mxu0 %vm10693_vm0, %v18300_v26  ;;  %9834 = vmatprep.mubr.msk.f32.mxu1 %vm10693_vm0, %v18300_v26  ;;  %v1522_v9 = vmul.f32 %v18519_v52, %v18518_v55  ;;  %v12808_v16 = vpack.c.bf16 %v1785_v53, %v1784_v58  ;;  %v1523_v3 = vmul.f32 %v12571_v5, %v12589_v61  ;;  %v18520_v10 = vsub.f32 0.0, %v18492_v63  ;;  %v18523_v61 = vld [vmem:[#allocation96_spill] sm:$0xff] }
 0x225   : > { %v1568_v24 = vmul.f32 %v12764_v33, %v1520_v56  ;;  %10238 = vmatpush3.bf16.msra.mxu0 %v12773_v18  ;;  %v1670_v25 = vsub.f32 0.0, %v12621_v57  ;;  %v18522_v5 = vsub.f32 0.0, %v18498_v62  ;;  %v1669_v57 = vsub.f32 0.0, %v12655_v37  ;;  %7105 = vbcast.lane.b32.xlu0 %v12834_v20, 256 }
 0x226   : > { %v10562_v51 = vpop.eup %10561  ;;  %10245 = vmatprep.subr.bf16.mxu0 %v18302_v14  ;;  %v12818_v8 = vmul.f32 %v18521_v34, %v18520_v10  ;;  %v1570_v58 = vmul.f32 %v12775_v38, %v1522_v9  ;;  %v18524_v53 = vsub.f32 0.0, %v18499_v28  ;;  %v1672_v52 = vsub.f32 0.0, %v12665_v43  ;;  %7109 = vbcast.lane.b32.xlu1 %v12834_v20, 264 }
 0x227   : > { %v10564_v45 = vpop.eup %10563  ;;  %v12821_v56 = vmul.f32 %v10562_v51, %v1671_v32  ;;  %9824 = vmatmul.mubr.msk.f32.gmra.mrb[40].mxu0 %vm1786_vm1, %v1568_v24  ;;  %9835 = vmatmul.mubr.msk.f32.vlgmr.msra.gmra.mrb[36].mxu1 %vm1786_vm1, %v1569_v47  ;;  %v12829_v21 = vmul.f32 %v18523_v61, %v18522_v5  ;;  %v1573_v47 = vmul.f32 %v10560_v48, %v1525_v1  ;;  %v18525_v32 = vld [vmem:[#allocation44_spill] sm:$0xff]  ;;  %v18526_v37 = vsub.f32 0.0, %v18501_v27  ;;  %v18542_v61 = vld [vmem:[#allocation17_spill] sm:$0xff] }
 0x228   : > { %v10566_v63 = vpop.eup %10565  ;;  %10241 = vmatpush3.bf16.msra.mxu1 %v12800_v29  ;;  %9837 = vmatprep.mubr.msk.f32.mxu1 %vm10693_vm0, %v18300_v26  ;;  %v12843_v62 = vmul.f32 %v12356_v44, %v18524_v53  ;;  %v12846_v24 = vmul.f32 %v18525_v32, %v1651_v49  ;;  %v18527_v28 = vsub.f32 0.0, %v18505_v39  ;;  %v18528_v49 = vsub.f32 0.0, %v18506_v50  ;;  %v18545_v53 = vld [vmem:[#allocation18_spill] sm:$0xff]  ;;  %v18546_v32 = vld [vmem:[#allocation60_spill] sm:$0xff] }
 0x229   : > { %v10568_v55 = vpop.eup %10567  ;;  %9851 = vmatprep.mubr.msk.f32.mxu0 %vm10693_vm0, %v18300_v26  ;;  %10242 = vmatprep.subr.bf16.mxu1 %v18302_v14  ;;  %v12855_v9 = vmul.f32 %v12396_v4, %v18526_v37  ;;  %v12868_v10 = vmul.f32 %v12506_v15, %v1657_v31  ;;  %v18529_v34 = vsub.f32 0.0, %v18507_v36  ;;  %v12876_v4 = vmul.f32 %v12707_v11, %v1660_v6  ;;  %v18530_v31 = vld [vmem:[#allocation3_spill] sm:$0xff]  ;;  %v18548_v37 = vld [vmem:[#allocation54_spill] sm:$0xff] }
 0x22a   : > { %v12860_v44 = vmul.f32 %v12422_v59, %v18527_v28  ;;  %v12865_v1 = vmul.f32 %v12469_v30, %v18528_v49  ;;  %v10570_v43 = vpop.eup %10569  ;;  %v12879_v59 = vmul.f32 %v12742_v7, %v1661_v0  ;;  %v1673_v30 = vsub.f32 0.0, %v12710_v54  ;;  %7113 = vbcast.lane.b32.xlu0 %v12834_v20, 272  ;;  %v18547_v20 = vld [vmem:[#allocation52_spill] sm:$0xff]  ;;  %v18549_v49 = vld [vmem:[#allocation58_spill] sm:$0xff] }
 0x22b   : > { %v12873_v27 = vmul.f32 %v12487_v40, %v18529_v34  ;;  %9838 = vmatmul.mubr.msk.f32.gmra.mrb[38].mxu1 %vm1786_vm1, %v1570_v58  ;;  %9852 = vmatmul.mubr.msk.f32.vlgmr.msra.gmra.mrb[42].mxu0 %vm1786_vm1, %v1572_v41  ;;  %v12886_v15 = vmul.f32 %v12727_v46, %v1663_v2  ;;  %v12889_v40 = vmul.f32 %v12764_v33, %v1664_v23  ;;  %v18531_v33 = vld [vmem:[#allocation4_spill] sm:$0xff]  ;;  %v18533_v23 = vld [vmem:[#allocation41_spill] sm:$0xff]  ;;  %v18541_v58 = vld [vmem:[#allocation59_spill] sm:$0xff]  ;;  %v1633_v28 = vsub.f32 0.0, %v18548_v37 }
 0x22c   : > { %v12892_v6 = vmul.f32 %v12775_v38, %v1666_v22  ;;  %10244 = vmatpush3.bf16.msra.mxu1 %v12808_v16  ;;  %9840 = vmatprep.mubr.msk.f32.mxu1 %vm10693_vm0, %v18300_v26  ;;  %v12897_v0 = vmul.f32 %v10564_v45, %v1667_v35  ;;  %v12899_v50 = vmul.f32 %v10560_v48, %v1669_v57  ;;  %v1627_v2 = vsub.f32 0.0, %v18533_v23  ;;  %v18534_v22 = vld [vmem:[#allocation48_spill] sm:$0xff]  ;;  %v18537_v41 = vld [vmem:[#allocation13_spill] sm:$0xff]  ;;  %v18573_v37 = vld [vmem:[#allocation63_spill] sm:$0xff] }
 0x22d   : > { %v12901_v11 = vmul.f32 %v10566_v63, %v1670_v25  ;;  %9854 = vmatprep.mubr.msk.f32.mxu0 %vm10693_vm0, %v18300_v26  ;;  %v1571_v54 = vmul.f32 %v10564_v45, %v1523_v3  ;;  %10247 = vmatpush3.bf16.msra.mxu0 %v18530_v31  ;;  %v12906_v46 = vmul.f32 %v10568_v55, %v1672_v52  ;;  %v18539_v3 = vld [vmem:[#allocation16_spill] sm:$0xff]  ;;  %v18540_v45 = vld [vmem:[#allocation37_spill] sm:$0xff]  ;;  %v1631_v52 = vsub.f32 0.0, %v18547_v20 }
 0x22e   : > { %v12908_v7 = vmul.f32 %v10570_v43, %v1673_v30  ;;  %10248 = vmatprep.subr.bf16.mxu0 %v18302_v14  ;;  %10251 = vmatprep.subr.bf16.mxu1 %v18302_v14  ;;  %v1575_v35 = vmul.f32 %v10562_v51, %v1527_v12  ;;  %v1526_v39 = vmul.f32 %v12582_v60, %v12618_v17  ;;  %v18532_v17 = vld [vmem:[#allocation5_spill] sm:$0xff]  ;;  %v1628_v25 = vsub.f32 0.0, %v18540_v45  ;;  %v18551_v30 = vld [vmem:[#allocation20_spill] sm:$0xff] }
 0x22f   : > { %9841 = vmatmul.mubr.msk.f32.gmra.mrb[40].mxu1 %vm1786_vm1, %v1571_v54  ;;  %9855 = vmatmul.mubr.msk.f32.gmra.mrb[44].mxu0 %vm1786_vm1, %v1573_v47  ;;  %v1528_v60 = vmul.f32 %v12628_v42, %v12643_v13  ;;  %v18535_v42 = vld [vmem:[#allocation99_spill] sm:$0xff]  ;;  %v18536_v13 = vld [vmem:[#allocation98_spill] sm:$0xff]  ;;  %v1675_v51 = vmul.f32 %v18537_v41, %v1627_v2  ;;  %v1681_v54 = vmul.f32 %v18551_v30, %v1633_v28  ;;  %v18552_v31 = vld [vmem:[#allocation25_spill] sm:$0xff] }
 0x230   : > { %9857 = vmatprep.mubr.msk.f32.mxu0 %vm10693_vm0, %v18300_v26  ;;  %9868 = vmatprep.mubr.msk.f32.mxu1 %vm10693_vm0, %v18300_v26  ;;  %v1574_v38 = vmul.f32 %v10566_v63, %v1526_v39  ;;  %v1529_v12 = vmul.f32 %v18536_v13, %v18535_v42  ;;  %v1676_v5 = vmul.f32 %v18541_v58, %v1628_v25  ;;  %v18543_v63 = vld [vmem:[#allocation43_spill] sm:$0xff]  ;;  %v18554_v39 = vld [vmem:[#allocation53_spill] sm:$0xff]  ;;  %v18558_v2 = vld [vmem:[#allocation68_spill] sm:$0xff] }
 0x231   : > { %10250 = vmatpush3.bf16.msra.mxu0 %v18531_v33  ;;  %v1576_v36 = vmul.f32 %v10568_v55, %v1528_v60  ;;  %v1630_v57 = vsub.f32 0.0, %v18543_v63  ;;  %v18544_v47 = vld [vmem:[#allocation11_spill] sm:$0xff]  ;;  %v18562_v41 = vld [vmem:[#allocation12_spill] sm:$0xff]  ;;  %v18565_v25 = vld [vmem:[#allocation61_spill] sm:$0xff] }
 0x232   : > { %10257 = vmatprep.subr.bf16.mxu0 %v18302_v14  ;;  %v1577_v48 = vmul.f32 %v10570_v43, %v1529_v12  ;;  %v18550_v43 = vld [vmem:[#allocation72_spill] sm:$0xff]  ;;  %v18555_v33 = vld [vmem:[#allocation75_spill] sm:$0xff]  ;;  %v18561_v12 = vld [vmem:[#allocation65_spill] sm:$0xff] }
 0x233   : > { %9858 = vmatmul.mubr.msk.f32.gmra.mrb[46].mxu0 %vm1786_vm1, %v1574_v38  ;;  %9869 = vmatmul.mubr.msk.f32.vlgmr.msra.gmra.mrb[42].mxu1 %vm1786_vm1, %v1575_v35  ;;  %v1678_v55 = vmul.f32 %v18546_v32, %v1630_v57  ;;  %v1679_v34 = vmul.f32 %v18550_v43, %v1631_v52  ;;  %v18553_v35 = vld [vmem:[#allocation32_spill] sm:$0xff]  ;;  %v1634_v38 = vsub.f32 0.0, %v18554_v39  ;;  %v18560_v13 = vld [vmem:[#allocation39_spill] sm:$0xff]  ;;  %v18568_v63 = vld [vmem:[#allocation66_spill] sm:$0xff] }
 0x234   : > { %10253 = vmatpush3.bf16.msra.mxu1 %v18532_v17  ;;  %9871 = vmatprep.mubr.msk.f32.mxu1 %vm10693_vm0, %v18300_v26  ;;  %v18556_v17 = vld [vmem:[#allocation38_spill] sm:$0xff]  ;;  %v1640_v57 = vsub.f32 0.0, %v18568_v63  ;;  %v18572_v52 = vld [vmem:[#allocation21_spill] sm:$0xff] }
 0x235   : > { %9885 = vmatprep.mubr.msk.f32.mxu0 %vm10693_vm0, %v18300_v26  ;;  %10254 = vmatprep.subr.bf16.mxu1 %v18302_v14  ;;  %v1682_v60 = vmul.f32 %v18555_v33, %v1634_v38  ;;  %v18570_v32 = vld [vmem:[#allocation10_spill] sm:$0xff]  ;;  %v18579_v38 = vld [vmem:[#allocation95_spill] sm:$0xff]  ;;  %v18603_v63 = vld [vmem:[#allocation29_spill] sm:$0xff] }
 0x236   : > { %v18575_v43 = vld [vmem:[#allocation74_spill] sm:$0xff] }
 0x237   : > { %9872 = vmatmul.mubr.msk.f32.gmra.mrb[44].mxu1 %vm1786_vm1, %v1576_v36  ;;  %9886 = vmatmul.mubr.msk.f32.vlgmr.msra.gmra.mrb[48].mxu0 %vm1786_vm1, %v18534_v22  ;;  %v18557_v36 = vld [vmem:[#allocation57_spill] sm:$0xff]  ;;  %v18559_v22 = vld [vmem:[#allocation46_spill] sm:$0xff] }
 0x238   : > { %9874 = vmatprep.mubr.msk.f32.mxu1 %vm10693_vm0, %v18300_v26  ;;  %9888 = vmatprep.mubr.msk.f32.mxu0 %vm10693_vm0, %v18300_v26  ;;  %v1636_v23 = vsub.f32 0.0, %v18557_v36  ;;  %v18576_v30 = vld [vmem:[#allocation78_spill] sm:$0xff]  ;;  %v18582_v36 = vld [vmem:[#allocation83_spill] sm:$0xff] }
 0x239   : > { %10256 = vmatpush3.bf16.msra.mxu1 %v18538_v19  ;;  %10259 = vmatpush3.bf16.msra.mxu0 %v18539_v3  ;;  %v18563_v19 = vld [vmem:[#allocation19_spill] sm:$0xff]  ;;  %v18564_v3 = vld [vmem:[#allocation22_spill] sm:$0xff] }
 0x23a   : > { %10260 = vmatprep.subr.bf16.mxu0 %v18302_v14  ;;  %10263 = vmatprep.subr.bf16.mxu1 %v18302_v14  ;;  %v1684_v42 = vmul.f32 %v18559_v22, %v1636_v23  ;;  %v18583_v23 = vld [vmem:[#allocation92_spill] sm:$0xff]  ;;  %v18585_v22 = vld [vmem:[#allocation94_spill] sm:$0xff] }
 0x23b   : > { %9875 = vmatmul.mubr.msk.f32.gmra.mrb[46].mxu1 %vm1786_vm1, %v1577_v48  ;;  %9889 = vmatmul.mubr.msk.f32.gmra.mrb[50].mxu0 %vm1786_vm1, %v1675_v51  ;;  %v1637_v48 = vsub.f32 0.0, %v18561_v12  ;;  %v1639_v51 = vsub.f32 0.0, %v18562_v41  ;;  %v18594_v41 = vld [vmem:[#allocation47_spill] sm:$0xff] }
 0x23c   : > { %9891 = vmatprep.mubr.msk.f32.mxu0 %vm10693_vm0, %v18300_v26  ;;  %9902 = vmatprep.mubr.msk.f32.mxu1 %vm10693_vm0, %v18300_v26 }
 0x23d   : > { %10262 = vmatpush3.bf16.msra.mxu0 %v18542_v61  ;;  %v1685_v45 = vmul.f32 %v18564_v3, %v1637_v48  ;;  %v1687_v58 = vmul.f32 %v18565_v25, %v1639_v51  ;;  %v18567_v61 = vld [vmem:[#allocation55_spill] sm:$0xff]  ;;  %v18593_v48 = vld [vmem:[#allocation8_spill] sm:$0xff] }
 0x23e   : > { %10269 = vmatprep.subr.bf16.mxu0 %v18302_v14  ;;  %v18598_v3 = vld [vmem:[#allocation27_spill] sm:$0xff] }
 0x23f   : > { %9892 = vmatmul.mubr.msk.f32.gmra.mrb[52].mxu0 %vm1786_vm1, %v1676_v5  ;;  %9903 = vmatmul.mubr.msk.f32.vlgmr.msra.gmra.mrb[48].mxu1 %vm1786_vm1, %v18544_v47  ;;  %v18566_v5 = vld [vmem:[#allocation45_spill] sm:$0xff]  ;;  %v18569_v47 = vld [vmem:[#allocation88_spill] sm:$0xff] }
 0x240   : > { %10265 = vmatpush3.bf16.msra.mxu1 %v18545_v53  ;;  %9905 = vmatprep.mubr.msk.f32.mxu1 %vm10693_vm0, %v18300_v26  ;;  %v1688_v53 = vmul.f32 %v18569_v47, %v1640_v57 }
 0x241   : > { %9919 = vmatprep.mubr.msk.f32.mxu0 %vm10693_vm0, %v18300_v26  ;;  %10266 = vmatprep.subr.bf16.mxu1 %v18302_v14 }
 0x243   : > { %9906 = vmatmul.mubr.msk.f32.gmra.mrb[50].mxu1 %vm1786_vm1, %v1678_v55  ;;  %9920 = vmatmul.mubr.msk.f32.vlgmr.msra.gmra.mrb[54].mxu0 %vm1786_vm1, %v18549_v49  ;;  %v18571_v55 = vld [vmem:[#allocation69_spill] sm:$0xff]  ;;  %v18574_v49 = vld [vmem:[#allocation67_spill] sm:$0xff] }
 0x244   : > { %9908 = vmatprep.mubr.msk.f32.mxu1 %vm10693_vm0, %v18300_v26  ;;  %9922 = vmatprep.mubr.msk.f32.mxu0 %vm10693_vm0, %v18300_v26  ;;  %v1642_v20 = vsub.f32 0.0, %v18571_v55 }
 0x245   : > { %10268 = vmatpush3.bf16.msra.mxu1 %v18552_v31  ;;  %10271 = vmatpush3.bf16.msra.mxu0 %v18553_v35  ;;  %v18577_v31 = vld [vmem:[#allocation9_spill] sm:$0xff]  ;;  %v18578_v35 = vld [vmem:[#allocation91_spill] sm:$0xff] }
 0x246   : > { %10272 = vmatprep.subr.bf16.mxu0 %v18302_v14  ;;  %10275 = vmatprep.subr.bf16.mxu1 %v18302_v14  ;;  %v1690_v28 = vmul.f32 %v18573_v37, %v1642_v20 }
 0x247   : > { %9909 = vmatmul.mubr.msk.f32.gmra.mrb[52].mxu1 %vm1786_vm1, %v1679_v34  ;;  %9923 = vmatmul.mubr.msk.f32.gmra.mrb[56].mxu0 %vm1786_vm1, %v1681_v54  ;;  %v1643_v34 = vsub.f32 0.0, %v18575_v43  ;;  %v1645_v54 = vsub.f32 0.0, %v18576_v30 }
 0x248   : > { %9925 = vmatprep.mubr.msk.f32.mxu0 %vm10693_vm0, %v18300_v26  ;;  %9936 = vmatprep.mubr.msk.f32.mxu1 %vm10693_vm0, %v18300_v26 }
 0x249   : > { %10274 = vmatpush3.bf16.msra.mxu0 %v18556_v17  ;;  %v1691_v39 = vmul.f32 %v18578_v35, %v1643_v34  ;;  %v1693_v33 = vmul.f32 %v18579_v38, %v1645_v54  ;;  %v18581_v17 = vld [vmem:[#allocation80_spill] sm:$0xff] }
 0x24a   : > { %10281 = vmatprep.subr.bf16.mxu0 %v18302_v14 }
 0x24b   : > { %9926 = vmatmul.mubr.msk.f32.gmra.mrb[58].mxu0 %vm1786_vm1, %v1682_v60  ;;  %9937 = vmatmul.mubr.msk.f32.vlgmr.msra.gmra.mrb[54].mxu1 %vm1786_vm1, %v18558_v2  ;;  %v18580_v60 = vld [vmem:[#allocation77_spill] sm:$0xff]  ;;  %v18584_v2 = vld [vmem:[#allocation82_spill] sm:$0xff] }
 0x24c   : > { %9939 = vmatprep.mubr.msk.f32.mxu1 %vm10693_vm0, %v18300_v26  ;;  %9953 = vmatprep.mubr.msk.f32.mxu0 %vm10693_vm0, %v18300_v26 }
 0x24d   : > { %10277 = vmatpush3.bf16.msra.mxu1 %v18560_v13  ;;  %v18589_v13 = vld [vmem:[#allocation30_spill] sm:$0xff] }
 0x24e   : > { %10278 = vmatprep.subr.bf16.mxu1 %v18302_v14 }
 0x24f   : > { %9940 = vmatmul.mubr.msk.f32.gmra.mrb[56].mxu1 %vm1786_vm1, %v1684_v42  ;;  %9954 = vmatmul.mubr.msk.f32.vlgmr.msra.gmra.mrb[60].mxu0 %vm1786_vm1, %v18563_v19  ;;  %v18587_v42 = vld [vmem:[#allocation24_spill] sm:$0xff] }
 0x250   : > { %9942 = vmatprep.mubr.msk.f32.mxu1 %vm10693_vm0, %v18300_v26  ;;  %9956 = vmatprep.mubr.msk.f32.mxu0 %vm10693_vm0, %v18300_v26 }
 0x251   : > { %10280 = vmatpush3.bf16.msra.mxu1 %v18566_v5  ;;  %10283 = vmatpush3.bf16.msra.mxu0 %v18567_v61  ;;  %v18602_v61 = vld [vmem:[#allocation101_spill] sm:$0xff] }
 0x252   : > { %10284 = vmatprep.subr.bf16.mxu0 %v18302_v14  ;;  %10287 = vmatprep.subr.bf16.mxu1 %v18302_v14 }
 0x253   : > { %9943 = vmatmul.mubr.msk.f32.gmra.mrb[58].mxu1 %vm1786_vm1, %v1685_v45  ;;  %9957 = vmatmul.mubr.msk.f32.gmra.mrb[62].mxu0 %vm1786_vm1, %v1687_v58 }
 0x254   : > { %9959 = vmatprep.mubr.msk.f32.mxu0 %vm10693_vm0, %v18300_v26  ;;  %9970 = vmatprep.mubr.msk.f32.mxu1 %vm10693_vm0, %v18300_v26 }
 0x255   : > { %10286 = vmatpush3.bf16.msra.mxu0 %v18570_v32 }
 0x256   : > { %10293 = vmatprep.subr.bf16.mxu0 %v18302_v14 }
 0x257   : > { %9960 = vmatmul.mubr.msk.f32.gmra.mrb[64].mxu0 %vm1786_vm1, %v1688_v53  ;;  %9971 = vmatmul.mubr.msk.f32.vlgmr.msra.gmra.mrb[60].mxu1 %vm1786_vm1, %v18572_v52 }
 0x258   : > { %9973 = vmatprep.mubr.msk.f32.mxu1 %vm10693_vm0, %v18300_v26  ;;  %9987 = vmatprep.mubr.msk.f32.mxu0 %vm10693_vm0, %v18300_v26 }
 0x259   : > { %10289 = vmatpush3.bf16.msra.mxu1 %v18574_v49 }
 0x25a   : > { %10290 = vmatprep.subr.bf16.mxu1 %v18302_v14 }
 0x25b   : > { %9974 = vmatmul.mubr.msk.f32.gmra.mrb[62].mxu1 %vm1786_vm1, %v1690_v28  ;;  %9988 = vmatmul.mubr.msk.f32.vlgmr.msra.gmra.mrb[66].mxu0 %vm1786_vm1, %v18577_v31 }
 0x25c   : > { %9976 = vmatprep.mubr.msk.f32.mxu1 %vm10693_vm0, %v18300_v26  ;;  %9990 = vmatprep.mubr.msk.f32.mxu0 %vm10693_vm0, %v18300_v26 }
 0x25d   : > { %10292 = vmatpush3.bf16.msra.mxu1 %v18580_v60  ;;  %10295 = vmatpush3.bf16.msra.mxu0 %v18581_v17 }
 0x25e   : > { %10296 = vmatprep.subr.bf16.mxu0 %v18302_v14  ;;  %10299 = vmatprep.subr.bf16.mxu1 %v18302_v14 }
 0x25f   : > { %9977 = vmatmul.mubr.msk.f32.gmra.mrb[64].mxu1 %vm1786_vm1, %v1691_v39  ;;  %9991 = vmatmul.mubr.msk.f32.gmra.mrb[68].mxu0 %vm1786_vm1, %v1693_v33 }
 0x260   : > { %9993 = vmatprep.mubr.msk.f32.mxu0 %vm10693_vm0, %v18300_v26  ;;  %10004 = vmatprep.mubr.msk.f32.mxu1 %vm10693_vm0, %v18300_v26 }
 0x261   : > { %10298 = vmatpush3.bf16.msra.mxu0 %v18582_v36 }
 0x262   : > { %10305 = vmatprep.subr.bf16.mxu0 %v18302_v14 }
 0x263   : > { %9994 = vmatmul.mubr.msk.f32.gmra.mrb[70].mxu0 %vm1786_vm1, %v12818_v8  ;;  %10005 = vmatmul.mubr.msk.f32.vlgmr.msra.gmra.mrb[66].mxu1 %vm1786_vm1, %v18583_v23  ;;  %v18586_v8 = vld [vmem:[#allocation50_spill] sm:$0xff] }
 0x264   : > { %10007 = vmatprep.mubr.msk.f32.mxu1 %vm10693_vm0, %v18300_v26  ;;  %10021 = vmatprep.mubr.msk.f32.mxu0 %vm10693_vm0, %v18300_v26 }
 0x265   : > { %10301 = vmatpush3.bf16.msra.mxu1 %v18584_v2 }
 0x266   : > { %10302 = vmatprep.subr.bf16.mxu1 %v18302_v14 }
 0x267   : > { %10008 = vmatmul.mubr.msk.f32.gmra.mrb[68].mxu1 %vm1786_vm1, %v12829_v21  ;;  %10022 = vmatmul.mubr.msk.f32.vlgmr.msra.gmra.mrb[72].mxu0 %vm1786_vm1, %v18585_v22  ;;  %v18588_v21 = vld [vmem:[#allocation56_spill] sm:$0xff] }
 0x268   : > { %10010 = vmatprep.mubr.msk.f32.mxu1 %vm10693_vm0, %v18300_v26  ;;  %10024 = vmatprep.mubr.msk.f32.mxu0 %vm10693_vm0, %v18300_v26 }
 0x269   : > { %10304 = vmatpush3.bf16.msra.mxu1 %v18586_v8  ;;  %10307 = vmatpush3.bf16.msra.mxu0 %v18587_v42 }
 0x26a   : > { %10308 = vmatprep.subr.bf16.mxu0 %v18302_v14  ;;  %10311 = vmatprep.subr.bf16.mxu1 %v18302_v14 }
 0x26b   : > { %10011 = vmatmul.mubr.msk.f32.gmra.mrb[70].mxu1 %vm1786_vm1, %v12843_v62  ;;  %10025 = vmatmul.mubr.msk.f32.gmra.mrb[74].mxu0 %vm1786_vm1, %v12846_v24  ;;  %v18590_v62 = vld [vmem:[#allocation26_spill] sm:$0xff] }
 0x26c   : > { %10027 = vmatprep.mubr.msk.f32.mxu0 %vm10693_vm0, %v18300_v26  ;;  %10038 = vmatprep.mubr.msk.f32.mxu1 %vm10693_vm0, %v18300_v26  ;;  %v18591_v24 = vld [vmem:[#allocation70_spill] sm:$0xff] }
 0x26d   : > { %10310 = vmatpush3.bf16.msra.mxu0 %v18588_v21 }
 0x26e   : > { %10317 = vmatprep.subr.bf16.mxu0 %v18302_v14 }
 0x26f   : > { %10028 = vmatmul.mubr.msk.f32.gmra.mrb[76].mxu0 %vm1786_vm1, %v12855_v9  ;;  %10039 = vmatmul.mubr.msk.f32.vlgmr.msra.gmra.mrb[72].mxu1 %vm1786_vm1, %v18589_v13  ;;  %v13113_v9 = vpop.f32.mrb[0].mxu0 }
 0x270   : > { %10041 = vmatprep.mubr.msk.f32.mxu1 %vm10693_vm0, %v18300_v26  ;;  %10055 = vmatprep.mubr.msk.f32.mxu0 %vm10693_vm0, %v18300_v26  ;;  %18592 = vst [vmem:[#allocation51_spill] sm:$0xff] %v13113_v9  ;;  %v9615_v12 = vpop.f32.mrb[1].mxu0  ;;  %v13122_v51 = vadd.f32 1.0, %v13113_v9 }
 0x271   : > { %10313 = vmatpush3.bf16.msra.mxu1 %v18590_v62 }
 0x272   : > { %10314 = vmatprep.subr.bf16.mxu1 %v18302_v14  ;;  %4923 = vrot.lane.b32.xlu0 %v13122_v51, %s10695_s10 }
 0x273   : > { %10042 = vmatmul.mubr.msk.f32.gmra.mrb[74].mxu1 %vm1786_vm1, %v12860_v44  ;;  %10056 = vmatmul.mubr.msk.f32.vlgmr.msra.gmra.mrb[78].mxu0 %vm1786_vm1, %v18591_v24  ;;  %v18595_v44 = vld [vmem:[#allocation100_spill] sm:$0xff] }
 0x274   : > { %10044 = vmatprep.mubr.msk.f32.mxu1 %vm10693_vm0, %v18300_v26  ;;  %10058 = vmatprep.mubr.msk.f32.mxu0 %vm10693_vm0, %v18300_v26  ;;  %v13150_v45 = vpop.f32.mrb[0].mxu1 }
 0x275   : > { %10316 = vmatpush3.bf16.msra.mxu1 %v18593_v48  ;;  %10319 = vmatpush3.bf16.msra.mxu0 %v18594_v41  ;;  %18599 = vst [vmem:[#allocation35_spill] sm:$0xff] %v13150_v45  ;;  %v9632_v58 = vpop.f32.mrb[1].mxu1  ;;  %v13165_v57 = vadd.f32 1.0, %v13150_v45 }
 0x276   : > { %10320 = vmatprep.subr.bf16.mxu0 %v18302_v14  ;;  %10323 = vmatprep.subr.bf16.mxu1 %v18302_v14 }
 0x277   : > { %10045 = vmatmul.mubr.msk.f32.gmra.mrb[76].mxu1 %vm1786_vm1, %v12865_v1  ;;  %10059 = vmatmul.mubr.msk.f32.gmra.mrb[80].mxu0 %vm1786_vm1, %v12868_v10  ;;  %v18596_v1 = vld [vmem:[#allocation97_spill] sm:$0xff]  ;;  %v13142_v10 = vpop.f32.mrb[2].mxu0 }
 0x278   : > { %10061 = vmatprep.mubr.msk.f32.mxu0 %vm10693_vm0, %v18300_v26  ;;  %10072 = vmatprep.mubr.msk.f32.mxu1 %vm10693_vm0, %v18300_v26  ;;  %18597 = vst [vmem:[#allocation90_spill] sm:$0xff] %v13142_v10  ;;  %v9618_v19 = vpop.f32.mrb[3].mxu0 }
 0x279   : > { %10322 = vmatpush3.bf16.msra.mxu0 %v18595_v44  ;;  %v13156_v25 = vpop.f32.mrb[4].mxu0  ;;  %4929 = vrot.lane.b32.xlu1 %v13165_v57, %s10695_s10 }
 0x27a   : > { %10329 = vmatprep.subr.bf16.mxu0 %v18302_v14  ;;  %18601 = vst [vmem:[#allocation23_spill] sm:$0xff] %v13156_v25  ;;  %v9621_v5 = vpop.f32.mrb[5].mxu0 }
 0x27b   : > { %10062 = vmatmul.mubr.msk.f32.gmra.mrb[82].mxu0 %vm1786_vm1, %v12873_v27  ;;  %10073 = vmatmul.mubr.msk.f32.vlgmr.msra.gmra.mrb[78].mxu1 %vm1786_vm1, %v18596_v1  ;;  %v18600_v27 = vld [vmem:[#allocation85_spill] sm:$0xff]  ;;  %v13175_v47 = vpop.f32.mrb[6].mxu0 }
 0x27c   : > { %10075 = vmatprep.mubr.msk.f32.mxu1 %vm10693_vm0, %v18300_v26  ;;  %10089 = vmatprep.mubr.msk.f32.mxu0 %vm10693_vm0, %v18300_v26  ;;  %18605 = vst [vmem:[#allocation81_spill] sm:$0xff] %v13175_v47  ;;  %v9649_v55 = vpop.f32.mrb[7].mxu0 }
 0x27d   : > { %10325 = vmatpush3.bf16.msra.mxu1 %v18598_v3 }
 0x27e   : > { %10326 = vmatprep.subr.bf16.mxu1 %v18302_v14 }
 0x27f   : > { %10076 = vmatmul.mubr.msk.f32.gmra.mrb[80].mxu1 %vm1786_vm1, %v12876_v4  ;;  %10090 = vmatmul.mubr.msk.f32.vlgmr.msra.gmra.mrb[84].mxu0 %vm1786_vm1, %v18600_v27  ;;  %v13169_v4 = vpop.f32.mrb[2].mxu1 }
 0x280   : > { %10078 = vmatprep.mubr.msk.f32.mxu1 %vm10693_vm0, %v18300_v26  ;;  %10092 = vmatprep.mubr.msk.f32.mxu0 %vm10693_vm0, %v18300_v26  ;;  %18604 = vst [vmem:[#allocation79_spill] sm:$0xff] %v13169_v4  ;;  %v9635_v53 = vpop.f32.mrb[3].mxu1  ;;  %v13178_v32 = vadd.f32 1.0, %v13169_v4 }
 0x281   : > { %10328 = vmatpush3.bf16.msra.mxu1 %v18602_v61  ;;  %10331 = vmatpush3.bf16.msra.mxu0 %v18603_v63 }
 0x282   : > { %10332 = vmatprep.subr.bf16.mxu0 %v18302_v14  ;;  %10335 = vmatprep.subr.bf16.mxu1 %v18302_v14 }
 0x283   : > { %10079 = vmatmul.mubr.msk.f32.gmra.mrb[82].mxu1 %vm1786_vm1, %v12879_v59  ;;  %10093 = vmatmul.mubr.msk.f32.gmra.mrb[86].mxu0 %vm1786_vm1, %v12886_v15  ;;  %v18606_v59 = vld [vmem:[#allocation89_spill] sm:$0xff]  ;;  %v13194_v15 = vadd.f32 1.0, %v13142_v10 }
 0x284   : > { %10095 = vmatprep.mubr.msk.f32.mxu0 %vm10693_vm0, %v18300_v26  ;;  %10106 = vmatprep.mubr.msk.f32.mxu1 %vm10693_vm0, %v18300_v26 }
 0x285   : > { %10334 = vmatpush3.bf16.msra.mxu0 %v12773_v18  ;;  %4931 = vrot.lane.b32.xlu0 %v13178_v32, %s10695_s10  ;;  %v13201_v18 = vadd.f32 1.0, %v13156_v25 }
 0x286   : > { %4925 = vrot.lane.b32.xlu1 %v13194_v15, %s10695_s10 }
 0x287   : > { %10096 = vmatmul.mubr.msk.f32.gmra.mrb[88].mxu0 %vm1786_vm1, %v12889_v40  ;;  %10107 = vmatmul.mubr.msk.f32.vlgmr.msra.gmra.mrb[84].mxu1 %vm1786_vm1, %v18606_v59  ;;  %v18607_v40 = vld [vmem:[#allocation76_spill] sm:$0xff] }
 0x288   : > { %10109 = vmatprep.mubr.msk.f32.mxu1 %vm10693_vm0, %v18300_v26  ;;  %10123 = vmatprep.mubr.msk.f32.mxu0 %vm10693_vm0, %v18300_v26 }
 0x289   : > { %10337 = vmatpush3.bf16.msra.mxu1 %v12800_v29  ;;  %4927 = vrot.lane.b32.xlu0 %v13201_v18, %s10695_s10  ;;  %v13218_v29 = vadd.f32 1.0, %v13175_v47 }
 0x28a   : > { %10338 = vmatprep.subr.bf16.mxu1 %v18302_v14 }
 0x28b   : > { %10110 = vmatmul.mubr.msk.f32.gmra.mrb[86].mxu1 %vm1786_vm1, %v12892_v6  ;;  %10124 = vmatmul.mubr.msk.f32.vlgmr.msra.gmra.mrb[90].mxu0 %vm1786_vm1, %v18607_v40 }
 0x28c   : > { %10112 = vmatprep.mubr.msk.f32.mxu1 %vm10693_vm0, %v18300_v26  ;;  %10126 = vmatprep.mubr.msk.f32.mxu0 %vm10693_vm0, %v18300_v26 }
 0x28d   : > { %10340 = vmatpush3.bf16.msra.mxu1 %v12808_v16  ;;  %4935 = vrot.lane.b32.xlu0 %v13218_v29, %s10695_s10 }
 0x28f   : > { %10113 = vmatmul.mubr.msk.f32.gmra.mrb[88].mxu1 %vm1786_vm1, %v12897_v0  ;;  %10127 = vmatmul.mubr.msk.f32.gmra.mrb[92].mxu0 %vm1786_vm1, %v12899_v50  ;;  %v13241_v14 = vpop.f32.mrb[4].mxu1  ;;  %v13243_v16 = vpop.f32.mrb[8].mxu0 }
 0x290   : > { %10129 = vmatprep.mubr.msk.f32.mxu0 %vm10693_vm0, %v18300_v26  ;;  %10140 = vmatprep.mubr.msk.f32.mxu1 %vm10693_vm0, %v18300_v26  ;;  %18608 = vst [vmem:[#allocation42_spill] sm:$0xff] %v13241_v14  ;;  %18609 = vst [vmem:[#allocation73_spill] sm:$0xff] %v13243_v16  ;;  %v9638_v6 = vpop.f32.mrb[5].mxu1  ;;  %v9652_v0 = vpop.f32.mrb[9].mxu0  ;;  %v13246_v50 = vadd.f32 1.0, %v13241_v14  ;;  %v13269_v43 = vadd.f32 1.0, %v13243_v16 }
 0x292   : > { %4933 = vrot.lane.b32.xlu1 %v13246_v50, %s10695_s10 }
 0x293   : > { %10130 = vmatmul.mubr.msk.f32.gmra.mrb[94].mxu0 %vm1786_vm1, %v12901_v11  ;;  %10141 = vmatmul.mubr.msk.f32.vlgmr.msra.gmra.mrb[90].mxu1 %vm1786_vm1, %v12821_v56  ;;  %v13254_v11 = vpop.f32.mrb[6].mxu1 }
 0x294   : > { %10143 = vmatprep.mubr.msk.f32.mxu1 %vm10693_vm0, %v18300_v26  ;;  %18611 = vst [vmem:[#allocation87_spill] sm:$0xff] %v13254_v11  ;;  %v13257_v20 = vadd.f32 1.0, %v13254_v11 }
 0x295   : > { %v13252_v56 = vpop.f32.mrb[10].mxu0 }
 0x296   : > { %18610 = vst [vmem:[#allocation86_spill] sm:$0xff] %v13252_v56  ;;  %4941 = vrot.lane.b32.xlu1 %v13257_v20, %s10695_s10  ;;  %v13276_v34 = vadd.f32 1.0, %v13252_v56 }
 0x297   : > { %10144 = vmatmul.mubr.msk.f32.gmra.mrb[92].mxu1 %vm1786_vm1, %v12906_v46  ;;  %v9666_v46 = vpop.f32.mrb[7].mxu1 }
 0x298   : > { %10146 = vmatprep.mubr.msk.f32.mxu1 %vm10693_vm0, %v18300_v26  ;;  %v9655_v26 = vpop.f32.mrb[11].mxu0 }
 0x299   : > { %v13261_v52 = vpop.f32.mrb[12].mxu0  ;;  %v13263_v37 = vpop.f32.mrb[8].mxu1 }
 0x29a   : > { %18612 = vst [vmem:[#allocation62_spill] sm:$0xff] %v13261_v52  ;;  %18613 = vst [vmem:[#allocation31_spill] sm:$0xff] %v13263_v37  ;;  %v9669_v28 = vpop.f32.mrb[9].mxu1  ;;  %v13266_v49 = vadd.f32 1.0, %v13263_v37  ;;  %4937 = vrot.lane.b32.xlu1 %v13269_v43, %s10695_s10  ;;  %v13281_v30 = vadd.f32 1.0, %v13261_v52 }
 0x29b   : > { %10147 = vmatmul.mubr.msk.f32.gmra.mrb[94].mxu1 %vm1786_vm1, %v12908_v7  ;;  %v9683_v7 = vpop.f32.mrb[13].mxu0 }
 0x29c   : > { %4943 = vrot.lane.b32.xlu0 %v13266_v49, %s10695_s10 }
 0x2a0   : > { %4939 = vrot.lane.b32.xlu0 %v13276_v34, %s10695_s10 }
 0x2a4   : > { %4947 = vrot.lane.b32.xlu0 %v13281_v30, %s10695_s10 }
 0x2ac   : > { %v13285_v54 = vpop.f32.mrb[10].mxu1 }
 0x2ad   : > { %18614 = vst [vmem:[#allocation15_spill] sm:$0xff] %v13285_v54  ;;  %v13287_v31 = vpop.f32.mrb[14].mxu0  ;;  %v9672_v35 = vpop.f32.mrb[11].mxu1  ;;  %v13290_v39 = vadd.f32 1.0, %v13285_v54 }
 0x2ae   : > { %18615 = vst [vmem:[#allocation14_spill] sm:$0xff] %v13287_v31  ;;  %v9686_v38 = vpop.f32.mrb[15].mxu0  ;;  %v13311_v21 = vadd.f32 1.0, %v13287_v31 }
 0x2af   : > { %4945 = vrot.lane.b32.xlu1 %v13290_v39, %s10695_s10 }
 0x2b0   : > { %v13294_v33 = vpop.f32.mrb[12].mxu1 }
 0x2b1   : > { %18616 = vst [vmem:[#allocation33_spill] sm:$0xff] %v13294_v33  ;;  %v13296_v60 = vpop.f32.mrb[16].mxu0  ;;  %v9700_v17 = vpop.f32.mrb[13].mxu1  ;;  %v13299_v36 = vadd.f32 1.0, %v13294_v33 }
 0x2b2   : > { %18617 = vst [vmem:[#allocation34_spill] sm:$0xff] %v13296_v60  ;;  %v9689_v23 = vpop.f32.mrb[17].mxu0  ;;  %v13325_v41 = vadd.f32 1.0, %v13296_v60 }
 0x2b3   : > { %4953 = vrot.lane.b32.xlu1 %v13299_v36, %s10695_s10 }
 0x2b4   : > { %v13303_v2 = vpop.f32.mrb[14].mxu1 }
 0x2b5   : > { %18618 = vst [vmem:[#allocation40_spill] sm:$0xff] %v13303_v2  ;;  %v13305_v22 = vpop.f32.mrb[18].mxu0  ;;  %v9703_v8 = vpop.f32.mrb[15].mxu1  ;;  %v13308_v42 = vadd.f32 1.0, %v13303_v2 }
 0x2b6   : > { %18619 = vst [vmem:[#allocation7_spill] sm:$0xff] %v13305_v22  ;;  %v9717_v13 = vpop.f32.mrb[19].mxu0  ;;  %v13339_v58 = vadd.f32 1.0, %v13305_v22 }
 0x2b7   : > { %4955 = vrot.lane.b32.xlu0 %v13308_v42, %s10695_s10  ;;  %4949 = vrot.lane.b32.xlu1 %v13311_v21, %s10695_s10 }
 0x2b9   : > { %v13317_v62 = vpop.f32.mrb[16].mxu1  ;;  %v13319_v24 = vpop.f32.mrb[20].mxu0 }
 0x2ba   : > { %18620 = vst [vmem:[#allocation28_spill] sm:$0xff] %v13317_v62  ;;  %18621 = vst [vmem:[#allocation71_spill] sm:$0xff] %v13319_v24  ;;  %v9706_v12 = vpop.f32.mrb[17].mxu1  ;;  %v13322_v48 = vadd.f32 1.0, %v13317_v62  ;;  %v9720_v44 = vpop.f32.mrb[21].mxu0  ;;  %v13353_v59 = vadd.f32 1.0, %v13319_v24 }
 0x2bb   : > { %4951 = vrot.lane.b32.xlu0 %v13325_v41, %s10695_s10 }
 0x2bc   : > { %4957 = vrot.lane.b32.xlu1 %v13322_v48, %s10695_s10 }
 0x2bd   : > { %v13331_v1 = vpop.f32.mrb[18].mxu1 }
 0x2be   : > { %18622 = vst [vmem:[#allocation64_spill] sm:$0xff] %v13331_v1  ;;  %v9734_v3 = vpop.f32.mrb[19].mxu1  ;;  %v13336_v27 = vadd.f32 1.0, %v13331_v1 }
 0x2bf   : > { %4959 = vrot.lane.b32.xlu0 %v13339_v58, %s10695_s10 }
 0x2c0   : > { %v13333_v19 = vpop.f32.mrb[22].mxu0  ;;  %4965 = vrot.lane.b32.xlu1 %v13336_v27, %s10695_s10 }
 0x2c1   : > { %18623 = vst [vmem:[#allocation49_spill] sm:$0xff] %v13333_v19  ;;  %v9723_v5 = vpop.f32.mrb[23].mxu0  ;;  %v13360_v6 = vadd.f32 1.0, %v13333_v19 }
 0x2c4   : > { %v13345_v61 = vpop.f32.mrb[20].mxu1  ;;  %4961 = vrot.lane.b32.xlu1 %v13353_v59, %s10695_s10 }
 0x2c5   : > { %18624 = vst [vmem:[#allocation84_spill] sm:$0xff] %v13345_v61  ;;  %v13347_v63 = vpop.f32.mrb[24].mxu0  ;;  %v9737_v53 = vpop.f32.mrb[21].mxu1  ;;  %v13350_v55 = vadd.f32 1.0, %v13345_v61 }
 0x2c6   : > { %18625 = vst [vmem:[#allocation36_spill] sm:$0xff] %v13347_v63  ;;  %v9751_v40 = vpop.f32.mrb[25].mxu0  ;;  %v13365_v0 = vadd.f32 1.0, %v13347_v63 }
 0x2c7   : > { %4967 = vrot.lane.b32.xlu0 %v13350_v55, %s10695_s10 }
 0x2cb   : > { %4963 = vrot.lane.b32.xlu0 %v13360_v6, %s10695_s10 }
 0x2cf   : > { %4971 = vrot.lane.b32.xlu0 %v13365_v0, %s10695_s10 }
 0x2d7   : > { %v13371_v46 = vpop.f32.mrb[26].mxu0 }
 0x2d8   : > { %v13369_v26 = vpop.f32.mrb[22].mxu1  ;;  %18627 = vst [vmem:[#allocation96_spill] sm:$0xff] %v13371_v46  ;;  %v9754_v28 = vpop.f32.mrb[27].mxu0  ;;  %v13395_v40 = vadd.f32 1.0, %v13371_v46 }
 0x2d9   : > { %18626 = vst [vmem:[#allocation93_spill] sm:$0xff] %v13369_v26  ;;  %v9740_v7 = vpop.f32.mrb[23].mxu1  ;;  %v13374_v35 = vadd.f32 1.0, %v13369_v26  ;;  %v13415_v46 = vpop.permute.xlu0 %7093 }
 0x2da   : > { %18634 = vst [vmem:[#allocation99_spill] sm:$0xff] %v13415_v46 }
 0x2db   : > { %4969 = vrot.lane.b32.xlu1 %v13374_v35, %s10695_s10 }
 0x2dc   : > { %v13380_v17 = vpop.f32.mrb[24].mxu1 }
 0x2dd   : > { %v13378_v38 = vpop.f32.mrb[28].mxu0  ;;  %18629 = vst [vmem:[#allocation3_spill] sm:$0xff] %v13380_v17  ;;  %v9768_v8 = vpop.f32.mrb[25].mxu1  ;;  %v13383_v13 = vadd.f32 1.0, %v13380_v17 }
 0x2de   : > { %18628 = vst [vmem:[#allocation44_spill] sm:$0xff] %v13378_v38  ;;  %v9757_v23 = vpop.f32.mrb[29].mxu0 }
 0x2df   : > { %4977 = vrot.lane.b32.xlu1 %v13383_v13, %s10695_s10 }
 0x2e0   : > { %v13387_v12 = vpop.f32.mrb[26].mxu1 }
 0x2e1   : > { %18630 = vst [vmem:[#allocation4_spill] sm:$0xff] %v13387_v12  ;;  %v13389_v44 = vpop.f32.mrb[30].mxu0  ;;  %v9771_v3 = vpop.f32.mrb[27].mxu1  ;;  %v13392_v53 = vadd.f32 1.0, %v13387_v12 }
 0x2e2   : > { %18631 = vst [vmem:[#allocation5_spill] sm:$0xff] %v13389_v44  ;;  %v9785_v5 = vpop.f32.mrb[31].mxu0  ;;  %v13417_v12 = vpop.permute.xlu1 %7089 }
 0x2e3   : > { %4979 = vrot.lane.b32.xlu0 %v13392_v53, %s10695_s10  ;;  %4973 = vrot.lane.b32.xlu1 %v13395_v40, %s10695_s10  ;;  %v13409_v5 = vadd.f32 1.0, %v13378_v38  ;;  %18635 = vst [vmem:[#allocation98_spill] sm:$0xff] %v13417_v12  ;;  %v13427_v38 = vadd.f32 1.0, %v13389_v44  ;;  %v13436_v12 = vpop.permute.xlu0 %7105 }
 0x2e4   : > { %18638 = vst [vmem:[#allocation16_spill] sm:$0xff] %v13436_v12 }
 0x2e5   : > { %v13401_v7 = vpop.f32.mrb[28].mxu1  ;;  %v13403_v28 = vpop.f32.mrb[32].mxu0 }
 0x2e6   : > { %18632 = vst [vmem:[#allocation41_spill] sm:$0xff] %v13401_v7  ;;  %18633 = vst [vmem:[#allocation48_spill] sm:$0xff] %v13403_v28  ;;  %v9774_v23 = vpop.f32.mrb[29].mxu1  ;;  %v9788_v8 = vpop.f32.mrb[33].mxu0  ;;  %v13406_v3 = vadd.f32 1.0, %v13401_v7  ;;  %v13434_v46 = vadd.f32 1.0, %v13403_v28 }
 0x2e7   : > { %4975 = vrot.lane.b32.xlu0 %v13409_v5, %s10695_s10  ;;  %v13451_v28 = vpop.permute.xlu0 %7113 }
 0x2e8   : > { %4981 = vrot.lane.b32.xlu1 %v13406_v3, %s10695_s10  ;;  %18642 = vst [vmem:[#allocation43_spill] sm:$0xff] %v13451_v28 }
 0x2ea   : > { %v13419_v17 = vpop.f32.mrb[34].mxu0  ;;  %v13421_v23 = vpop.f32.mrb[30].mxu1 }
 0x2eb   : > { %18636 = vst [vmem:[#allocation13_spill] sm:$0xff] %v13419_v17  ;;  %18637 = vst [vmem:[#allocation6_spill] sm:$0xff] %v13421_v23  ;;  %v9791_v8 = vpop.f32.mrb[35].mxu0  ;;  %v9802_v7 = vpop.f32.mrb[31].mxu1  ;;  %v13424_v63 = vadd.f32 1.0, %v13421_v23  ;;  %4983 = vrot.lane.b32.xlu0 %v13427_v38, %s10695_s10 }
 0x2ec   : > { %v13440_v7 = vpop.permute.xlu1 %7097  ;;  %v13483_v1 = vpop.permute.xlu0 %4923 }
 0x2ed   : > { %4989 = vrot.lane.b32.xlu1 %v13424_v63, %s10695_s10  ;;  %18639 = vst [vmem:[#allocation37_spill] sm:$0xff] %v13440_v7 }
 0x2f1   : > { %4985 = vrot.lane.b32.xlu1 %v13434_v46, %s10695_s10  ;;  %v13442_v8 = vpop.f32.mrb[32].mxu1 }
 0x2f2   : > { %18640 = vst [vmem:[#allocation59_spill] sm:$0xff] %v13442_v8  ;;  %v13444_v44 = vpop.f32.mrb[36].mxu0  ;;  %v9805_v23 = vpop.f32.mrb[33].mxu1  ;;  %v13447_v19 = vadd.f32 1.0, %v13442_v8 }
 0x2f3   : > { %18641 = vst [vmem:[#allocation17_spill] sm:$0xff] %v13444_v44  ;;  %v9819_v26 = vpop.f32.mrb[37].mxu0  ;;  %v13461_v23 = vadd.f32 1.0, %v13419_v17  ;;  %v13477_v17 = vadd.f32 1.0, %v13444_v44 }
 0x2f4   : > { %4991 = vrot.lane.b32.xlu0 %v13447_v19, %s10695_s10  ;;  %v13467_v26 = vpop.permute.xlu1 %7109 }
 0x2f5   : > { %18645 = vst [vmem:[#allocation60_spill] sm:$0xff] %v13467_v26 }
 0x2f6   : > { %v13453_v12 = vpop.f32.mrb[34].mxu1  ;;  %v13455_v24 = vpop.f32.mrb[38].mxu0 }
 0x2f7   : > { %18643 = vst [vmem:[#allocation11_spill] sm:$0xff] %v13453_v12  ;;  %18644 = vst [vmem:[#allocation18_spill] sm:$0xff] %v13455_v24  ;;  %v9808_v61 = vpop.f32.mrb[35].mxu1  ;;  %v9822_v7 = vpop.f32.mrb[39].mxu0  ;;  %v13458_v22 = vadd.f32 1.0, %v13453_v12  ;;  %v13493_v44 = vadd.f32 1.0, %v13455_v24 }
 0x2f8   : > { %4987 = vrot.lane.b32.xlu0 %v13461_v23, %s10695_s10  ;;  %v13499_v62 = vpop.permute.xlu1 %4929  ;;  %v13501_v31 = vpop.permute.xlu0 %4931 }
 0x2f9   : > { %4993 = vrot.lane.b32.xlu1 %v13458_v22, %s10695_s10  ;;  %18650 = vst [vmem:[#allocation20_spill] sm:$0xff] %v13499_v62  ;;  %18651 = vst [vmem:[#allocation25_spill] sm:$0xff] %v13501_v31  ;;  %v4687_v62 = vmul.f32 %v13178_v32, %v13178_v32 }
 0x2fa   : > { %v13469_v28 = vpop.f32.mrb[40].mxu0  ;;  %v13471_v8 = vpop.f32.mrb[36].mxu1 }
 0x2fb   : > { %18646 = vst [vmem:[#allocation52_spill] sm:$0xff] %v13469_v28  ;;  %18647 = vst [vmem:[#allocation54_spill] sm:$0xff] %v13471_v8  ;;  %v9825_v61 = vpop.f32.mrb[41].mxu0  ;;  %v9836_v7 = vpop.f32.mrb[37].mxu1  ;;  %v13474_v12 = vadd.f32 1.0, %v13471_v8  ;;  %v13511_v24 = vadd.f32 1.0, %v13469_v28 }
 0x2fc   : > { %4995 = vrot.lane.b32.xlu0 %v13477_v17, %s10695_s10  ;;  %v13531_v28 = vpop.permute.xlu1 %4925 }
 0x2fd   : > { %5001 = vrot.lane.b32.xlu1 %v13474_v12, %s10695_s10  ;;  %18656 = vst [vmem:[#allocation57_spill] sm:$0xff] %v13531_v28 }
 0x2fe   : > { %v13485_v26 = vpop.f32.mrb[38].mxu1  ;;  %v13487_v60 = vpop.f32.mrb[42].mxu0 }
 0x2ff   : > { %18648 = vst [vmem:[#allocation58_spill] sm:$0xff] %v13485_v26  ;;  %18649 = vst [vmem:[#allocation72_spill] sm:$0xff] %v13487_v60  ;;  %v9839_v61 = vpop.f32.mrb[39].mxu1  ;;  %v9853_v7 = vpop.f32.mrb[43].mxu0  ;;  %v13490_v8 = vadd.f32 1.0, %v13485_v26 }
 0x301   : > { %5003 = vrot.lane.b32.xlu0 %v13490_v8, %s10695_s10  ;;  %4997 = vrot.lane.b32.xlu1 %v13493_v44, %s10695_s10 }
 0x302   : > { %v13503_v2 = vpop.f32.mrb[40].mxu1  ;;  %v13505_v61 = vpop.f32.mrb[44].mxu0 }
 0x303   : > { %18652 = vst [vmem:[#allocation32_spill] sm:$0xff] %v13503_v2  ;;  %18653 = vst [vmem:[#allocation53_spill] sm:$0xff] %v13505_v61  ;;  %v9842_v7 = vpop.f32.mrb[41].mxu1  ;;  %v9856_v26 = vpop.f32.mrb[45].mxu0  ;;  %v13508_v33 = vadd.f32 1.0, %v13503_v2  ;;  %v13547_v14 = vadd.f32 1.0, %v13505_v61 }
 0x304   : > { %v13525_v7 = vadd.f32 1.0, %v13487_v60  ;;  %v13533_v2 = vpop.permute.xlu0 %4927  ;;  %v13571_v10 = vpop.permute.xlu1 %4933 }
 0x305   : > { %5005 = vrot.lane.b32.xlu1 %v13508_v33, %s10695_s10  ;;  %4999 = vrot.lane.b32.xlu0 %v13511_v24, %s10695_s10  ;;  %18657 = vst [vmem:[#allocation68_spill] sm:$0xff] %v13533_v2  ;;  %18662 = vst [vmem:[#allocation19_spill] sm:$0xff] %v13571_v10 }
 0x306   : > { %v13517_v52 = vpop.f32.mrb[46].mxu0  ;;  %v13519_v54 = vpop.f32.mrb[42].mxu1 }
 0x307   : > { %18654 = vst [vmem:[#allocation75_spill] sm:$0xff] %v13517_v52  ;;  %18655 = vst [vmem:[#allocation38_spill] sm:$0xff] %v13519_v54  ;;  %v9859_v56 = vpop.f32.mrb[47].mxu0  ;;  %v9870_v16 = vpop.f32.mrb[43].mxu1  ;;  %v13522_v26 = vadd.f32 1.0, %v13519_v54 }
 0x308   : > { %v4683_v16 = vmul.f32 %v13122_v51, %v13122_v51  ;;  %v13611_v32 = vpop.permute.xlu1 %4941 }
 0x309   : > { %5013 = vrot.lane.b32.xlu1 %v13522_v26, %s10695_s10  ;;  %5007 = vrot.lane.b32.xlu0 %v13525_v7, %s10695_s10  ;;  %18668 = vst [vmem:[#allocation88_spill] sm:$0xff] %v13611_v32 }
 0x30a   : > { %v13535_v37 = vpop.f32.mrb[44].mxu1  ;;  %v13537_v56 = vpop.f32.mrb[48].mxu0 }
 0x30b   : > { %18658 = vst [vmem:[#allocation46_spill] sm:$0xff] %v13535_v37  ;;  %18659 = vst [vmem:[#allocation39_spill] sm:$0xff] %v13537_v56  ;;  %v4731_v60 = vmul.f32 %v13537_v56, %v13537_v56  ;;  %v9873_v54 = vpop.f32.mrb[45].mxu1  ;;  %v9887_v11 = vpop.f32.mrb[49].mxu0  ;;  %v13544_v47 = vadd.f32 1.0, %v13535_v37 }
 0x30c   : > { %v4684_v11 = vmul.f32 %v13194_v15, %v13194_v15  ;;  %v13573_v15 = vpop.permute.xlu0 %4935 }
 0x30d   : > { %v4779_v25 = vadd.f32 %v4731_v60, %v4683_v16  ;;  %5015 = vrot.lane.b32.xlu0 %v13544_v47, %s10695_s10  ;;  %5009 = vrot.lane.b32.xlu1 %v13547_v14, %s10695_s10  ;;  %v13565_v16 = vadd.f32 1.0, %v13517_v52  ;;  %18663 = vst [vmem:[#allocation22_spill] sm:$0xff] %v13573_v15 }
 0x30e   : > { %v13553_v2 = vpop.f32.mrb[46].mxu1  ;;  %v13555_v51 = vpop.f32.mrb[50].mxu0 }
 0x30f   : > { %18660 = vst [vmem:[#allocation65_spill] sm:$0xff] %v13553_v2  ;;  %18661 = vst [vmem:[#allocation12_spill] sm:$0xff] %v13555_v51  ;;  %v4732_v54 = vmul.f32 %v13555_v51, %v13555_v51  ;;  %v9876_v37 = vpop.f32.mrb[47].mxu1  ;;  %v9890_v61 = vpop.f32.mrb[51].mxu0  ;;  %v13562_v60 = vadd.f32 1.0, %v13553_v2  ;;  %10571 = vrcp.f32 %v4779_v25  ;;  %v4688_v25 = vmul.f32 %v13246_v50, %v13246_v50 }
 0x310   : > { %v4686_v61 = vmul.f32 %v13165_v57, %v13165_v57 }
 0x311   : > { %v4780_v28 = vadd.f32 %v4732_v54, %v4684_v11  ;;  %5017 = vrot.lane.b32.xlu1 %v13562_v60, %s10695_s10  ;;  %5011 = vrot.lane.b32.xlu0 %v13565_v16, %s10695_s10  ;;  %v4685_v11 = vmul.f32 %v13201_v18, %v13201_v18 }
 0x312   : > { %v13575_v31 = vpop.f32.mrb[52].mxu0  ;;  %v13577_v37 = vpop.f32.mrb[48].mxu1 }
 0x313   : > { %18664 = vst [vmem:[#allocation61_spill] sm:$0xff] %v13575_v31  ;;  %18665 = vst [vmem:[#allocation45_spill] sm:$0xff] %v13577_v37  ;;  %v4733_v54 = vmul.f32 %v13575_v31, %v13575_v31  ;;  %v4734_v52 = vmul.f32 %v13577_v37, %v13577_v37  ;;  %v9893_v2 = vpop.f32.mrb[53].mxu0  ;;  %v9904_v10 = vpop.f32.mrb[49].mxu1 }
 0x314   : > { %v4689_v2 = vmul.f32 %v13218_v29, %v13218_v29  ;;  %v13613_v29 = vpop.permute.xlu0 %4943 }
 0x315   : > { %v13587_v4 = vadd.f32 %v4733_v54, %v4685_v11  ;;  %v4782_v15 = vadd.f32 %v4734_v52, %v4686_v61  ;;  %5169 = vrot.lane.b32.xlu1 %v13577_v37, %s10695_s10  ;;  %5163 = vrot.lane.b32.xlu0 %v13537_v56, %s10695_s10  ;;  %18669 = vst [vmem:[#allocation10_spill] sm:$0xff] %v13613_v29 }
 0x316   : > { %v13593_v57 = vpop.f32.mrb[50].mxu1  ;;  %v13595_v18 = vpop.f32.mrb[54].mxu0  ;;  %v4692_v29 = vmul.f32 %v13257_v20, %v13257_v20 }
 0x317   : > { %18666 = vst [vmem:[#allocation55_spill] sm:$0xff] %v13593_v57  ;;  %18667 = vst [vmem:[#allocation66_spill] sm:$0xff] %v13595_v18  ;;  %v4735_v10 = vmul.f32 %v13593_v57, %v13593_v57  ;;  %v4737_v52 = vmul.f32 %v13595_v18, %v13595_v18  ;;  %v9907_v61 = vpop.f32.mrb[51].mxu1  ;;  %v9921_v11 = vpop.f32.mrb[55].mxu0  ;;  %10573 = vrcp.f32 %v4782_v15 }
 0x318   : > { %10575 = vrcp.f32 %v4780_v28  ;;  %v13653_v20 = vpop.permute.xlu1 %4937 }
 0x319   : > { %v4783_v54 = vadd.f32 %v4735_v10, %v4687_v62  ;;  %v13605_v56 = vadd.f32 %v4737_v52, %v4689_v2  ;;  %5171 = vrot.lane.b32.xlu0 %v13593_v57, %s10695_s10  ;;  %5165 = vrot.lane.b32.xlu1 %v13555_v51, %s10695_s10  ;;  %v4690_v62 = vmul.f32 %v13269_v43, %v13269_v43  ;;  %v10572_v28 = vpop.eup %10571 }
 0x31a   : > { %v13615_v37 = vpop.f32.mrb[52].mxu1  ;;  %v13617_v45 = vpop.f32.mrb[56].mxu0  ;;  %18674 = vst [vmem:[#allocation74_spill] sm:$0xff] %v13653_v20 }
 0x31b   : > { %18670 = vst [vmem:[#allocation69_spill] sm:$0xff] %v13615_v37  ;;  %18671 = vst [vmem:[#allocation21_spill] sm:$0xff] %v13617_v45  ;;  %v4736_v2 = vmul.f32 %v13615_v37, %v13615_v37  ;;  %v4738_v10 = vmul.f32 %v13617_v45, %v13617_v45  ;;  %v9910_v52 = vpop.f32.mrb[53].mxu1  ;;  %v9924_v61 = vpop.f32.mrb[57].mxu0  ;;  %10577 = vrcp.f32 %v4783_v54 }
 0x31c   : > { %v4691_v52 = vmul.f32 %v13276_v34, %v13276_v34  ;;  %v13655_v34 = vpop.permute.xlu0 %4939  ;;  %10579 = vrcp.f32 %v13587_v4  ;;  %v4698_v4 = vmul.f32 %v13299_v36, %v13299_v36 }
 0x31d   : > { %v4784_v11 = vadd.f32 %v4736_v2, %v4688_v25  ;;  %v13627_v15 = vadd.f32 %v4738_v10, %v4690_v62  ;;  %5173 = vrot.lane.b32.xlu1 %v13615_v37, %s10695_s10  ;;  %5167 = vrot.lane.b32.xlu0 %v13575_v31, %s10695_s10  ;;  %18675 = vst [vmem:[#allocation78_spill] sm:$0xff] %v13655_v34 }
 0x31e   : > { %v13633_v50 = vpop.f32.mrb[58].mxu0  ;;  %v13635_v43 = vpop.f32.mrb[54].mxu1  ;;  %v4699_v37 = vmul.f32 %v13308_v42, %v13308_v42 }
 0x31f   : > { %18672 = vst [vmem:[#allocation63_spill] sm:$0xff] %v13633_v50  ;;  %18673 = vst [vmem:[#allocation67_spill] sm:$0xff] %v13635_v43  ;;  %v4739_v25 = vmul.f32 %v13633_v50, %v13633_v50  ;;  %v4740_v62 = vmul.f32 %v13635_v43, %v13635_v43  ;;  %v9927_v2 = vpop.f32.mrb[59].mxu0  ;;  %v9938_v10 = vpop.f32.mrb[55].mxu1  ;;  %10581 = vrcp.f32 %v4784_v11 }
 0x320   : > { %10583 = vrcp.f32 %v13605_v56  ;;  %v4700_v56 = vmul.f32 %v13322_v48, %v13322_v48 }
 0x321   : > { %v13645_v61 = vadd.f32 %v4739_v25, %v4691_v52  ;;  %v13647_v32 = vadd.f32 %v4740_v62, %v4692_v29  ;;  %5181 = vrot.lane.b32.xlu1 %v13635_v43, %s10695_s10  ;;  %5175 = vrot.lane.b32.xlu0 %v13595_v18, %s10695_s10  ;;  %v4693_v29 = vmul.f32 %v13266_v49, %v13266_v49  ;;  %v10574_v54 = vpop.eup %10573 }
 0x322   : > { %v13657_v31 = vpop.f32.mrb[56].mxu1  ;;  %v13659_v2 = vpop.f32.mrb[60].mxu0  ;;  %v4695_v52 = vmul.f32 %v13281_v30, %v13281_v30  ;;  %v4694_v43 = vmul.f32 %v13290_v39, %v13290_v39 }
 0x323   : > { %18676 = vst [vmem:[#allocation9_spill] sm:$0xff] %v13657_v31  ;;  %18677 = vst [vmem:[#allocation91_spill] sm:$0xff] %v13659_v2  ;;  %v4741_v25 = vmul.f32 %v13657_v31, %v13657_v31  ;;  %v4743_v62 = vmul.f32 %v13659_v2, %v13659_v2  ;;  %v9941_v10 = vpop.f32.mrb[57].mxu1  ;;  %v9955_v34 = vpop.f32.mrb[61].mxu0  ;;  %10585 = vrcp.f32 %v13647_v32 }
 0x324   : > { %v4696_v10 = vmul.f32 %v13311_v21, %v13311_v21  ;;  %v13698_v39 = vpop.permute.xlu0 %4947  ;;  %10587 = vrcp.f32 %v13627_v15 }
 0x325   : > { %v13669_v20 = vadd.f32 %v4741_v25, %v4693_v29  ;;  %v13671_v18 = vadd.f32 %v4743_v62, %v4695_v52  ;;  %5457 = vrot.lane.b32.xlu1 %v10574_v54, %s10695_s10  ;;  %5451 = vrot.lane.b32.xlu0 %v10572_v28, %s10695_s10  ;;  %v13687_v62 = vpop.permute.xlu1 %4945  ;;  %18681 = vst [vmem:[#allocation83_spill] sm:$0xff] %v13698_v39 }
 0x326   : > { %v13675_v49 = vpop.f32.mrb[58].mxu1  ;;  %v13677_v30 = vpop.f32.mrb[62].mxu0  ;;  %18680 = vst [vmem:[#allocation80_spill] sm:$0xff] %v13687_v62 }
 0x327   : > { %18678 = vst [vmem:[#allocation95_spill] sm:$0xff] %v13675_v49  ;;  %18679 = vst [vmem:[#allocation77_spill] sm:$0xff] %v13677_v30  ;;  %v4742_v34 = vmul.f32 %v13675_v49, %v13675_v49  ;;  %v4744_v29 = vmul.f32 %v13677_v30, %v13677_v30  ;;  %v9944_v52 = vpop.f32.mrb[59].mxu1  ;;  %v9958_v25 = vpop.f32.mrb[63].mxu0  ;;  %10589 = vrcp.f32 %v13669_v20 }
 0x328   : > { %v10576_v25 = vpop.eup %10575  ;;  %10591 = vrcp.f32 %v13645_v61 }
 0x329   : > { %v13690_v28 = vadd.f32 %v4742_v34, %v4694_v43  ;;  %v13692_v54 = vadd.f32 %v4744_v29, %v4696_v10  ;;  %5183 = vrot.lane.b32.xlu0 %v13657_v31, %s10695_s10  ;;  %5177 = vrot.lane.b32.xlu1 %v13617_v45, %s10695_s10  ;;  %v4697_v43 = vmul.f32 %v13325_v41, %v13325_v41  ;;  %v10578_v11 = vpop.eup %10577  ;;  %v13712_v62 = vpop.permute.xlu1 %4953 }
 0x32a   : > { %v13700_v21 = vpop.f32.mrb[64].mxu0  ;;  %v13702_v52 = vpop.f32.mrb[60].mxu1  ;;  %18684 = vst [vmem:[#allocation94_spill] sm:$0xff] %v13712_v62 }
 0x32b   : > { %18682 = vst [vmem:[#allocation92_spill] sm:$0xff] %v13700_v21  ;;  %18683 = vst [vmem:[#allocation82_spill] sm:$0xff] %v13702_v52  ;;  %v4745_v10 = vmul.f32 %v13700_v21, %v13700_v21  ;;  %v4746_v34 = vmul.f32 %v13702_v52, %v13702_v52  ;;  %v9972_v29 = vpop.f32.mrb[61].mxu1  ;;  %v9961_v39 = vpop.f32.mrb[65].mxu0  ;;  %10593 = vrcp.f32 %v13690_v28 }
 0x32c   : > { %v4701_v39 = vmul.f32 %v13339_v58, %v13339_v58  ;;  %v13732_v29 = vpop.permute.xlu0 %4955  ;;  %10595 = vrcp.f32 %v13671_v18 }
 0x32d   : > { %v13714_v31 = vadd.f32 %v4745_v10, %v4697_v43  ;;  %v13716_v45 = vadd.f32 %v4746_v34, %v4698_v4  ;;  %5459 = vrot.lane.b32.xlu0 %v10578_v11, %s10695_s10  ;;  %5453 = vrot.lane.b32.xlu1 %v10576_v25, %s10695_s10  ;;  %18687 = vst [vmem:[#allocation56_spill] sm:$0xff] %v13732_v29  ;;  %v13743_v42 = vpop.permute.xlu1 %4949 }
 0x32e   : > { %v13720_v36 = vpop.f32.mrb[62].mxu1  ;;  %v13722_v41 = vpop.f32.mrb[66].mxu0  ;;  %18688 = vst [vmem:[#allocation30_spill] sm:$0xff] %v13743_v42 }
 0x32f   : > { %18685 = vst [vmem:[#allocation50_spill] sm:$0xff] %v13720_v36  ;;  %18686 = vst [vmem:[#allocation24_spill] sm:$0xff] %v13722_v41  ;;  %v4747_v43 = vmul.f32 %v13720_v36, %v13720_v36  ;;  %v4749_v4 = vmul.f32 %v13722_v41, %v13722_v41  ;;  %v9975_v10 = vpop.f32.mrb[63].mxu1  ;;  %v9989_v34 = vpop.f32.mrb[67].mxu0  ;;  %10597 = vrcp.f32 %v13716_v45 }
 0x330   : > { %v10580_v34 = vpop.eup %10579  ;;  %v13758_v29 = vpop.permute.xlu0 %4951  ;;  %10599 = vrcp.f32 %v13692_v54  ;;  %v4717_v54 = vmul.f32 %v13447_v19, %v13447_v19 }
 0x331   : > { %v13735_v25 = vadd.f32 %v4747_v43, %v4699_v37  ;;  %v13737_v11 = vadd.f32 %v4749_v4, %v4701_v39  ;;  %5185 = vrot.lane.b32.xlu1 %v13675_v49, %s10695_s10  ;;  %5179 = vrot.lane.b32.xlu0 %v13633_v50, %s10695_s10  ;;  %v4702_v37 = vmul.f32 %v13353_v59, %v13353_v59  ;;  %v10582_v32 = vpop.eup %10581 }
 0x332   : > { %v13746_v58 = vpop.f32.mrb[64].mxu1  ;;  %v13748_v10 = vpop.f32.mrb[68].mxu0  ;;  %18691 = vst [vmem:[#allocation8_spill] sm:$0xff] %v13758_v29  ;;  %v4704_v49 = vmul.f32 %v13336_v27, %v13336_v27 }
 0x333   : > { %18689 = vst [vmem:[#allocation26_spill] sm:$0xff] %v13746_v58  ;;  %18690 = vst [vmem:[#allocation70_spill] sm:$0xff] %v13748_v10  ;;  %v4748_v39 = vmul.f32 %v13746_v58, %v13746_v58  ;;  %v4750_v43 = vmul.f32 %v13748_v10, %v13748_v10  ;;  %v9978_v4 = vpop.f32.mrb[65].mxu1  ;;  %v9992_v42 = vpop.f32.mrb[69].mxu0  ;;  %10601 = vrcp.f32 %v13735_v25 }
 0x334   : > { %v4703_v42 = vmul.f32 %v13360_v6, %v13360_v6  ;;  %v13787_v27 = vpop.permute.xlu1 %4957  ;;  %v13789_v6 = vpop.permute.xlu0 %4959  ;;  %10603 = vrcp.f32 %v13714_v31  ;;  %v4722_v31 = vmul.f32 %v13474_v12, %v13474_v12 }
 0x335   : > { %v13760_v62 = vadd.f32 %v4748_v39, %v4700_v56  ;;  %v13762_v50 = vadd.f32 %v4750_v43, %v4702_v37  ;;  %5461 = vrot.lane.b32.xlu1 %v10582_v32, %s10695_s10  ;;  %5455 = vrot.lane.b32.xlu0 %v10580_v34, %s10695_s10  ;;  %18694 = vst [vmem:[#allocation97_spill] sm:$0xff] %v13787_v27  ;;  %18695 = vst [vmem:[#allocation27_spill] sm:$0xff] %v13789_v6  ;;  %v10584_v15 = vpop.eup %10583 }
 0x336   : > { %v13766_v48 = vpop.f32.mrb[70].mxu0  ;;  %v13768_v59 = vpop.f32.mrb[66].mxu1 }
 0x337   : > { %18692 = vst [vmem:[#allocation47_spill] sm:$0xff] %v13766_v48  ;;  %18693 = vst [vmem:[#allocation100_spill] sm:$0xff] %v13768_v59  ;;  %v4751_v56 = vmul.f32 %v13766_v48, %v13766_v48  ;;  %v4752_v37 = vmul.f32 %v13768_v59, %v13768_v59  ;;  %v10006_v39 = vpop.f32.mrb[67].mxu1  ;;  %v9995_v43 = vpop.f32.mrb[71].mxu0  ;;  %10605 = vrcp.f32 %v13760_v62 }
 0x338   : > { %v10586_v20 = vpop.eup %10585  ;;  %10607 = vrcp.f32 %v13737_v11  ;;  %v4724_v11 = vmul.f32 %v13508_v33, %v13508_v33 }
 0x339   : > { %v13779_v34 = vadd.f32 %v4751_v56, %v4703_v42  ;;  %v13781_v4 = vadd.f32 %v4752_v37, %v4704_v49  ;;  %5193 = vrot.lane.b32.xlu1 %v13702_v52, %s10695_s10  ;;  %5187 = vrot.lane.b32.xlu0 %v13659_v2, %s10695_s10  ;;  %v4705_v49 = vmul.f32 %v13350_v55, %v13350_v55  ;;  %v10588_v61 = vpop.eup %10587  ;;  %v10696_v52 = vmov 2  }
 0x33a   : > { %v13792_v32 = vpop.f32.mrb[68].mxu1  ;;  %v13794_v39 = vpop.f32.mrb[72].mxu0  ;;  %v4707_v42 = vmul.f32 %v13365_v0, %v13365_v0  ;;  %v4706_v2 = vmul.f32 %v13374_v35, %v13374_v35  ;;  %10374 = vset.pattern.permute.xlu1 %v10696_v52  ;;  %10373 = vset.pattern.permute.xlu0 %v10696_v52 }
 0x33b   : > { %18696 = vst [vmem:[#allocation85_spill] sm:$0xff] %v13792_v32  ;;  %18697 = vst [vmem:[#allocation101_spill] sm:$0xff] %v13794_v39  ;;  %v4753_v56 = vmul.f32 %v13792_v32, %v13792_v32  ;;  %v4755_v37 = vmul.f32 %v13794_v39, %v13794_v39  ;;  %v10009_v43 = vpop.f32.mrb[69].mxu1  ;;  %v10023_v6 = vpop.f32.mrb[73].mxu0  ;;  %10609 = vrcp.f32 %v13781_v4 }
 0x33c   : > { %v4708_v43 = vmul.f32 %v13395_v40, %v13395_v40  ;;  %v13831_v35 = vpop.permute.xlu1 %4965  ;;  %v13833_v40 = vpop.permute.xlu0 %4967  ;;  %10611 = vrcp.f32 %v13762_v50 }
 0x33d   : > { %v13804_v29 = vadd.f32 %v4753_v56, %v4705_v49  ;;  %v13806_v27 = vadd.f32 %v4755_v37, %v4707_v42  ;;  %5469 = vrot.lane.b32.xlu1 %v10586_v20, %s10695_s10  ;;  %5463 = vrot.lane.b32.xlu0 %v10584_v15, %s10695_s10  ;;  %18700 = vst [vmem:[#allocation76_spill] sm:$0xff] %v13831_v35  ;;  %18701 = vst [vmem:[#allocation102_spill] sm:$0xff] %v13833_v40  ;;  %v10590_v28 = vpop.eup %10589 }
 0x33e   : > { %v13810_v55 = vpop.f32.mrb[70].mxu1  ;;  %v13812_v0 = vpop.f32.mrb[74].mxu0 }
 0x33f   : > { %18698 = vst [vmem:[#allocation29_spill] sm:$0xff] %v13810_v55  ;;  %18699 = vst [vmem:[#allocation89_spill] sm:$0xff] %v13812_v0  ;;  %v4754_v6 = vmul.f32 %v13810_v55, %v13810_v55  ;;  %v4756_v49 = vmul.f32 %v13812_v0, %v13812_v0  ;;  %v10012_v42 = vpop.f32.mrb[71].mxu1  ;;  %v10026_v56 = vpop.f32.mrb[75].mxu0  ;;  %10613 = vrcp.f32 %v13804_v29 }
 0x340   : > { %v10592_v18 = vpop.eup %10591  ;;  %10615 = vrcp.f32 %v13779_v34 }
 0x341   : > { %v13823_v15 = vadd.f32 %v4754_v6, %v4706_v2  ;;  %v13825_v37 = vadd.f32 %v4756_v49, %v4708_v43  ;;  %5195 = vrot.lane.b32.xlu0 %v13720_v36, %s10695_s10  ;;  %5189 = vrot.lane.b32.xlu1 %v13677_v30, %s10695_s10  ;;  %v4710_v2 = vmul.f32 %v13383_v13, %v13383_v13  ;;  %v10594_v45 = vpop.eup %10593 }
 0x342   : > { %v13836_v20 = vpop.f32.mrb[76].mxu0  ;;  %v13838_v42 = vpop.f32.mrb[72].mxu1  ;;  %v4709_v43 = vmul.f32 %v13409_v5, %v13409_v5  ;;  %v4711_v30 = vmul.f32 %v13392_v53, %v13392_v53 }
 0x343   : > { %18702 = vst [vmem:[#allocation103_spill] sm:$0xff] %v13836_v20  ;;  %18703 = vst [vmem:[#allocation104_spill] sm:$0xff] %v13838_v42  ;;  %v4757_v6 = vmul.f32 %v13836_v20, %v13836_v20  ;;  %v4758_v49 = vmul.f32 %v13838_v42, %v13838_v42  ;;  %v10040_v56 = vpop.f32.mrb[73].mxu1  ;;  %v10029_v40 = vpop.f32.mrb[77].mxu0  ;;  %10617 = vrcp.f32 %v13823_v15 }
 0x344   : > { %v4713_v56 = vmul.f32 %v13427_v38, %v13427_v38  ;;  %v13875_v38 = vpop.permute.xlu1 %4961  ;;  %v13877_v53 = vpop.permute.xlu0 %4963  ;;  %10619 = vrcp.f32 %v13806_v27 }
 0x345   : > { %v13848_v35 = vadd.f32 %v4757_v6, %v4709_v43  ;;  %v13850_v36 = vadd.f32 %v4758_v49, %v4710_v2  ;;  %5471 = vrot.lane.b32.xlu0 %v10590_v28, %s10695_s10  ;;  %5465 = vrot.lane.b32.xlu1 %v10588_v61, %s10695_s10  ;;  %18706 = vst [vmem:[#allocation107_spill] sm:$0xff] %v13875_v38  ;;  %18707 = vst [vmem:[#allocation108_spill] sm:$0xff] %v13877_v53 }
 0x346   : > { %v13854_v13 = vpop.f32.mrb[74].mxu1  ;;  %v13856_v5 = vpop.f32.mrb[78].mxu0 }
 0x347   : > { %18704 = vst [vmem:[#allocation105_spill] sm:$0xff] %v13854_v13  ;;  %18705 = vst [vmem:[#allocation106_spill] sm:$0xff] %v13856_v5  ;;  %v4759_v40 = vmul.f32 %v13854_v13, %v13854_v13  ;;  %v4761_v2 = vmul.f32 %v13856_v5, %v13856_v5  ;;  %v10043_v43 = vpop.f32.mrb[75].mxu1  ;;  %v10057_v6 = vpop.f32.mrb[79].mxu0  ;;  %10621 = vrcp.f32 %v13850_v36 }
 0x348   : > { %10623 = vrcp.f32 %v13825_v37  ;;  %v5067_v37 = vmul.f32 %v13483_v1, %v13113_v9 }
 0x349   : > { %v13867_v61 = vadd.f32 %v4759_v40, %v4711_v30  ;;  %v13869_v49 = vadd.f32 %v4761_v2, %v4713_v56  ;;  %5197 = vrot.lane.b32.xlu1 %v13746_v58, %s10695_s10  ;;  %5191 = vrot.lane.b32.xlu0 %v13700_v21, %s10695_s10  ;;  %v4712_v30 = vmul.f32 %v13406_v3, %v13406_v3 }
 0x34a   : > { %v13880_v28 = vpop.f32.mrb[76].mxu1  ;;  %v13882_v43 = vpop.f32.mrb[80].mxu0  ;;  %v4714_v56 = vmul.f32 %v13434_v46, %v13434_v46  ;;  %v4716_v58 = vmul.f32 %v13424_v63, %v13424_v63 }
 0x34b   : > { %18708 = vst [vmem:[#allocation109_spill] sm:$0xff] %v13880_v28  ;;  %18709 = vst [vmem:[#allocation110_spill] sm:$0xff] %v13882_v43  ;;  %v4760_v40 = vmul.f32 %v13880_v28, %v13880_v28  ;;  %v4762_v2 = vmul.f32 %v13882_v43, %v13882_v43  ;;  %v10046_v6 = vpop.f32.mrb[77].mxu1  ;;  %v10060_v53 = vpop.f32.mrb[81].mxu0  ;;  %10625 = vrcp.f32 %v13867_v61 }
 0x34c   : > { %v4715_v6 = vmul.f32 %v13461_v23, %v13461_v23  ;;  %v13921_v63 = vpop.permute.xlu0 %4971 }
 0x34d   : > { %v13892_v38 = vadd.f32 %v4760_v40, %v4712_v30  ;;  %v13894_v21 = vadd.f32 %v4762_v2, %v4714_v56  ;;  %5473 = vrot.lane.b32.xlu1 %v10594_v45, %s10695_s10  ;;  %5467 = vrot.lane.b32.xlu0 %v10592_v18, %s10695_s10  ;;  %v13910_v2 = vpop.permute.xlu1 %4969  ;;  %18713 = vst [vmem:[#allocation114_spill] sm:$0xff] %v13921_v63 }
 0x34e   : > { %v13898_v3 = vpop.f32.mrb[82].mxu0  ;;  %v13900_v46 = vpop.f32.mrb[78].mxu1  ;;  %18712 = vst [vmem:[#allocation113_spill] sm:$0xff] %v13910_v2 }
 0x34f   : > { %18710 = vst [vmem:[#allocation111_spill] sm:$0xff] %v13898_v3  ;;  %18711 = vst [vmem:[#allocation112_spill] sm:$0xff] %v13900_v46  ;;  %v4763_v53 = vmul.f32 %v13898_v3, %v13898_v3  ;;  %v4764_v30 = vmul.f32 %v13900_v46, %v13900_v46  ;;  %v10074_v56 = vpop.f32.mrb[79].mxu1  ;;  %v10063_v40 = vpop.f32.mrb[83].mxu0 }
 0x350   : > { %v10596_v40 = vpop.eup %10595  ;;  %10627 = vrcp.f32 %v13848_v35  ;;  %v18755_v35 = vld [vmem:[#allocation79_spill] sm:$0xff] }
 0x351   : > { %v13913_v18 = vadd.f32 %v4763_v53, %v4715_v6  ;;  %v13915_v45 = vadd.f32 %v4764_v30, %v4716_v58  ;;  %5205 = vrot.lane.b32.xlu1 %v13768_v59, %s10695_s10  ;;  %5199 = vrot.lane.b32.xlu0 %v13722_v41, %s10695_s10  ;;  %v4719_v58 = vmul.f32 %v13477_v17, %v13477_v17  ;;  %v10598_v25 = vpop.eup %10597  ;;  %v13936_v2 = vpop.permute.xlu1 %4977  ;;  %10629 = vrcp.f32 %v13892_v38 }
 0x352   : > { %v13924_v23 = vpop.f32.mrb[80].mxu1  ;;  %v13926_v56 = vpop.f32.mrb[84].mxu0  ;;  %18716 = vst [vmem:[#allocation117_spill] sm:$0xff] %v13936_v2 }
 0x353   : > { %18714 = vst [vmem:[#allocation115_spill] sm:$0xff] %v13924_v23  ;;  %18715 = vst [vmem:[#allocation116_spill] sm:$0xff] %v13926_v56  ;;  %v4765_v6 = vmul.f32 %v13924_v23, %v13924_v23  ;;  %v4767_v53 = vmul.f32 %v13926_v56, %v13926_v56  ;;  %v10077_v30 = vpop.f32.mrb[81].mxu1  ;;  %v10091_v63 = vpop.f32.mrb[85].mxu0 }
 0x354   : > { %v4718_v63 = vmul.f32 %v13458_v22, %v13458_v22 }
 0x355   : > { %v13938_v41 = vadd.f32 %v4765_v6, %v4717_v54  ;;  %v13940_v59 = vadd.f32 %v4767_v53, %v4719_v58  ;;  %5481 = vrot.lane.b32.xlu1 %v10598_v25, %s10695_s10  ;;  %5475 = vrot.lane.b32.xlu0 %v10596_v40, %s10695_s10  ;;  %v4720_v54 = vmul.f32 %v13493_v44, %v13493_v44  ;;  %v13956_v30 = vpop.permute.xlu0 %4979  ;;  %v13958_v25 = vpop.permute.xlu1 %4973 }
 0x356   : > { %v13944_v19 = vpop.f32.mrb[82].mxu1  ;;  %v13946_v17 = vpop.f32.mrb[86].mxu0  ;;  %18719 = vst [vmem:[#allocation120_spill] sm:$0xff] %v13956_v30  ;;  %18720 = vst [vmem:[#allocation121_spill] sm:$0xff] %v13958_v25 }
 0x357   : > { %18717 = vst [vmem:[#allocation118_spill] sm:$0xff] %v13944_v19  ;;  %18718 = vst [vmem:[#allocation119_spill] sm:$0xff] %v13946_v17  ;;  %v4766_v58 = vmul.f32 %v13944_v19, %v13944_v19  ;;  %v4768_v6 = vmul.f32 %v13946_v17, %v13946_v17  ;;  %v10080_v40 = vpop.f32.mrb[83].mxu1  ;;  %v10094_v53 = vpop.f32.mrb[87].mxu0 }
 0x358   : > { %v10600_v53 = vpop.eup %10599  ;;  %10631 = vrcp.f32 %v13869_v49  ;;  %v18767_v49 = vld [vmem:[#allocation81_spill] sm:$0xff] }
 0x359   : > { %v13961_v52 = vadd.f32 %v4766_v58, %v4718_v63  ;;  %v13963_v22 = vadd.f32 %v4768_v6, %v4720_v54  ;;  %5207 = vrot.lane.b32.xlu0 %v13792_v32, %s10695_s10  ;;  %5201 = vrot.lane.b32.xlu1 %v13748_v10, %s10695_s10  ;;  %v4721_v63 = vmul.f32 %v13511_v24, %v13511_v24  ;;  %v10602_v62 = vpop.eup %10601  ;;  %v13984_v2 = vpop.permute.xlu0 %4975  ;;  %10633 = vrcp.f32 %v13915_v45  ;;  %v18771_v45 = vld [vmem:[#allocation67_spill] sm:$0xff] }
 0x35a   : > { %v13970_v44 = vpop.f32.mrb[88].mxu0  ;;  %v13972_v40 = vpop.f32.mrb[84].mxu1  ;;  %18724 = vst [vmem:[#allocation125_spill] sm:$0xff] %v13984_v2 }
 0x35b   : > { %18721 = vst [vmem:[#allocation122_spill] sm:$0xff] %v13970_v44  ;;  %18722 = vst [vmem:[#allocation123_spill] sm:$0xff] %v13972_v40  ;;  %v4769_v54 = vmul.f32 %v13970_v44, %v13970_v44  ;;  %v4770_v58 = vmul.f32 %v13972_v40, %v13972_v40  ;;  %v10108_v6 = vpop.f32.mrb[85].mxu1  ;;  %v10097_v25 = vpop.f32.mrb[89].mxu0 }
 0x35c   : > { %v13982_v30 = vpop.permute.xlu1 %4981  ;;  %v4723_v25 = vmul.f32 %v13490_v8, %v13490_v8  ;;  %v4725_v6 = vmul.f32 %v13525_v7, %v13525_v7 }
 0x35d   : > { %18723 = vst [vmem:[#allocation124_spill] sm:$0xff] %v13982_v30  ;;  %v13986_v32 = vadd.f32 %v4769_v54, %v4721_v63  ;;  %v13988_v10 = vadd.f32 %v4770_v58, %v4722_v31  ;;  %5483 = vrot.lane.b32.xlu0 %v10602_v62, %s10695_s10  ;;  %5477 = vrot.lane.b32.xlu1 %v10600_v53, %s10695_s10  ;;  %v14015_v8 = vpop.permute.xlu0 %4983 }
 0x35e   : > { %v13992_v24 = vpop.f32.mrb[86].mxu1  ;;  %v13994_v12 = vpop.f32.mrb[90].mxu0  ;;  %18728 = vst [vmem:[#allocation129_spill] sm:$0xff] %v14015_v8 }
 0x35f   : > { %18725 = vst [vmem:[#allocation126_spill] sm:$0xff] %v13992_v24  ;;  %18726 = vst [vmem:[#allocation127_spill] sm:$0xff] %v13994_v12  ;;  %v4771_v63 = vmul.f32 %v13992_v24, %v13992_v24  ;;  %v4773_v31 = vmul.f32 %v13994_v12, %v13994_v12  ;;  %v10111_v54 = vpop.f32.mrb[87].mxu1  ;;  %v10125_v58 = vpop.f32.mrb[91].mxu0 }
 0x360   : > { %v14004_v62 = vpop.permute.xlu1 %4989  ;;  %v10604_v58 = vpop.eup %10603  ;;  %10635 = vrcp.f32 %v13894_v21 }
 0x361   : > { %18727 = vst [vmem:[#allocation128_spill] sm:$0xff] %v14004_v62  ;;  %v14007_v53 = vadd.f32 %v4771_v63, %v4723_v25  ;;  %v14009_v2 = vadd.f32 %v4773_v31, %v4725_v6  ;;  %5209 = vrot.lane.b32.xlu1 %v13810_v55, %s10695_s10  ;;  %5203 = vrot.lane.b32.xlu0 %v13766_v48, %s10695_s10  ;;  %v10606_v4 = vpop.eup %10605  ;;  %10637 = vrcp.f32 %v13938_v41  ;;  %v18784_v41 = vld [vmem:[#allocation9_spill] sm:$0xff] }
 0x362   : > { %v14018_v7 = vpop.f32.mrb[88].mxu1  ;;  %v14020_v54 = vpop.f32.mrb[92].mxu0  ;;  %v4726_v25 = vmul.f32 %v13547_v14, %v13547_v14  ;;  %v4728_v55 = vmul.f32 %v13522_v26, %v13522_v26 }
 0x363   : > { %18729 = vst [vmem:[#allocation130_spill] sm:$0xff] %v14018_v7  ;;  %18730 = vst [vmem:[#allocation131_spill] sm:$0xff] %v14020_v54  ;;  %v4772_v6 = vmul.f32 %v14018_v7, %v14018_v7  ;;  %v4774_v63 = vmul.f32 %v14020_v54, %v14020_v54  ;;  %v10114_v31 = vpop.f32.mrb[89].mxu1  ;;  %v10128_v8 = vpop.f32.mrb[93].mxu0 }
 0x364   : > { %v14036_v33 = vpop.permute.xlu1 %4985  ;;  %v4727_v8 = vmul.f32 %v13565_v16, %v13565_v16  ;;  %v10608_v16 = vpop.eup %10607  ;;  %10639 = vrcp.f32 %v13913_v18 }
 0x365   : > { %v14030_v62 = vadd.f32 %v4772_v6, %v4724_v11  ;;  %v14032_v30 = vadd.f32 %v4774_v63, %v4726_v25  ;;  %5485 = vrot.lane.b32.xlu1 %v10606_v4, %s10695_s10  ;;  %5479 = vrot.lane.b32.xlu0 %v10604_v58, %s10695_s10  ;;  %18731 = vst [vmem:[#allocation132_spill] sm:$0xff] %v14036_v33 }
 0x366   : > { %v14038_v14 = vpop.f32.mrb[94].mxu0  ;;  %v14040_v48 = vpop.f32.mrb[90].mxu1 }
 0x367   : > { %18732 = vst [vmem:[#allocation133_spill] sm:$0xff] %v14038_v14  ;;  %18733 = vst [vmem:[#allocation134_spill] sm:$0xff] %v14040_v48  ;;  %v4775_v11 = vmul.f32 %v14038_v14, %v14038_v14  ;;  %v4776_v25 = vmul.f32 %v14040_v48, %v14040_v48  ;;  %v10142_v6 = vpop.f32.mrb[91].mxu1  ;;  %v14050_v58 = vpop.permute.xlu0 %4991 }
 0x368   : > { %18734 = vst [vmem:[#allocation135_spill] sm:$0xff] %v14050_v58  ;;  %v10131_v63 = vpop.f32.mrb[95].mxu0  ;;  %v4729_v6 = vmul.f32 %v13544_v47, %v13544_v47  ;;  %v4730_v47 = vmul.f32 %v13562_v60, %v13562_v60 }
 0x369   : > { %v14053_v31 = vadd.f32 %v4775_v11, %v4727_v8  ;;  %v14055_v4 = vadd.f32 %v4776_v25, %v4728_v55  ;;  %5217 = vrot.lane.b32.xlu1 %v13838_v42, %s10695_s10  ;;  %5211 = vrot.lane.b32.xlu0 %v13794_v39, %s10695_s10  ;;  %v10610_v11 = vpop.eup %10609  ;;  %10641 = vrcp.f32 %v13961_v52  ;;  %v18794_v52 = vld [vmem:[#allocation63_spill] sm:$0xff] }
 0x36a   : > { %v14062_v26 = vpop.f32.mrb[92].mxu1  ;;  %v10612_v60 = vpop.eup %10611  ;;  %10643 = vrcp.f32 %v13940_v59 }
 0x36b   : > { %18735 = vst [vmem:[#allocation136_spill] sm:$0xff] %v14062_v26  ;;  %v4777_v50 = vmul.f32 %v14062_v26, %v14062_v26  ;;  %v10145_v8 = vpop.f32.mrb[93].mxu1  ;;  %v14068_v55 = vpop.permute.xlu1 %4993 }
 0x36c   : > { %18736 = vst [vmem:[#allocation137_spill] sm:$0xff] %v14068_v55  ;;  %v14070_v25 = vpop.permute.xlu0 %4987 }
 0x36d   : > { %18737 = vst [vmem:[#allocation138_spill] sm:$0xff] %v14070_v25  ;;  %v14072_v63 = vadd.f32 %v4777_v50, %v4729_v6  ;;  %5493 = vrot.lane.b32.xlu1 %v10610_v11, %s10695_s10  ;;  %5487 = vrot.lane.b32.xlu0 %v10608_v16, %s10695_s10  ;;  %v10614_v50 = vpop.eup %10613  ;;  %v18757_v25 = vld [vmem:[#allocation90_spill] sm:$0xff]  ;;  %10645 = vrcp.f32 %v13988_v10  ;;  %v18804_v10 = vld [vmem:[#allocation91_spill] sm:$0xff] }
 0x36e   : > { %v14076_v29 = vpop.f32.mrb[94].mxu1  ;;  %v10616_v15 = vpop.eup %10615  ;;  %10647 = vrcp.f32 %v13963_v22 }
 0x36f   : > { %18738 = vst [vmem:[#allocation139_spill] sm:$0xff] %v14076_v29  ;;  %v4778_v58 = vmul.f32 %v14076_v29, %v14076_v29  ;;  %v10148_v8 = vpop.f32.mrb[95].mxu1  ;;  %v14082_v33 = vpop.permute.xlu1 %5001 }
 0x370   : > { %18739 = vst [vmem:[#allocation140_spill] sm:$0xff] %v14082_v33  ;;  %v14084_v55 = vpop.permute.xlu0 %4995  ;;  %v10618_v8 = vpop.eup %10617  ;;  %10649 = vrcp.f32 %v14007_v53  ;;  %v18814_v53 = vld [vmem:[#allocation50_spill] sm:$0xff] }
 0x371   : > { %18740 = vst [vmem:[#allocation141_spill] sm:$0xff] %v14084_v55  ;;  %v14087_v6 = vadd.f32 %v4778_v58, %v4730_v47  ;;  %5219 = vrot.lane.b32.xlu0 %v13854_v13, %s10695_s10  ;;  %5213 = vrot.lane.b32.xlu1 %v13812_v0, %s10695_s10  ;;  %v10620_v36 = vpop.eup %10619  ;;  %v18769_v13 = vld [vmem:[#allocation87_spill] sm:$0xff]  ;;  %10651 = vrcp.f32 %v13986_v32  ;;  %v18821_v32 = vld [vmem:[#allocation8_spill] sm:$0xff] }
 0x373   : > { %v14094_v16 = vpop.permute.xlu1 %4997 }
 0x374   : > { %18741 = vst [vmem:[#allocation142_spill] sm:$0xff] %v14094_v16  ;;  %v14096_v11 = vpop.permute.xlu0 %5003 }
 0x375   : > { %18742 = vst [vmem:[#allocation143_spill] sm:$0xff] %v14096_v11  ;;  %5495 = vrot.lane.b32.xlu0 %v10614_v50, %s10695_s10  ;;  %5489 = vrot.lane.b32.xlu1 %v10612_v60, %s10695_s10 }
 0x377   : > { %v14100_v34 = vpop.permute.xlu1 %5005 }
 0x378   : > { %18743 = vst [vmem:[#allocation144_spill] sm:$0xff] %v14100_v34  ;;  %v14102_v58 = vpop.permute.xlu0 %4999  ;;  %v18753_v34 = vld [vmem:[#allocation45_spill] sm:$0xff] }
 0x379   : > { %18744 = vst [vmem:[#allocation145_spill] sm:$0xff] %v14102_v58  ;;  %5221 = vrot.lane.b32.xlu1 %v13880_v28, %s10695_s10  ;;  %5215 = vrot.lane.b32.xlu0 %v13836_v20, %s10695_s10  ;;  %v18766_v28 = vld [vmem:[#allocation61_spill] sm:$0xff] }
 0x37b   : > { %v14110_v47 = vpop.permute.xlu1 %5013 }
 0x37c   : > { %18745 = vst [vmem:[#allocation146_spill] sm:$0xff] %v14110_v47  ;;  %v14112_v50 = vpop.permute.xlu0 %5007 }
 0x37d   : > { %18746 = vst [vmem:[#allocation147_spill] sm:$0xff] %v14112_v50  ;;  %5497 = vrot.lane.b32.xlu1 %v10618_v8, %s10695_s10  ;;  %5491 = vrot.lane.b32.xlu0 %v10616_v15, %s10695_s10  ;;  %v10622_v8 = vpop.eup %10621  ;;  %10653 = vrcp.f32 %v14030_v62  ;;  %v18823_v62 = vld [vmem:[#allocation92_spill] sm:$0xff] }
 0x37f   : > { %v14116_v60 = vpop.permute.xlu1 %5009 }
 0x380   : > { %18747 = vst [vmem:[#allocation148_spill] sm:$0xff] %v14116_v60  ;;  %v14118_v27 = vpop.permute.xlu0 %5015  ;;  %v18752_v60 = vld [vmem:[#allocation20_spill] sm:$0xff] }
 0x381   : > { %18748 = vst [vmem:[#allocation149_spill] sm:$0xff] %v14118_v27  ;;  %5229 = vrot.lane.b32.xlu1 %v13900_v46, %s10695_s10  ;;  %5223 = vrot.lane.b32.xlu0 %v13856_v5, %s10695_s10  ;;  %v18751_v27 = vld [vmem:[#allocation35_spill] sm:$0xff]  ;;  %v14138_v61 = vmul.f32 %v18752_v60, %v18753_v34 }
 0x382   : > { %v5070_v58 = vmul.f32 %v18752_v60, %v18751_v27 }
 0x383   : > { %v14126_v50 = vpop.permute.xlu1 %5017 }
 0x384   : > { %18749 = vst [vmem:[#allocation150_spill] sm:$0xff] %v14126_v50  ;;  %v14128_v47 = vpop.permute.xlu0 %5011 }
 0x385   : > { %18750 = vst [vmem:[#allocation151_spill] sm:$0xff] %v14128_v47  ;;  %5505 = vrot.lane.b32.xlu1 %v10622_v8, %s10695_s10  ;;  %5499 = vrot.lane.b32.xlu0 %v10620_v36, %s10695_s10  ;;  %v18754_v8 = vld [vmem:[#allocation39_spill] sm:$0xff] }
 0x386   : > { %v14146_v36 = vmul.f32 %v13483_v1, %v18754_v8 }
 0x387   : > { %v5170_v15 = vpop.permute.xlu1 %5169 }
 0x388   : > { %v5310_v50 = vmul.f32 %v5170_v15, %v18753_v34  ;;  %v14142_v11 = vmul.f32 %v5170_v15, %v18751_v27  ;;  %v5164_v47 = vpop.permute.xlu0 %5163  ;;  %v10624_v15 = vpop.eup %10623  ;;  %v18756_v34 = vld [vmem:[#allocation25_spill] sm:$0xff]  ;;  %10655 = vrcp.f32 %v14009_v2 }
 0x389   : > { %v5307_v16 = vmul.f32 %v5164_v47, %v18754_v8  ;;  %v14151_v55 = vmul.f32 %v5164_v47, %v13113_v9  ;;  %5231 = vrot.lane.b32.xlu0 %v13924_v23, %s10695_s10  ;;  %5225 = vrot.lane.b32.xlu1 %v13882_v43, %s10695_s10  ;;  %v5071_v27 = vmul.f32 %v18756_v34, %v18755_v35  ;;  %v10626_v33 = vpop.eup %10625  ;;  %v18758_v23 = vld [vmem:[#allocation57_spill] sm:$0xff]  ;;  %10657 = vrcp.f32 %v14055_v4 }
 0x38a   : > { %v14158_v60 = vadd.f32 %v5310_v50, %v5070_v58  ;;  %v5068_v43 = vmul.f32 %v18758_v23, %v18757_v25  ;;  %v14172_v38 = vmul.f32 %v18758_v23, %v13555_v51 }
 0x38b   : > { %v5166_v8 = vpop.permute.xlu1 %5165  ;;  %v14164_v47 = vadd.f32 %v5307_v16, %v5067_v37  ;;  %v14180_v16 = vmul.f32 %v18756_v34, %v13593_v57 }
 0x38c   : > { %v5172_v58 = vpop.permute.xlu0 %5171  ;;  %v5308_v50 = vmul.f32 %v5166_v8, %v13555_v51  ;;  %v14176_v1 = vmul.f32 %v5166_v8, %v18757_v25  ;;  %v18759_v8 = vld [vmem:[#allocation23_spill] sm:$0xff]  ;;  %v18760_v25 = vld [vmem:[#allocation68_spill] sm:$0xff] }
 0x38d   : > { %v5311_v37 = vmul.f32 %v5172_v58, %v13593_v57  ;;  %v14184_v9 = vmul.f32 %v5172_v58, %v18755_v35  ;;  %5507 = vrot.lane.b32.xlu0 %v10626_v33, %s10695_s10  ;;  %5501 = vrot.lane.b32.xlu1 %v10624_v15, %s10695_s10  ;;  %v5069_v5 = vmul.f32 %v18760_v25, %v18759_v8  ;;  %v18761_v58 = vld [vmem:[#allocation42_spill] sm:$0xff]  ;;  %v18762_v35 = vld [vmem:[#allocation19_spill] sm:$0xff]  ;;  %v18763_v33 = vld [vmem:[#allocation69_spill] sm:$0xff] }
 0x38e   : > { %v14188_v23 = vadd.f32 %v5308_v50, %v5068_v43  ;;  %v5072_v20 = vmul.f32 %v18762_v35, %v18761_v58  ;;  %v14202_v15 = vmul.f32 %v18762_v35, %v18763_v33  ;;  %v10628_v35 = vpop.eup %10627  ;;  %10659 = vrcp.f32 %v14032_v30  ;;  %v18831_v30 = vld [vmem:[#allocation27_spill] sm:$0xff] }
 0x38f   : > { %v5174_v46 = vpop.permute.xlu1 %5173  ;;  %v14194_v34 = vadd.f32 %v5311_v37, %v5071_v27  ;;  %v14210_v27 = vmul.f32 %v18760_v25, %v18766_v28 }
 0x390   : > { %18764 = vst [vmem:[#allocation20_spill] sm:$0xff] %v14202_v15  ;;  %v5312_v43 = vmul.f32 %v5174_v46, %v18763_v33  ;;  %v14206_v50 = vmul.f32 %v5174_v46, %v18761_v58  ;;  %v5168_v51 = vpop.permute.xlu0 %5167  ;;  %v18768_v33 = vld [vmem:[#allocation22_spill] sm:$0xff] }
 0x391   : > { %v5309_v37 = vmul.f32 %v5168_v51, %v18766_v28  ;;  %v14215_v57 = vmul.f32 %v5168_v51, %v18759_v8  ;;  %5233 = vrot.lane.b32.xlu1 %v13944_v19, %s10695_s10  ;;  %5227 = vrot.lane.b32.xlu0 %v13898_v3, %s10695_s10  ;;  %v5073_v58 = vmul.f32 %v18768_v33, %v18767_v49  ;;  %v10630_v19 = vpop.eup %10629  ;;  %v18770_v3 = vld [vmem:[#allocation88_spill] sm:$0xff]  ;;  %v18774_v15 = vld [vmem:[#allocation66_spill] sm:$0xff]  ;;  %10661 = vrcp.f32 %v14072_v63 }
 0x392   : > { %18765 = vst [vmem:[#allocation25_spill] sm:$0xff] %v14206_v50  ;;  %v14222_v46 = vadd.f32 %v5312_v43, %v5072_v20  ;;  %v5076_v0 = vmul.f32 %v18770_v3, %v18769_v13  ;;  %v14236_v20 = vmul.f32 %v18770_v3, %v18771_v45  ;;  %v18833_v63 = vld [vmem:[#allocation24_spill] sm:$0xff] }
 0x393   : > { %v5182_v28 = vpop.permute.xlu1 %5181  ;;  %v14228_v51 = vadd.f32 %v5309_v37, %v5069_v5  ;;  %v14244_v5 = vmul.f32 %v18768_v33, %v18774_v15  ;;  %v18780_v33 = vld [vmem:[#allocation74_spill] sm:$0xff] }
 0x394   : > { %18772 = vst [vmem:[#allocation57_spill] sm:$0xff] %v14236_v20  ;;  %v5316_v43 = vmul.f32 %v5182_v28, %v18771_v45  ;;  %v14240_v25 = vmul.f32 %v5182_v28, %v18769_v13  ;;  %v5176_v50 = vpop.permute.xlu0 %5175 }
 0x395   : > { %18775 = vst [vmem:[#allocation19_spill] sm:$0xff] %v14244_v5  ;;  %v5313_v37 = vmul.f32 %v5176_v50, %v18774_v15  ;;  %v14248_v8 = vmul.f32 %v5176_v50, %v18767_v49  ;;  %5509 = vrot.lane.b32.xlu1 %v10630_v19, %s10695_s10  ;;  %5503 = vrot.lane.b32.xlu0 %v10628_v35, %s10695_s10  ;;  %v18777_v19 = vld [vmem:[#allocation31_spill] sm:$0xff]  ;;  %v18778_v50 = vld [vmem:[#allocation10_spill] sm:$0xff]  ;;  %v18781_v49 = vld [vmem:[#allocation21_spill] sm:$0xff] }
 0x396   : > { %18773 = vst [vmem:[#allocation68_spill] sm:$0xff] %v14240_v25  ;;  %v14252_v3 = vadd.f32 %v5316_v43, %v5076_v0  ;;  %v10632_v0 = vpop.eup %10631  ;;  %v14276_v21 = vmul.f32 %v18780_v33, %v18781_v49  ;;  %v14284_v5 = vmul.f32 %v18778_v50, %v18784_v41  ;;  %10663 = vrcp.f32 %v14053_v31 }
 0x397   : > { %18776 = vst [vmem:[#allocation22_spill] sm:$0xff] %v14248_v8  ;;  %v14256_v45 = vpop.permute.xlu1 %5457  ;;  %v14258_v13 = vadd.f32 %v5313_v37, %v5073_v58  ;;  %v5077_v58 = vmul.f32 %v18778_v50, %v18777_v19  ;;  %v10634_v43 = vpop.eup %10633  ;;  %v18779_v37 = vld [vmem:[#allocation73_spill] sm:$0xff]  ;;  %10665 = vrcp.f32 %v14087_v6 }
 0x398   : > { %v14262_v15 = vpop.permute.xlu0 %5451  ;;  %v5074_v28 = vmul.f32 %v18780_v33, %v18779_v37  ;;  %18782 = vst [vmem:[#allocation88_spill] sm:$0xff] %v14276_v21  ;;  %18785 = vst [vmem:[#allocation74_spill] sm:$0xff] %v14284_v5 }
 0x399   : > { %5241 = vrot.lane.b32.xlu1 %v13972_v40, %s10695_s10  ;;  %5235 = vrot.lane.b32.xlu0 %v13926_v56, %s10695_s10 }
 0x39b   : > { %v5178_v35 = vpop.permute.xlu1 %5177 }
 0x39c   : > { %v5184_v8 = vpop.permute.xlu0 %5183  ;;  %v5314_v40 = vmul.f32 %v5178_v35, %v18781_v49  ;;  %v14280_v56 = vmul.f32 %v5178_v35, %v18779_v37  ;;  %v18790_v49 = vld [vmem:[#allocation80_spill] sm:$0xff] }
 0x39d   : > { %v5317_v25 = vmul.f32 %v5184_v8, %v18784_v41  ;;  %v14288_v20 = vmul.f32 %v5184_v8, %v18777_v19  ;;  %5517 = vrot.lane.b32.xlu1 %v10634_v43, %s10695_s10  ;;  %5511 = vrot.lane.b32.xlu0 %v10632_v0, %s10695_s10  ;;  %v18787_v8 = vld [vmem:[#allocation86_spill] sm:$0xff]  ;;  %v18789_v43 = vld [vmem:[#allocation15_spill] sm:$0xff] }
 0x39e   : > { %18783 = vst [vmem:[#allocation10_spill] sm:$0xff] %v14280_v56  ;;  %v14292_v33 = vadd.f32 %v5314_v40, %v5074_v28  ;;  %v10636_v40 = vpop.eup %10635  ;;  %v18788_v28 = vld [vmem:[#allocation78_spill] sm:$0xff]  ;;  %v5078_v50 = vmul.f32 %v18790_v49, %v18789_v43  ;;  %v18791_v19 = vld [vmem:[#allocation95_spill] sm:$0xff] }
 0x39f   : > { %18786 = vst [vmem:[#allocation152_spill] sm:$0xff] %v14288_v20  ;;  %v14296_v35 = vpop.permute.xlu1 %5453  ;;  %v14298_v37 = vadd.f32 %v5317_v25, %v5077_v58  ;;  %v5075_v25 = vmul.f32 %v18788_v28, %v18787_v8  ;;  %v10638_v58 = vpop.eup %10637  ;;  %v14316_v18 = vmul.f32 %v18790_v49, %v18791_v19  ;;  %v14324_v21 = vmul.f32 %v18788_v28, %v18794_v52  ;;  %v18800_v28 = vld [vmem:[#allocation94_spill] sm:$0xff] }
 0x3a0   : > { %v14302_v41 = vpop.permute.xlu0 %5459 }
 0x3a1   : > { %5243 = vrot.lane.b32.xlu0 %v13992_v24, %s10695_s10  ;;  %5237 = vrot.lane.b32.xlu1 %v13946_v17, %s10695_s10  ;;  %18792 = vst [vmem:[#allocation78_spill] sm:$0xff] %v14316_v18  ;;  %18795 = vst [vmem:[#allocation153_spill] sm:$0xff] %v14324_v21 }
 0x3a3   : > { %v5186_v0 = vpop.permute.xlu1 %5185 }
 0x3a4   : > { %v5318_v24 = vmul.f32 %v5186_v0, %v18791_v19  ;;  %v14320_v56 = vmul.f32 %v5186_v0, %v18789_v43  ;;  %v5180_v17 = vpop.permute.xlu0 %5179 }
 0x3a5   : > { %v5315_v20 = vmul.f32 %v5180_v17, %v18794_v52  ;;  %v14328_v5 = vmul.f32 %v5180_v17, %v18787_v8  ;;  %5519 = vrot.lane.b32.xlu0 %v10638_v58, %s10695_s10  ;;  %5513 = vrot.lane.b32.xlu1 %v10636_v40, %s10695_s10  ;;  %v10640_v17 = vpop.eup %10639  ;;  %v18799_v58 = vld [vmem:[#allocation33_spill] sm:$0xff]  ;;  %v18801_v8 = vld [vmem:[#allocation82_spill] sm:$0xff] }
 0x3a6   : > { %18793 = vst [vmem:[#allocation80_spill] sm:$0xff] %v14320_v56  ;;  %v14332_v49 = vadd.f32 %v5318_v24, %v5078_v50  ;;  %v18797_v24 = vld [vmem:[#allocation62_spill] sm:$0xff]  ;;  %v18798_v50 = vld [vmem:[#allocation83_spill] sm:$0xff]  ;;  %v5082_v0 = vmul.f32 %v18800_v28, %v18799_v58  ;;  %v14356_v59 = vmul.f32 %v18800_v28, %v18801_v8 }
 0x3a7   : > { %18796 = vst [vmem:[#allocation154_spill] sm:$0xff] %v14328_v5  ;;  %v14336_v19 = vpop.permute.xlu1 %5461  ;;  %v14338_v43 = vadd.f32 %v5315_v20, %v5075_v25  ;;  %v5079_v20 = vmul.f32 %v18798_v50, %v18797_v24  ;;  %v10642_v25 = vpop.eup %10641  ;;  %v14364_v21 = vmul.f32 %v18798_v50, %v18804_v10  ;;  %v18810_v50 = vld [vmem:[#allocation30_spill] sm:$0xff] }
 0x3a8   : > { %v14342_v52 = vpop.permute.xlu0 %5455  ;;  %18802 = vst [vmem:[#allocation83_spill] sm:$0xff] %v14356_v59 }
 0x3a9   : > { %5245 = vrot.lane.b32.xlu1 %v14018_v7, %s10695_s10  ;;  %5239 = vrot.lane.b32.xlu0 %v13970_v44, %s10695_s10  ;;  %18805 = vst [vmem:[#allocation155_spill] sm:$0xff] %v14364_v21 }
 0x3ab   : > { %v5194_v40 = vpop.permute.xlu1 %5193 }
 0x3ac   : > { %v5322_v7 = vmul.f32 %v5194_v40, %v18801_v8  ;;  %v14360_v5 = vmul.f32 %v5194_v40, %v18799_v58  ;;  %v5188_v44 = vpop.permute.xlu0 %5187 }
 0x3ad   : > { %v5319_v56 = vmul.f32 %v5188_v44, %v18804_v10  ;;  %v14368_v18 = vmul.f32 %v5188_v44, %v18797_v24  ;;  %5521 = vrot.lane.b32.xlu1 %v10642_v25, %s10695_s10  ;;  %5515 = vrot.lane.b32.xlu0 %v10640_v17, %s10695_s10  ;;  %v10644_v44 = vpop.eup %10643  ;;  %v18809_v25 = vld [vmem:[#allocation14_spill] sm:$0xff]  ;;  %v18811_v24 = vld [vmem:[#allocation77_spill] sm:$0xff] }
 0x3ae   : > { %18803 = vst [vmem:[#allocation94_spill] sm:$0xff] %v14360_v5  ;;  %v14372_v28 = vadd.f32 %v5322_v7, %v5082_v0  ;;  %v18807_v7 = vld [vmem:[#allocation40_spill] sm:$0xff]  ;;  %v5080_v40 = vmul.f32 %v18810_v50, %v18809_v25  ;;  %v14396_v22 = vmul.f32 %v18810_v50, %v18811_v24 }
 0x3af   : > { %18806 = vst [vmem:[#allocation156_spill] sm:$0xff] %v14368_v18  ;;  %v14376_v8 = vpop.permute.xlu1 %5469  ;;  %v14378_v58 = vadd.f32 %v5319_v56, %v5079_v20  ;;  %v18808_v0 = vld [vmem:[#allocation56_spill] sm:$0xff]  ;;  %v10646_v20 = vpop.eup %10645 }
 0x3b0   : > { %v14382_v10 = vpop.permute.xlu0 %5463  ;;  %v5083_v56 = vmul.f32 %v18808_v0, %v18807_v7  ;;  %18812 = vst [vmem:[#allocation56_spill] sm:$0xff] %v14396_v22  ;;  %v14404_v21 = vmul.f32 %v18808_v0, %v18814_v53  ;;  %v18820_v0 = vld [vmem:[#allocation34_spill] sm:$0xff]  ;;  %v14444_v22 = vmul.f32 %v18821_v32, %v18823_v62 }
 0x3b1   : > { %5253 = vrot.lane.b32.xlu1 %v14040_v48, %s10695_s10  ;;  %5247 = vrot.lane.b32.xlu0 %v13994_v12, %s10695_s10 }
 0x3b2   : > { %18824 = vst [vmem:[#allocation158_spill] sm:$0xff] %v14444_v22 }
 0x3b3   : > { %v5190_v17 = vpop.permute.xlu1 %5189 }
 0x3b4   : > { %v5196_v18 = vpop.permute.xlu0 %5195  ;;  %v5320_v48 = vmul.f32 %v5190_v17, %v18811_v24  ;;  %v14400_v12 = vmul.f32 %v5190_v17, %v18809_v25 }
 0x3b5   : > { %v5323_v5 = vmul.f32 %v5196_v18, %v18814_v53  ;;  %v14408_v59 = vmul.f32 %v5196_v18, %v18807_v7  ;;  %5529 = vrot.lane.b32.xlu1 %v10646_v20, %s10695_s10  ;;  %5523 = vrot.lane.b32.xlu0 %v10644_v44, %s10695_s10  ;;  %v18816_v18 = vld [vmem:[#allocation28_spill] sm:$0xff]  ;;  %v18818_v20 = vld [vmem:[#allocation26_spill] sm:$0xff]  ;;  %v5081_v7 = vmul.f32 %v18821_v32, %v18820_v0 }
 0x3b6   : > { %18813 = vst [vmem:[#allocation30_spill] sm:$0xff] %v14400_v12  ;;  %v14412_v50 = vadd.f32 %v5320_v48, %v5080_v40  ;;  %v10648_v48 = vpop.eup %10647  ;;  %v18817_v40 = vld [vmem:[#allocation97_spill] sm:$0xff] }
 0x3b7   : > { %18815 = vst [vmem:[#allocation157_spill] sm:$0xff] %v14408_v59  ;;  %v14416_v17 = vpop.permute.xlu1 %5465  ;;  %v14418_v25 = vadd.f32 %v5323_v5, %v5083_v56  ;;  %v5084_v5 = vmul.f32 %v18817_v40, %v18816_v18  ;;  %v10650_v56 = vpop.eup %10649  ;;  %v14434_v24 = vmul.f32 %v18817_v40, %v18818_v20 }
 0x3b8   : > { %v14422_v53 = vpop.permute.xlu0 %5471  ;;  %v10652_v4 = vpop.eup %10651 }
 0x3b9   : > { %5255 = vrot.lane.b32.xlu0 %v14062_v26, %s10695_s10  ;;  %5249 = vrot.lane.b32.xlu1 %v14020_v54, %s10695_s10  ;;  %18819 = vst [vmem:[#allocation97_spill] sm:$0xff] %v14434_v24 }
 0x3bb   : > { %v5198_v44 = vpop.permute.xlu1 %5197 }
 0x3bc   : > { %v5324_v26 = vmul.f32 %v5198_v44, %v18818_v20  ;;  %v14440_v12 = vmul.f32 %v5198_v44, %v18816_v18  ;;  %v5192_v54 = vpop.permute.xlu0 %5191  ;;  %v18830_v20 = vld [vmem:[#allocation7_spill] sm:$0xff] }
 0x3bd   : > { %v5321_v59 = vmul.f32 %v5192_v54, %v18823_v62  ;;  %v14449_v40 = vmul.f32 %v5192_v54, %v18820_v0  ;;  %5531 = vrot.lane.b32.xlu0 %v10650_v56, %s10695_s10  ;;  %5525 = vrot.lane.b32.xlu1 %v10648_v48, %s10695_s10  ;;  %v18827_v48 = vld [vmem:[#allocation76_spill] sm:$0xff]  ;;  %v5085_v62 = vmul.f32 %v18831_v30, %v18830_v20 }
 0x3be   : > { %18822 = vst [vmem:[#allocation8_spill] sm:$0xff] %v14440_v12  ;;  %v14454_v44 = vadd.f32 %v5324_v26, %v5084_v5  ;;  %v18826_v26 = vld [vmem:[#allocation64_spill] sm:$0xff]  ;;  %v10654_v5 = vpop.eup %10653 }
 0x3bf   : > { %18825 = vst [vmem:[#allocation159_spill] sm:$0xff] %v14449_v40  ;;  %v14458_v32 = vpop.permute.xlu1 %5473  ;;  %v14460_v18 = vadd.f32 %v5321_v59, %v5081_v7  ;;  %v5088_v59 = vmul.f32 %v18827_v48, %v18826_v26  ;;  %v18828_v56 = vld [vmem:[#allocation100_spill] sm:$0xff]  ;;  %v14486_v40 = vmul.f32 %v18831_v30, %v18833_v63  ;;  %v10656_v30 = vpop.eup %10655 }
 0x3c0   : > { %v14464_v54 = vpop.permute.xlu0 %5467  ;;  %v14476_v2 = vmul.f32 %v18827_v48, %v18828_v56 }
 0x3c1   : > { %5257 = vrot.lane.b32.xlu1 %v14076_v29, %s10695_s10  ;;  %5251 = vrot.lane.b32.xlu0 %v14038_v14, %s10695_s10  ;;  %18834 = vst [vmem:[#allocation160_spill] sm:$0xff] %v14486_v40 }
 0x3c2   : > { %18829 = vst [vmem:[#allocation76_spill] sm:$0xff] %v14476_v2  ;;  %v18841_v2 = vld [vmem:[#allocation107_spill] sm:$0xff] }
 0x3c3   : > { %v5206_v7 = vpop.permute.xlu1 %5205 }
 0x3c4   : > { %v5328_v0 = vmul.f32 %v5206_v7, %v18828_v56  ;;  %v14482_v29 = vmul.f32 %v5206_v7, %v18826_v26  ;;  %v5200_v14 = vpop.permute.xlu0 %5199 }
 0x3c5   : > { %v5325_v22 = vmul.f32 %v5200_v14, %v18833_v63  ;;  %v14491_v48 = vmul.f32 %v5200_v14, %v18830_v20  ;;  %5533 = vrot.lane.b32.xlu1 %v10654_v5, %s10695_s10  ;;  %5527 = vrot.lane.b32.xlu0 %v10652_v4, %s10695_s10  ;;  %v10658_v63 = vpop.eup %10657  ;;  %v18839_v4 = vld [vmem:[#allocation102_spill] sm:$0xff] }
 0x3c6   : > { %18832 = vst [vmem:[#allocation27_spill] sm:$0xff] %v14482_v29  ;;  %v14496_v7 = vadd.f32 %v5328_v0, %v5088_v59  ;;  %v10660_v6 = vpop.eup %10659  ;;  %v18838_v0 = vld [vmem:[#allocation84_spill] sm:$0xff]  ;;  %v18840_v29 = vld [vmem:[#allocation71_spill] sm:$0xff] }
 0x3c7   : > { %18835 = vst [vmem:[#allocation161_spill] sm:$0xff] %v14491_v48  ;;  %v14500_v26 = vpop.permute.xlu1 %5481  ;;  %v14502_v31 = vadd.f32 %v5325_v22, %v5085_v62  ;;  %v5089_v59 = vmul.f32 %v18839_v4, %v18838_v0  ;;  %v10662_v56 = vpop.eup %10661  ;;  %v5086_v22 = vmul.f32 %v18841_v2, %v18840_v29  ;;  %v18842_v62 = vld [vmem:[#allocation70_spill] sm:$0xff] }
 0x3c8   : > { %18836 = vst [vmem:[#allocation162_spill] sm:$0xff] %v14496_v7  ;;  %v14506_v20 = vpop.permute.xlu0 %5475 }
 0x3c9   : > { %18837 = vst [vmem:[#allocation163_spill] sm:$0xff] %v14502_v31  ;;  %5541 = vrot.lane.b32.xlu1 %v10658_v63, %s10695_s10  ;;  %5535 = vrot.lane.b32.xlu0 %v10656_v30, %s10695_s10  ;;  %v14516_v31 = vmul.f32 %v18841_v2, %v18842_v62  ;;  %v18845_v30 = vld [vmem:[#allocation85_spill] sm:$0xff] }
 0x3ca   : > { %v14524_v40 = vmul.f32 %v18839_v4, %v18845_v30  ;;  %v18852_v4 = vld [vmem:[#allocation93_spill] sm:$0xff] }
 0x3cb   : > { %v5202_v5 = vpop.permute.xlu1 %5201  ;;  %18843 = vst [vmem:[#allocation102_spill] sm:$0xff] %v14516_v31  ;;  %v18854_v31 = vld [vmem:[#allocation29_spill] sm:$0xff] }
 0x3cc   : > { %v5208_v14 = vpop.permute.xlu0 %5207  ;;  %v5326_v48 = vmul.f32 %v5202_v5, %v18842_v62  ;;  %v14520_v63 = vmul.f32 %v5202_v5, %v18840_v29  ;;  %18846 = vst [vmem:[#allocation164_spill] sm:$0xff] %v14524_v40  ;;  %v10664_v5 = vpop.eup %10663 }
 0x3cd   : > { %v5329_v7 = vmul.f32 %v5208_v14, %v18845_v30  ;;  %v14528_v12 = vmul.f32 %v5208_v14, %v18838_v0  ;;  %5537 = vrot.lane.b32.xlu1 %v10660_v6, %s10695_s10  ;;  %5543 = vrot.lane.b32.xlu0 %v10662_v56, %s10695_s10  ;;  %v10666_v30 = vpop.eup %10665  ;;  %v18849_v56 = vld [vmem:[#allocation49_spill] sm:$0xff] }
 0x3ce   : > { %18844 = vst [vmem:[#allocation107_spill] sm:$0xff] %v14520_v63  ;;  %v14532_v2 = vadd.f32 %v5326_v48, %v5086_v22  ;;  %v18850_v48 = vld [vmem:[#allocation108_spill] sm:$0xff]  ;;  %v5595_v22 = vmul.f32 %v14262_v15, %v14164_v47  ;;  %v18853_v0 = vld [vmem:[#allocation113_spill] sm:$0xff]  ;;  %v18855_v47 = vld [vmem:[#allocation47_spill] sm:$0xff] }
 0x3cf   : > { %18847 = vst [vmem:[#allocation165_spill] sm:$0xff] %v14528_v12  ;;  %v14536_v29 = vpop.permute.xlu1 %5477  ;;  %v14538_v24 = vadd.f32 %v5329_v7, %v5089_v59  ;;  %v5087_v6 = vmul.f32 %v18850_v48, %v18849_v56  ;;  %v18851_v7 = vsub.f32 %v14146_v36, %v14151_v55  ;;  %v5090_v63 = vmul.f32 %v18853_v0, %v18852_v4 }
 0x3d0   : > { %18848 = vst [vmem:[#allocation166_spill] sm:$0xff] %v14532_v2  ;;  %v14542_v14 = vpop.permute.xlu0 %5483  ;;  %v14566_v2 = vmul.f32 %v18850_v48, %v18855_v47 }
 0x3d1   : > { %5545 = vrot.lane.b32.xlu1 %v10666_v30, %s10695_s10  ;;  %5539 = vrot.lane.b32.xlu0 %v10664_v5, %s10695_s10  ;;  %v5787_v59 = vmul.f32 %v18851_v7, %v14262_v15  ;;  %v14558_v30 = vmul.f32 %v18853_v0, %v18854_v31  ;;  %v5596_v7 = vmul.f32 %v14296_v35, %v14188_v23 }
 0x3d2   : > { %v5599_v23 = vmul.f32 %v14302_v41, %v14194_v34 }
 0x3d3   : > { %v5210_v62 = vpop.permute.xlu1 %5209 }
 0x3d4   : > { %v5330_v5 = vmul.f32 %v5210_v62, %v18854_v31  ;;  %v14562_v12 = vmul.f32 %v5210_v62, %v18852_v4  ;;  %v5204_v40 = vpop.permute.xlu0 %5203  ;;  %v5598_v62 = vmul.f32 %v14256_v45, %v14158_v60  ;;  %v18858_v60 = vsub.f32 %v14138_v61, %v14142_v11  ;;  %v18860_v4 = vld [vmem:[#allocation117_spill] sm:$0xff] }
 0x3d5   : > { %v5327_v55 = vmul.f32 %v5204_v40, %v18855_v47  ;;  %v14570_v36 = vmul.f32 %v5204_v40, %v18849_v56  ;;  %6125 = vperm.xlu1 %10374, %v5787_v59   ;;  %5837 = vperm.xlu0 %10373, %v5595_v22   ;;  %v18857_v22 = vld [vmem:[#allocation114_spill] sm:$0xff]  ;;  %v14600_v40 = vmul.f32 %v18860_v4, %v13838_v42 }
 0x3d6   : > { %v14572_v15 = vadd.f32 %v5330_v5, %v5090_v63  ;;  %v18856_v63 = vld [vmem:[#allocation36_spill] sm:$0xff]  ;;  %v5790_v0 = vmul.f32 %v18858_v60, %v14256_v45  ;;  %v14608_v11 = vmul.f32 %v18857_v22, %v13794_v39  ;;  %v18862_v60 = vsub.f32 %v14180_v16, %v14184_v9 }
 0x3d7   : > { %v14580_v48 = vpop.permute.xlu1 %5485  ;;  %v14582_v31 = vadd.f32 %v5327_v55, %v5087_v6  ;;  %v5091_v5 = vmul.f32 %v18857_v22, %v18856_v63  ;;  %v18859_v55 = vld [vmem:[#allocation3_spill] sm:$0xff]  ;;  %v18863_v22 = vsub.f32 %v14172_v38, %v14176_v1  ;;  %v5600_v16 = vmul.f32 %v14336_v19, %v14222_v46 }
 0x3d8   : > { %v14586_v59 = vpop.permute.xlu0 %5479  ;;  %v5094_v47 = vmul.f32 %v18860_v4, %v18859_v55  ;;  %v5597_v1 = vmul.f32 %v14342_v52, %v14228_v51 }
 0x3d9   : > { %5842 = vperm.xlu1 %10374, %v5596_v7   ;;  %5852 = vperm.xlu0 %10373, %v5598_v62  }
 0x3db   : > { %v5218_v6 = vpop.permute.xlu1 %5217 }
 0x3dc   : > { %v5334_v62 = vmul.f32 %v5218_v6, %v13838_v42  ;;  %v14604_v7 = vmul.f32 %v5218_v6, %v18859_v55  ;;  %v5212_v56 = vpop.permute.xlu0 %5211  ;;  %v5791_v6 = vmul.f32 %v18862_v60, %v14302_v41  ;;  %v5788_v42 = vmul.f32 %v18863_v22, %v14296_v35  ;;  %v18866_v41 = vld [vmem:[#allocation96_spill] sm:$0xff]  ;;  %v18867_v35 = vld [vmem:[#allocation121_spill] sm:$0xff] }
 0x3dd   : > { %v5331_v61 = vmul.f32 %v5212_v56, %v13794_v39  ;;  %v14612_v34 = vmul.f32 %v5212_v56, %v18856_v63  ;;  %5857 = vperm.xlu1 %10374, %v5599_v23   ;;  %6140 = vperm.xlu0 %10373, %v5790_v0   ;;  %v18864_v23 = vld [vmem:[#allocation4_spill] sm:$0xff] }
 0x3de   : > { %v14614_v45 = vadd.f32 %v5334_v62, %v5094_v47  ;;  %v18865_v62 = vld [vmem:[#allocation120_spill] sm:$0xff]  ;;  %v18871_v47 = vld [vmem:[#allocation105_spill] sm:$0xff] }
 0x3df   : > { %18861 = vst [vmem:[#allocation108_spill] sm:$0xff] %v14612_v34  ;;  %v14626_v55 = vpop.permute.xlu1 %5493  ;;  %v14628_v56 = vadd.f32 %v5331_v61, %v5091_v5  ;;  %v5095_v9 = vmul.f32 %v18865_v62, %v18864_v23  ;;  %v5092_v5 = vmul.f32 %v18867_v35, %v18866_v41  ;;  %v18868_v61 = vld [vmem:[#allocation89_spill] sm:$0xff]  ;;  %v14652_v46 = vmul.f32 %v18865_v62, %v18871_v47 }
 0x3e0   : > { %v14632_v0 = vpop.permute.xlu0 %5487  ;;  %v14644_v60 = vmul.f32 %v18867_v35, %v18868_v61  ;;  %v18877_v62 = vsub.f32 %v14210_v27, %v14215_v57  ;;  %v5601_v57 = vmul.f32 %v14382_v10, %v14258_v13  ;;  %v18885_v35 = vld [vmem:[#allocation103_spill] sm:$0xff] }
 0x3e1   : > { %6145 = vperm.xlu1 %10374, %v5791_v6   ;;  %6130 = vperm.xlu0 %10373, %v5788_v42   ;;  %18872 = vst [vmem:[#allocation117_spill] sm:$0xff] %v14652_v46 }
 0x3e2   : > { %18869 = vst [vmem:[#allocation113_spill] sm:$0xff] %v14644_v60  ;;  %v18892_v60 = vld [vmem:[#allocation22_spill] sm:$0xff] }
 0x3e3   : > { %v5214_v38 = vpop.permute.xlu1 %5213 }
 0x3e4   : > { %v5220_v22 = vpop.permute.xlu0 %5219  ;;  %v5332_v42 = vmul.f32 %v5214_v38, %v18868_v61  ;;  %v14648_v6 = vmul.f32 %v5214_v38, %v18866_v41  ;;  %v18874_v61 = vld [vmem:[#allocation20_spill] sm:$0xff]  ;;  %v18875_v38 = vld [vmem:[#allocation25_spill] sm:$0xff] }
 0x3e5   : > { %v5335_v51 = vmul.f32 %v5220_v22, %v18871_v47  ;;  %v14656_v4 = vmul.f32 %v5220_v22, %v18864_v23  ;;  %5847 = vperm.xlu1 %10374, %v5597_v1   ;;  %5862 = vperm.xlu0 %10373, %v5600_v16   ;;  %v18876_v41 = vsub.f32 %v18874_v61, %v18875_v38 }
 0x3e6   : > { %18870 = vst [vmem:[#allocation114_spill] sm:$0xff] %v14648_v6  ;;  %v14658_v39 = vadd.f32 %v5332_v42, %v5092_v5  ;;  %v5789_v47 = vmul.f32 %v18877_v62, %v14342_v52  ;;  %v18878_v5 = vld [vmem:[#allocation41_spill] sm:$0xff]  ;;  %v18879_v42 = vld [vmem:[#allocation124_spill] sm:$0xff] }
 0x3e7   : > { %18873 = vst [vmem:[#allocation120_spill] sm:$0xff] %v14656_v4  ;;  %v5792_v63 = vmul.f32 %v18876_v41, %v14336_v19  ;;  %v14670_v34 = vpop.permute.xlu1 %5489  ;;  %v14672_v22 = vadd.f32 %v5335_v51, %v5095_v9  ;;  %v5096_v61 = vmul.f32 %v18879_v42, %v18878_v5  ;;  %v5604_v19 = vmul.f32 %v14376_v8, %v14252_v3  ;;  %v18880_v52 = vld [vmem:[#allocation109_spill] sm:$0xff]  ;;  %v18882_v41 = vld [vmem:[#allocation44_spill] sm:$0xff] }
 0x3e8   : > { %v14676_v1 = vpop.permute.xlu0 %5495  ;;  %v14686_v9 = vmul.f32 %v18879_v42, %v18880_v52  ;;  %v18883_v51 = vld [vmem:[#allocation125_spill] sm:$0xff] }
 0x3e9   : > { %6135 = vperm.xlu1 %10374, %v5789_v47   ;;  %6150 = vperm.xlu0 %10373, %v5792_v63   ;;  %v5093_v38 = vmul.f32 %v18883_v51, %v18882_v41  ;;  %v14696_v3 = vmul.f32 %v18883_v51, %v18885_v35  ;;  %v18891_v51 = vld [vmem:[#allocation19_spill] sm:$0xff] }
 0x3ea   : > { %18881 = vst [vmem:[#allocation121_spill] sm:$0xff] %v14686_v9  ;;  %v18893_v4 = vsub.f32 %v18891_v51, %v18892_v60 }
 0x3eb   : > { %v5222_v27 = vpop.permute.xlu1 %5221  ;;  %18886 = vst [vmem:[#allocation25_spill] sm:$0xff] %v14696_v3  ;;  %v18908_v3 = vld [vmem:[#allocation10_spill] sm:$0xff] }
 0x3ec   : > { %v5336_v47 = vmul.f32 %v5222_v27, %v18880_v52  ;;  %v14692_v63 = vmul.f32 %v5222_v27, %v18878_v5  ;;  %v5216_v62 = vpop.permute.xlu0 %5215  ;;  %v18888_v27 = vld [vmem:[#allocation57_spill] sm:$0xff]  ;;  %v18889_v5 = vld [vmem:[#allocation68_spill] sm:$0xff] }
 0x3ed   : > { %v5333_v13 = vmul.f32 %v5216_v62, %v18885_v35  ;;  %v14700_v16 = vmul.f32 %v5216_v62, %v18882_v41  ;;  %5867 = vperm.xlu1 %10374, %v5601_v57   ;;  %5882 = vperm.xlu0 %10373, %v5604_v19   ;;  %v18890_v23 = vsub.f32 %v18888_v27, %v18889_v5  ;;  %v18894_v57 = vld [vmem:[#allocation6_spill] sm:$0xff] }
 0x3ee   : > { %18884 = vst [vmem:[#allocation20_spill] sm:$0xff] %v14692_v63  ;;  %v14702_v42 = vadd.f32 %v5336_v47, %v5096_v61  ;;  %v5793_v35 = vmul.f32 %v18893_v4, %v14382_v10  ;;  %v18895_v47 = vld [vmem:[#allocation128_spill] sm:$0xff]  ;;  %v5602_v10 = vmul.f32 %v14416_v17, %v14292_v33  ;;  %v18901_v61 = vld [vmem:[#allocation106_spill] sm:$0xff] }
 0x3ef   : > { %18887 = vst [vmem:[#allocation124_spill] sm:$0xff] %v14700_v16  ;;  %v5796_v6 = vmul.f32 %v18890_v23, %v14376_v8  ;;  %v14714_v46 = vpop.permute.xlu1 %5497  ;;  %v14716_v62 = vadd.f32 %v5333_v13, %v5093_v38  ;;  %v5100_v5 = vmul.f32 %v18895_v47, %v18894_v57  ;;  %v5605_v8 = vmul.f32 %v14422_v53, %v14298_v37  ;;  %v18896_v23 = vld [vmem:[#allocation112_spill] sm:$0xff]  ;;  %v18898_v38 = vld [vmem:[#allocation5_spill] sm:$0xff] }
 0x3f0   : > { %v14720_v19 = vpop.permute.xlu0 %5491  ;;  %v14730_v60 = vmul.f32 %v18895_v47, %v18896_v23  ;;  %v18899_v13 = vld [vmem:[#allocation129_spill] sm:$0xff] }
 0x3f1   : > { %6155 = vperm.xlu1 %10374, %v5793_v35   ;;  %6170 = vperm.xlu0 %10373, %v5796_v6   ;;  %v5097_v27 = vmul.f32 %v18899_v13, %v18898_v38  ;;  %v14740_v37 = vmul.f32 %v18899_v13, %v18901_v61  ;;  %v18907_v13 = vld [vmem:[#allocation88_spill] sm:$0xff] }
 0x3f2   : > { %18897 = vst [vmem:[#allocation125_spill] sm:$0xff] %v14730_v60  ;;  %v18909_v63 = vsub.f32 %v18907_v13, %v18908_v3  ;;  %v18913_v3 = vld [vmem:[#allocation135_spill] sm:$0xff] }
 0x3f3   : > { %v5230_v4 = vpop.permute.xlu1 %5229  ;;  %18902 = vst [vmem:[#allocation68_spill] sm:$0xff] %v14740_v37  ;;  %v18924_v37 = vld [vmem:[#allocation154_spill] sm:$0xff] }
 0x3f4   : > { %v5340_v35 = vmul.f32 %v5230_v4, %v18896_v23  ;;  %v14736_v6 = vmul.f32 %v5230_v4, %v18894_v57  ;;  %v5224_v51 = vpop.permute.xlu0 %5223  ;;  %v18904_v4 = vld [vmem:[#allocation74_spill] sm:$0xff]  ;;  %v18905_v57 = vld [vmem:[#allocation152_spill] sm:$0xff] }
 0x3f5   : > { %v5337_v33 = vmul.f32 %v5224_v51, %v18901_v61  ;;  %v14744_v52 = vmul.f32 %v5224_v51, %v18898_v38  ;;  %5887 = vperm.xlu1 %10374, %v5605_v8   ;;  %5872 = vperm.xlu0 %10373, %v5602_v10   ;;  %v18906_v41 = vsub.f32 %v18904_v4, %v18905_v57  ;;  %v18910_v10 = vld [vmem:[#allocation48_spill] sm:$0xff] }
 0x3f6   : > { %18900 = vst [vmem:[#allocation57_spill] sm:$0xff] %v14736_v6  ;;  %v14746_v47 = vadd.f32 %v5340_v35, %v5100_v5  ;;  %v5794_v61 = vmul.f32 %v18909_v63, %v14416_v17  ;;  %v18911_v35 = vld [vmem:[#allocation132_spill] sm:$0xff]  ;;  %v5603_v17 = vmul.f32 %v14464_v54, %v14338_v43  ;;  %v18912_v63 = vld [vmem:[#allocation59_spill] sm:$0xff] }
 0x3f7   : > { %18903 = vst [vmem:[#allocation19_spill] sm:$0xff] %v14744_v52  ;;  %v5797_v16 = vmul.f32 %v18906_v41, %v14422_v53  ;;  %v14758_v9 = vpop.permute.xlu1 %5505  ;;  %v14760_v51 = vadd.f32 %v5337_v33, %v5097_v27  ;;  %v5098_v57 = vmul.f32 %v18911_v35, %v18910_v10  ;;  %v5606_v53 = vmul.f32 %v14458_v32, %v14332_v49  ;;  %v18914_v33 = vld [vmem:[#allocation110_spill] sm:$0xff]  ;;  %v18917_v5 = vld [vmem:[#allocation115_spill] sm:$0xff] }
 0x3f8   : > { %v14764_v8 = vpop.permute.xlu0 %5499  ;;  %v5101_v27 = vmul.f32 %v18913_v3, %v18912_v63  ;;  %v14776_v4 = vmul.f32 %v18911_v35, %v18914_v33  ;;  %v14784_v49 = vmul.f32 %v18913_v3, %v18917_v5  ;;  %v18923_v3 = vld [vmem:[#allocation153_spill] sm:$0xff]  ;;  %v18932_v35 = vld [vmem:[#allocation111_spill] sm:$0xff] }
 0x3f9   : > { %6175 = vperm.xlu1 %10374, %v5797_v16   ;;  %6160 = vperm.xlu0 %10373, %v5794_v61   ;;  %v18925_v6 = vsub.f32 %v18923_v3, %v18924_v37  ;;  %v18928_v37 = vld [vmem:[#allocation118_spill] sm:$0xff] }
 0x3fa   : > { %18915 = vst [vmem:[#allocation22_spill] sm:$0xff] %v14776_v4  ;;  %18918 = vst [vmem:[#allocation129_spill] sm:$0xff] %v14784_v49  ;;  %v18939_v4 = vld [vmem:[#allocation156_spill] sm:$0xff] }
 0x3fb   : > { %v5226_v41 = vpop.permute.xlu1 %5225 }
 0x3fc   : > { %v5232_v13 = vpop.permute.xlu0 %5231  ;;  %v5338_v16 = vmul.f32 %v5226_v41, %v18914_v33  ;;  %v14780_v61 = vmul.f32 %v5226_v41, %v18910_v10  ;;  %v18920_v33 = vld [vmem:[#allocation78_spill] sm:$0xff]  ;;  %v18921_v41 = vld [vmem:[#allocation80_spill] sm:$0xff] }
 0x3fd   : > { %v5341_v43 = vmul.f32 %v5232_v13, %v18917_v5  ;;  %v14788_v23 = vmul.f32 %v5232_v13, %v18912_v63  ;;  %5877 = vperm.xlu1 %10374, %v5603_v17   ;;  %5892 = vperm.xlu0 %10373, %v5606_v53   ;;  %v18922_v10 = vsub.f32 %v18920_v33, %v18921_v41  ;;  %v18926_v17 = vld [vmem:[#allocation11_spill] sm:$0xff] }
 0x3fe   : > { %18916 = vst [vmem:[#allocation128_spill] sm:$0xff] %v14780_v61  ;;  %v14790_v38 = vadd.f32 %v5338_v16, %v5098_v57  ;;  %v5795_v5 = vmul.f32 %v18925_v6, %v14464_v54  ;;  %v18927_v16 = vld [vmem:[#allocation137_spill] sm:$0xff]  ;;  %v5607_v54 = vmul.f32 %v14506_v20, %v14378_v58 }
 0x3ff   : > { %18919 = vst [vmem:[#allocation74_spill] sm:$0xff] %v14788_v23  ;;  %v5798_v52 = vmul.f32 %v18922_v10, %v14458_v32  ;;  %v14802_v60 = vpop.permute.xlu1 %5501  ;;  %v14804_v13 = vadd.f32 %v5341_v43, %v5101_v27  ;;  %v5102_v33 = vmul.f32 %v18927_v16, %v18926_v17  ;;  %v5610_v32 = vmul.f32 %v14500_v26, %v14372_v28  ;;  %v18929_v27 = vld [vmem:[#allocation13_spill] sm:$0xff]  ;;  %v18930_v43 = vld [vmem:[#allocation138_spill] sm:$0xff] }
 0x400   : > { %v14808_v53 = vpop.permute.xlu0 %5507  ;;  %v14818_v10 = vmul.f32 %v18927_v16, %v18928_v37  ;;  %v5099_v41 = vmul.f32 %v18930_v43, %v18929_v27  ;;  %v14828_v28 = vmul.f32 %v18930_v43, %v18932_v35  ;;  %v18938_v43 = vld [vmem:[#allocation155_spill] sm:$0xff] }
 0x401   : > { %6165 = vperm.xlu1 %10374, %v5795_v5   ;;  %6180 = vperm.xlu0 %10373, %v5798_v52   ;;  %v18940_v23 = vsub.f32 %v18938_v43, %v18939_v4 }
 0x402   : > { %18933 = vst [vmem:[#allocation88_spill] sm:$0xff] %v14828_v28 }
 0x403   : > { %v5234_v6 = vpop.permute.xlu1 %5233 }
 0x404   : > { %v5342_v5 = vmul.f32 %v5234_v6, %v18928_v37  ;;  %v14824_v52 = vmul.f32 %v5234_v6, %v18926_v17  ;;  %v5228_v3 = vpop.permute.xlu0 %5227  ;;  %v18935_v6 = vld [vmem:[#allocation83_spill] sm:$0xff]  ;;  %v18936_v17 = vld [vmem:[#allocation94_spill] sm:$0xff] }
 0x405   : > { %v5339_v58 = vmul.f32 %v5228_v3, %v18932_v35  ;;  %v14832_v57 = vmul.f32 %v5228_v3, %v18929_v27  ;;  %5897 = vperm.xlu1 %10374, %v5607_v54   ;;  %5912 = vperm.xlu0 %10373, %v5610_v32   ;;  %v18937_v63 = vsub.f32 %v18935_v6, %v18936_v17  ;;  %v18941_v54 = vld [vmem:[#allocation54_spill] sm:$0xff] }
 0x406   : > { %18931 = vst [vmem:[#allocation152_spill] sm:$0xff] %v14824_v52  ;;  %v14834_v16 = vadd.f32 %v5342_v5, %v5102_v33  ;;  %v5799_v35 = vmul.f32 %v18940_v23, %v14506_v20  ;;  %v18942_v5 = vld [vmem:[#allocation140_spill] sm:$0xff]  ;;  %v5608_v20 = vmul.f32 %v14536_v29, %v14412_v50 }
 0x407   : > { %18934 = vst [vmem:[#allocation10_spill] sm:$0xff] %v14832_v57  ;;  %v5802_v61 = vmul.f32 %v18937_v63, %v14500_v26  ;;  %v14846_v49 = vpop.permute.xlu1 %5509  ;;  %v14848_v3 = vadd.f32 %v5339_v58, %v5099_v41  ;;  %v5106_v17 = vmul.f32 %v18942_v5, %v18941_v54  ;;  %v5611_v26 = vmul.f32 %v14542_v14, %v14418_v25  ;;  %v18943_v63 = vld [vmem:[#allocation123_spill] sm:$0xff]  ;;  %v18945_v41 = vld [vmem:[#allocation17_spill] sm:$0xff]  ;;  %v18948_v33 = vld [vmem:[#allocation116_spill] sm:$0xff] }
 0x408   : > { %v14852_v32 = vpop.permute.xlu0 %5503  ;;  %v14862_v4 = vmul.f32 %v18942_v5, %v18943_v63  ;;  %v18946_v58 = vld [vmem:[#allocation141_spill] sm:$0xff]  ;;  %v18954_v57 = vld [vmem:[#allocation30_spill] sm:$0xff] }
 0x409   : > { %6185 = vperm.xlu1 %10374, %v5799_v35   ;;  %6200 = vperm.xlu0 %10373, %v5802_v61   ;;  %v5103_v6 = vmul.f32 %v18946_v58, %v18945_v41  ;;  %v14872_v25 = vmul.f32 %v18946_v58, %v18948_v33  ;;  %v18953_v58 = vld [vmem:[#allocation56_spill] sm:$0xff] }
 0x40a   : > { %18944 = vst [vmem:[#allocation132_spill] sm:$0xff] %v14862_v4  ;;  %v18955_v28 = vsub.f32 %v18953_v58, %v18954_v57 }
 0x40b   : > { %v5242_v23 = vpop.permute.xlu1 %5241  ;;  %18949 = vst [vmem:[#allocation78_spill] sm:$0xff] %v14872_v25  ;;  %v18971_v25 = vld [vmem:[#allocation159_spill] sm:$0xff] }
 0x40c   : > { %v5346_v35 = vmul.f32 %v5242_v23, %v18943_v63  ;;  %v14868_v61 = vmul.f32 %v5242_v23, %v18941_v54  ;;  %v5236_v43 = vpop.permute.xlu0 %5235  ;;  %v18951_v23 = vld [vmem:[#allocation157_spill] sm:$0xff] }
 0x40d   : > { %v5343_v50 = vmul.f32 %v5236_v43, %v18948_v33  ;;  %v14876_v37 = vmul.f32 %v5236_v43, %v18945_v41  ;;  %5917 = vperm.xlu1 %10374, %v5611_v26   ;;  %5902 = vperm.xlu0 %10373, %v5608_v20   ;;  %v18952_v54 = vsub.f32 %v14404_v21, %v18951_v23  ;;  %v18956_v20 = vld [vmem:[#allocation18_spill] sm:$0xff] }
 0x40e   : > { %18947 = vst [vmem:[#allocation135_spill] sm:$0xff] %v14868_v61  ;;  %v14878_v5 = vadd.f32 %v5346_v35, %v5106_v17  ;;  %v5800_v33 = vmul.f32 %v18955_v28, %v14536_v29  ;;  %v18957_v35 = vld [vmem:[#allocation142_spill] sm:$0xff]  ;;  %v5609_v29 = vmul.f32 %v14586_v59, %v14460_v18 }
 0x40f   : > { %18950 = vst [vmem:[#allocation80_spill] sm:$0xff] %v14876_v37  ;;  %v5803_v27 = vmul.f32 %v18952_v54, %v14542_v14  ;;  %v14890_v52 = vpop.permute.xlu1 %5517  ;;  %v14892_v43 = vadd.f32 %v5343_v50, %v5103_v6  ;;  %v5104_v21 = vmul.f32 %v18957_v35, %v18956_v20  ;;  %v5612_v14 = vmul.f32 %v14580_v48, %v14454_v44  ;;  %v18958_v28 = vld [vmem:[#allocation58_spill] sm:$0xff]  ;;  %v18959_v54 = vld [vmem:[#allocation143_spill] sm:$0xff] }
 0x410   : > { %v14896_v26 = vpop.permute.xlu0 %5511  ;;  %v5107_v6 = vmul.f32 %v18959_v54, %v18958_v28  ;;  %v18960_v50 = vld [vmem:[#allocation119_spill] sm:$0xff]  ;;  %v18963_v17 = vld [vmem:[#allocation126_spill] sm:$0xff] }
 0x411   : > { %6205 = vperm.xlu1 %10374, %v5803_v27   ;;  %6190 = vperm.xlu0 %10373, %v5800_v33   ;;  %v14908_v23 = vmul.f32 %v18957_v35, %v18960_v50  ;;  %v14916_v44 = vmul.f32 %v18959_v54, %v18963_v17  ;;  %v18970_v54 = vld [vmem:[#allocation158_spill] sm:$0xff] }
 0x412   : > { %v18972_v61 = vsub.f32 %v18970_v54, %v18971_v25  ;;  %v18978_v25 = vld [vmem:[#allocation130_spill] sm:$0xff]  ;;  %v18981_v54 = vld [vmem:[#allocation145_spill] sm:$0xff] }
 0x413   : > { %v5238_v57 = vpop.permute.xlu1 %5237  ;;  %18961 = vst [vmem:[#allocation153_spill] sm:$0xff] %v14908_v23  ;;  %18964 = vst [vmem:[#allocation137_spill] sm:$0xff] %v14916_v44  ;;  %v18991_v44 = vld [vmem:[#allocation161_spill] sm:$0xff] }
 0x414   : > { %v5244_v58 = vpop.permute.xlu0 %5243  ;;  %v5344_v27 = vmul.f32 %v5238_v57, %v18960_v50  ;;  %v14912_v33 = vmul.f32 %v5238_v57, %v18956_v20  ;;  %v18967_v50 = vld [vmem:[#allocation97_spill] sm:$0xff]  ;;  %v18968_v57 = vld [vmem:[#allocation8_spill] sm:$0xff] }
 0x415   : > { %v5347_v18 = vmul.f32 %v5244_v58, %v18963_v17  ;;  %v14920_v63 = vmul.f32 %v5244_v58, %v18958_v28  ;;  %5907 = vperm.xlu1 %10374, %v5609_v29   ;;  %5922 = vperm.xlu0 %10373, %v5612_v14   ;;  %v18969_v20 = vsub.f32 %v18967_v50, %v18968_v57  ;;  %v18974_v29 = vld [vmem:[#allocation32_spill] sm:$0xff]  ;;  %v18977_v57 = vld [vmem:[#allocation163_spill] sm:$0xff]  ;;  %v18983_v28 = vld [vmem:[#allocation122_spill] sm:$0xff] }
 0x416   : > { %18962 = vst [vmem:[#allocation154_spill] sm:$0xff] %v14912_v33  ;;  %v14922_v41 = vadd.f32 %v5344_v27, %v5104_v21  ;;  %v5801_v17 = vmul.f32 %v18972_v61, %v14586_v59  ;;  %v18975_v27 = vld [vmem:[#allocation144_spill] sm:$0xff]  ;;  %v5613_v59 = vmul.f32 %v14632_v0, %v18977_v57 }
 0x417   : > { %18965 = vst [vmem:[#allocation138_spill] sm:$0xff] %v14920_v63  ;;  %v5804_v37 = vmul.f32 %v18969_v20, %v14580_v48  ;;  %v14934_v4 = vpop.permute.xlu1 %5513  ;;  %v14936_v58 = vadd.f32 %v5347_v18, %v5107_v6  ;;  %v5108_v50 = vmul.f32 %v18975_v27, %v18974_v29  ;;  %v18976_v48 = vld [vmem:[#allocation162_spill] sm:$0xff]  ;;  %v14950_v6 = vmul.f32 %v18975_v27, %v18978_v25  ;;  %v18980_v18 = vld [vmem:[#allocation52_spill] sm:$0xff] }
 0x418   : > { %18966 = vst [vmem:[#allocation83_spill] sm:$0xff] %v14922_v41  ;;  %v14940_v14 = vpop.permute.xlu0 %5519  ;;  %v5616_v20 = vmul.f32 %v14626_v55, %v18976_v48  ;;  %v5105_v35 = vmul.f32 %v18981_v54, %v18980_v18  ;;  %v14960_v48 = vmul.f32 %v18981_v54, %v18983_v28  ;;  %v18990_v54 = vld [vmem:[#allocation160_spill] sm:$0xff] }
 0x419   : > { %18973 = vst [vmem:[#allocation94_spill] sm:$0xff] %v14936_v58  ;;  %6195 = vperm.xlu1 %10374, %v5801_v17   ;;  %6210 = vperm.xlu0 %10373, %v5804_v37   ;;  %18979 = vst [vmem:[#allocation155_spill] sm:$0xff] %v14950_v6  ;;  %v18992_v41 = vsub.f32 %v18990_v54, %v18991_v44  ;;  %v18996_v44 = vld [vmem:[#allocation134_spill] sm:$0xff] }
 0x41a   : > { %18984 = vst [vmem:[#allocation140_spill] sm:$0xff] %v14960_v48 }
 0x41b   : > { %v5246_v61 = vpop.permute.xlu1 %5245 }
 0x41c   : > { %v5348_v17 = vmul.f32 %v5246_v61, %v18978_v25  ;;  %v14956_v37 = vmul.f32 %v5246_v61, %v18974_v29  ;;  %v5240_v21 = vpop.permute.xlu0 %5239  ;;  %v18987_v61 = vld [vmem:[#allocation76_spill] sm:$0xff]  ;;  %v18988_v29 = vld [vmem:[#allocation27_spill] sm:$0xff] }
 0x41d   : > { %v5345_v57 = vmul.f32 %v5240_v21, %v18983_v28  ;;  %v14964_v33 = vmul.f32 %v5240_v21, %v18980_v18  ;;  %5927 = vperm.xlu1 %10374, %v5613_v59   ;;  %5942 = vperm.xlu0 %10373, %v5616_v20   ;;  %v18989_v23 = vsub.f32 %v18987_v61, %v18988_v29  ;;  %v18993_v59 = vld [vmem:[#allocation38_spill] sm:$0xff]  ;;  %v18998_v61 = vld [vmem:[#allocation147_spill] sm:$0xff] }
 0x41e   : > { %18982 = vst [vmem:[#allocation156_spill] sm:$0xff] %v14956_v37  ;;  %v14966_v27 = vadd.f32 %v5348_v17, %v5108_v50  ;;  %v5805_v28 = vmul.f32 %v18992_v41, %v14632_v0  ;;  %v18994_v17 = vld [vmem:[#allocation146_spill] sm:$0xff]  ;;  %v18999_v25 = vld [vmem:[#allocation127_spill] sm:$0xff] }
 0x41f   : > { %18985 = vst [vmem:[#allocation141_spill] sm:$0xff] %v14964_v33  ;;  %v5808_v63 = vmul.f32 %v18989_v23, %v14626_v55  ;;  %v14978_v58 = vpop.permute.xlu1 %5521  ;;  %v14980_v21 = vadd.f32 %v5345_v57, %v5105_v35  ;;  %v5112_v29 = vmul.f32 %v18994_v17, %v18993_v59  ;;  %v5617_v55 = vmul.f32 %v14676_v1, %v14538_v24  ;;  %v18995_v23 = vld [vmem:[#allocation166_spill] sm:$0xff]  ;;  %v18997_v57 = vld [vmem:[#allocation72_spill] sm:$0xff]  ;;  %v19004_v37 = vld [vmem:[#allocation107_spill] sm:$0xff] }
 0x420   : > { %18986 = vst [vmem:[#allocation157_spill] sm:$0xff] %v14966_v27  ;;  %v14984_v20 = vpop.permute.xlu0 %5515  ;;  %v5614_v0 = vmul.f32 %v14670_v34, %v18995_v23  ;;  %v14994_v35 = vmul.f32 %v18994_v17, %v18996_v44  ;;  %v5109_v54 = vmul.f32 %v18998_v61, %v18997_v57  ;;  %v15004_v24 = vmul.f32 %v18998_v61, %v18999_v25  ;;  %v19003_v61 = vld [vmem:[#allocation102_spill] sm:$0xff] }
 0x421   : > { %6215 = vperm.xlu1 %10374, %v5805_v28   ;;  %6230 = vperm.xlu0 %10373, %v5808_v63   ;;  %v19005_v6 = vsub.f32 %v19003_v61, %v19004_v37  ;;  %v19009_v37 = vld [vmem:[#allocation149_spill] sm:$0xff] }
 0x423   : > { %v5254_v41 = vpop.permute.xlu1 %5253 }
 0x424   : > { %v5352_v28 = vmul.f32 %v5254_v41, %v18996_v44  ;;  %v15000_v63 = vmul.f32 %v5254_v41, %v18993_v59  ;;  %v5248_v50 = vpop.permute.xlu0 %5247  ;;  %v19000_v41 = vld [vmem:[#allocation164_spill] sm:$0xff]  ;;  %v19001_v59 = vld [vmem:[#allocation165_spill] sm:$0xff] }
 0x425   : > { %v5349_v23 = vmul.f32 %v5248_v50, %v18999_v25  ;;  %v15008_v18 = vmul.f32 %v5248_v50, %v18997_v57  ;;  %5947 = vperm.xlu1 %10374, %v5617_v55   ;;  %5932 = vperm.xlu0 %10373, %v5614_v0   ;;  %v19002_v33 = vsub.f32 %v19000_v41, %v19001_v59  ;;  %v19006_v0 = vld [vmem:[#allocation53_spill] sm:$0xff] }
 0x426   : > { %v15010_v17 = vadd.f32 %v5352_v28, %v5112_v29  ;;  %v5806_v25 = vmul.f32 %v19005_v6, %v14670_v34  ;;  %v19007_v28 = vld [vmem:[#allocation148_spill] sm:$0xff]  ;;  %v5615_v34 = vmul.f32 %v14720_v19, %v14582_v31  ;;  %v19008_v6 = vld [vmem:[#allocation46_spill] sm:$0xff] }
 0x427   : > { %v5809_v48 = vmul.f32 %v19002_v33, %v14676_v1  ;;  %v15022_v27 = vpop.permute.xlu1 %5529  ;;  %v15024_v50 = vadd.f32 %v5349_v23, %v5109_v54  ;;  %v5110_v59 = vmul.f32 %v19007_v28, %v19006_v0  ;;  %v5618_v1 = vmul.f32 %v14714_v46, %v14572_v15  ;;  %v19010_v23 = vld [vmem:[#allocation131_spill] sm:$0xff]  ;;  %v19011_v29 = vld [vmem:[#allocation136_spill] sm:$0xff] }
 0x428   : > { %v15028_v55 = vpop.permute.xlu0 %5523  ;;  %v5113_v54 = vmul.f32 %v19009_v37, %v19008_v6  ;;  %v15040_v41 = vmul.f32 %v19007_v28, %v19010_v23  ;;  %v15048_v15 = vmul.f32 %v19009_v37, %v19011_v29  ;;  %v19014_v37 = vsub.f32 %v14566_v2, %v14570_v36 }
 0x429   : > { %6235 = vperm.xlu1 %10374, %v5809_v48   ;;  %6220 = vperm.xlu0 %10373, %v5806_v25   ;;  %v5619_v2 = vmul.f32 %v14764_v8, %v14628_v56 }
 0x42b   : > { %v5250_v33 = vpop.permute.xlu1 %5249 }
 0x42c   : > { %v5256_v61 = vpop.permute.xlu0 %5255  ;;  %v5350_v25 = vmul.f32 %v5250_v33, %v19010_v23  ;;  %v15044_v48 = vmul.f32 %v5250_v33, %v19006_v0  ;;  %v19013_v33 = vsub.f32 %v14558_v30, %v14562_v12  ;;  %v5807_v0 = vmul.f32 %v19014_v37, %v14720_v19 }
 0x42d   : > { %v5353_v31 = vmul.f32 %v5256_v61, %v19011_v29  ;;  %v15052_v44 = vmul.f32 %v5256_v61, %v19008_v6  ;;  %5937 = vperm.xlu1 %10374, %v5615_v34   ;;  %5952 = vperm.xlu0 %10373, %v5618_v1   ;;  %v19015_v34 = vld [vmem:[#allocation65_spill] sm:$0xff]  ;;  %v5622_v30 = vmul.f32 %v14758_v9, %v14614_v45 }
 0x42e   : > { %v15054_v57 = vadd.f32 %v5350_v25, %v5110_v59  ;;  %v5810_v23 = vmul.f32 %v19013_v33, %v14714_v46  ;;  %v19016_v25 = vld [vmem:[#allocation150_spill] sm:$0xff]  ;;  %v19017_v46 = vld [vmem:[#allocation139_spill] sm:$0xff]  ;;  %v19020_v59 = vld [vmem:[#allocation133_spill] sm:$0xff] }
 0x42f   : > { %19012 = vst [vmem:[#allocation56_spill] sm:$0xff] %v15052_v44  ;;  %v15066_v29 = vpop.permute.xlu1 %5525  ;;  %v15068_v61 = vadd.f32 %v5353_v31, %v5113_v54  ;;  %v5114_v12 = vmul.f32 %v19016_v25, %v19015_v34  ;;  %v15082_v19 = vmul.f32 %v19016_v25, %v19017_v46  ;;  %v19018_v54 = vld [vmem:[#allocation75_spill] sm:$0xff] }
 0x430   : > { %v15072_v1 = vpop.permute.xlu0 %5531  ;;  %v19019_v31 = vld [vmem:[#allocation151_spill] sm:$0xff] }
 0x431   : > { %6225 = vperm.xlu1 %10374, %v5807_v0   ;;  %6240 = vperm.xlu0 %10373, %v5810_v23   ;;  %v5111_v33 = vmul.f32 %v19019_v31, %v19018_v54  ;;  %v15092_v45 = vmul.f32 %v19019_v31, %v19020_v59  ;;  %v19022_v31 = vld [vmem:[#allocation108_spill] sm:$0xff] }
 0x432   : > { %v19023_v6 = vsub.f32 %v14608_v11, %v19022_v31  ;;  %v19024_v11 = vld [vmem:[#allocation117_spill] sm:$0xff] }
 0x433   : > { %v5258_v36 = vpop.permute.xlu1 %5257 }
 0x434   : > { %v5354_v0 = vmul.f32 %v5258_v36, %v19017_v46  ;;  %v15088_v23 = vmul.f32 %v5258_v36, %v19015_v34  ;;  %v5252_v37 = vpop.permute.xlu0 %5251  ;;  %v19021_v36 = vsub.f32 %v14600_v40, %v14604_v7 }
 0x435   : > { %v5351_v56 = vmul.f32 %v5252_v37, %v19020_v59  ;;  %v15096_v28 = vmul.f32 %v5252_v37, %v19018_v54  ;;  %5957 = vperm.xlu1 %10374, %v5619_v2   ;;  %5972 = vperm.xlu0 %10373, %v5622_v30   ;;  %v5811_v59 = vmul.f32 %v19023_v6, %v14764_v8 }
 0x436   : > { %v15098_v25 = vadd.f32 %v5354_v0, %v5114_v12  ;;  %v5814_v34 = vmul.f32 %v19021_v36, %v14758_v9  ;;  %v5623_v12 = vmul.f32 %v14808_v53, %v14672_v22  ;;  %v5620_v2 = vmul.f32 %v14802_v60, %v14658_v39  ;;  %v19025_v9 = vld [vmem:[#allocation120_spill] sm:$0xff] }
 0x437   : > { %v15110_v44 = vadd.f32 %v5351_v56, %v5111_v33  ;;  %v15118_v40 = vpop.permute.xlu1 %5533  ;;  %v19026_v8 = vsub.f32 %v19024_v11, %v19025_v9  ;;  %v5624_v39 = vmul.f32 %v14846_v49, %v14702_v42  ;;  %v5621_v22 = vmul.f32 %v14852_v32, %v14716_v62  ;;  %v19031_v36 = vld [vmem:[#allocation20_spill] sm:$0xff] }
 0x438   : > { %v15120_v7 = vpop.permute.xlu0 %5527 }
 0x439   : > { %6245 = vperm.xlu1 %10374, %v5811_v59   ;;  %6260 = vperm.xlu0 %10373, %v5814_v34   ;;  %v5815_v6 = vmul.f32 %v19026_v8, %v14808_v53  ;;  %v19027_v59 = vld [vmem:[#allocation113_spill] sm:$0xff]  ;;  %v19028_v34 = vld [vmem:[#allocation114_spill] sm:$0xff]  ;;  %v5628_v8 = vmul.f32 %v14890_v52, %v14746_v47  ;;  %v5629_v47 = vmul.f32 %v14940_v14, %v14804_v13 }
 0x43a   : > { %v19029_v33 = vsub.f32 %v19027_v59, %v19028_v34  ;;  %v19030_v53 = vld [vmem:[#allocation121_spill] sm:$0xff]  ;;  %v19045_v13 = vld [vmem:[#allocation74_spill] sm:$0xff] }
 0x43b   : > { %v15134_v37 = vpop.permute.xlu1 %5541  ;;  %v19032_v31 = vsub.f32 %v19030_v53, %v19031_v36  ;;  %v19037_v59 = vld [vmem:[#allocation57_spill] sm:$0xff] }
 0x43c   : > { %v5812_v0 = vmul.f32 %v19029_v33, %v14802_v60  ;;  %v15136_v56 = vpop.permute.xlu0 %5535  ;;  %v19033_v60 = vld [vmem:[#allocation25_spill] sm:$0xff] }
 0x43d   : > { %5977 = vperm.xlu1 %10374, %v5623_v12   ;;  %5962 = vperm.xlu0 %10373, %v5620_v2   ;;  %v5816_v12 = vmul.f32 %v19032_v31, %v14846_v49  ;;  %v19034_v2 = vld [vmem:[#allocation124_spill] sm:$0xff]  ;;  %v19036_v49 = vld [vmem:[#allocation125_spill] sm:$0xff] }
 0x43e   : > { %v19035_v11 = vsub.f32 %v19033_v60, %v19034_v2  ;;  %v19038_v34 = vsub.f32 %v19036_v49, %v19037_v59  ;;  %v19043_v2 = vld [vmem:[#allocation51_spill] sm:$0xff] }
 0x43f   : > { %v15146_v42 = vpop.permute.xlu1 %5537 }
 0x440   : > { %v5813_v9 = vmul.f32 %v19035_v11, %v14852_v32  ;;  %v15148_v62 = vpop.permute.xlu0 %5543  ;;  %v5820_v33 = vmul.f32 %v19038_v34, %v14890_v52  ;;  %v19039_v32 = vld [vmem:[#allocation68_spill] sm:$0xff]  ;;  %v19042_v52 = vld [vmem:[#allocation39_spill] sm:$0xff]  ;;  %v19047_v34 = vld [vmem:[#allocation22_spill] sm:$0xff] }
 0x441   : > { %6265 = vperm.xlu1 %10374, %v5815_v6   ;;  %6250 = vperm.xlu0 %10373, %v5812_v0   ;;  %v5625_v6 = vmul.f32 %v14896_v26, %v14760_v51  ;;  %v19040_v0 = vld [vmem:[#allocation19_spill] sm:$0xff]  ;;  %v5626_v51 = vmul.f32 %v14934_v4, %v14790_v38  ;;  %v19057_v38 = vld [vmem:[#allocation90_spill] sm:$0xff] }
 0x443   : > { %v15162_v53 = vpop.permute.xlu1 %5545 }
 0x444   : > { %v15164_v36 = vpop.permute.xlu0 %5539 }
 0x445   : > { %5967 = vperm.xlu1 %10374, %v5621_v22   ;;  %5982 = vperm.xlu0 %10373, %v5624_v39   ;;  %v19041_v39 = vsub.f32 %v19039_v32, %v19040_v0 }
 0x447   : > { %v5817_v22 = vmul.f32 %v19041_v39, %v14896_v26 }
 0x449   : > { %6255 = vperm.xlu1 %10374, %v5813_v9   ;;  %6270 = vperm.xlu0 %10373, %v5816_v12  }
 0x44d   : > { %5987 = vperm.xlu1 %10374, %v5625_v6   ;;  %6002 = vperm.xlu0 %10373, %v5628_v8   ;;  %v19044_v8 = vld [vmem:[#allocation129_spill] sm:$0xff] }
 0x44e   : > { %v19046_v6 = vsub.f32 %v19044_v8, %v19045_v13 }
 0x450   : > { %v5821_v49 = vmul.f32 %v19046_v6, %v14940_v14  ;;  %v5630_v14 = vmul.f32 %v14978_v58, %v14834_v16  ;;  %v19054_v16 = vld [vmem:[#allocation88_spill] sm:$0xff] }
 0x451   : > { %6275 = vperm.xlu1 %10374, %v5817_v22   ;;  %6290 = vperm.xlu0 %10373, %v5820_v33   ;;  %v19048_v33 = vld [vmem:[#allocation128_spill] sm:$0xff] }
 0x452   : > { %v19049_v32 = vsub.f32 %v19047_v34, %v19048_v33  ;;  %v19055_v34 = vld [vmem:[#allocation10_spill] sm:$0xff] }
 0x453   : > { %v19056_v33 = vsub.f32 %v19054_v16, %v19055_v34 }
 0x454   : > { %v6126_v31 = vpop.permute.xlu1 %6125  ;;  %v5838_v12 = vpop.permute.xlu0 %5837  ;;  %v5818_v0 = vmul.f32 %v19049_v32, %v14934_v4 }
 0x455   : > { %v15171_v60 = vmul.f32 %v6126_v31, %v19042_v52  ;;  %v6699_v11 = vmul.f32 %v6126_v31, %v19043_v2  ;;  %v15175_v26 = vmul.f32 %v5838_v12, %v19043_v2  ;;  %v6747_v9 = vmul.f32 %v5838_v12, %v19042_v52  ;;  %6007 = vperm.xlu1 %10374, %v5629_v47   ;;  %v19050_v12 = vld [vmem:[#allocation35_spill] sm:$0xff] }
 0x456   : > { %5992 = vperm.xlu0 %10373, %v5626_v51   ;;  %v5627_v47 = vmul.f32 %v14984_v20, %v14848_v3  ;;  %v19052_v3 = vld [vmem:[#allocation152_spill] sm:$0xff]  ;;  %v5819_v32 = vmul.f32 %v19056_v33, %v14984_v20  ;;  %v19067_v33 = vld [vmem:[#allocation23_spill] sm:$0xff] }
 0x457   : > { %v15184_v59 = vadd.f32 %v6747_v9, %v6699_v11  ;;  %v19051_v9 = vld [vmem:[#allocation45_spill] sm:$0xff]  ;;  %v19053_v6 = vsub.f32 %v14818_v10, %v19052_v3  ;;  %v19060_v10 = vld [vmem:[#allocation55_spill] sm:$0xff] }
 0x458   : > { %v5843_v39 = vpop.permute.xlu1 %5842  ;;  %v5853_v22 = vpop.permute.xlu0 %5852 }
 0x459   : > { %6295 = vperm.xlu1 %10374, %v5821_v49   ;;  %v15195_v11 = vmul.f32 %v5853_v22, %v19050_v12  ;;  %v6750_v8 = vmul.f32 %v5853_v22, %v19051_v9  ;;  %v5822_v49 = vmul.f32 %v19053_v6, %v14978_v58  ;;  %v15215_v30 = vmul.f32 %v5843_v39, %v19057_v38 }
 0x45a   : > { %6280 = vperm.xlu0 %10373, %v5818_v0  }
 0x45c   : > { %v5858_v51 = vpop.permute.xlu1 %5857  ;;  %v6141_v31 = vpop.permute.xlu0 %6140 }
 0x45d   : > { %v15199_v13 = vmul.f32 %v6141_v31, %v19051_v9  ;;  %v6702_v4 = vmul.f32 %v6141_v31, %v19050_v12  ;;  %5997 = vperm.xlu1 %10374, %v5627_v47   ;;  %v19058_v47 = vld [vmem:[#allocation12_spill] sm:$0xff]  ;;  %v19059_v31 = vld [vmem:[#allocation79_spill] sm:$0xff]  ;;  %v6751_v58 = vmul.f32 %v5858_v51, %v19060_v10 }
 0x45e   : > { %6012 = vperm.xlu0 %10373, %v5630_v14   ;;  %v6748_v14 = vmul.f32 %v5843_v39, %v19058_v47  ;;  %v15219_v46 = vmul.f32 %v5858_v51, %v19059_v31  ;;  %v5631_v39 = vmul.f32 %v15028_v55, %v14892_v43  ;;  %v19061_v43 = vld [vmem:[#allocation132_spill] sm:$0xff] }
 0x45f   : > { %v15212_v22 = vadd.f32 %v6750_v8, %v6702_v4 }
 0x460   : > { %v6146_v3 = vpop.permute.xlu1 %6145  ;;  %v6131_v6 = vpop.permute.xlu0 %6130 }
 0x461   : > { %v15223_v16 = vmul.f32 %v6146_v3, %v19060_v10  ;;  %v6703_v20 = vmul.f32 %v6146_v3, %v19059_v31  ;;  %v15227_v8 = vmul.f32 %v6131_v6, %v19058_v47  ;;  %v6700_v4 = vmul.f32 %v6131_v6, %v19057_v38  ;;  %6285 = vperm.xlu1 %10374, %v5819_v32  }
 0x462   : > { %6300 = vperm.xlu0 %10373, %v5822_v49   ;;  %v5634_v3 = vmul.f32 %v15022_v27, %v14878_v5  ;;  %v19062_v49 = vld [vmem:[#allocation135_spill] sm:$0xff]  ;;  %v19069_v5 = vld [vmem:[#allocation42_spill] sm:$0xff] }
 0x463   : > { %v15234_v34 = vadd.f32 %v6751_v58, %v6703_v20  ;;  %v15238_v0 = vadd.f32 %v6748_v14, %v6700_v4  ;;  %v19063_v32 = vsub.f32 %v19061_v43, %v19062_v49  ;;  %v19064_v58 = vld [vmem:[#allocation78_spill] sm:$0xff]  ;;  %v19065_v20 = vld [vmem:[#allocation80_spill] sm:$0xff]  ;;  %v19068_v4 = vld [vmem:[#allocation61_spill] sm:$0xff] }
 0x464   : > { %v5848_v47 = vpop.permute.xlu1 %5847  ;;  %v5863_v6 = vpop.permute.xlu0 %5862  ;;  %v19066_v51 = vsub.f32 %v19064_v58, %v19065_v20  ;;  %v19081_v58 = vld [vmem:[#allocation81_spill] sm:$0xff] }
 0x465   : > { %6017 = vperm.xlu1 %10374, %v5631_v39   ;;  %v5826_v10 = vmul.f32 %v19063_v32, %v15022_v27  ;;  %v15251_v14 = vmul.f32 %v5848_v47, %v19067_v33  ;;  %v6749_v31 = vmul.f32 %v5848_v47, %v19068_v4  ;;  %v15255_v9 = vmul.f32 %v5863_v6, %v19069_v5  ;;  %v19070_v39 = vld [vmem:[#allocation69_spill] sm:$0xff] }
 0x466   : > { %6032 = vperm.xlu0 %10373, %v5634_v3   ;;  %v5823_v38 = vmul.f32 %v19066_v51, %v15028_v55  ;;  %v6752_v3 = vmul.f32 %v5863_v6, %v19070_v39  ;;  %v19071_v51 = vld [vmem:[#allocation94_spill] sm:$0xff] }
 0x467   : > { %v5635_v47 = vmul.f32 %v15072_v1, %v19071_v51 }
 0x468   : > { %v6136_v52 = vpop.permute.xlu1 %6135  ;;  %v6151_v12 = vpop.permute.xlu0 %6150 }
 0x469   : > { %v15259_v43 = vmul.f32 %v6136_v52, %v19068_v4  ;;  %v6701_v27 = vmul.f32 %v6136_v52, %v19067_v33  ;;  %v15263_v49 = vmul.f32 %v6151_v12, %v19070_v39  ;;  %v6704_v55 = vmul.f32 %v6151_v12, %v19069_v5  ;;  %6305 = vperm.xlu1 %10374, %v5823_v38   ;;  %v19074_v52 = vld [vmem:[#allocation83_spill] sm:$0xff]  ;;  %v19075_v38 = vld [vmem:[#allocation137_spill] sm:$0xff] }
 0x46a   : > { %6320 = vperm.xlu0 %10373, %v5826_v10   ;;  %v5632_v39 = vmul.f32 %v15066_v29, %v19074_v52  ;;  %v19076_v10 = vld [vmem:[#allocation138_spill] sm:$0xff]  ;;  %v19083_v52 = vld [vmem:[#allocation87_spill] sm:$0xff] }
 0x46b   : > { %v15270_v32 = vadd.f32 %v6749_v31, %v6701_v27  ;;  %v15274_v20 = vadd.f32 %v6752_v3, %v6704_v55  ;;  %v19077_v51 = vsub.f32 %v19075_v38, %v19076_v10  ;;  %v19078_v31 = vld [vmem:[#allocation153_spill] sm:$0xff]  ;;  %v19079_v27 = vld [vmem:[#allocation154_spill] sm:$0xff] }
 0x46c   : > { %v5868_v4 = vpop.permute.xlu1 %5867  ;;  %v5883_v12 = vpop.permute.xlu0 %5882  ;;  %v19080_v6 = vsub.f32 %v19078_v31, %v19079_v27  ;;  %v19082_v55 = vld [vmem:[#allocation66_spill] sm:$0xff] }
 0x46d   : > { %19072 = vst [vmem:[#allocation30_spill] sm:$0xff] %v15270_v32  ;;  %19073 = vst [vmem:[#allocation142_spill] sm:$0xff] %v15274_v20  ;;  %6037 = vperm.xlu1 %10374, %v5635_v47   ;;  %v5827_v5 = vmul.f32 %v19077_v51, %v15072_v1  ;;  %v15287_v3 = vmul.f32 %v5868_v4, %v19081_v58  ;;  %v6753_v2 = vmul.f32 %v5868_v4, %v19082_v55  ;;  %v19084_v47 = vld [vmem:[#allocation67_spill] sm:$0xff] }
 0x46e   : > { %6022 = vperm.xlu0 %10373, %v5632_v39   ;;  %v5824_v33 = vmul.f32 %v19080_v6, %v15066_v29  ;;  %v15291_v54 = vmul.f32 %v5883_v12, %v19083_v52  ;;  %v6756_v39 = vmul.f32 %v5883_v12, %v19084_v47  ;;  %v5633_v4 = vmul.f32 %v15120_v7, %v14980_v21  ;;  %v19089_v21 = vld [vmem:[#allocation155_spill] sm:$0xff] }
 0x46f   : > { %v19095_v51 = vld [vmem:[#allocation31_spill] sm:$0xff] }
 0x470   : > { %v6156_v20 = vpop.permute.xlu1 %6155  ;;  %v6171_v32 = vpop.permute.xlu0 %6170 }
 0x471   : > { %v15295_v38 = vmul.f32 %v6156_v20, %v19082_v55  ;;  %v6705_v1 = vmul.f32 %v6156_v20, %v19081_v58  ;;  %v15299_v10 = vmul.f32 %v6171_v32, %v19084_v47  ;;  %v6708_v29 = vmul.f32 %v6171_v32, %v19083_v52  ;;  %6325 = vperm.xlu1 %10374, %v5827_v5   ;;  %v19088_v20 = vld [vmem:[#allocation157_spill] sm:$0xff] }
 0x472   : > { %6310 = vperm.xlu0 %10373, %v5824_v33   ;;  %v5636_v27 = vmul.f32 %v15118_v40, %v19088_v20  ;;  %v19090_v33 = vld [vmem:[#allocation156_spill] sm:$0xff]  ;;  %v19097_v20 = vld [vmem:[#allocation73_spill] sm:$0xff] }
 0x473   : > { %19085 = vst [vmem:[#allocation143_spill] sm:$0xff] %v15299_v10  ;;  %v15306_v12 = vadd.f32 %v6753_v2, %v6705_v1  ;;  %v15310_v31 = vadd.f32 %v6756_v39, %v6708_v29  ;;  %v19091_v5 = vsub.f32 %v19089_v21, %v19090_v33  ;;  %v19092_v2 = vld [vmem:[#allocation140_spill] sm:$0xff]  ;;  %v19093_v1 = vld [vmem:[#allocation141_spill] sm:$0xff] }
 0x474   : > { %v5888_v47 = vpop.permute.xlu1 %5887  ;;  %v5873_v32 = vpop.permute.xlu0 %5872  ;;  %v19094_v6 = vsub.f32 %v19092_v2, %v19093_v1  ;;  %v19096_v29 = vld [vmem:[#allocation9_spill] sm:$0xff] }
 0x475   : > { %19086 = vst [vmem:[#allocation97_spill] sm:$0xff] %v15306_v12  ;;  %19087 = vst [vmem:[#allocation8_spill] sm:$0xff] %v15310_v31  ;;  %6027 = vperm.xlu1 %10374, %v5633_v4   ;;  %v5828_v55 = vmul.f32 %v19091_v5, %v15118_v40  ;;  %v15323_v39 = vmul.f32 %v5888_v47, %v19095_v51  ;;  %v6757_v58 = vmul.f32 %v5888_v47, %v19096_v29  ;;  %v19098_v4 = vld [vmem:[#allocation21_spill] sm:$0xff] }
 0x476   : > { %6042 = vperm.xlu0 %10373, %v5636_v27   ;;  %v5825_v52 = vmul.f32 %v19094_v6, %v15120_v7  ;;  %v15327_v31 = vmul.f32 %v5873_v32, %v19097_v20  ;;  %v6754_v27 = vmul.f32 %v5873_v32, %v19098_v4  ;;  %v5637_v47 = vmul.f32 %v15136_v56, %v15024_v50 }
 0x477   : > { %v19099_v50 = vsub.f32 %v14994_v35, %v15000_v63 }
 0x478   : > { %v6176_v12 = vpop.permute.xlu1 %6175  ;;  %v6161_v10 = vpop.permute.xlu0 %6160 }
 0x479   : > { %v15331_v21 = vmul.f32 %v6176_v12, %v19096_v29  ;;  %v6709_v40 = vmul.f32 %v6176_v12, %v19095_v51  ;;  %v15335_v33 = vmul.f32 %v6161_v10, %v19098_v4  ;;  %v6706_v7 = vmul.f32 %v6161_v10, %v19097_v20  ;;  %6315 = vperm.xlu1 %10374, %v5825_v52  }
 0x47a   : > { %6330 = vperm.xlu0 %10373, %v5828_v55   ;;  %v5640_v12 = vmul.f32 %v15134_v37, %v15010_v17  ;;  %v5832_v55 = vmul.f32 %v19099_v50, %v15134_v37  ;;  %v19103_v17 = vld [vmem:[#allocation15_spill] sm:$0xff]  ;;  %v5641_v37 = vmul.f32 %v15148_v62, %v15068_v61  ;;  %v19105_v61 = vsub.f32 %v15040_v41, %v15044_v48 }
 0x47b   : > { %v15342_v32 = vadd.f32 %v6757_v58, %v6709_v40  ;;  %v15346_v2 = vadd.f32 %v6754_v27, %v6706_v7  ;;  %v19100_v58 = vsub.f32 %v15004_v24, %v15008_v18  ;;  %v19101_v40 = vld [vmem:[#allocation86_spill] sm:$0xff]  ;;  %v19102_v7 = vld [vmem:[#allocation63_spill] sm:$0xff] }
 0x47c   : > { %v5878_v1 = vpop.permute.xlu1 %5877  ;;  %v5893_v10 = vpop.permute.xlu0 %5892 }
 0x47d   : > { %6047 = vperm.xlu1 %10374, %v5637_v47   ;;  %v5829_v52 = vmul.f32 %v19100_v58, %v15136_v56  ;;  %v15359_v27 = vmul.f32 %v5878_v1, %v19101_v40  ;;  %v6755_v5 = vmul.f32 %v5878_v1, %v19102_v7  ;;  %v15363_v6 = vmul.f32 %v5893_v10, %v19103_v17  ;;  %v19104_v47 = vld [vmem:[#allocation95_spill] sm:$0xff] }
 0x47e   : > { %6062 = vperm.xlu0 %10373, %v5640_v12   ;;  %v6758_v12 = vmul.f32 %v5893_v10, %v19104_v47  ;;  %v19108_v10 = vld [vmem:[#allocation62_spill] sm:$0xff] }
 0x480   : > { %v6166_v4 = vpop.permute.xlu1 %6165  ;;  %v6181_v29 = vpop.permute.xlu0 %6180 }
 0x481   : > { %v15367_v35 = vmul.f32 %v6166_v4, %v19102_v7  ;;  %v6707_v63 = vmul.f32 %v6166_v4, %v19101_v40  ;;  %v15371_v18 = vmul.f32 %v6181_v29, %v19104_v47  ;;  %v6710_v24 = vmul.f32 %v6181_v29, %v19103_v17  ;;  %6335 = vperm.xlu1 %10374, %v5829_v52  }
 0x482   : > { %6350 = vperm.xlu0 %10373, %v5832_v55   ;;  %v5638_v4 = vmul.f32 %v15146_v42, %v15054_v57  ;;  %v5830_v55 = vmul.f32 %v19105_v61, %v15146_v42  ;;  %v19110_v57 = vld [vmem:[#allocation33_spill] sm:$0xff] }
 0x483   : > { %v15378_v1 = vadd.f32 %v6755_v5, %v6707_v63  ;;  %v15382_v50 = vadd.f32 %v6758_v12, %v6710_v24  ;;  %v19106_v5 = vld [vmem:[#allocation56_spill] sm:$0xff]  ;;  %v19109_v24 = vld [vmem:[#allocation91_spill] sm:$0xff] }
 0x484   : > { %v5898_v58 = vpop.permute.xlu1 %5897  ;;  %v5913_v29 = vpop.permute.xlu0 %5912  ;;  %v19107_v52 = vsub.f32 %v15048_v15, %v19106_v5 }
 0x485   : > { %6067 = vperm.xlu1 %10374, %v5641_v37   ;;  %v15395_v12 = vmul.f32 %v5898_v58, %v19108_v10  ;;  %v6759_v56 = vmul.f32 %v5898_v58, %v19109_v24  ;;  %v15399_v47 = vmul.f32 %v5913_v29, %v19110_v57  ;;  %v19111_v37 = vld [vmem:[#allocation82_spill] sm:$0xff] }
 0x486   : > { %6052 = vperm.xlu0 %10373, %v5638_v4   ;;  %v5833_v63 = vmul.f32 %v19107_v52, %v15148_v62  ;;  %v6762_v4 = vmul.f32 %v5913_v29, %v19111_v37  ;;  %v5639_v62 = vmul.f32 %v15164_v36, %v15110_v44  ;;  %v19112_v44 = vsub.f32 %v15082_v19, %v15088_v23 }
 0x488   : > { %v6186_v7 = vpop.permute.xlu1 %6185  ;;  %v6201_v17 = vpop.permute.xlu0 %6200 }
 0x489   : > { %v15403_v41 = vmul.f32 %v6186_v7, %v19109_v24  ;;  %v6711_v48 = vmul.f32 %v6186_v7, %v19108_v10  ;;  %v15407_v15 = vmul.f32 %v6201_v17, %v19111_v37  ;;  %v6714_v42 = vmul.f32 %v6201_v17, %v19110_v57  ;;  %6355 = vperm.xlu1 %10374, %v5833_v63  }
 0x48a   : > { %6340 = vperm.xlu0 %10373, %v5830_v55   ;;  %v5642_v7 = vmul.f32 %v15162_v53, %v15098_v25  ;;  %v5834_v55 = vmul.f32 %v19112_v44, %v15162_v53  ;;  %v19116_v25 = vld [vmem:[#allocation14_spill] sm:$0xff] }
 0x48b   : > { %v15414_v29 = vadd.f32 %v6759_v56, %v6711_v48  ;;  %v15418_v5 = vadd.f32 %v6762_v4, %v6714_v42  ;;  %v19113_v56 = vsub.f32 %v15092_v45, %v15096_v28  ;;  %v19114_v48 = vld [vmem:[#allocation40_spill] sm:$0xff]  ;;  %v19115_v42 = vld [vmem:[#allocation50_spill] sm:$0xff] }
 0x48c   : > { %v5918_v52 = vpop.permute.xlu1 %5917  ;;  %v5903_v17 = vpop.permute.xlu0 %5902  ;;  %v19124_v53 = vld [vmem:[#allocation26_spill] sm:$0xff] }
 0x48d   : > { %6057 = vperm.xlu1 %10374, %v5639_v62   ;;  %v5831_v63 = vmul.f32 %v19113_v56, %v15164_v36  ;;  %v15431_v4 = vmul.f32 %v5918_v52, %v19114_v48  ;;  %v6763_v61 = vmul.f32 %v5918_v52, %v19115_v42  ;;  %v15435_v58 = vmul.f32 %v5903_v17, %v19116_v25  ;;  %v19117_v62 = vld [vmem:[#allocation77_spill] sm:$0xff] }
 0x48e   : > { %6072 = vperm.xlu0 %10373, %v5642_v7   ;;  %v6760_v7 = vmul.f32 %v5903_v17, %v19117_v62 }
 0x490   : > { %v6206_v37 = vpop.permute.xlu1 %6205  ;;  %v6191_v24 = vpop.permute.xlu0 %6190 }
 0x491   : > { %v15439_v19 = vmul.f32 %v6206_v37, %v19115_v42  ;;  %v6715_v23 = vmul.f32 %v6206_v37, %v19114_v48  ;;  %v15443_v28 = vmul.f32 %v6191_v24, %v19117_v62  ;;  %v6712_v45 = vmul.f32 %v6191_v24, %v19116_v25  ;;  %6345 = vperm.xlu1 %10374, %v5831_v63  }
 0x492   : > { %6360 = vperm.xlu0 %10373, %v5834_v55   ;;  %v19118_v37 = vsub.f32 %v15175_v26, %v15171_v60  ;;  %v19119_v24 = vsub.f32 %v15195_v11, %v15199_v13  ;;  %v19120_v55 = vmov 0  }
 0x493   : > { %v15448_v36 = vadd.f32 %v6763_v61, %v6715_v23  ;;  %v15452_v17 = vadd.f32 %v6760_v7, %v6712_v45  ;;  %v19121_v61 = vld [vmem:[#allocation34_spill] sm:$0xff]  ;;  %v19122_v7 = vld [vmem:[#allocation92_spill] sm:$0xff] }
 0x494   : > { %v5908_v44 = vpop.permute.xlu1 %5907  ;;  %v5923_v56 = vpop.permute.xlu0 %5922  ;;  %v19123_v45 = vld [vmem:[#allocation28_spill] sm:$0xff] }
 0x495   : > { %6507 = vrot.lane.b32.xlu1 %v19118_v37, %s10695_s10  ;;  %v15465_v63 = vmul.f32 %v5908_v44, %v19121_v61  ;;  %v6761_v23 = vmul.f32 %v5908_v44, %v19122_v7  ;;  %v15469_v52 = vmul.f32 %v5923_v56, %v19123_v45  ;;  %v6764_v60 = vmul.f32 %v5923_v56, %v19124_v53 }
 0x496   : > { %6513 = vrot.lane.b32.xlu0 %v19119_v24, %s10695_s10  ;;  %10375 = vset.pattern.permute.xlu1 %v19120_v55 }
 0x497   : > { %10376 = vset.pattern.permute.xlu0 %v19120_v55  ;;  %v19129_v55 = vld [vmem:[#allocation64_spill] sm:$0xff] }
 0x498   : > { %v6196_v26 = vpop.permute.xlu1 %6195  ;;  %v6211_v37 = vpop.permute.xlu0 %6210 }
 0x499   : > { %v15473_v62 = vmul.f32 %v6196_v26, %v19122_v7  ;;  %v6713_v11 = vmul.f32 %v6196_v26, %v19121_v61  ;;  %v15477_v13 = vmul.f32 %v6211_v37, %v19124_v53  ;;  %v6716_v24 = vmul.f32 %v6211_v37, %v19123_v45  ;;  %6891 = vrot.lane.b32.xlu1 %v15184_v59, %s10695_s10 }
 0x49a   : > { %6897 = vrot.lane.b32.xlu0 %v15212_v22, %s10695_s10  ;;  %v19125_v37 = vsub.f32 %v15219_v46, %v15223_v16  ;;  %v19126_v59 = vsub.f32 %v15215_v30, %v15227_v8  ;;  %v19127_v22 = vld [vmem:[#allocation7_spill] sm:$0xff] }
 0x49b   : > { %v15486_v56 = vadd.f32 %v6761_v23, %v6713_v11  ;;  %v15490_v26 = vadd.f32 %v6764_v60, %v6716_v24  ;;  %v19128_v11 = vld [vmem:[#allocation24_spill] sm:$0xff] }
 0x49c   : > { %v5928_v53 = vpop.permute.xlu1 %5927  ;;  %v5943_v7 = vpop.permute.xlu0 %5942  ;;  %v19130_v24 = vld [vmem:[#allocation100_spill] sm:$0xff] }
 0x49d   : > { %6515 = vrot.lane.b32.xlu1 %v19125_v37, %s10695_s10  ;;  %v15501_v23 = vmul.f32 %v5928_v53, %v19127_v22  ;;  %v6765_v44 = vmul.f32 %v5928_v53, %v19128_v11  ;;  %v15505_v60 = vmul.f32 %v5943_v7, %v19129_v55  ;;  %v6768_v45 = vmul.f32 %v5943_v7, %v19130_v24  ;;  %v19135_v37 = vld [vmem:[#allocation71_spill] sm:$0xff] }
 0x49e   : > { %6509 = vrot.lane.b32.xlu0 %v19126_v59, %s10695_s10 }
 0x4a0   : > { %v6216_v61 = vpop.permute.xlu1 %6215  ;;  %v6231_v42 = vpop.permute.xlu0 %6230 }
 0x4a1   : > { %v15509_v46 = vmul.f32 %v6216_v61, %v19128_v11  ;;  %v6717_v16 = vmul.f32 %v6216_v61, %v19127_v22  ;;  %v15513_v30 = vmul.f32 %v6231_v42, %v19130_v24  ;;  %v6720_v8 = vmul.f32 %v6231_v42, %v19129_v55  ;;  %6899 = vrot.lane.b32.xlu1 %v15234_v34, %s10695_s10  ;;  %v19133_v34 = vld [vmem:[#allocation84_spill] sm:$0xff] }
 0x4a2   : > { %6893 = vrot.lane.b32.xlu0 %v15238_v0, %s10695_s10  ;;  %v19131_v42 = vsub.f32 %v15251_v14, %v15259_v43  ;;  %v19132_v0 = vsub.f32 %v15255_v9, %v15263_v49 }
 0x4a3   : > { %v15522_v7 = vadd.f32 %v6765_v44, %v6717_v16  ;;  %v15526_v61 = vadd.f32 %v6768_v45, %v6720_v8  ;;  %v19134_v16 = vld [vmem:[#allocation85_spill] sm:$0xff]  ;;  %v19136_v8 = vld [vmem:[#allocation70_spill] sm:$0xff] }
 0x4a4   : > { %v5948_v59 = vpop.permute.xlu1 %5947  ;;  %v5933_v24 = vpop.permute.xlu0 %5932 }
 0x4a5   : > { %6511 = vrot.lane.b32.xlu1 %v19131_v42, %s10695_s10  ;;  %v15537_v44 = vmul.f32 %v5948_v59, %v19133_v34  ;;  %v6769_v53 = vmul.f32 %v5948_v59, %v19134_v16  ;;  %v15541_v45 = vmul.f32 %v5933_v24, %v19135_v37  ;;  %v6766_v11 = vmul.f32 %v5933_v24, %v19136_v8  ;;  %v19137_v42 = vld [vmem:[#allocation30_spill] sm:$0xff]  ;;  %v19142_v24 = vld [vmem:[#allocation49_spill] sm:$0xff] }
 0x4a6   : > { %6517 = vrot.lane.b32.xlu0 %v19132_v0, %s10695_s10  ;;  %v19138_v59 = vld [vmem:[#allocation142_spill] sm:$0xff] }
 0x4a8   : > { %v6236_v55 = vpop.permute.xlu1 %6235  ;;  %v6221_v22 = vpop.permute.xlu0 %6220 }
 0x4a9   : > { %v15545_v14 = vmul.f32 %v6236_v55, %v19134_v16  ;;  %v6721_v43 = vmul.f32 %v6236_v55, %v19133_v34  ;;  %v15549_v9 = vmul.f32 %v6221_v22, %v19136_v8  ;;  %v6718_v49 = vmul.f32 %v6221_v22, %v19135_v37  ;;  %6895 = vrot.lane.b32.xlu1 %v19137_v42, %s10695_s10  ;;  %v19140_v42 = vld [vmem:[#allocation143_spill] sm:$0xff]  ;;  %v19144_v16 = vld [vmem:[#allocation93_spill] sm:$0xff] }
 0x4aa   : > { %6901 = vrot.lane.b32.xlu0 %v19138_v59, %s10695_s10  ;;  %v19139_v22 = vsub.f32 %v15287_v3, %v15295_v38  ;;  %v19141_v59 = vsub.f32 %v15291_v54, %v19140_v42  ;;  %v19146_v42 = vld [vmem:[#allocation97_spill] sm:$0xff] }
 0x4ab   : > { %v15558_v0 = vadd.f32 %v6769_v53, %v6721_v43  ;;  %v15562_v55 = vadd.f32 %v6766_v11, %v6718_v49  ;;  %v19143_v43 = vld [vmem:[#allocation47_spill] sm:$0xff]  ;;  %v19145_v49 = vld [vmem:[#allocation29_spill] sm:$0xff] }
 0x4ac   : > { %v5938_v8 = vpop.permute.xlu1 %5937  ;;  %v5953_v34 = vpop.permute.xlu0 %5952 }
 0x4ad   : > { %6519 = vrot.lane.b32.xlu1 %v19139_v22, %s10695_s10  ;;  %v15573_v53 = vmul.f32 %v5938_v8, %v19142_v24  ;;  %v6767_v37 = vmul.f32 %v5938_v8, %v19143_v43  ;;  %v15577_v11 = vmul.f32 %v5953_v34, %v19144_v16  ;;  %v6770_v25 = vmul.f32 %v5953_v34, %v19145_v49  ;;  %v19147_v8 = vld [vmem:[#allocation8_spill] sm:$0xff] }
 0x4ae   : > { %6525 = vrot.lane.b32.xlu0 %v19141_v59, %s10695_s10 }
 0x4b0   : > { %v6226_v48 = vpop.permute.xlu1 %6225  ;;  %v6241_v57 = vpop.permute.xlu0 %6240 }
 0x4b1   : > { %v15581_v3 = vmul.f32 %v6226_v48, %v19143_v43  ;;  %v6719_v38 = vmul.f32 %v6226_v48, %v19142_v24  ;;  %v15585_v54 = vmul.f32 %v6241_v57, %v19145_v49  ;;  %v6722_v22 = vmul.f32 %v6241_v57, %v19144_v16  ;;  %6903 = vrot.lane.b32.xlu1 %v19146_v42, %s10695_s10  ;;  %v19152_v43 = vld [vmem:[#allocation3_spill] sm:$0xff] }
 0x4b2   : > { %6909 = vrot.lane.b32.xlu0 %v19147_v8, %s10695_s10  ;;  %v19148_v57 = vsub.f32 %v15323_v39, %v15331_v21  ;;  %v19149_v42 = vsub.f32 %v15327_v31, %v15335_v33  ;;  %v19150_v8 = vld [vmem:[#allocation36_spill] sm:$0xff] }
 0x4b3   : > { %v15594_v59 = vadd.f32 %v6767_v37, %v6719_v38  ;;  %v15598_v48 = vadd.f32 %v6770_v25, %v6722_v22  ;;  %v19151_v38 = vld [vmem:[#allocation101_spill] sm:$0xff]  ;;  %v19153_v22 = vld [vmem:[#allocation104_spill] sm:$0xff] }
 0x4b4   : > { %v5958_v49 = vpop.permute.xlu1 %5957  ;;  %v5973_v24 = vpop.permute.xlu0 %5972 }
 0x4b5   : > { %6527 = vrot.lane.b32.xlu1 %v19148_v57, %s10695_s10  ;;  %v15609_v37 = vmul.f32 %v5958_v49, %v19150_v8  ;;  %v6771_v34 = vmul.f32 %v5958_v49, %v19151_v38  ;;  %v15613_v25 = vmul.f32 %v5973_v24, %v19152_v43  ;;  %v6774_v16 = vmul.f32 %v5973_v24, %v19153_v22  ;;  %v19158_v57 = vld [vmem:[#allocation96_spill] sm:$0xff] }
 0x4b6   : > { %6521 = vrot.lane.b32.xlu0 %v19149_v42, %s10695_s10 }
 0x4b8   : > { %v6246_v10 = vpop.permute.xlu1 %6245  ;;  %v6261_v40 = vpop.permute.xlu0 %6260 }
 0x4b9   : > { %v15617_v39 = vmul.f32 %v6246_v10, %v19151_v38  ;;  %v6723_v21 = vmul.f32 %v6246_v10, %v19150_v8  ;;  %v15621_v31 = vmul.f32 %v6261_v40, %v19153_v22  ;;  %v6726_v33 = vmul.f32 %v6261_v40, %v19152_v43  ;;  %6911 = vrot.lane.b32.xlu1 %v15342_v32, %s10695_s10 }
 0x4ba   : > { %6905 = vrot.lane.b32.xlu0 %v15346_v2, %s10695_s10  ;;  %v19154_v40 = vsub.f32 %v15359_v27, %v15367_v35  ;;  %v19155_v32 = vsub.f32 %v15363_v6, %v15371_v18  ;;  %v19156_v2 = vld [vmem:[#allocation4_spill] sm:$0xff] }
 0x4bb   : > { %v15630_v49 = vadd.f32 %v6771_v34, %v6723_v21  ;;  %v15634_v10 = vadd.f32 %v6774_v16, %v6726_v33  ;;  %v19157_v21 = vld [vmem:[#allocation105_spill] sm:$0xff] }
 0x4bc   : > { %v5978_v42 = vpop.permute.xlu1 %5977  ;;  %v5963_v22 = vpop.permute.xlu0 %5962  ;;  %v19159_v33 = vld [vmem:[#allocation89_spill] sm:$0xff] }
 0x4bd   : > { %6523 = vrot.lane.b32.xlu1 %v19154_v40, %s10695_s10  ;;  %v15645_v34 = vmul.f32 %v5978_v42, %v19156_v2  ;;  %v6775_v24 = vmul.f32 %v5978_v42, %v19157_v21  ;;  %v15649_v16 = vmul.f32 %v5963_v22, %v19158_v57  ;;  %v6772_v38 = vmul.f32 %v5963_v22, %v19159_v33  ;;  %v19164_v40 = vld [vmem:[#allocation41_spill] sm:$0xff] }
 0x4be   : > { %6529 = vrot.lane.b32.xlu0 %v19155_v32, %s10695_s10 }
 0x4c0   : > { %v6266_v43 = vpop.permute.xlu1 %6265  ;;  %v6251_v8 = vpop.permute.xlu0 %6250 }
 0x4c1   : > { %v15653_v27 = vmul.f32 %v6266_v43, %v19157_v21  ;;  %v6727_v35 = vmul.f32 %v6266_v43, %v19156_v2  ;;  %v15657_v6 = vmul.f32 %v6251_v8, %v19159_v33  ;;  %v6724_v18 = vmul.f32 %v6251_v8, %v19158_v57  ;;  %6907 = vrot.lane.b32.xlu1 %v15378_v1, %s10695_s10 }
 0x4c2   : > { %6913 = vrot.lane.b32.xlu0 %v15382_v50, %s10695_s10  ;;  %v19160_v8 = vsub.f32 %v15395_v12, %v15403_v41  ;;  %v19161_v1 = vsub.f32 %v15399_v47, %v15407_v15  ;;  %v19162_v50 = vld [vmem:[#allocation44_spill] sm:$0xff] }
 0x4c3   : > { %v15666_v42 = vadd.f32 %v6775_v24, %v6727_v35  ;;  %v15670_v43 = vadd.f32 %v6772_v38, %v6724_v18  ;;  %v19163_v35 = vld [vmem:[#allocation103_spill] sm:$0xff]  ;;  %v19165_v18 = vld [vmem:[#allocation109_spill] sm:$0xff] }
 0x4c4   : > { %v5968_v32 = vpop.permute.xlu1 %5967  ;;  %v5983_v33 = vpop.permute.xlu0 %5982 }
 0x4c5   : > { %6531 = vrot.lane.b32.xlu1 %v19160_v8, %s10695_s10  ;;  %v15681_v24 = vmul.f32 %v5968_v32, %v19162_v50  ;;  %v6773_v22 = vmul.f32 %v5968_v32, %v19163_v35  ;;  %v15685_v38 = vmul.f32 %v5983_v33, %v19164_v40  ;;  %v6776_v21 = vmul.f32 %v5983_v33, %v19165_v18  ;;  %v19170_v8 = vld [vmem:[#allocation6_spill] sm:$0xff] }
 0x4c6   : > { %6537 = vrot.lane.b32.xlu0 %v19161_v1, %s10695_s10 }
 0x4c8   : > { %v6256_v57 = vpop.permute.xlu1 %6255  ;;  %v6271_v2 = vpop.permute.xlu0 %6270 }
 0x4c9   : > { %v15689_v12 = vmul.f32 %v6256_v57, %v19163_v35  ;;  %v6725_v41 = vmul.f32 %v6256_v57, %v19162_v50  ;;  %v15693_v47 = vmul.f32 %v6271_v2, %v19165_v18  ;;  %v6728_v15 = vmul.f32 %v6271_v2, %v19164_v40  ;;  %6915 = vrot.lane.b32.xlu1 %v15414_v29, %s10695_s10 }
 0x4ca   : > { %6921 = vrot.lane.b32.xlu0 %v15418_v5, %s10695_s10  ;;  %v19166_v2 = vsub.f32 %v15431_v4, %v15439_v19  ;;  %v19167_v29 = vsub.f32 %v15435_v58, %v15443_v28  ;;  %v19168_v5 = vld [vmem:[#allocation5_spill] sm:$0xff] }
 0x4cb   : > { %v15702_v32 = vadd.f32 %v6773_v22, %v6725_v41  ;;  %v15706_v57 = vadd.f32 %v6776_v21, %v6728_v15  ;;  %v19169_v41 = vld [vmem:[#allocation106_spill] sm:$0xff]  ;;  %v19171_v15 = vld [vmem:[#allocation112_spill] sm:$0xff] }
 0x4cc   : > { %v5988_v1 = vpop.permute.xlu1 %5987  ;;  %v6003_v18 = vpop.permute.xlu0 %6002 }
 0x4cd   : > { %6539 = vrot.lane.b32.xlu1 %v19166_v2, %s10695_s10  ;;  %v15717_v22 = vmul.f32 %v5988_v1, %v19168_v5  ;;  %v6777_v33 = vmul.f32 %v5988_v1, %v19169_v41  ;;  %v15721_v21 = vmul.f32 %v6003_v18, %v19170_v8  ;;  %v6780_v35 = vmul.f32 %v6003_v18, %v19171_v15  ;;  %v19175_v18 = vld [vmem:[#allocation115_spill] sm:$0xff] }
 0x4ce   : > { %6533 = vrot.lane.b32.xlu0 %v19167_v29, %s10695_s10 }
 0x4d0   : > { %v6276_v40 = vpop.permute.xlu1 %6275  ;;  %v6291_v50 = vpop.permute.xlu0 %6290 }
 0x4d1   : > { %v15725_v4 = vmul.f32 %v6276_v40, %v19169_v41  ;;  %v6729_v19 = vmul.f32 %v6276_v40, %v19168_v5  ;;  %v15729_v58 = vmul.f32 %v6291_v50, %v19171_v15  ;;  %v6732_v28 = vmul.f32 %v6291_v50, %v19170_v8  ;;  %6923 = vrot.lane.b32.xlu1 %v15448_v36, %s10695_s10  ;;  %v19225_v8 = vld [vmem:[#allocation45_spill] sm:$0xff] }
 0x4d2   : > { %6917 = vrot.lane.b32.xlu0 %v15452_v17, %s10695_s10  ;;  %v19172_v50 = vsub.f32 %v15465_v63, %v15473_v62  ;;  %v19173_v36 = vsub.f32 %v15469_v52, %v15477_v13  ;;  %v19176_v62 = vld [vmem:[#allocation48_spill] sm:$0xff]  ;;  %v19177_v52 = vld [vmem:[#allocation110_spill] sm:$0xff] }
 0x4d3   : > { %v15738_v1 = vadd.f32 %v6777_v33, %v6729_v19  ;;  %v15742_v40 = vadd.f32 %v6780_v35, %v6732_v28  ;;  %v19174_v33 = vld [vmem:[#allocation59_spill] sm:$0xff] }
 0x4d4   : > { %v6008_v29 = vpop.permute.xlu1 %6007 }
 0x4d5   : > { %v5993_v15 = vpop.permute.xlu0 %5992  ;;  %6535 = vrot.lane.b32.xlu1 %v19172_v50, %s10695_s10  ;;  %v15753_v19 = vmul.f32 %v6008_v29, %v19174_v33  ;;  %v6781_v2 = vmul.f32 %v6008_v29, %v19175_v18  ;;  %v19181_v29 = vld [vmem:[#allocation111_spill] sm:$0xff] }
 0x4d6   : > { %6541 = vrot.lane.b32.xlu0 %v19173_v36, %s10695_s10  ;;  %v15763_v63 = vmul.f32 %v5993_v15, %v19176_v62  ;;  %v6778_v13 = vmul.f32 %v5993_v15, %v19177_v52 }
 0x4d8   : > { %v6296_v17 = vpop.permute.xlu1 %6295 }
 0x4d9   : > { %v15757_v35 = vmul.f32 %v6296_v17, %v19175_v18  ;;  %v6733_v28 = vmul.f32 %v6296_v17, %v19174_v33  ;;  %v6281_v41 = vpop.permute.xlu0 %6280  ;;  %6919 = vrot.lane.b32.xlu1 %v15486_v56, %s10695_s10 }
 0x4da   : > { %v15767_v50 = vmul.f32 %v6281_v41, %v19177_v52  ;;  %v6730_v36 = vmul.f32 %v6281_v41, %v19176_v62  ;;  %6925 = vrot.lane.b32.xlu0 %v15490_v26, %s10695_s10  ;;  %v19178_v52 = vsub.f32 %v15501_v23, %v15509_v46  ;;  %v19179_v26 = vsub.f32 %v15505_v60, %v15513_v30  ;;  %v19182_v23 = vld [vmem:[#allocation11_spill] sm:$0xff]  ;;  %v19183_v60 = vld [vmem:[#allocation118_spill] sm:$0xff] }
 0x4db   : > { %v15774_v17 = vadd.f32 %v6781_v2, %v6733_v28  ;;  %v19180_v2 = vld [vmem:[#allocation13_spill] sm:$0xff] }
 0x4dc   : > { %v15778_v18 = vadd.f32 %v6778_v13, %v6730_v36  ;;  %v5998_v33 = vpop.permute.xlu1 %5997 }
 0x4dd   : > { %v6013_v15 = vpop.permute.xlu0 %6012  ;;  %6543 = vrot.lane.b32.xlu1 %v19178_v52, %s10695_s10  ;;  %v15789_v28 = vmul.f32 %v5998_v33, %v19180_v2  ;;  %v6779_v56 = vmul.f32 %v5998_v33, %v19181_v29  ;;  %v19187_v33 = vld [vmem:[#allocation116_spill] sm:$0xff] }
 0x4de   : > { %6549 = vrot.lane.b32.xlu0 %v19179_v26, %s10695_s10  ;;  %v15799_v46 = vmul.f32 %v6013_v15, %v19182_v23  ;;  %v6782_v30 = vmul.f32 %v6013_v15, %v19183_v60 }
 0x4e0   : > { %v6286_v41 = vpop.permute.xlu1 %6285 }
 0x4e1   : > { %v15793_v13 = vmul.f32 %v6286_v41, %v19181_v29  ;;  %v6731_v36 = vmul.f32 %v6286_v41, %v19180_v2  ;;  %v6301_v62 = vpop.permute.xlu0 %6300  ;;  %6927 = vrot.lane.b32.xlu1 %v15522_v7, %s10695_s10 }
 0x4e2   : > { %v15803_v52 = vmul.f32 %v6301_v62, %v19183_v60  ;;  %v6734_v26 = vmul.f32 %v6301_v62, %v19182_v23  ;;  %6933 = vrot.lane.b32.xlu0 %v15526_v61, %s10695_s10  ;;  %v19184_v60 = vsub.f32 %v15537_v44, %v15545_v14  ;;  %v19185_v61 = vsub.f32 %v15541_v45, %v15549_v9  ;;  %v19188_v44 = vld [vmem:[#allocation54_spill] sm:$0xff]  ;;  %v19189_v45 = vld [vmem:[#allocation123_spill] sm:$0xff] }
 0x4e3   : > { %v15810_v41 = vadd.f32 %v6779_v56, %v6731_v36  ;;  %v19186_v56 = vld [vmem:[#allocation17_spill] sm:$0xff] }
 0x4e4   : > { %v15814_v29 = vadd.f32 %v6782_v30, %v6734_v26  ;;  %v6018_v2 = vpop.permute.xlu1 %6017 }
 0x4e5   : > { %v6033_v15 = vpop.permute.xlu0 %6032  ;;  %6551 = vrot.lane.b32.xlu1 %v19184_v60, %s10695_s10  ;;  %v15825_v36 = vmul.f32 %v6018_v2, %v19186_v56  ;;  %v6783_v7 = vmul.f32 %v6018_v2, %v19187_v33  ;;  %v19193_v2 = vld [vmem:[#allocation126_spill] sm:$0xff] }
 0x4e6   : > { %6545 = vrot.lane.b32.xlu0 %v19185_v61, %s10695_s10  ;;  %v15835_v14 = vmul.f32 %v6033_v15, %v19188_v44  ;;  %v6786_v9 = vmul.f32 %v6033_v15, %v19189_v45 }
 0x4e8   : > { %v6306_v62 = vpop.permute.xlu1 %6305 }
 0x4e9   : > { %v15829_v30 = vmul.f32 %v6306_v62, %v19187_v33  ;;  %v6735_v26 = vmul.f32 %v6306_v62, %v19186_v56  ;;  %v6321_v23 = vpop.permute.xlu0 %6320  ;;  %6935 = vrot.lane.b32.xlu1 %v15558_v0, %s10695_s10 }
 0x4ea   : > { %v15839_v60 = vmul.f32 %v6321_v23, %v19189_v45  ;;  %v6738_v61 = vmul.f32 %v6321_v23, %v19188_v44  ;;  %6929 = vrot.lane.b32.xlu0 %v15562_v55, %s10695_s10  ;;  %v19190_v45 = vsub.f32 %v15573_v53, %v15581_v3  ;;  %v19191_v55 = vsub.f32 %v15577_v11, %v15585_v54  ;;  %v19194_v53 = vld [vmem:[#allocation18_spill] sm:$0xff]  ;;  %v19195_v11 = vld [vmem:[#allocation119_spill] sm:$0xff] }
 0x4eb   : > { %v15846_v62 = vadd.f32 %v6783_v7, %v6735_v26  ;;  %v19192_v7 = vld [vmem:[#allocation58_spill] sm:$0xff] }
 0x4ec   : > { %v15850_v33 = vadd.f32 %v6786_v9, %v6738_v61  ;;  %v6038_v56 = vpop.permute.xlu1 %6037 }
 0x4ed   : > { %v6023_v15 = vpop.permute.xlu0 %6022  ;;  %6547 = vrot.lane.b32.xlu1 %v19190_v45, %s10695_s10  ;;  %v15861_v26 = vmul.f32 %v6038_v56, %v19192_v7  ;;  %v6787_v0 = vmul.f32 %v6038_v56, %v19193_v2  ;;  %v19199_v56 = vld [vmem:[#allocation122_spill] sm:$0xff] }
 0x4ee   : > { %6553 = vrot.lane.b32.xlu0 %v19191_v55, %s10695_s10  ;;  %v15871_v3 = vmul.f32 %v6023_v15, %v19194_v53  ;;  %v6784_v54 = vmul.f32 %v6023_v15, %v19195_v11 }
 0x4f0   : > { %v6326_v23 = vpop.permute.xlu1 %6325 }
 0x4f1   : > { %v15865_v9 = vmul.f32 %v6326_v23, %v19193_v2  ;;  %v6739_v61 = vmul.f32 %v6326_v23, %v19192_v7  ;;  %v6311_v44 = vpop.permute.xlu0 %6310  ;;  %6931 = vrot.lane.b32.xlu1 %v15594_v59, %s10695_s10 }
 0x4f2   : > { %v15875_v45 = vmul.f32 %v6311_v44, %v19195_v11  ;;  %v6736_v55 = vmul.f32 %v6311_v44, %v19194_v53  ;;  %6937 = vrot.lane.b32.xlu0 %v15598_v48, %s10695_s10  ;;  %v19196_v11 = vsub.f32 %v15609_v37, %v15617_v39  ;;  %v19197_v48 = vsub.f32 %v15613_v25, %v15621_v31  ;;  %v19200_v37 = vld [vmem:[#allocation32_spill] sm:$0xff]  ;;  %v19201_v25 = vld [vmem:[#allocation130_spill] sm:$0xff] }
 0x4f3   : > { %v15882_v23 = vadd.f32 %v6787_v0, %v6739_v61  ;;  %v19198_v0 = vld [vmem:[#allocation52_spill] sm:$0xff] }
 0x4f4   : > { %v15886_v2 = vadd.f32 %v6784_v54, %v6736_v55  ;;  %v6028_v7 = vpop.permute.xlu1 %6027 }
 0x4f5   : > { %v6043_v15 = vpop.permute.xlu0 %6042  ;;  %6555 = vrot.lane.b32.xlu1 %v19196_v11, %s10695_s10  ;;  %v15897_v61 = vmul.f32 %v6028_v7, %v19198_v0  ;;  %v6785_v59 = vmul.f32 %v6028_v7, %v19199_v56  ;;  %v19205_v7 = vld [vmem:[#allocation127_spill] sm:$0xff] }
 0x4f6   : > { %6561 = vrot.lane.b32.xlu0 %v19197_v48, %s10695_s10  ;;  %v15907_v39 = vmul.f32 %v6043_v15, %v19200_v37  ;;  %v6788_v31 = vmul.f32 %v6043_v15, %v19201_v25 }
 0x4f8   : > { %v6316_v44 = vpop.permute.xlu1 %6315 }
 0x4f9   : > { %v15901_v54 = vmul.f32 %v6316_v44, %v19199_v56  ;;  %v6737_v55 = vmul.f32 %v6316_v44, %v19198_v0  ;;  %v6331_v53 = vpop.permute.xlu0 %6330  ;;  %6939 = vrot.lane.b32.xlu1 %v15630_v49, %s10695_s10 }
 0x4fa   : > { %v15911_v11 = vmul.f32 %v6331_v53, %v19201_v25  ;;  %v6740_v48 = vmul.f32 %v6331_v53, %v19200_v37  ;;  %6945 = vrot.lane.b32.xlu0 %v15634_v10, %s10695_s10  ;;  %v19202_v25 = vsub.f32 %v15645_v34, %v15653_v27  ;;  %v19203_v10 = vsub.f32 %v15649_v16, %v15657_v6  ;;  %v19206_v34 = vld [vmem:[#allocation38_spill] sm:$0xff] }
 0x4fb   : > { %v15918_v44 = vadd.f32 %v6785_v59, %v6737_v55  ;;  %v19204_v59 = vld [vmem:[#allocation72_spill] sm:$0xff]  ;;  %v19207_v16 = vld [vmem:[#allocation134_spill] sm:$0xff] }
 0x4fc   : > { %v15922_v56 = vadd.f32 %v6788_v31, %v6740_v48  ;;  %v6048_v0 = vpop.permute.xlu1 %6047 }
 0x4fd   : > { %v6063_v15 = vpop.permute.xlu0 %6062  ;;  %6563 = vrot.lane.b32.xlu1 %v19202_v25, %s10695_s10  ;;  %v15933_v55 = vmul.f32 %v6048_v0, %v19204_v59  ;;  %v6789_v49 = vmul.f32 %v6048_v0, %v19205_v7  ;;  %v19211_v0 = vld [vmem:[#allocation136_spill] sm:$0xff] }
 0x4fe   : > { %6557 = vrot.lane.b32.xlu0 %v19203_v10, %s10695_s10  ;;  %v15943_v27 = vmul.f32 %v6063_v15, %v19206_v34  ;;  %v6792_v6 = vmul.f32 %v6063_v15, %v19207_v16 }
 0x500   : > { %v6336_v53 = vpop.permute.xlu1 %6335 }
 0x501   : > { %v15937_v31 = vmul.f32 %v6336_v53, %v19205_v7  ;;  %v6741_v48 = vmul.f32 %v6336_v53, %v19204_v59  ;;  %v6351_v37 = vpop.permute.xlu0 %6350  ;;  %6947 = vrot.lane.b32.xlu1 %v15666_v42, %s10695_s10 }
 0x502   : > { %v15947_v25 = vmul.f32 %v6351_v37, %v19207_v16  ;;  %v6744_v10 = vmul.f32 %v6351_v37, %v19206_v34  ;;  %6941 = vrot.lane.b32.xlu0 %v15670_v43, %s10695_s10  ;;  %v19208_v16 = vsub.f32 %v15681_v24, %v15689_v12  ;;  %v19209_v43 = vsub.f32 %v15685_v38, %v15693_v47  ;;  %v19212_v24 = vld [vmem:[#allocation53_spill] sm:$0xff]  ;;  %v19213_v38 = vld [vmem:[#allocation131_spill] sm:$0xff] }
 0x503   : > { %v15954_v53 = vadd.f32 %v6789_v49, %v6741_v48  ;;  %v19210_v49 = vld [vmem:[#allocation46_spill] sm:$0xff] }
 0x504   : > { %v15958_v7 = vadd.f32 %v6792_v6, %v6744_v10  ;;  %v6068_v59 = vpop.permute.xlu1 %6067 }
 0x505   : > { %v6053_v15 = vpop.permute.xlu0 %6052  ;;  %6559 = vrot.lane.b32.xlu1 %v19208_v16, %s10695_s10  ;;  %v15969_v48 = vmul.f32 %v6068_v59, %v19210_v49  ;;  %v6793_v42 = vmul.f32 %v6068_v59, %v19211_v0  ;;  %v19217_v59 = vld [vmem:[#allocation133_spill] sm:$0xff] }
 0x506   : > { %6565 = vrot.lane.b32.xlu0 %v19209_v43, %s10695_s10  ;;  %v15979_v12 = vmul.f32 %v6053_v15, %v19212_v24  ;;  %v6790_v47 = vmul.f32 %v6053_v15, %v19213_v38 }
 0x508   : > { %v6356_v37 = vpop.permute.xlu1 %6355 }
 0x509   : > { %v15973_v6 = vmul.f32 %v6356_v37, %v19211_v0  ;;  %v6745_v10 = vmul.f32 %v6356_v37, %v19210_v49  ;;  %v6341_v34 = vpop.permute.xlu0 %6340  ;;  %6943 = vrot.lane.b32.xlu1 %v15702_v32, %s10695_s10 }
 0x50a   : > { %v15983_v16 = vmul.f32 %v6341_v34, %v19213_v38  ;;  %v6742_v43 = vmul.f32 %v6341_v34, %v19212_v24  ;;  %6949 = vrot.lane.b32.xlu0 %v15706_v57, %s10695_s10  ;;  %v19214_v38 = vsub.f32 %v15717_v22, %v15725_v4  ;;  %v19215_v57 = vsub.f32 %v15721_v21, %v15729_v58  ;;  %v19218_v22 = vld [vmem:[#allocation65_spill] sm:$0xff]  ;;  %v19219_v21 = vld [vmem:[#allocation139_spill] sm:$0xff] }
 0x50b   : > { %v15990_v37 = vadd.f32 %v6793_v42, %v6745_v10  ;;  %v19216_v42 = vld [vmem:[#allocation75_spill] sm:$0xff] }
 0x50c   : > { %v15994_v0 = vadd.f32 %v6790_v47, %v6742_v43  ;;  %v6058_v49 = vpop.permute.xlu1 %6057 }
 0x50d   : > { %v6073_v15 = vpop.permute.xlu0 %6072  ;;  %6567 = vrot.lane.b32.xlu1 %v19214_v38, %s10695_s10  ;;  %v16005_v10 = vmul.f32 %v6058_v49, %v19216_v42  ;;  %v6791_v32 = vmul.f32 %v6058_v49, %v19217_v59 }
 0x50e   : > { %6573 = vrot.lane.b32.xlu0 %v19215_v57, %s10695_s10  ;;  %v16015_v4 = vmul.f32 %v6073_v15, %v19218_v22  ;;  %v6794_v58 = vmul.f32 %v6073_v15, %v19219_v21 }
 0x510   : > { %v6346_v34 = vpop.permute.xlu1 %6345 }
 0x511   : > { %v16009_v47 = vmul.f32 %v6346_v34, %v19217_v59  ;;  %v6743_v43 = vmul.f32 %v6346_v34, %v19216_v42  ;;  %v6361_v24 = vpop.permute.xlu0 %6360  ;;  %6951 = vrot.lane.b32.xlu1 %v15738_v1, %s10695_s10  ;;  %v19224_v1 = vld [vmem:[#allocation39_spill] sm:$0xff] }
 0x512   : > { %v16019_v38 = vmul.f32 %v6361_v24, %v19219_v21  ;;  %v6746_v57 = vmul.f32 %v6361_v24, %v19218_v22  ;;  %6957 = vrot.lane.b32.xlu0 %v15742_v40, %s10695_s10  ;;  %v19220_v21 = vsub.f32 %v15753_v19, %v15757_v35  ;;  %v19221_v40 = vsub.f32 %v15763_v63, %v15767_v50  ;;  %v19222_v24 = vld [vmem:[#allocation51_spill] sm:$0xff]  ;;  %v19226_v19 = vld [vmem:[#allocation98_spill] sm:$0xff]  ;;  %v19227_v63 = vld [vmem:[#allocation16_spill] sm:$0xff] }
 0x513   : > { %v16026_v34 = vadd.f32 %v6791_v32, %v6743_v43  ;;  %v19223_v43 = vld [vmem:[#allocation35_spill] sm:$0xff] }
 0x514   : > { %v16030_v59 = vadd.f32 %v6794_v58, %v6746_v57  ;;  %v6508_v42 = vpop.permute.xlu1 %6507 }
 0x515   : > { %v6514_v15 = vpop.permute.xlu0 %6513  ;;  %6575 = vrot.lane.b32.xlu1 %v19220_v21, %s10695_s10  ;;  %v6651_v32 = vsub.f32 %v19222_v24, %v6508_v42 }
 0x516   : > { %6569 = vrot.lane.b32.xlu0 %v19221_v40, %s10695_s10  ;;  %v6654_v49 = vsub.f32 %v19223_v43, %v6514_v15 }
 0x517   : > { %v7115_v35 = vmul.f32 %v19226_v19, %v6651_v32  ;;  %v7307_v50 = vmul.f32 %v19227_v63, %v6651_v32  ;;  %v19230_v32 = vsub.f32 %v15789_v28, %v15793_v13  ;;  %v19236_v28 = vld [vmem:[#allocation12_spill] sm:$0xff] }
 0x518   : > { %v6892_v22 = vpop.permute.xlu1 %6891  ;;  %v7118_v15 = vmul.f32 %v19226_v19, %v6654_v49 }
 0x519   : > { %v7035_v58 = vsub.f32 %v19224_v1, %v6892_v22  ;;  %v6898_v57 = vpop.permute.xlu0 %6897  ;;  %6959 = vrot.lane.b32.xlu1 %v15774_v17, %s10695_s10  ;;  %v7310_v22 = vmul.f32 %v19227_v63, %v6654_v49  ;;  %v19232_v49 = vsub.f32 %v15799_v46, %v15803_v52  ;;  %v19238_v46 = vld [vmem:[#allocation60_spill] sm:$0xff] }
 0x51a   : > { %v7038_v5 = vsub.f32 %v19225_v8, %v6898_v57  ;;  %6953 = vrot.lane.b32.xlu0 %v15778_v18, %s10695_s10 }
 0x51b   : > { %v7163_v42 = vmul.f32 %v19227_v63, %v7035_v58  ;;  %v7259_v21 = vmul.f32 %v19226_v19, %v7035_v58 }
 0x51c   : > { %v7166_v1 = vmul.f32 %v19227_v63, %v7038_v5  ;;  %v7262_v17 = vmul.f32 %v19226_v19, %v7038_v5  ;;  %v6516_v8 = vpop.permute.xlu1 %6515  ;;  %v19233_v5 = vld [vmem:[#allocation79_spill] sm:$0xff] }
 0x51d   : > { %v16056_v40 = vsub.f32 %v7115_v35, %v7163_v42  ;;  %v16058_v18 = vadd.f32 %v7307_v50, %v7259_v21  ;;  %v6510_v24 = vpop.permute.xlu0 %6509  ;;  %6571 = vrot.lane.b32.xlu1 %v19230_v32, %s10695_s10  ;;  %v6655_v57 = vsub.f32 %v19233_v5, %v6516_v8  ;;  %v19234_v35 = vld [vmem:[#allocation90_spill] sm:$0xff]  ;;  %v19235_v21 = vld [vmem:[#allocation55_spill] sm:$0xff] }
 0x51e   : > { %v16064_v43 = vsub.f32 %v7118_v15, %v7166_v1  ;;  %v16066_v58 = vadd.f32 %v7310_v22, %v7262_v17  ;;  %6577 = vrot.lane.b32.xlu0 %v19232_v49, %s10695_s10  ;;  %v6652_v50 = vsub.f32 %v19234_v35, %v6510_v24  ;;  %v19237_v15 = vld [vmem:[#allocation99_spill] sm:$0xff] }
 0x51f   : > { %19228 = vst [vmem:[#allocation158_spill] sm:$0xff] %v16056_v40  ;;  %19229 = vst [vmem:[#allocation159_spill] sm:$0xff] %v16058_v18  ;;  %v7119_v22 = vmul.f32 %v19237_v15, %v6655_v57  ;;  %v7311_v52 = vmul.f32 %v19238_v46, %v6655_v57  ;;  %v19240_v57 = vsub.f32 %v15825_v36, %v15829_v30  ;;  %v19246_v36 = vld [vmem:[#allocation69_spill] sm:$0xff] }
 0x520   : > { %19231 = vst [vmem:[#allocation144_spill] sm:$0xff] %v16066_v58  ;;  %v6900_v42 = vpop.permute.xlu1 %6899  ;;  %v7116_v8 = vmul.f32 %v19237_v15, %v6652_v50  ;;  %v7308_v24 = vmul.f32 %v19238_v46, %v6652_v50  ;;  %v19242_v50 = vsub.f32 %v15835_v14, %v15839_v60  ;;  %v19248_v14 = vld [vmem:[#allocation43_spill] sm:$0xff] }
 0x521   : > { %v7039_v18 = vsub.f32 %v19235_v21, %v6900_v42  ;;  %v6894_v40 = vpop.permute.xlu0 %6893  ;;  %6955 = vrot.lane.b32.xlu1 %v15810_v41, %s10695_s10  ;;  %v19243_v42 = vld [vmem:[#allocation23_spill] sm:$0xff] }
 0x522   : > { %v7036_v13 = vsub.f32 %v19236_v28, %v6894_v40  ;;  %6961 = vrot.lane.b32.xlu0 %v15814_v29, %s10695_s10  ;;  %v19244_v28 = vld [vmem:[#allocation42_spill] sm:$0xff] }
 0x523   : > { %v7167_v1 = vmul.f32 %v19238_v46, %v7039_v18  ;;  %v7263_v17 = vmul.f32 %v19237_v15, %v7039_v18 }
 0x524   : > { %v7164_v32 = vmul.f32 %v19238_v46, %v7036_v13  ;;  %v7260_v41 = vmul.f32 %v19237_v15, %v7036_v13  ;;  %v6512_v40 = vpop.permute.xlu1 %6511 }
 0x525   : > { %v16088_v49 = vsub.f32 %v7119_v22, %v7167_v1  ;;  %v16090_v29 = vadd.f32 %v7311_v52, %v7263_v17  ;;  %v6518_v5 = vpop.permute.xlu0 %6517  ;;  %6579 = vrot.lane.b32.xlu1 %v19240_v57, %s10695_s10  ;;  %v6653_v21 = vsub.f32 %v19243_v42, %v6512_v40  ;;  %v19245_v52 = vld [vmem:[#allocation61_spill] sm:$0xff] }
 0x526   : > { %v16096_v18 = vsub.f32 %v7116_v8, %v7164_v32  ;;  %v16098_v35 = vadd.f32 %v7308_v24, %v7260_v41  ;;  %6585 = vrot.lane.b32.xlu0 %v19242_v50, %s10695_s10  ;;  %v6656_v13 = vsub.f32 %v19244_v28, %v6518_v5  ;;  %v19247_v8 = vld [vmem:[#allocation37_spill] sm:$0xff] }
 0x527   : > { %19239 = vst [vmem:[#allocation162_spill] sm:$0xff] %v16090_v29  ;;  %v7117_v24 = vmul.f32 %v19247_v8, %v6653_v21  ;;  %v7309_v60 = vmul.f32 %v19248_v14, %v6653_v21  ;;  %v19250_v21 = vsub.f32 %v15861_v26, %v15865_v9  ;;  %v19256_v26 = vld [vmem:[#allocation67_spill] sm:$0xff] }
 0x528   : > { %19241 = vst [vmem:[#allocation163_spill] sm:$0xff] %v16098_v35  ;;  %v6896_v22 = vpop.permute.xlu1 %6895  ;;  %v7120_v40 = vmul.f32 %v19247_v8, %v6656_v13  ;;  %v7312_v5 = vmul.f32 %v19248_v14, %v6656_v13  ;;  %v19252_v13 = vsub.f32 %v15871_v3, %v15875_v45 }
 0x529   : > { %v7037_v1 = vsub.f32 %v19245_v52, %v6896_v22  ;;  %v6902_v17 = vpop.permute.xlu0 %6901  ;;  %6963 = vrot.lane.b32.xlu1 %v15846_v62, %s10695_s10 }
 0x52a   : > { %v7040_v30 = vsub.f32 %v19246_v36, %v6902_v17  ;;  %6969 = vrot.lane.b32.xlu0 %v15850_v33, %s10695_s10  ;;  %v19254_v36 = vld [vmem:[#allocation87_spill] sm:$0xff] }
 0x52b   : > { %v7165_v32 = vmul.f32 %v19248_v14, %v7037_v1  ;;  %v7261_v41 = vmul.f32 %v19247_v8, %v7037_v1  ;;  %v19253_v1 = vld [vmem:[#allocation81_spill] sm:$0xff] }
 0x52c   : > { %v7168_v57 = vmul.f32 %v19248_v14, %v7040_v30  ;;  %v7264_v62 = vmul.f32 %v19247_v8, %v7040_v30  ;;  %v6520_v50 = vpop.permute.xlu1 %6519 }
 0x52d   : > { %v16120_v42 = vsub.f32 %v7117_v24, %v7165_v32  ;;  %v16122_v33 = vadd.f32 %v7309_v60, %v7261_v41  ;;  %v6526_v28 = vpop.permute.xlu0 %6525  ;;  %6587 = vrot.lane.b32.xlu1 %v19250_v21, %s10695_s10  ;;  %v6657_v17 = vsub.f32 %v19253_v1, %v6520_v50  ;;  %v19255_v60 = vld [vmem:[#allocation66_spill] sm:$0xff]  ;;  %v19258_v1 = vsub.f32 %v15897_v61, %v15901_v54  ;;  %v19262_v61 = vld [vmem:[#allocation21_spill] sm:$0xff] }
 0x52e   : > { %v16128_v22 = vsub.f32 %v7120_v40, %v7168_v57  ;;  %v16130_v52 = vadd.f32 %v7312_v5, %v7264_v62  ;;  %6581 = vrot.lane.b32.xlu0 %v19252_v13, %s10695_s10  ;;  %v6660_v30 = vsub.f32 %v19254_v36, %v6526_v28 }
 0x52f   : > { %19249 = vst [vmem:[#allocation145_spill] sm:$0xff] %v16122_v33  ;;  %v7121_v40 = vmul.f32 %v19226_v19, %v6657_v17  ;;  %v7313_v3 = vmul.f32 %v19227_v63, %v6657_v17 }
 0x530   : > { %19251 = vst [vmem:[#allocation76_spill] sm:$0xff] %v16130_v52  ;;  %v6904_v24 = vpop.permute.xlu1 %6903  ;;  %v7124_v57 = vmul.f32 %v19226_v19, %v6660_v30  ;;  %v7316_v62 = vmul.f32 %v19227_v63, %v6660_v30  ;;  %v19260_v30 = vsub.f32 %v15907_v39, %v15911_v11 }
 0x531   : > { %v7041_v32 = vsub.f32 %v19255_v60, %v6904_v24  ;;  %v6910_v41 = vpop.permute.xlu0 %6909  ;;  %6971 = vrot.lane.b32.xlu1 %v15882_v23, %s10695_s10 }
 0x532   : > { %v7044_v9 = vsub.f32 %v19256_v26, %v6910_v41  ;;  %6965 = vrot.lane.b32.xlu0 %v15886_v2, %s10695_s10  ;;  %v19261_v41 = vld [vmem:[#allocation9_spill] sm:$0xff] }
 0x533   : > { %v7169_v45 = vmul.f32 %v19227_v63, %v7041_v32  ;;  %v7265_v5 = vmul.f32 %v19226_v19, %v7041_v32 }
 0x534   : > { %v7172_v50 = vmul.f32 %v19227_v63, %v7044_v9  ;;  %v7268_v23 = vmul.f32 %v19226_v19, %v7044_v9  ;;  %v6528_v28 = vpop.permute.xlu1 %6527 }
 0x535   : > { %v16152_v21 = vsub.f32 %v7121_v40, %v7169_v45  ;;  %v16154_v2 = vadd.f32 %v7313_v3, %v7265_v5  ;;  %v6522_v13 = vpop.permute.xlu0 %6521  ;;  %6583 = vrot.lane.b32.xlu1 %v19258_v1, %s10695_s10  ;;  %v6661_v24 = vsub.f32 %v19095_v51, %v6528_v28  ;;  %v19268_v1 = vld [vmem:[#allocation86_spill] sm:$0xff] }
 0x536   : > { %v16160_v17 = vsub.f32 %v7124_v57, %v7172_v50  ;;  %v16162_v36 = vadd.f32 %v7316_v62, %v7268_v23  ;;  %6589 = vrot.lane.b32.xlu0 %v19260_v30, %s10695_s10  ;;  %v6658_v60 = vsub.f32 %v19097_v20, %v6522_v13  ;;  %v19265_v50 = vsub.f32 %v15933_v55, %v15937_v31  ;;  %v19271_v55 = vld [vmem:[#allocation95_spill] sm:$0xff] }
 0x537   : > { %19257 = vst [vmem:[#allocation27_spill] sm:$0xff] %v16154_v2  ;;  %v7125_v40 = vmul.f32 %v19237_v15, %v6661_v24  ;;  %v7317_v39 = vmul.f32 %v19238_v46, %v6661_v24  ;;  %v19267_v13 = vsub.f32 %v15943_v27, %v15947_v25  ;;  %v19269_v24 = vld [vmem:[#allocation15_spill] sm:$0xff] }
 0x538   : > { %19259 = vst [vmem:[#allocation160_spill] sm:$0xff] %v16162_v36  ;;  %v6912_v32 = vpop.permute.xlu1 %6911  ;;  %v7122_v11 = vmul.f32 %v19237_v15, %v6658_v60  ;;  %v7314_v3 = vmul.f32 %v19238_v46, %v6658_v60 }
 0x539   : > { %v7045_v26 = vsub.f32 %v19261_v41, %v6912_v32  ;;  %v6906_v9 = vpop.permute.xlu0 %6905  ;;  %6967 = vrot.lane.b32.xlu1 %v15918_v44, %s10695_s10  ;;  %v19270_v41 = vld [vmem:[#allocation63_spill] sm:$0xff] }
 0x53a   : > { %v7042_v54 = vsub.f32 %v19262_v61, %v6906_v9  ;;  %6973 = vrot.lane.b32.xlu0 %v15922_v56, %s10695_s10 }
 0x53b   : > { %v7173_v51 = vmul.f32 %v19238_v46, %v7045_v26  ;;  %v7269_v20 = vmul.f32 %v19237_v15, %v7045_v26 }
 0x53c   : > { %v7170_v45 = vmul.f32 %v19238_v46, %v7042_v54  ;;  %v7266_v44 = vmul.f32 %v19237_v15, %v7042_v54  ;;  %v6524_v5 = vpop.permute.xlu1 %6523 }
 0x53d   : > { %v16184_v57 = vsub.f32 %v7125_v40, %v7173_v51  ;;  %v16186_v56 = vadd.f32 %v7317_v39, %v7269_v20  ;;  %v6530_v62 = vpop.permute.xlu0 %6529  ;;  %6591 = vrot.lane.b32.xlu1 %v19265_v50, %s10695_s10  ;;  %v6659_v30 = vsub.f32 %v19268_v1, %v6524_v5  ;;  %v19278_v50 = vld [vmem:[#allocation62_spill] sm:$0xff]  ;;  %v19279_v1 = vld [vmem:[#allocation33_spill] sm:$0xff] }
 0x53e   : > { %v16192_v23 = vsub.f32 %v7122_v11, %v7170_v45  ;;  %v16194_v28 = vadd.f32 %v7314_v3, %v7266_v44  ;;  %6597 = vrot.lane.b32.xlu0 %v19267_v13, %s10695_s10  ;;  %v6662_v60 = vsub.f32 %v19269_v24, %v6530_v62  ;;  %v19274_v45 = vsub.f32 %v15969_v48, %v15973_v6  ;;  %v19281_v48 = vld [vmem:[#allocation82_spill] sm:$0xff] }
 0x53f   : > { %19263 = vst [vmem:[#allocation161_spill] sm:$0xff] %v16184_v57  ;;  %19264 = vst [vmem:[#allocation146_spill] sm:$0xff] %v16186_v56  ;;  %v7123_v61 = vmul.f32 %v19247_v8, %v6659_v30  ;;  %v7315_v27 = vmul.f32 %v19248_v14, %v6659_v30  ;;  %v19277_v62 = vsub.f32 %v15979_v12, %v15983_v16 }
 0x540   : > { %19266 = vst [vmem:[#allocation166_spill] sm:$0xff] %v16194_v28  ;;  %v6908_v32 = vpop.permute.xlu1 %6907  ;;  %v7126_v40 = vmul.f32 %v19247_v8, %v6662_v60  ;;  %v7318_v39 = vmul.f32 %v19248_v14, %v6662_v60  ;;  %v19280_v60 = vld [vmem:[#allocation91_spill] sm:$0xff] }
 0x541   : > { %v7043_v26 = vsub.f32 %v19270_v41, %v6908_v32  ;;  %v6914_v9 = vpop.permute.xlu0 %6913  ;;  %6975 = vrot.lane.b32.xlu1 %v15954_v53, %s10695_s10 }
 0x542   : > { %v7046_v31 = vsub.f32 %v19271_v55, %v6914_v9  ;;  %6981 = vrot.lane.b32.xlu0 %v15958_v7, %s10695_s10 }
 0x543   : > { %v7171_v25 = vmul.f32 %v19248_v14, %v7043_v26  ;;  %v7267_v54 = vmul.f32 %v19247_v8, %v7043_v26 }
 0x544   : > { %v7174_v51 = vmul.f32 %v19248_v14, %v7046_v31  ;;  %v7270_v53 = vmul.f32 %v19247_v8, %v7046_v31  ;;  %v6532_v20 = vpop.permute.xlu1 %6531 }
 0x545   : > { %v16216_v11 = vsub.f32 %v7123_v61, %v7171_v25  ;;  %v16218_v7 = vadd.f32 %v7315_v27, %v7267_v54  ;;  %v6538_v3 = vpop.permute.xlu0 %6537  ;;  %6599 = vrot.lane.b32.xlu1 %v19274_v45, %s10695_s10  ;;  %v6663_v13 = vsub.f32 %v19278_v50, %v6532_v20  ;;  %v19288_v20 = vld [vmem:[#allocation40_spill] sm:$0xff]  ;;  %v19289_v45 = vld [vmem:[#allocation14_spill] sm:$0xff] }
 0x546   : > { %v16224_v44 = vsub.f32 %v7126_v40, %v7174_v51  ;;  %v16226_v5 = vadd.f32 %v7318_v39, %v7270_v53  ;;  %6593 = vrot.lane.b32.xlu0 %v19277_v62, %s10695_s10  ;;  %v6666_v30 = vsub.f32 %v19279_v1, %v6538_v3  ;;  %v19284_v40 = vsub.f32 %v16005_v10, %v16009_v47  ;;  %v19291_v10 = vld [vmem:[#allocation77_spill] sm:$0xff] }
 0x547   : > { %19272 = vst [vmem:[#allocation147_spill] sm:$0xff] %v16216_v11  ;;  %19273 = vst [vmem:[#allocation164_spill] sm:$0xff] %v16218_v7  ;;  %v7127_v26 = vmul.f32 %v19226_v19, %v6663_v13  ;;  %v7319_v12 = vmul.f32 %v19227_v63, %v6663_v13  ;;  %v19287_v53 = vsub.f32 %v16015_v4, %v16019_v38  ;;  %v19290_v13 = vld [vmem:[#allocation50_spill] sm:$0xff] }
 0x548   : > { %19275 = vst [vmem:[#allocation165_spill] sm:$0xff] %v16224_v44  ;;  %19276 = vst [vmem:[#allocation102_spill] sm:$0xff] %v16226_v5  ;;  %v6916_v24 = vpop.permute.xlu1 %6915  ;;  %v7130_v55 = vmul.f32 %v19226_v19, %v6666_v30  ;;  %v7322_v31 = vmul.f32 %v19227_v63, %v6666_v30 }
 0x549   : > { %v7047_v32 = vsub.f32 %v19280_v60, %v6916_v24  ;;  %v6922_v41 = vpop.permute.xlu0 %6921  ;;  %6983 = vrot.lane.b32.xlu1 %v15990_v37, %s10695_s10 }
 0x54a   : > { %v7050_v6 = vsub.f32 %v19281_v48, %v6922_v41  ;;  %6977 = vrot.lane.b32.xlu0 %v15994_v0, %s10695_s10 }
 0x54b   : > { %v7175_v16 = vmul.f32 %v19227_v63, %v7047_v32  ;;  %v7271_v9 = vmul.f32 %v19226_v19, %v7047_v32 }
 0x54c   : > { %v7178_v61 = vmul.f32 %v19227_v63, %v7050_v6  ;;  %v7274_v37 = vmul.f32 %v19226_v19, %v7050_v6  ;;  %v6540_v27 = vpop.permute.xlu1 %6539 }
 0x54d   : > { %v16248_v25 = vsub.f32 %v7127_v26, %v7175_v16  ;;  %v16250_v0 = vadd.f32 %v7319_v12, %v7271_v9  ;;  %v6534_v54 = vpop.permute.xlu0 %6533  ;;  %6595 = vrot.lane.b32.xlu1 %v19284_v40, %s10695_s10  ;;  %v6667_v3 = vsub.f32 %v19288_v20, %v6540_v27  ;;  %v19294_v16 = vld [vmem:[#allocation158_spill] sm:$0xff]  ;;  %v19299_v27 = vld [vmem:[#allocation28_spill] sm:$0xff] }
 0x54e   : > { %v16256_v39 = vsub.f32 %v7130_v55, %v7178_v61  ;;  %v16258_v51 = vadd.f32 %v7322_v31, %v7274_v37  ;;  %6601 = vrot.lane.b32.xlu0 %v19287_v53, %s10695_s10  ;;  %v6664_v62 = vsub.f32 %v19289_v45, %v6534_v54  ;;  %v19297_v31 = vld [vmem:[#allocation159_spill] sm:$0xff]  ;;  %v19298_v61 = vld [vmem:[#allocation34_spill] sm:$0xff]  ;;  %v19300_v53 = vld [vmem:[#allocation92_spill] sm:$0xff] }
 0x54f   : > { %19282 = vst [vmem:[#allocation107_spill] sm:$0xff] %v16248_v25  ;;  %19283 = vst [vmem:[#allocation148_spill] sm:$0xff] %v16250_v0  ;;  %v7131_v24 = vmul.f32 %v19237_v15, %v6667_v3  ;;  %v7323_v4 = vmul.f32 %v19238_v46, %v6667_v3  ;;  %v19301_v45 = vld [vmem:[#allocation26_spill] sm:$0xff] }
 0x550   : > { %19285 = vst [vmem:[#allocation149_spill] sm:$0xff] %v16256_v39  ;;  %19286 = vst [vmem:[#allocation150_spill] sm:$0xff] %v16258_v51  ;;  %v6924_v50 = vpop.permute.xlu1 %6923  ;;  %v7128_v32 = vmul.f32 %v19237_v15, %v6664_v62  ;;  %v7320_v41 = vmul.f32 %v19238_v46, %v6664_v62 }
 0x551   : > { %v7051_v1 = vsub.f32 %v19290_v13, %v6924_v50  ;;  %v6918_v30 = vpop.permute.xlu0 %6917  ;;  %6979 = vrot.lane.b32.xlu1 %v16026_v34, %s10695_s10 }
 0x552   : > { %v7048_v47 = vsub.f32 %v19291_v10, %v6918_v30  ;;  %6985 = vrot.lane.b32.xlu0 %v16030_v59, %s10695_s10 }
 0x553   : > { %v7179_v38 = vmul.f32 %v19238_v46, %v7051_v1  ;;  %v7275_v60 = vmul.f32 %v19237_v15, %v7051_v1 }
 0x554   : > { %v7176_v48 = vmul.f32 %v19238_v46, %v7048_v47  ;;  %v7272_v34 = vmul.f32 %v19237_v15, %v7048_v47  ;;  %v6536_v6 = vpop.permute.xlu1 %6535 }
 0x555   : > { %v16280_v26 = vsub.f32 %v7131_v24, %v7179_v38  ;;  %v16282_v59 = vadd.f32 %v7323_v4, %v7275_v60  ;;  %v6542_v12 = vpop.permute.xlu0 %6541  ;;  %7452 = vperm.xlu1 %10375, %v19294_v16   ;;  %v6665_v37 = vsub.f32 %v19298_v61, %v6536_v6  ;;  %v19306_v6 = vld [vmem:[#allocation7_spill] sm:$0xff]  ;;  %v19307_v61 = vld [vmem:[#allocation64_spill] sm:$0xff] }
 0x556   : > { %v16285_v9 = vsub.f32 %v7128_v32, %v7176_v48  ;;  %v16287_v55 = vadd.f32 %v7320_v41, %v7272_v34  ;;  %7900 = vperm.xlu0 %10376, %v19297_v31   ;;  %v6668_v54 = vsub.f32 %v19299_v27, %v6542_v12 }
 0x557   : > { %19292 = vst [vmem:[#allocation151_spill] sm:$0xff] %v16280_v26  ;;  %19293 = vst [vmem:[#allocation108_spill] sm:$0xff] %v16282_v59  ;;  %v7129_v50 = vmul.f32 %v19247_v8, %v6665_v37  ;;  %v7321_v13 = vmul.f32 %v19248_v14, %v6665_v37 }
 0x558   : > { %19295 = vst [vmem:[#allocation117_spill] sm:$0xff] %v16285_v9  ;;  %19296 = vst [vmem:[#allocation120_spill] sm:$0xff] %v16287_v55  ;;  %v6920_v40 = vpop.permute.xlu1 %6919  ;;  %v7132_v10 = vmul.f32 %v19247_v8, %v6668_v54  ;;  %v7324_v47 = vmul.f32 %v19248_v14, %v6668_v54  ;;  %v19308_v54 = vld [vmem:[#allocation24_spill] sm:$0xff] }
 0x559   : > { %v7049_v20 = vsub.f32 %v19300_v53, %v6920_v40  ;;  %v6926_v3 = vpop.permute.xlu0 %6925  ;;  %7461 = vperm.xlu1 %10375, %v16064_v43  }
 0x55a   : > { %v7052_v62 = vsub.f32 %v19301_v45, %v6926_v3  ;;  %7455 = vperm.xlu0 %10376, %v16096_v18  }
 0x55b   : > { %v7177_v1 = vmul.f32 %v19248_v14, %v7049_v20  ;;  %v7273_v30 = vmul.f32 %v19247_v8, %v7049_v20  ;;  %v19309_v20 = vld [vmem:[#allocation100_spill] sm:$0xff] }
 0x55c   : > { %v7180_v24 = vmul.f32 %v19248_v14, %v7052_v62  ;;  %v7276_v4 = vmul.f32 %v19247_v8, %v7052_v62  ;;  %v6544_v38 = vpop.permute.xlu1 %6543 }
 0x55d   : > { %v16304_v60 = vsub.f32 %v7129_v50, %v7177_v1  ;;  %v16306_v32 = vadd.f32 %v7321_v13, %v7273_v30  ;;  %v6550_v41 = vpop.permute.xlu0 %6549  ;;  %7909 = vperm.xlu1 %10375, %v16066_v58   ;;  %v6669_v12 = vsub.f32 %v19306_v6, %v6544_v38 }
 0x55e   : > { %v16309_v48 = vsub.f32 %v7132_v10, %v7180_v24  ;;  %v16311_v34 = vadd.f32 %v7324_v47, %v7276_v4  ;;  %7464 = vperm.xlu0 %10376, %v16088_v49   ;;  %v6672_v37 = vsub.f32 %v19307_v61, %v6550_v41  ;;  %v19314_v61 = vld [vmem:[#allocation84_spill] sm:$0xff] }
 0x55f   : > { %19302 = vst [vmem:[#allocation113_spill] sm:$0xff] %v16304_v60  ;;  %19303 = vst [vmem:[#allocation114_spill] sm:$0xff] %v16306_v32  ;;  %v7133_v45 = vmul.f32 %v19226_v19, %v6669_v12  ;;  %v7325_v62 = vmul.f32 %v19227_v63, %v6669_v12 }
 0x560   : > { %19304 = vst [vmem:[#allocation121_spill] sm:$0xff] %v16309_v48  ;;  %19305 = vst [vmem:[#allocation20_spill] sm:$0xff] %v16311_v34  ;;  %v6928_v27 = vpop.permute.xlu1 %6927  ;;  %v7136_v1 = vmul.f32 %v19226_v19, %v6672_v37  ;;  %v7328_v30 = vmul.f32 %v19227_v63, %v6672_v37 }
 0x561   : > { %v7053_v40 = vsub.f32 %v19308_v54, %v6928_v27  ;;  %v6934_v53 = vpop.permute.xlu0 %6933  ;;  %7903 = vperm.xlu1 %10375, %v16098_v35   ;;  %v19315_v27 = vld [vmem:[#allocation71_spill] sm:$0xff] }
 0x562   : > { %v7056_v3 = vsub.f32 %v19309_v20, %v6934_v53  ;;  %7912 = vperm.xlu0 %10376, %v16090_v29   ;;  %v19316_v53 = vld [vmem:[#allocation85_spill] sm:$0xff] }
 0x563   : > { %v7181_v50 = vmul.f32 %v19227_v63, %v7053_v40  ;;  %v7277_v13 = vmul.f32 %v19226_v19, %v7053_v40 }
 0x564   : > { %v7184_v10 = vmul.f32 %v19227_v63, %v7056_v3  ;;  %v7280_v47 = vmul.f32 %v19226_v19, %v7056_v3  ;;  %v6552_v24 = vpop.permute.xlu1 %6551 }
 0x565   : > { %v16328_v4 = vsub.f32 %v7133_v45, %v7181_v50  ;;  %v16330_v38 = vadd.f32 %v7325_v62, %v7277_v13  ;;  %v6546_v41 = vpop.permute.xlu0 %6545  ;;  %7458 = vperm.xlu1 %10375, %v16120_v42   ;;  %v6673_v37 = vsub.f32 %v19314_v61, %v6552_v24  ;;  %v19317_v45 = vld [vmem:[#allocation70_spill] sm:$0xff] }
 0x566   : > { %v16333_v6 = vsub.f32 %v7136_v1, %v7184_v10  ;;  %v16335_v12 = vadd.f32 %v7328_v30, %v7280_v47  ;;  %7906 = vperm.xlu0 %10376, %v16122_v33   ;;  %v6670_v54 = vsub.f32 %v19315_v27, %v6546_v41 }
 0x567   : > { %19310 = vst [vmem:[#allocation25_spill] sm:$0xff] %v16328_v4  ;;  %19311 = vst [vmem:[#allocation124_spill] sm:$0xff] %v16330_v38  ;;  %v7137_v50 = vmul.f32 %v19237_v15, %v6673_v37  ;;  %v7329_v13 = vmul.f32 %v19238_v46, %v6673_v37 }
 0x568   : > { %19312 = vst [vmem:[#allocation125_spill] sm:$0xff] %v16333_v6  ;;  %19313 = vst [vmem:[#allocation57_spill] sm:$0xff] %v16335_v12  ;;  %v6936_v40 = vpop.permute.xlu1 %6935  ;;  %v7134_v10 = vmul.f32 %v19237_v15, %v6670_v54  ;;  %v7326_v47 = vmul.f32 %v19238_v46, %v6670_v54 }
 0x569   : > { %v7057_v20 = vsub.f32 %v19316_v53, %v6936_v40  ;;  %v6930_v3 = vpop.permute.xlu0 %6929  ;;  %7467 = vperm.xlu1 %10375, %v16128_v22  }
 0x56a   : > { %v7054_v62 = vsub.f32 %v19317_v45, %v6930_v3  ;;  %7470 = vperm.xlu0 %10376, %v16152_v21   ;;  %v19323_v45 = vld [vmem:[#allocation93_spill] sm:$0xff] }
 0x56b   : > { %v7185_v1 = vmul.f32 %v19238_v46, %v7057_v20  ;;  %v7281_v30 = vmul.f32 %v19237_v15, %v7057_v20  ;;  %v19322_v20 = vld [vmem:[#allocation49_spill] sm:$0xff] }
 0x56c   : > { %v7182_v24 = vmul.f32 %v19238_v46, %v7054_v62  ;;  %v7278_v41 = vmul.f32 %v19237_v15, %v7054_v62  ;;  %v6548_v61 = vpop.permute.xlu1 %6547  ;;  %v19324_v62 = vld [vmem:[#allocation47_spill] sm:$0xff] }
 0x56d   : > { %v16352_v27 = vsub.f32 %v7137_v50, %v7185_v1  ;;  %v16354_v40 = vadd.f32 %v7329_v13, %v7281_v30  ;;  %v6554_v53 = vpop.permute.xlu0 %6553  ;;  %7915 = vperm.xlu1 %10375, %v16130_v52   ;;  %v6671_v54 = vsub.f32 %v19322_v20, %v6548_v61  ;;  %v19325_v13 = vld [vmem:[#allocation29_spill] sm:$0xff] }
 0x56e   : > { %v16357_v37 = vsub.f32 %v7134_v10, %v7182_v24  ;;  %v16359_v3 = vadd.f32 %v7326_v47, %v7278_v41  ;;  %7918 = vperm.xlu0 %10376, %v16154_v2   ;;  %v6674_v29 = vsub.f32 %v19323_v45, %v6554_v53  ;;  %v19331_v2 = vld [vmem:[#allocation3_spill] sm:$0xff] }
 0x56f   : > { %19318 = vst [vmem:[#allocation68_spill] sm:$0xff] %v16352_v27  ;;  %19319 = vst [vmem:[#allocation19_spill] sm:$0xff] %v16354_v40  ;;  %v7135_v30 = vmul.f32 %v19247_v8, %v6671_v54  ;;  %v7327_v10 = vmul.f32 %v19248_v14, %v6671_v54 }
 0x570   : > { %19320 = vst [vmem:[#allocation129_spill] sm:$0xff] %v16357_v37  ;;  %19321 = vst [vmem:[#allocation74_spill] sm:$0xff] %v16359_v3  ;;  %v6932_v33 = vpop.permute.xlu1 %6931  ;;  %v7138_v41 = vmul.f32 %v19247_v8, %v6674_v29  ;;  %v7330_v61 = vmul.f32 %v19248_v14, %v6674_v29 }
 0x571   : > { %v7055_v31 = vsub.f32 %v19324_v62, %v6932_v33  ;;  %v6938_v50 = vpop.permute.xlu0 %6937  ;;  %7479 = vperm.xlu1 %10375, %v16160_v17  }
 0x572   : > { %v7058_v1 = vsub.f32 %v19325_v13, %v6938_v50  ;;  %7482 = vperm.xlu0 %10376, %v16184_v57  }
 0x573   : > { %v7183_v47 = vmul.f32 %v19248_v14, %v7055_v31  ;;  %v7279_v24 = vmul.f32 %v19247_v8, %v7055_v31  ;;  %v19330_v31 = vld [vmem:[#allocation36_spill] sm:$0xff] }
 0x574   : > { %v7186_v33 = vmul.f32 %v19248_v14, %v7058_v1  ;;  %v7282_v53 = vmul.f32 %v19247_v8, %v7058_v1  ;;  %v6556_v20 = vpop.permute.xlu1 %6555  ;;  %v19332_v1 = vld [vmem:[#allocation101_spill] sm:$0xff] }
 0x575   : > { %v16376_v45 = vsub.f32 %v7135_v30, %v7183_v47  ;;  %v16378_v62 = vadd.f32 %v7327_v10, %v7279_v24  ;;  %v6562_v50 = vpop.permute.xlu0 %6561  ;;  %7927 = vperm.xlu1 %10375, %v16162_v36   ;;  %v6675_v29 = vsub.f32 %v19330_v31, %v6556_v20  ;;  %v19333_v10 = vld [vmem:[#allocation104_spill] sm:$0xff] }
 0x576   : > { %v16381_v54 = vsub.f32 %v7138_v41, %v7186_v33  ;;  %v16383_v13 = vadd.f32 %v7330_v61, %v7282_v53  ;;  %7930 = vperm.xlu0 %10376, %v16186_v56   ;;  %v6678_v52 = vsub.f32 %v19331_v2, %v6562_v50  ;;  %v19339_v56 = vld [vmem:[#allocation96_spill] sm:$0xff] }
 0x577   : > { %19326 = vst [vmem:[#allocation22_spill] sm:$0xff] %v16376_v45  ;;  %19327 = vst [vmem:[#allocation128_spill] sm:$0xff] %v16378_v62  ;;  %v7139_v24 = vmul.f32 %v19226_v19, %v6675_v29  ;;  %v7331_v41 = vmul.f32 %v19227_v63, %v6675_v29 }
 0x578   : > { %19328 = vst [vmem:[#allocation152_spill] sm:$0xff] %v16381_v54  ;;  %19329 = vst [vmem:[#allocation88_spill] sm:$0xff] %v16383_v13  ;;  %v6940_v58 = vpop.permute.xlu1 %6939  ;;  %v7142_v2 = vmul.f32 %v19226_v19, %v6678_v52  ;;  %v7334_v53 = vmul.f32 %v19227_v63, %v6678_v52 }
 0x579   : > { %v7059_v35 = vsub.f32 %v19332_v1, %v6940_v58  ;;  %v6946_v30 = vpop.permute.xlu0 %6945  ;;  %7473 = vperm.xlu1 %10375, %v16192_v23  }
 0x57a   : > { %v7062_v47 = vsub.f32 %v19333_v10, %v6946_v30  ;;  %7476 = vperm.xlu0 %10376, %v16216_v11  }
 0x57b   : > { %v7187_v61 = vmul.f32 %v19227_v63, %v7059_v35  ;;  %v7283_v33 = vmul.f32 %v19226_v19, %v7059_v35  ;;  %v19338_v35 = vld [vmem:[#allocation4_spill] sm:$0xff] }
 0x57c   : > { %v7190_v58 = vmul.f32 %v19227_v63, %v7062_v47  ;;  %v7286_v20 = vmul.f32 %v19226_v19, %v7062_v47  ;;  %v6564_v50 = vpop.permute.xlu1 %6563  ;;  %v19340_v47 = vld [vmem:[#allocation105_spill] sm:$0xff] }
 0x57d   : > { %v16400_v31 = vsub.f32 %v7139_v24, %v7187_v61  ;;  %v16402_v1 = vadd.f32 %v7331_v41, %v7283_v33  ;;  %v6558_v30 = vpop.permute.xlu0 %6557  ;;  %7921 = vperm.xlu1 %10375, %v16194_v28   ;;  %v6679_v52 = vsub.f32 %v19338_v35, %v6564_v50  ;;  %v19341_v41 = vld [vmem:[#allocation89_spill] sm:$0xff] }
 0x57e   : > { %v16405_v29 = vsub.f32 %v7142_v2, %v7190_v58  ;;  %v16407_v10 = vadd.f32 %v7334_v53, %v7286_v20  ;;  %7924 = vperm.xlu0 %10376, %v16218_v7   ;;  %v6676_v36 = vsub.f32 %v19339_v56, %v6558_v30  ;;  %v19346_v7 = vld [vmem:[#allocation41_spill] sm:$0xff] }
 0x57f   : > { %19334 = vst [vmem:[#allocation10_spill] sm:$0xff] %v16400_v31  ;;  %19335 = vst [vmem:[#allocation132_spill] sm:$0xff] %v16402_v1  ;;  %v7143_v33 = vmul.f32 %v19237_v15, %v6679_v52  ;;  %v7335_v2 = vmul.f32 %v19238_v46, %v6679_v52 }
 0x580   : > { %19336 = vst [vmem:[#allocation135_spill] sm:$0xff] %v16405_v29  ;;  %19337 = vst [vmem:[#allocation78_spill] sm:$0xff] %v16407_v10  ;;  %v6948_v57 = vpop.permute.xlu1 %6947  ;;  %v7140_v56 = vmul.f32 %v19237_v15, %v6676_v36  ;;  %v7332_v20 = vmul.f32 %v19238_v46, %v6676_v36 }
 0x581   : > { %v7063_v11 = vsub.f32 %v19340_v47, %v6948_v57  ;;  %v6942_v24 = vpop.permute.xlu0 %6941  ;;  %7485 = vperm.xlu1 %10375, %v16224_v44  }
 0x582   : > { %v7060_v61 = vsub.f32 %v19341_v41, %v6942_v24  ;;  %7488 = vperm.xlu0 %10376, %v16248_v25  }
 0x583   : > { %v7191_v53 = vmul.f32 %v19238_v46, %v7063_v11  ;;  %v7287_v58 = vmul.f32 %v19237_v15, %v7063_v11  ;;  %v19345_v11 = vld [vmem:[#allocation44_spill] sm:$0xff] }
 0x584   : > { %v7188_v57 = vmul.f32 %v19238_v46, %v7060_v61  ;;  %v7284_v50 = vmul.f32 %v19237_v15, %v7060_v61  ;;  %v6560_v30 = vpop.permute.xlu1 %6559  ;;  %v19347_v61 = vld [vmem:[#allocation103_spill] sm:$0xff] }
 0x585   : > { %v16424_v35 = vsub.f32 %v7143_v33, %v7191_v53  ;;  %v16426_v47 = vadd.f32 %v7335_v2, %v7287_v58  ;;  %v6566_v24 = vpop.permute.xlu0 %6565  ;;  %7933 = vperm.xlu1 %10375, %v16226_v5   ;;  %v6677_v36 = vsub.f32 %v19345_v11, %v6560_v30  ;;  %v19348_v2 = vld [vmem:[#allocation109_spill] sm:$0xff] }
 0x586   : > { %v16429_v52 = vsub.f32 %v7140_v56, %v7188_v57  ;;  %v16431_v41 = vadd.f32 %v7332_v20, %v7284_v50  ;;  %7936 = vperm.xlu0 %10376, %v16250_v0   ;;  %v6680_v28 = vsub.f32 %v19346_v7, %v6566_v24  ;;  %v19352_v0 = vld [vmem:[#allocation6_spill] sm:$0xff] }
 0x587   : > { %19342 = vst [vmem:[#allocation80_spill] sm:$0xff] %v16424_v35  ;;  %19343 = vst [vmem:[#allocation94_spill] sm:$0xff] %v16426_v47  ;;  %v7141_v58 = vmul.f32 %v19247_v8, %v6677_v36  ;;  %v7333_v56 = vmul.f32 %v19248_v14, %v6677_v36 }
 0x588   : > { %19344 = vst [vmem:[#allocation83_spill] sm:$0xff] %v16431_v41  ;;  %v6944_v25 = vpop.permute.xlu1 %6943  ;;  %v7144_v7 = vmul.f32 %v19247_v8, %v6680_v28  ;;  %v7336_v50 = vmul.f32 %v19248_v14, %v6680_v28 }
 0x589   : > { %v7061_v44 = vsub.f32 %v19347_v61, %v6944_v25  ;;  %v6950_v33 = vpop.permute.xlu0 %6949  ;;  %7497 = vperm.xlu1 %10375, %v16256_v39  }
 0x58a   : > { %v7064_v53 = vsub.f32 %v19348_v2, %v6950_v33  ;;  %7500 = vperm.xlu0 %10376, %v16280_v26  }
 0x58b   : > { %v7189_v20 = vmul.f32 %v19248_v14, %v7061_v44  ;;  %v7285_v57 = vmul.f32 %v19247_v8, %v7061_v44  ;;  %v19351_v44 = vld [vmem:[#allocation5_spill] sm:$0xff] }
 0x58c   : > { %v7192_v25 = vmul.f32 %v19248_v14, %v7064_v53  ;;  %v7288_v30 = vmul.f32 %v19247_v8, %v7064_v53  ;;  %v6568_v24 = vpop.permute.xlu1 %6567  ;;  %v19353_v53 = vld [vmem:[#allocation106_spill] sm:$0xff] }
 0x58d   : > { %v16448_v11 = vsub.f32 %v7141_v58, %v7189_v20  ;;  %v16450_v61 = vadd.f32 %v7333_v56, %v7285_v57  ;;  %v6574_v33 = vpop.permute.xlu0 %6573  ;;  %7945 = vperm.xlu1 %10375, %v16258_v51   ;;  %v6681_v28 = vsub.f32 %v19351_v44, %v6568_v24  ;;  %v19354_v56 = vld [vmem:[#allocation112_spill] sm:$0xff] }
 0x58e   : > { %v16453_v36 = vsub.f32 %v7144_v7, %v7192_v25  ;;  %v16455_v2 = vadd.f32 %v7336_v50, %v7288_v30  ;;  %7948 = vperm.xlu0 %10376, %v16282_v59   ;;  %v6684_v5 = vsub.f32 %v19352_v0, %v6574_v33  ;;  %v19358_v59 = vld [vmem:[#allocation48_spill] sm:$0xff] }
 0x58f   : > { %19349 = vst [vmem:[#allocation137_spill] sm:$0xff] %v16450_v61  ;;  %v7145_v57 = vmul.f32 %v19226_v19, %v6681_v28  ;;  %v7337_v7 = vmul.f32 %v19227_v63, %v6681_v28 }
 0x590   : > { %19350 = vst [vmem:[#allocation138_spill] sm:$0xff] %v16455_v2  ;;  %v6952_v26 = vpop.permute.xlu1 %6951  ;;  %v7148_v0 = vmul.f32 %v19226_v19, %v6684_v5  ;;  %v7340_v30 = vmul.f32 %v19227_v63, %v6684_v5 }
 0x591   : > { %v7065_v39 = vsub.f32 %v19353_v53, %v6952_v26  ;;  %v6958_v58 = vpop.permute.xlu0 %6957  ;;  %7491 = vperm.xlu1 %10375, %v16285_v9  }
 0x592   : > { %v7068_v20 = vsub.f32 %v19354_v56, %v6958_v58  ;;  %7494 = vperm.xlu0 %10376, %v16304_v60  }
 0x593   : > { %v7193_v50 = vmul.f32 %v19227_v63, %v7065_v39  ;;  %v7289_v25 = vmul.f32 %v19226_v19, %v7065_v39  ;;  %v19357_v39 = vld [vmem:[#allocation59_spill] sm:$0xff] }
 0x594   : > { %v7196_v26 = vmul.f32 %v19227_v63, %v7068_v20  ;;  %v7292_v24 = vmul.f32 %v19226_v19, %v7068_v20  ;;  %v6576_v33 = vpop.permute.xlu1 %6575  ;;  %v19359_v20 = vld [vmem:[#allocation115_spill] sm:$0xff] }
 0x595   : > { %v16472_v44 = vsub.f32 %v7145_v57, %v7193_v50  ;;  %v16474_v53 = vadd.f32 %v7337_v7, %v7289_v25  ;;  %v6570_v58 = vpop.permute.xlu0 %6569  ;;  %7939 = vperm.xlu1 %10375, %v16287_v55   ;;  %v6685_v5 = vsub.f32 %v19357_v39, %v6576_v33  ;;  %v19360_v7 = vld [vmem:[#allocation110_spill] sm:$0xff] }
 0x596   : > { %v16477_v28 = vsub.f32 %v7148_v0, %v7196_v26  ;;  %v16479_v56 = vadd.f32 %v7340_v30, %v7292_v24  ;;  %7942 = vperm.xlu0 %10376, %v16306_v32   ;;  %v6682_v51 = vsub.f32 %v19358_v59, %v6570_v58  ;;  %v19364_v32 = vld [vmem:[#allocation11_spill] sm:$0xff] }
 0x597   : > { %19355 = vst [vmem:[#allocation153_spill] sm:$0xff] %v16474_v53  ;;  %v7149_v25 = vmul.f32 %v19237_v15, %v6685_v5  ;;  %v7341_v0 = vmul.f32 %v19238_v46, %v6685_v5 }
 0x598   : > { %19356 = vst [vmem:[#allocation154_spill] sm:$0xff] %v16479_v56  ;;  %v6960_v60 = vpop.permute.xlu1 %6959  ;;  %v7146_v59 = vmul.f32 %v19237_v15, %v6682_v51  ;;  %v7338_v24 = vmul.f32 %v19238_v46, %v6682_v51 }
 0x599   : > { %v7069_v9 = vsub.f32 %v19359_v20, %v6960_v60  ;;  %v6954_v57 = vpop.permute.xlu0 %6953  ;;  %7503 = vperm.xlu1 %10375, %v16309_v48  }
 0x59a   : > { %v7066_v50 = vsub.f32 %v19360_v7, %v6954_v57  ;;  %7506 = vperm.xlu0 %10376, %v16328_v4  }
 0x59b   : > { %v7197_v30 = vmul.f32 %v19238_v46, %v7069_v9  ;;  %v7293_v26 = vmul.f32 %v19237_v15, %v7069_v9  ;;  %v19363_v9 = vld [vmem:[#allocation13_spill] sm:$0xff] }
 0x59c   : > { %v7194_v60 = vmul.f32 %v19238_v46, %v7066_v50  ;;  %v7290_v33 = vmul.f32 %v19237_v15, %v7066_v50  ;;  %v6572_v58 = vpop.permute.xlu1 %6571  ;;  %v19365_v50 = vld [vmem:[#allocation111_spill] sm:$0xff] }
 0x59d   : > { %v16496_v39 = vsub.f32 %v7149_v25, %v7197_v30  ;;  %v16498_v20 = vadd.f32 %v7341_v0, %v7293_v26  ;;  %v6578_v57 = vpop.permute.xlu0 %6577  ;;  %7951 = vperm.xlu1 %10375, %v16311_v34   ;;  %v6683_v51 = vsub.f32 %v19363_v9, %v6572_v58  ;;  %v19366_v0 = vld [vmem:[#allocation118_spill] sm:$0xff] }
 0x59e   : > { %v16501_v5 = vsub.f32 %v7146_v59, %v7194_v60  ;;  %v16503_v7 = vadd.f32 %v7338_v24, %v7290_v33  ;;  %7954 = vperm.xlu0 %10376, %v16330_v38   ;;  %v6686_v55 = vsub.f32 %v19364_v32, %v6578_v57  ;;  %v19370_v38 = vld [vmem:[#allocation54_spill] sm:$0xff] }
 0x59f   : > { %19361 = vst [vmem:[#allocation157_spill] sm:$0xff] %v16498_v20  ;;  %v7147_v26 = vmul.f32 %v19247_v8, %v6683_v51  ;;  %v7339_v59 = vmul.f32 %v19248_v14, %v6683_v51 }
 0x5a0   : > { %19362 = vst [vmem:[#allocation155_spill] sm:$0xff] %v16503_v7  ;;  %v6956_v4 = vpop.permute.xlu1 %6955  ;;  %v7150_v32 = vmul.f32 %v19247_v8, %v6686_v55  ;;  %v7342_v33 = vmul.f32 %v19248_v14, %v6686_v55 }
 0x5a1   : > { %v7067_v48 = vsub.f32 %v19365_v50, %v6956_v4  ;;  %v6962_v25 = vpop.permute.xlu0 %6961  ;;  %7515 = vperm.xlu1 %10375, %v16333_v6  }
 0x5a2   : > { %v7070_v30 = vsub.f32 %v19366_v0, %v6962_v25  ;;  %7518 = vperm.xlu0 %10376, %v16352_v27  }
 0x5a3   : > { %v7195_v24 = vmul.f32 %v19248_v14, %v7067_v48  ;;  %v7291_v60 = vmul.f32 %v19247_v8, %v7067_v48  ;;  %v19369_v48 = vld [vmem:[#allocation17_spill] sm:$0xff] }
 0x5a4   : > { %v7198_v4 = vmul.f32 %v19248_v14, %v7070_v30  ;;  %v7294_v58 = vmul.f32 %v19247_v8, %v7070_v30  ;;  %v6580_v57 = vpop.permute.xlu1 %6579  ;;  %v19371_v30 = vld [vmem:[#allocation116_spill] sm:$0xff] }
 0x5a5   : > { %v16520_v9 = vsub.f32 %v7147_v26, %v7195_v24  ;;  %v16522_v50 = vadd.f32 %v7339_v59, %v7291_v60  ;;  %v6586_v25 = vpop.permute.xlu0 %6585  ;;  %7963 = vperm.xlu1 %10375, %v16335_v12   ;;  %v6687_v55 = vsub.f32 %v19369_v48, %v6580_v57  ;;  %v19372_v59 = vld [vmem:[#allocation123_spill] sm:$0xff] }
 0x5a6   : > { %v16525_v51 = vsub.f32 %v7150_v32, %v7198_v4  ;;  %v16527_v0 = vadd.f32 %v7342_v33, %v7294_v58  ;;  %7966 = vperm.xlu0 %10376, %v16354_v40   ;;  %v6690_v34 = vsub.f32 %v19370_v38, %v6586_v25  ;;  %v19377_v40 = vld [vmem:[#allocation18_spill] sm:$0xff] }
 0x5a7   : > { %19367 = vst [vmem:[#allocation156_spill] sm:$0xff] %v16522_v50  ;;  %v7151_v60 = vmul.f32 %v19226_v19, %v6687_v55  ;;  %v7343_v32 = vmul.f32 %v19227_v63, %v6687_v55 }
 0x5a8   : > { %19368 = vst [vmem:[#allocation140_spill] sm:$0xff] %v16527_v0  ;;  %v6964_v27 = vpop.permute.xlu1 %6963  ;;  %v7154_v38 = vmul.f32 %v19226_v19, %v6690_v34  ;;  %v7346_v58 = vmul.f32 %v19227_v63, %v6690_v34 }
 0x5a9   : > { %v7071_v6 = vsub.f32 %v19371_v30, %v6964_v27  ;;  %v6970_v26 = vpop.permute.xlu0 %6969  ;;  %7509 = vperm.xlu1 %10375, %v16357_v37  }
 0x5aa   : > { %v7074_v24 = vsub.f32 %v19372_v59, %v6970_v26  ;;  %7512 = vperm.xlu0 %10376, %v16376_v45  }
 0x5ab   : > { %v7199_v33 = vmul.f32 %v19227_v63, %v7071_v6  ;;  %v7295_v4 = vmul.f32 %v19226_v19, %v7071_v6  ;;  %v19376_v6 = vld [vmem:[#allocation58_spill] sm:$0xff] }
 0x5ac   : > { %v7202_v27 = vmul.f32 %v19227_v63, %v7074_v24  ;;  %v7298_v57 = vmul.f32 %v19226_v19, %v7074_v24  ;;  %v6588_v25 = vpop.permute.xlu1 %6587  ;;  %v19378_v24 = vld [vmem:[#allocation126_spill] sm:$0xff] }
 0x5ad   : > { %v16544_v48 = vsub.f32 %v7151_v60, %v7199_v33  ;;  %v16546_v30 = vadd.f32 %v7343_v32, %v7295_v4  ;;  %v6582_v26 = vpop.permute.xlu0 %6581  ;;  %7957 = vperm.xlu1 %10375, %v16359_v3   ;;  %v6691_v34 = vsub.f32 %v19376_v6, %v6588_v25  ;;  %v19379_v32 = vld [vmem:[#allocation119_spill] sm:$0xff] }
 0x5ae   : > { %v16549_v55 = vsub.f32 %v7154_v38, %v7202_v27  ;;  %v16551_v59 = vadd.f32 %v7346_v58, %v7298_v57  ;;  %7960 = vperm.xlu0 %10376, %v16378_v62   ;;  %v6688_v12 = vsub.f32 %v19377_v40, %v6582_v26  ;;  %v19384_v62 = vld [vmem:[#allocation32_spill] sm:$0xff] }
 0x5af   : > { %19373 = vst [vmem:[#allocation141_spill] sm:$0xff] %v16544_v48  ;;  %19374 = vst [vmem:[#allocation31_spill] sm:$0xff] %v16546_v30  ;;  %v7155_v4 = vmul.f32 %v19237_v15, %v6691_v34  ;;  %v7347_v38 = vmul.f32 %v19238_v46, %v6691_v34 }
 0x5b0   : > { %19375 = vst [vmem:[#allocation73_spill] sm:$0xff] %v16551_v59  ;;  %v6972_v45 = vpop.permute.xlu1 %6971  ;;  %v7152_v40 = vmul.f32 %v19237_v15, %v6688_v12  ;;  %v7344_v57 = vmul.f32 %v19238_v46, %v6688_v12 }
 0x5b1   : > { %v7075_v37 = vsub.f32 %v19378_v24, %v6972_v45  ;;  %v6966_v60 = vpop.permute.xlu0 %6965  ;;  %7521 = vperm.xlu1 %10375, %v16381_v54  }
 0x5b2   : > { %v7072_v33 = vsub.f32 %v19379_v32, %v6966_v60  ;;  %7524 = vperm.xlu0 %10376, %v16400_v31  }
 0x5b3   : > { %v7203_v58 = vmul.f32 %v19238_v46, %v7075_v37  ;;  %v7299_v27 = vmul.f32 %v19237_v15, %v7075_v37  ;;  %v19383_v37 = vld [vmem:[#allocation52_spill] sm:$0xff] }
 0x5b4   : > { %v7200_v45 = vmul.f32 %v19238_v46, %v7072_v33  ;;  %v7296_v25 = vmul.f32 %v19237_v15, %v7072_v33  ;;  %v6584_v26 = vpop.permute.xlu1 %6583  ;;  %v19385_v33 = vld [vmem:[#allocation122_spill] sm:$0xff] }
 0x5b5   : > { %v16568_v6 = vsub.f32 %v7155_v4, %v7203_v58  ;;  %v16570_v24 = vadd.f32 %v7347_v38, %v7299_v27  ;;  %v6590_v60 = vpop.permute.xlu0 %6589  ;;  %7969 = vperm.xlu1 %10375, %v16383_v13   ;;  %v6689_v12 = vsub.f32 %v19383_v37, %v6584_v26  ;;  %v19386_v38 = vld [vmem:[#allocation130_spill] sm:$0xff] }
 0x5b6   : > { %v16573_v34 = vsub.f32 %v7152_v40, %v7200_v45  ;;  %v16575_v32 = vadd.f32 %v7344_v57, %v7296_v25  ;;  %7972 = vperm.xlu0 %10376, %v16402_v1   ;;  %v6692_v3 = vsub.f32 %v19384_v62, %v6590_v60  ;;  %v19392_v1 = vld [vmem:[#allocation38_spill] sm:$0xff] }
 0x5b7   : > { %19380 = vst [vmem:[#allocation56_spill] sm:$0xff] %v16568_v6  ;;  %19381 = vst [vmem:[#allocation30_spill] sm:$0xff] %v16570_v24  ;;  %v7153_v27 = vmul.f32 %v19247_v8, %v6689_v12  ;;  %v7345_v40 = vmul.f32 %v19248_v14, %v6689_v12 }
 0x5b8   : > { %19382 = vst [vmem:[#allocation142_spill] sm:$0xff] %v16575_v32  ;;  %v6968_v31 = vpop.permute.xlu1 %6967  ;;  %v7156_v62 = vmul.f32 %v19247_v8, %v6692_v3  ;;  %v7348_v25 = vmul.f32 %v19248_v14, %v6692_v3 }
 0x5b9   : > { %v7073_v54 = vsub.f32 %v19385_v33, %v6968_v31  ;;  %v6974_v4 = vpop.permute.xlu0 %6973  ;;  %7533 = vperm.xlu1 %10375, %v16405_v29  }
 0x5ba   : > { %v7076_v58 = vsub.f32 %v19386_v38, %v6974_v4  ;;  %7536 = vperm.xlu0 %10376, %v16424_v35  }
 0x5bb   : > { %v7201_v57 = vmul.f32 %v19248_v14, %v7073_v54  ;;  %v7297_v45 = vmul.f32 %v19247_v8, %v7073_v54  ;;  %v19391_v54 = vld [vmem:[#allocation72_spill] sm:$0xff] }
 0x5bc   : > { %v7204_v31 = vmul.f32 %v19248_v14, %v7076_v58  ;;  %v7300_v26 = vmul.f32 %v19247_v8, %v7076_v58  ;;  %v6592_v60 = vpop.permute.xlu1 %6591  ;;  %v19393_v58 = vld [vmem:[#allocation127_spill] sm:$0xff] }
 0x5bd   : > { %v16592_v37 = vsub.f32 %v7153_v27, %v7201_v57  ;;  %v16594_v33 = vadd.f32 %v7345_v40, %v7297_v45  ;;  %v6598_v4 = vpop.permute.xlu0 %6597  ;;  %7981 = vperm.xlu1 %10375, %v16407_v10   ;;  %v6693_v3 = vsub.f32 %v19391_v54, %v6592_v60  ;;  %v19394_v40 = vld [vmem:[#allocation134_spill] sm:$0xff] }
 0x5be   : > { %v16597_v12 = vsub.f32 %v7156_v62, %v7204_v31  ;;  %v16599_v38 = vadd.f32 %v7348_v25, %v7300_v26  ;;  %7984 = vperm.xlu0 %10376, %v16426_v47   ;;  %v6696_v13 = vsub.f32 %v19392_v1, %v6598_v4  ;;  %v19400_v47 = vld [vmem:[#allocation53_spill] sm:$0xff] }
 0x5bf   : > { %19387 = vst [vmem:[#allocation143_spill] sm:$0xff] %v16592_v37  ;;  %19388 = vst [vmem:[#allocation97_spill] sm:$0xff] %v16594_v33  ;;  %v7157_v45 = vmul.f32 %v19226_v19, %v6693_v3  ;;  %v7349_v62 = vmul.f32 %v19227_v63, %v6693_v3 }
 0x5c0   : > { %19389 = vst [vmem:[#allocation8_spill] sm:$0xff] %v16597_v12  ;;  %19390 = vst [vmem:[#allocation51_spill] sm:$0xff] %v16599_v38  ;;  %v6976_v35 = vpop.permute.xlu1 %6975  ;;  %v7160_v1 = vmul.f32 %v19226_v19, %v6696_v13  ;;  %v7352_v26 = vmul.f32 %v19227_v63, %v6696_v13 }
 0x5c1   : > { %v7077_v29 = vsub.f32 %v19393_v58, %v6976_v35  ;;  %v6982_v27 = vpop.permute.xlu0 %6981  ;;  %7527 = vperm.xlu1 %10375, %v16429_v52  }
 0x5c2   : > { %v7080_v57 = vsub.f32 %v19394_v40, %v6982_v27  ;;  %7530 = vperm.xlu0 %10376, %v16448_v11  }
 0x5c3   : > { %v7205_v25 = vmul.f32 %v19227_v63, %v7077_v29  ;;  %v7301_v31 = vmul.f32 %v19226_v19, %v7077_v29  ;;  %v19399_v29 = vld [vmem:[#allocation46_spill] sm:$0xff] }
 0x5c4   : > { %v7208_v35 = vmul.f32 %v19227_v63, %v7080_v57  ;;  %v7304_v60 = vmul.f32 %v19226_v19, %v7080_v57  ;;  %v6600_v4 = vpop.permute.xlu1 %6599  ;;  %v19401_v19 = vld [vmem:[#allocation136_spill] sm:$0xff] }
 0x5c5   : > { %v16616_v54 = vsub.f32 %v7157_v45, %v7205_v25  ;;  %v16618_v58 = vadd.f32 %v7349_v62, %v7301_v31  ;;  %v6594_v27 = vpop.permute.xlu0 %6593  ;;  %7975 = vperm.xlu1 %10375, %v16431_v41   ;;  %v6697_v13 = vsub.f32 %v19399_v29, %v6600_v4  ;;  %v19402_v62 = vld [vmem:[#allocation131_spill] sm:$0xff] }
 0x5c6   : > { %v16621_v3 = vsub.f32 %v7160_v1, %v7208_v35  ;;  %v16623_v40 = vadd.f32 %v7352_v26, %v7304_v60  ;;  %7978 = vperm.xlu0 %10376, %v16450_v61   ;;  %v6694_v63 = vsub.f32 %v19400_v47, %v6594_v27  ;;  %v19408_v61 = vld [vmem:[#allocation65_spill] sm:$0xff] }
 0x5c7   : > { %19395 = vst [vmem:[#allocation35_spill] sm:$0xff] %v16616_v54  ;;  %19396 = vst [vmem:[#allocation39_spill] sm:$0xff] %v16618_v58  ;;  %v7161_v31 = vmul.f32 %v19237_v15, %v6697_v13  ;;  %v7353_v1 = vmul.f32 %v19238_v46, %v6697_v13 }
 0x5c8   : > { %19397 = vst [vmem:[#allocation45_spill] sm:$0xff] %v16621_v3  ;;  %19398 = vst [vmem:[#allocation98_spill] sm:$0xff] %v16623_v40  ;;  %v6984_v10 = vpop.permute.xlu1 %6983  ;;  %v7158_v47 = vmul.f32 %v19237_v15, %v6694_v63  ;;  %v7350_v60 = vmul.f32 %v19238_v46, %v6694_v63 }
 0x5c9   : > { %v7081_v57 = vsub.f32 %v19401_v19, %v6984_v10  ;;  %v6978_v45 = vpop.permute.xlu0 %6977  ;;  %7539 = vperm.xlu1 %10375, %v16453_v36  }
 0x5ca   : > { %v7078_v25 = vsub.f32 %v19402_v62, %v6978_v45  ;;  %7542 = vperm.xlu0 %10376, %v16472_v44  }
 0x5cb   : > { %v7209_v26 = vmul.f32 %v19238_v46, %v7081_v57  ;;  %v7305_v35 = vmul.f32 %v19237_v15, %v7081_v57  ;;  %v19407_v57 = vld [vmem:[#allocation75_spill] sm:$0xff] }
 0x5cc   : > { %v7206_v10 = vmul.f32 %v19238_v46, %v7078_v25  ;;  %v7302_v4 = vmul.f32 %v19237_v15, %v7078_v25  ;;  %v6596_v27 = vpop.permute.xlu1 %6595  ;;  %v19409_v15 = vld [vmem:[#allocation133_spill] sm:$0xff] }
 0x5cd   : > { %v16640_v29 = vsub.f32 %v7161_v31, %v7209_v26  ;;  %v16642_v19 = vadd.f32 %v7353_v1, %v7305_v35  ;;  %v6602_v45 = vpop.permute.xlu0 %6601  ;;  %7987 = vperm.xlu1 %10375, %v16455_v2   ;;  %v6695_v63 = vsub.f32 %v19407_v57, %v6596_v27  ;;  %v19410_v1 = vld [vmem:[#allocation139_spill] sm:$0xff] }
 0x5ce   : > { %v16645_v13 = vsub.f32 %v7158_v47, %v7206_v10  ;;  %v16647_v62 = vadd.f32 %v7350_v60, %v7302_v4  ;;  %7990 = vperm.xlu0 %10376, %v16474_v53   ;;  %v6698_v46 = vsub.f32 %v19408_v61, %v6602_v45 }
 0x5cf   : > { %19403 = vst [vmem:[#allocation16_spill] sm:$0xff] %v16640_v29  ;;  %19404 = vst [vmem:[#allocation79_spill] sm:$0xff] %v16642_v19  ;;  %v7159_v35 = vmul.f32 %v19247_v8, %v6695_v63  ;;  %v7351_v47 = vmul.f32 %v19248_v14, %v6695_v63 }
 0x5d0   : > { %19405 = vst [vmem:[#allocation90_spill] sm:$0xff] %v16645_v13  ;;  %19406 = vst [vmem:[#allocation55_spill] sm:$0xff] %v16647_v62  ;;  %v6980_v41 = vpop.permute.xlu1 %6979  ;;  %v7162_v61 = vmul.f32 %v19247_v8, %v6698_v46  ;;  %v7354_v4 = vmul.f32 %v19248_v14, %v6698_v46 }
 0x5d1   : > { %v7079_v25 = vsub.f32 %v19409_v15, %v6980_v41  ;;  %v6986_v31 = vpop.permute.xlu0 %6985  ;;  %7551 = vperm.xlu1 %10375, %v16477_v28  }
 0x5d2   : > { %v7082_v26 = vsub.f32 %v19410_v1, %v6986_v31  ;;  %7554 = vperm.xlu0 %10376, %v16496_v39  }
 0x5d3   : > { %v7207_v60 = vmul.f32 %v19248_v14, %v7079_v25  ;;  %v7303_v10 = vmul.f32 %v19247_v8, %v7079_v25 }
 0x5d4   : > { %v7210_v41 = vmul.f32 %v19248_v14, %v7082_v26  ;;  %v7306_v27 = vmul.f32 %v19247_v8, %v7082_v26  ;;  %v16664_v45 = vpop.permute.xlu1 %7452 }
 0x5d5   : > { %v16666_v57 = vsub.f32 %v7159_v35, %v7207_v60  ;;  %v16668_v15 = vadd.f32 %v7351_v47, %v7303_v10  ;;  %v16670_v31 = vpop.permute.xlu0 %7900  ;;  %7999 = vperm.xlu1 %10375, %v16479_v56  }
 0x5d6   : > { %v16673_v63 = vsub.f32 %v7162_v61, %v7210_v41  ;;  %v16675_v25 = vadd.f32 %v7354_v4, %v7306_v27  ;;  %8002 = vperm.xlu0 %10376, %v16498_v20  }
 0x5d7   : > { %19411 = vst [vmem:[#allocation12_spill] sm:$0xff] %v16666_v57  ;;  %19412 = vst [vmem:[#allocation99_spill] sm:$0xff] %v16668_v15 }
 0x5d8   : > { %19413 = vst [vmem:[#allocation60_spill] sm:$0xff] %v16673_v63  ;;  %19414 = vst [vmem:[#allocation23_spill] sm:$0xff] %v16675_v25  ;;  %v16678_v46 = vpop.permute.xlu1 %7461 }
 0x5d9   : > { %v16680_v14 = vpop.permute.xlu0 %7455  ;;  %7545 = vperm.xlu1 %10375, %v16501_v5  }
 0x5da   : > { %7548 = vperm.xlu0 %10376, %v16520_v9  }
 0x5dc   : > { %v16684_v8 = vpop.permute.xlu1 %7909 }
 0x5dd   : > { %v16686_v1 = vpop.permute.xlu0 %7464  ;;  %7993 = vperm.xlu1 %10375, %v16503_v7  }
 0x5de   : > { %7996 = vperm.xlu0 %10376, %v16522_v50  }
 0x5e0   : > { %v16690_v26 = vpop.permute.xlu1 %7903 }
 0x5e1   : > { %v16692_v35 = vpop.permute.xlu0 %7912  ;;  %7557 = vperm.xlu1 %10375, %v16525_v51  }
 0x5e2   : > { %7560 = vperm.xlu0 %10376, %v16544_v48  }
 0x5e4   : > { %v16696_v47 = vpop.permute.xlu1 %7458 }
 0x5e5   : > { %v16698_v60 = vpop.permute.xlu0 %7906  ;;  %8005 = vperm.xlu1 %10375, %v16527_v0  }
 0x5e6   : > { %8008 = vperm.xlu0 %10376, %v16546_v30  }
 0x5e8   : > { %v16702_v10 = vpop.permute.xlu1 %7467 }
 0x5e9   : > { %v16704_v61 = vpop.permute.xlu0 %7470  ;;  %7569 = vperm.xlu1 %10375, %v16549_v55  }
 0x5ea   : > { %7572 = vperm.xlu0 %10376, %v16568_v6   ;;  %v19415_v6 = vlaneseq }
 0x5ec   : > { %v16708_v4 = vpop.permute.xlu1 %7915 }
 0x5ed   : > { %v16710_v41 = vpop.permute.xlu0 %7918  ;;  %8017 = vperm.xlu1 %10375, %v16551_v59  }
 0x5ee   : > { %8020 = vperm.xlu0 %10376, %v16570_v24  }
 0x5f0   : > { %v16714_v27 = vpop.permute.xlu1 %7479 }
 0x5f1   : > { %v16716_v20 = vpop.permute.xlu0 %7482  ;;  %7563 = vperm.xlu1 %10375, %v16573_v34  }
 0x5f2   : > { %7566 = vperm.xlu0 %10376, %v16592_v37  }
 0x5f4   : > { %v16720_v30 = vpop.permute.xlu1 %7927 }
 0x5f5   : > { %v16722_v50 = vpop.permute.xlu0 %7930  ;;  %8011 = vperm.xlu1 %10375, %v16575_v32  }
 0x5f6   : > { %8014 = vperm.xlu0 %10376, %v16594_v33  }
 0x5f8   : > { %v16726_v0 = vpop.permute.xlu1 %7473 }
 0x5f9   : > { %v16728_v59 = vpop.permute.xlu0 %7476  ;;  %7575 = vperm.xlu1 %10375, %v16597_v12  }
 0x5fa   : > { %7578 = vperm.xlu0 %10376, %v16616_v54  }
 0x5fc   : > { %v16732_v24 = vpop.permute.xlu1 %7921 }
 0x5fd   : > { %v16734_v53 = vpop.permute.xlu0 %7924  ;;  %8023 = vperm.xlu1 %10375, %v16599_v38  }
 0x5fe   : > { %8026 = vperm.xlu0 %10376, %v16618_v58  }
 0x600   : > { %v16738_v56 = vpop.permute.xlu1 %7485 }
 0x601   : > { %v16740_v32 = vpop.permute.xlu0 %7488  ;;  %7587 = vperm.xlu1 %10375, %v16621_v3  }
 0x602   : > { %7590 = vperm.xlu0 %10376, %v16640_v29  }
 0x604   : > { %v16744_v33 = vpop.permute.xlu1 %7933 }
 0x605   : > { %v16746_v7 = vpop.permute.xlu0 %7936  ;;  %8035 = vperm.xlu1 %10375, %v16623_v40  }
 0x606   : > { %8038 = vperm.xlu0 %10376, %v16642_v19   ;;  %v10697_v19 = vmov 1  }
 0x608   : > { %v16750_v2 = vpop.permute.xlu1 %7497 }
 0x609   : > { %v16752_v38 = vpop.permute.xlu0 %7500  ;;  %7581 = vperm.xlu1 %10375, %v16645_v13  }
 0x60a   : > { %7584 = vperm.xlu0 %10376, %v16666_v57  }
 0x60c   : > { %v16756_v58 = vpop.permute.xlu1 %7945 }
 0x60d   : > { %v16758_v54 = vpop.permute.xlu0 %7948  ;;  %8029 = vperm.xlu1 %10375, %v16647_v62   ;;  %v7596_v62 = vand.u32 127, %v19415_v6 }
 0x60e   : > { %8032 = vperm.xlu0 %10376, %v16668_v15  }
 0x60f   : > { %v7601_v15 = vadd.s32 4294967288, %v7596_v62  ;;  %v7608_v37 = vadd.s32 4294967280, %v7596_v62 }
 0x610   : > { %v16762_v29 = vpop.permute.xlu1 %7491 }
 0x611   : > { %v16764_v40 = vpop.permute.xlu0 %7494  ;;  %7593 = vperm.xlu1 %10375, %v16673_v63  }
 0x612   : > { %10377 = vset.pattern.permute.xlu0 %v10697_v19 }
 0x613   : > { %8286 = vperm.xlu0 %10377, %v19294_v16   ;;  %v19416_v16 = vld [vmem:[#allocation2_spill] sm:$0xff] }
 0x614   : > { %v16768_v3 = vpop.permute.xlu1 %7939  ;;  %v16782_v63 = vsub.s32 %v7596_v62, %v19416_v16 }
 0x615   : > { %v16770_v57 = vpop.permute.xlu0 %7942  ;;  %8041 = vperm.xlu1 %10375, %v16675_v25   ;;  %v16785_v25 = vsub.s32 %v7601_v15, %v19416_v16 }
 0x616   : > { %v7600_v62 = vrot.slane %v16664_v45, %v16782_v63  ;;  %v8046_v15 = vrot.slane %v16670_v31, %v16782_v63 }
 0x617   : > { %8295 = vperm.xlu0 %10377, %v16064_v43   ;;  %v16790_v43 = vsub.s32 %v7608_v37, %v19416_v16 }
 0x618   : > { %v16775_v13 = vpop.permute.xlu1 %7503 }
 0x619   : > { %v16777_v12 = vpop.permute.xlu0 %7506  ;;  %10378 = vset.pattern.permute.xlu1 %v10697_v19  ;;  %v7622_v19 = vrot.slane %v16686_v1, %v16785_v25  ;;  %v7627_v37 = vrot.slane %v16702_v10, %v16790_v43  ;;  %v8069_v45 = vrot.slane %v16708_v4, %v16790_v43  ;;  %v7641_v31 = vrot.slane %v16728_v59, %v16790_v43 }
 0x61a   : > { %8289 = vperm.xlu1 %10378, %v16096_v18   ;;  %v7636_v18 = vrot.slane %v16726_v0, %v16785_v25  ;;  %v7618_v0 = vrot.slane %v16678_v46, %v16782_v63  ;;  %v7612_v16 = vrot.slane %v16696_v47, %v16790_v43  ;;  %v8055_v4 = vrot.slane %v16698_v60, %v16790_v43 }
 0x61b   : > { %8301 = vperm.xlu0 %10377, %v16128_v22   ;;  %v8064_v22 = vrot.slane %v16692_v35, %v16785_v25  ;;  %v7605_v35 = vrot.slane %v16680_v14, %v16785_v25  ;;  %v7650_v47 = vrot.slane %v16716_v20, %v16785_v25 }
 0x61c   : > { %v16787_v6 = vpop.permute.xlu1 %7951  ;;  %v7623_v46 = vsel %vm7606_vm2, %v7622_v19, %v7618_v0  ;;  %v8078_v19 = vrot.slane %v16732_v24, %v16785_v25  ;;  %v7655_v0 = vrot.slane %v16738_v56, %v16790_v43 }
 0x61d   : > { %v16792_v48 = vpop.permute.xlu0 %7954  ;;  %v7628_v59 = vsel %vm7613_vm3, %v7627_v37, %v7623_v46  ;;  %v7674_v46 = vrot.slane %v16750_v2, %v16782_v63  ;;  %v8097_v2 = vrot.slane %v16744_v33, %v16790_v43 }
 0x61e   : > { %8292 = vperm.xlu1 %10378, %v16120_v42   ;;  %v7632_v42 = vrot.slane %v16704_v61, %v16782_v63  ;;  %v8050_v61 = vrot.slane %v16690_v26, %v16785_v25  ;;  %v7646_v26 = vrot.slane %v16714_v27, %v16782_v63 }
 0x61f   : > { %8307 = vperm.xlu0 %10377, %v16192_v23   ;;  %v8060_v23 = vrot.slane %v16684_v8, %v16782_v63 }
 0x620   : > { %v16812_v1 = vpop.permute.xlu1 %7515  ;;  %v7637_v14 = vsel %vm7606_vm2, %v7636_v18, %v7632_v42  ;;  %v8092_v18 = vrot.slane %v16722_v50, %v16785_v25  ;;  %v8051_v20 = vsel %vm7606_vm2, %v8050_v61, %v8046_v15  ;;  %v8083_v50 = vrot.slane %v16734_v53, %v16790_v43 }
 0x621   : > { %v16822_v10 = vpop.permute.xlu0 %7518  ;;  %v8065_v8 = vsel %vm7606_vm2, %v8064_v22, %v8060_v23  ;;  %v7607_v22 = vsel %vm7606_vm2, %v7605_v35, %v7600_v62  ;;  %v7642_v27 = vsel %vm7613_vm3, %v7641_v31, %v7637_v14  ;;  %v8056_v62 = vsel %vm7613_vm3, %v8055_v4, %v8051_v20  ;;  %v19417_v35 = vld [vmem:[#allocation165_spill] sm:$0xff] }
 0x622   : > { %8298 = vperm.xlu1 %10378, %v16088_v49   ;;  %v8088_v49 = vrot.slane %v16720_v30, %v16782_v63  ;;  %v8070_v24 = vsel %vm7613_vm3, %v8069_v45, %v8065_v8  ;;  %v7614_v30 = vsel %vm7613_vm3, %v7612_v16, %v7607_v22  ;;  %v7664_v15 = vrot.slane %v16762_v29, %v16785_v25  ;;  %v19420_v20 = vld [vmem:[#allocation161_spill] sm:$0xff] }
 0x623   : > { %8313 = vperm.xlu0 %10377, %v16160_v17   ;;  %v8074_v17 = vrot.slane %v16710_v41, %v16782_v63  ;;  %v7826_v41 = vsel %vm7825_vm4, %v7628_v59, %v7614_v30  ;;  %v8267_v53 = vsel %vm7825_vm4, %v8070_v24, %v8056_v62  ;;  %v7651_v23 = vsel %vm7606_vm2, %v7650_v47, %v7646_v26  ;;  %v19418_v59 = vld [vmem:[#allocation147_spill] sm:$0xff]  ;;  %v19419_v47 = vld [vmem:[#allocation117_spill] sm:$0xff] }
 0x624   : > { %v16846_v60 = vpop.permute.xlu1 %7963  ;;  %v8093_v56 = vsel %vm7606_vm2, %v8092_v18, %v8088_v49  ;;  %v7660_v31 = vrot.slane %v16740_v32, %v16782_v63  ;;  %v7678_v29 = vrot.slane %v16752_v38, %v16785_v25  ;;  %v7656_v8 = vsel %vm7613_vm3, %v7655_v0, %v7651_v23  ;;  %v19421_v62 = vld [vmem:[#allocation149_spill] sm:$0xff] }
 0x625   : > { %v16853_v37 = vpop.permute.xlu0 %7966  ;;  %v8079_v42 = vsel %vm7606_vm2, %v8078_v19, %v8074_v17  ;;  %v7669_v4 = vrot.slane %v16764_v40, %v16790_v43  ;;  %v8106_v32 = vrot.slane %v16768_v3, %v16785_v25  ;;  %v7683_v19 = vrot.slane %v16775_v13, %v16790_v43 }
 0x626   : > { %8304 = vperm.xlu1 %10378, %v16152_v21   ;;  %v7828_v21 = vsel %vm7827_vm5, %v7642_v27, %v7826_v41  ;;  %v8084_v14 = vsel %vm7613_vm3, %v8083_v50, %v8079_v42  ;;  %v7665_v38 = vsel %vm7606_vm2, %v7664_v15, %v7660_v31  ;;  %v7688_v26 = vrot.slane %v16777_v12, %v16782_v63 }
 0x627   : > { %8319 = vperm.xlu0 %10377, %v19417_v35   ;;  %v8102_v40 = vrot.slane %v16746_v7, %v16782_v63  ;;  %v8116_v3 = vrot.slane %v16756_v58, %v16782_v63  ;;  %v8120_v49 = vrot.slane %v16758_v54, %v16785_v25  ;;  %v7679_v13 = vsel %vm7606_vm2, %v7678_v29, %v7674_v46  ;;  %v19422_v29 = vld [vmem:[#allocation107_spill] sm:$0xff] }
 0x628   : > { %v7510_v45 = vpop.permute.xlu1 %7509  ;;  %v8111_v12 = vrot.slane %v16770_v57, %v16790_v43  ;;  %v7670_v17 = vsel %vm7613_vm3, %v7669_v4, %v7665_v38  ;;  %v7702_v54 = vrot.slane %v16812_v1, %v16782_v63  ;;  %v7706_v27 = vrot.slane %v16822_v10, %v16785_v25  ;;  %v19423_v4 = vld [vmem:[#allocation121_spill] sm:$0xff] }
 0x629   : > { %v7692_v61 = vrot.slane %v7510_v45, %v16785_v25  ;;  %v7513_v16 = vpop.permute.xlu0 %7512  ;;  %v8107_v58 = vsel %vm7606_vm2, %v8106_v32, %v8102_v40  ;;  %v7830_v30 = vsel %vm7829_vm6, %v7656_v8, %v7828_v21  ;;  %v7684_v57 = vsel %vm7613_vm3, %v7683_v19, %v7679_v13 }
 0x62a   : > { %8310 = vperm.xlu1 %10378, %v19418_v59   ;;  %v7697_v33 = vrot.slane %v7513_v16, %v16790_v43  ;;  %v8125_v50 = vrot.slane %v16787_v6, %v16790_v43  ;;  %v8130_v0 = vrot.slane %v16792_v48, %v16782_v63  ;;  %v8098_v1 = vsel %vm7613_vm3, %v8097_v2, %v8093_v56 }
 0x62b   : > { %8325 = vperm.xlu0 %10377, %v19419_v47   ;;  %v7693_v22 = vsel %vm7606_vm2, %v7692_v61, %v7688_v26  ;;  %v8121_v10 = vsel %vm7606_vm2, %v8120_v49, %v8116_v3  ;;  %v7832_v35 = vsel %vm7831_vm7, %v7670_v17, %v7830_v30  ;;  %v8112_v6 = vsel %vm7613_vm3, %v8111_v12, %v8107_v58  ;;  %v19424_v47 = vld [vmem:[#allocation113_spill] sm:$0xff]  ;;  %v19426_v12 = vld [vmem:[#allocation151_spill] sm:$0xff]  ;;  %v19429_v58 = vld [vmem:[#allocation152_spill] sm:$0xff] }
 0x62c   : > { %v7958_v18 = vpop.permute.xlu1 %7957  ;;  %v7698_v41 = vsel %vm7613_vm3, %v7697_v33, %v7693_v22  ;;  %v7834_v45 = vsel %vm7833_vm8, %v7684_v57, %v7832_v35  ;;  %v7707_v56 = vsel %vm7606_vm2, %v7706_v27, %v7702_v54  ;;  %v8144_v31 = vrot.slane %v16846_v60, %v16782_v63  ;;  %v19425_v49 = vld [vmem:[#allocation129_spill] sm:$0xff]  ;;  %v19434_v35 = vld [vmem:[#allocation80_spill] sm:$0xff] }
 0x62d   : > { %v8134_v24 = vrot.slane %v7958_v18, %v16785_v25  ;;  %v7961_v7 = vpop.permute.xlu0 %7960  ;;  %v8148_v46 = vrot.slane %v16853_v37, %v16785_v25  ;;  %v8268_v61 = vsel %vm7827_vm5, %v8084_v14, %v8267_v53  ;;  %v8126_v16 = vsel %vm7613_vm3, %v8125_v50, %v8121_v10  ;;  %v19427_v22 = vld [vmem:[#allocation125_spill] sm:$0xff]  ;;  %v19431_v50 = vld [vmem:[#allocation68_spill] sm:$0xff]  ;;  %v19433_v10 = vld [vmem:[#allocation10_spill] sm:$0xff] }
 0x62e   : > { %8316 = vperm.xlu1 %10378, %v19420_v20   ;;  %v8139_v42 = vrot.slane %v7961_v7, %v16790_v43  ;;  %v7836_v8 = vsel %vm7835_vm9, %v7698_v41, %v7834_v45  ;;  %v8269_v37 = vsel %vm7829_vm6, %v8098_v1, %v8268_v61  ;;  %v19428_v17 = vld [vmem:[#allocation25_spill] sm:$0xff]  ;;  %v19430_v20 = vld [vmem:[#allocation22_spill] sm:$0xff]  ;;  %v19436_v45 = vld [vmem:[#allocation8_spill] sm:$0xff] }
 0x62f   : > { %8331 = vperm.xlu0 %10377, %v19421_v62   ;;  %v8135_v23 = vsel %vm7606_vm2, %v8134_v24, %v8130_v0  ;;  %v8270_v38 = vsel %vm7831_vm7, %v8112_v6, %v8269_v37  ;;  %v8149_v26 = vsel %vm7606_vm2, %v8148_v46, %v8144_v31  ;;  %v19432_v0 = vld [vmem:[#allocation135_spill] sm:$0xff]  ;;  %v19438_v31 = vld [vmem:[#allocation90_spill] sm:$0xff] }
 0x630   : > { %v7522_v15 = vpop.permute.xlu1 %7521  ;;  %v8140_v32 = vsel %vm7613_vm3, %v8139_v42, %v8135_v23  ;;  %v8271_v19 = vsel %vm7833_vm8, %v8126_v16, %v8270_v38 }
 0x631   : > { %v7711_v48 = vrot.slane %v7522_v15, %v16790_v43  ;;  %v16929_v21 = vpop.permute.xlu0 %7524  ;;  %v8272_v40 = vsel %vm7835_vm9, %v8140_v32, %v8271_v19  ;;  %v19443_v32 = vld [vmem:[#allocation12_spill] sm:$0xff] }
 0x632   : > { %8322 = vperm.xlu1 %10378, %v19422_v29   ;;  %v19440_v29 = vld [vmem:[#allocation45_spill] sm:$0xff]  ;;  %v19446_v19 = vld [vmem:[#allocation144_spill] sm:$0xff] }
 0x633   : > { %v7712_v60 = vsel %vm7613_vm3, %v7711_v48, %v7707_v56  ;;  %8337 = vperm.xlu0 %10377, %v19423_v4  }
 0x634   : > { %v7838_v59 = vsel %vm7837_vm10, %v7712_v60, %v7836_v8  ;;  %v7970_v2 = vpop.permute.xlu1 %7969  ;;  %v19441_v8 = vld [vmem:[#allocation35_spill] sm:$0xff]  ;;  %v19442_v60 = vld [vmem:[#allocation60_spill] sm:$0xff] }
 0x635   : > { %7849 = vst.msk [vmem:[%s16942_s14] sm:$0xff] %vm7848_vm11, %v7838_v59  ;;  %v8153_v53 = vrot.slane %v7970_v2, %v16790_v43  ;;  %v16957_v14 = vpop.permute.xlu0 %7972  ;;  %v19444_v59 = vld [vmem:[#allocation163_spill] sm:$0xff] }
 0x636   : > { %8328 = vperm.xlu1 %10378, %v19424_v47  }
 0x637   : > { %v8154_v3 = vsel %vm7613_vm3, %v8153_v53, %v8149_v26  ;;  %8343 = vperm.xlu0 %10377, %v19425_v49   ;;  %v19445_v53 = vld [vmem:[#allocation16_spill] sm:$0xff] }
 0x638   : > { %v8273_v33 = vsel %vm7837_vm10, %v8154_v3, %v8272_v40  ;;  %v16973_v18 = vpop.permute.xlu1 %7533  ;;  %v19447_v40 = vld [vmem:[#allocation159_spill] sm:$0xff]  ;;  %v19448_v3 = vld [vmem:[#allocation76_spill] sm:$0xff] }
 0x639   : > { %8283 = vst.msk [vmem:[%s16966_s17] sm:$0xff] %vm7848_vm11, %v8273_v33  ;;  %v16977_v13 = vpop.permute.xlu0 %7536  ;;  %v7730_v33 = vrot.slane %v16973_v18, %v16782_v63 }
 0x63a   : > { %8334 = vperm.xlu1 %10378, %v19426_v12   ;;  %v7734_v12 = vrot.slane %v16977_v13, %v16785_v25 }
 0x63b   : > { %8349 = vperm.xlu0 %10377, %v19427_v22  }
 0x63c   : > { %v16981_v24 = vpop.permute.xlu1 %7981 }
 0x63d   : > { %v16983_v7 = vpop.permute.xlu0 %7984 }
 0x63e   : > { %8340 = vperm.xlu1 %10378, %v19428_v17   ;;  %v8172_v17 = vrot.slane %v16981_v24, %v16782_v63  ;;  %v7716_v24 = vrot.slane %v16929_v21, %v16782_v63 }
 0x63f   : > { %8355 = vperm.xlu0 %10377, %v19429_v58   ;;  %v8176_v58 = vrot.slane %v16983_v7, %v16785_v25 }
 0x640   : > { %v16987_v54 = vpop.permute.xlu1 %7527 }
 0x641   : > { %v16989_v27 = vpop.permute.xlu0 %7530  ;;  %v8177_v21 = vsel %vm7606_vm2, %v8176_v58, %v8172_v17 }
 0x642   : > { %8346 = vperm.xlu1 %10378, %v19430_v20   ;;  %v7720_v20 = vrot.slane %v16987_v54, %v16785_v25  ;;  %v8158_v54 = vrot.slane %v16957_v14, %v16782_v63  ;;  %v19451_v14 = vld [vmem:[#allocation162_spill] sm:$0xff] }
 0x643   : > { %8361 = vperm.xlu0 %10377, %v16429_v52  }
 0x644   : > { %v16993_v30 = vpop.permute.xlu1 %7975 }
 0x645   : > { %v16995_v57 = vpop.permute.xlu0 %7978  ;;  %v8162_v18 = vrot.slane %v16993_v30, %v16785_v25 }
 0x646   : > { %8352 = vperm.xlu1 %10378, %v19431_v50  }
 0x647   : > { %8367 = vperm.xlu0 %10377, %v19432_v0   ;;  %v19449_v0 = vld [vmem:[#allocation145_spill] sm:$0xff] }
 0x648   : > { %v16999_v62 = vpop.permute.xlu1 %7539 }
 0x649   : > { %v17001_v1 = vpop.permute.xlu0 %7542  ;;  %v7739_v13 = vrot.slane %v16999_v62, %v16790_v43 }
 0x64a   : > { %8358 = vperm.xlu1 %10378, %v19433_v10   ;;  %v19450_v10 = vld [vmem:[#allocation166_spill] sm:$0xff]  ;;  %v7744_v7 = vrot.slane %v17001_v1, %v16782_v63  ;;  %v7725_v1 = vrot.slane %v16989_v27, %v16790_v43 }
 0x64b   : > { %8373 = vperm.xlu0 %10377, %v16453_v36  }
 0x64c   : > { %v17005_v41 = vpop.permute.xlu1 %7987 }
 0x64d   : > { %v17007_v42 = vpop.permute.xlu0 %7990  ;;  %v8181_v30 = vrot.slane %v17005_v41, %v16790_v43  ;;  %v8167_v41 = vrot.slane %v16995_v57, %v16790_v43 }
 0x64e   : > { %8364 = vperm.xlu1 %10378, %v16448_v11  }
 0x64f   : > { %8379 = vperm.xlu0 %10377, %v16501_v5  }
 0x650   : > { %v17011_v52 = vpop.permute.xlu1 %7551 }
 0x651   : > { %v17013_v15 = vpop.permute.xlu0 %7554 }
 0x652   : > { %8370 = vperm.xlu1 %10378, %v19434_v35   ;;  %v7762_v27 = vrot.slane %v17013_v15, %v16785_v25 }
 0x653   : > { %8385 = vperm.xlu0 %10377, %v16477_v28  }
 0x654   : > { %v17017_v6 = vpop.permute.xlu1 %7999 }
 0x655   : > { %v17019_v23 = vpop.permute.xlu0 %8002 }
 0x656   : > { %8376 = vperm.xlu1 %10378, %v16472_v44  }
 0x657   : > { %8391 = vperm.xlu0 %10377, %v16525_v51   ;;  %v19435_v51 = vld [vmem:[#allocation141_spill] sm:$0xff] }
 0x658   : > { %v7546_v36 = vpop.permute.xlu1 %7545 }
 0x659   : > { %v17023_v11 = vpop.permute.xlu0 %7548  ;;  %v7748_v50 = vrot.slane %v7546_v36, %v16785_v25  ;;  %v7735_v36 = vsel %vm7606_vm2, %v7734_v12, %v7730_v33  ;;  %v19454_v12 = vld [vmem:[#allocation102_spill] sm:$0xff] }
 0x65a   : > { %8382 = vperm.xlu1 %10378, %v16520_v9   ;;  %v7753_v62 = vrot.slane %v17023_v11, %v16790_v43  ;;  %v7740_v11 = vsel %vm7613_vm3, %v7739_v13, %v7735_v36 }
 0x65b   : > { %8397 = vperm.xlu0 %10377, %v16573_v34   ;;  %v19437_v34 = vld [vmem:[#allocation143_spill] sm:$0xff] }
 0x65c   : > { %v17027_v5 = vpop.permute.xlu1 %7993 }
 0x65d   : > { %v17029_v48 = vpop.permute.xlu0 %7996 }
 0x65e   : > { %8388 = vperm.xlu1 %10378, %v16496_v39   ;;  %v8195_v15 = vrot.slane %v17029_v48, %v16790_v43 }
 0x65f   : > { %8403 = vperm.xlu0 %10377, %v16549_v55   ;;  %v19439_v55 = vld [vmem:[#allocation56_spill] sm:$0xff] }
 0x660   : > { %v17033_v28 = vpop.permute.xlu1 %7557 }
 0x661   : > { %v17035_v44 = vpop.permute.xlu0 %7560 }
 0x662   : > { %8394 = vperm.xlu1 %10378, %v19435_v51  }
 0x663   : > { %8409 = vperm.xlu0 %10377, %v19436_v45   ;;  %v7721_v45 = vsel %vm7606_vm2, %v7720_v20, %v7716_v24 }
 0x664   : > { %v17039_v56 = vpop.permute.xlu1 %8005 }
 0x665   : > { %v17041_v9 = vpop.permute.xlu0 %8008 }
 0x666   : > { %8400 = vperm.xlu1 %10378, %v19437_v34   ;;  %v7749_v34 = vsel %vm7606_vm2, %v7748_v50, %v7744_v7  ;;  %v7772_v50 = vrot.slane %v17035_v44, %v16782_v63  ;;  %v19455_v44 = vld [vmem:[#allocation164_spill] sm:$0xff] }
 0x667   : > { %8415 = vperm.xlu0 %10377, %v19438_v31   ;;  %v8163_v31 = vsel %vm7606_vm2, %v8162_v18, %v8158_v54 }
 0x668   : > { %v17045_v46 = vpop.permute.xlu1 %7569 }
 0x669   : > { %v17047_v39 = vpop.permute.xlu0 %7572 }
 0x66a   : > { %8406 = vperm.xlu1 %10378, %v19439_v55   ;;  %v8190_v55 = vrot.slane %v17027_v5, %v16785_v25  ;;  %v8186_v5 = vrot.slane %v17007_v42, %v16782_v63 }
 0x66b   : > { %8421 = vperm.xlu0 %10377, %v19440_v29   ;;  %v19452_v29 = vld [vmem:[#allocation160_spill] sm:$0xff] }
 0x66c   : > { %v17051_v61 = vpop.permute.xlu1 %8017  ;;  %v8191_v42 = vsel %vm7606_vm2, %v8190_v55, %v8186_v5 }
 0x66d   : > { %v17053_v16 = vpop.permute.xlu0 %8020 }
 0x66e   : > { %8412 = vperm.xlu1 %10378, %v19441_v8   ;;  %v7758_v8 = vrot.slane %v17011_v52, %v16782_v63  ;;  %v7726_v52 = vsel %vm7613_vm3, %v7725_v1, %v7721_v45 }
 0x66f   : > { %8427 = vperm.xlu0 %10377, %v19442_v60   ;;  %v8200_v60 = vrot.slane %v17017_v6, %v16782_v63  ;;  %v7767_v6 = vrot.slane %v17033_v28, %v16790_v43 }
 0x670   : > { %v17057_v4 = vpop.permute.xlu1 %7563  ;;  %v7763_v48 = vsel %vm7606_vm2, %v7762_v27, %v7758_v8  ;;  %v19458_v8 = vld [vmem:[#allocation150_spill] sm:$0xff] }
 0x671   : > { %v17059_v37 = vpop.permute.xlu0 %7566  ;;  %v7776_v33 = vrot.slane %v17057_v4, %v16785_v25  ;;  %v7790_v4 = vrot.slane %v17047_v39, %v16785_v25  ;;  %v7768_v24 = vsel %vm7613_vm3, %v7767_v6, %v7763_v48  ;;  %v19460_v48 = vld [vmem:[#allocation20_spill] sm:$0xff] }
 0x672   : > { %8418 = vperm.xlu1 %10378, %v19443_v32   ;;  %v8204_v32 = vrot.slane %v17019_v23, %v16785_v25  ;;  %v19453_v23 = vld [vmem:[#allocation27_spill] sm:$0xff]  ;;  %v7781_v7 = vrot.slane %v17059_v37, %v16790_v43  ;;  %v8214_v37 = vrot.slane %v17041_v9, %v16782_v63 }
 0x673   : > { %8676 = vperm.xlu0 %10377, %v19444_v59   ;;  %v8182_v59 = vsel %vm7613_vm3, %v8181_v30, %v8177_v21  ;;  %v7777_v39 = vsel %vm7606_vm2, %v7776_v33, %v7772_v50  ;;  %v8232_v21 = vrot.slane %v17053_v16, %v16785_v25 }
 0x674   : > { %v17063_v2 = vpop.permute.xlu1 %8011  ;;  %v8205_v58 = vsel %vm7606_vm2, %v8204_v32, %v8200_v60  ;;  %v7782_v9 = vsel %vm7613_vm3, %v7781_v7, %v7777_v39  ;;  %v19464_v39 = vld [vmem:[#allocation57_spill] sm:$0xff] }
 0x675   : > { %v17065_v38 = vpop.permute.xlu0 %8014  ;;  %v8218_v54 = vrot.slane %v17063_v2, %v16785_v25  ;;  %v8228_v2 = vrot.slane %v17051_v61, %v16782_v63 }
 0x676   : > { %8424 = vperm.xlu1 %10378, %v19445_v53   ;;  %v7754_v53 = vsel %vm7613_vm3, %v7753_v62, %v7749_v34  ;;  %v19456_v62 = vld [vmem:[#allocation120_spill] sm:$0xff] }
 0x677   : > { %8682 = vperm.xlu0 %10377, %v19446_v19   ;;  %v8219_v61 = vsel %vm7606_vm2, %v8218_v54, %v8214_v37  ;;  %v19466_v37 = vld [vmem:[#allocation88_spill] sm:$0xff] }
 0x678   : > { %v17069_v26 = vpop.permute.xlu1 %7575 }
 0x679   : > { %v17071_v47 = vpop.permute.xlu0 %7578  ;;  %v7795_v36 = vrot.slane %v17069_v26, %v16790_v43  ;;  %v8223_v26 = vrot.slane %v17065_v38, %v16790_v43 }
 0x67a   : > { %8673 = vperm.xlu1 %10378, %v19447_v40   ;;  %v8168_v40 = vsel %vm7613_vm3, %v8167_v41, %v8163_v31  ;;  %v7800_v30 = vrot.slane %v17071_v47, %v16782_v63  ;;  %v19457_v41 = vld [vmem:[#allocation146_spill] sm:$0xff] }
 0x67b   : > { %8688 = vperm.xlu0 %10377, %v19448_v3   ;;  %v7839_v3 = vsel %vm7825_vm4, %v7740_v11, %v7726_v52  ;;  %v8274_v17 = vsel %vm7825_vm4, %v8182_v59, %v8168_v40  ;;  %v8224_v5 = vsel %vm7613_vm3, %v8223_v26, %v8219_v61  ;;  %v19459_v40 = vld [vmem:[#allocation148_spill] sm:$0xff] }
 0x67c   : > { %v17075_v49 = vpop.permute.xlu1 %8023  ;;  %v7840_v28 = vsel %vm7827_vm5, %v7754_v53, %v7839_v3  ;;  %v19471_v61 = vld [vmem:[#allocation132_spill] sm:$0xff] }
 0x67d   : > { %v17081_v22 = vpop.permute.xlu0 %8026  ;;  %v7841_v11 = vsel %vm7829_vm6, %v7768_v24, %v7840_v28  ;;  %v8237_v55 = vrot.slane %v17075_v49, %v16790_v43  ;;  %v19462_v24 = vld [vmem:[#allocation74_spill] sm:$0xff] }
 0x67e   : > { %8679 = vperm.xlu1 %10378, %v19449_v0   ;;  %v7786_v0 = vrot.slane %v17045_v46, %v16782_v63  ;;  %v8209_v46 = vrot.slane %v17039_v56, %v16790_v43  ;;  %v7842_v59 = vsel %vm7831_vm7, %v7782_v9, %v7841_v11  ;;  %v19473_v11 = vld [vmem:[#allocation137_spill] sm:$0xff] }
 0x67f   : > { %8694 = vperm.xlu0 %10377, %v19450_v10   ;;  %v8196_v10 = vsel %vm7613_vm3, %v8195_v15, %v8191_v42 }
 0x680   : > { %v17100_v35 = vpop.permute.xlu1 %7587  ;;  %v7791_v1 = vsel %vm7606_vm2, %v7790_v4, %v7786_v0  ;;  %v8210_v27 = vsel %vm7613_vm3, %v8209_v46, %v8205_v58  ;;  %v8275_v3 = vsel %vm7827_vm5, %v8196_v10, %v8274_v17  ;;  %v19463_v46 = vld [vmem:[#allocation108_spill] sm:$0xff] }
 0x681   : > { %v17109_v51 = vpop.permute.xlu0 %7590  ;;  %v7814_v16 = vrot.slane %v17100_v35, %v16782_v63  ;;  %v7796_v38 = vsel %vm7613_vm3, %v7795_v36, %v7791_v1  ;;  %v8233_v35 = vsel %vm7606_vm2, %v8232_v21, %v8228_v2 }
 0x682   : > { %8685 = vperm.xlu1 %10378, %v19451_v14   ;;  %v7818_v31 = vrot.slane %v17109_v51, %v16785_v25  ;;  %v8238_v42 = vsel %vm7613_vm3, %v8237_v55, %v8233_v35 }
 0x683   : > { %8700 = vperm.xlu0 %10377, %v19452_v29   ;;  %v8242_v29 = vrot.slane %v17081_v22, %v16782_v63  ;;  %v7843_v22 = vsel %vm7833_vm8, %v7796_v38, %v7842_v59  ;;  %v19474_v38 = vld [vmem:[#allocation155_spill] sm:$0xff] }
 0x684   : > { %v17132_v57 = vpop.permute.xlu1 %8035  ;;  %v7819_v52 = vsel %vm7606_vm2, %v7818_v31, %v7814_v16  ;;  %v19472_v16 = vld [vmem:[#allocation138_spill] sm:$0xff] }
 0x685   : > { %v17138_v19 = vpop.permute.xlu0 %8038  ;;  %v8256_v15 = vrot.slane %v17132_v57, %v16782_v63  ;;  %v8276_v57 = vsel %vm7829_vm6, %v8210_v27, %v8275_v3  ;;  %v19476_v27 = vld [vmem:[#allocation154_spill] sm:$0xff] }
 0x686   : > { %8691 = vperm.xlu1 %10378, %v19453_v23   ;;  %v8260_v6 = vrot.slane %v17138_v19, %v16785_v25 }
 0x687   : > { %8706 = vperm.xlu0 %10377, %v19454_v12  }
 0x688   : > { %v7582_v20 = vpop.permute.xlu1 %7581  ;;  %v8261_v0 = vsel %vm7606_vm2, %v8260_v6, %v8256_v15  ;;  %v19480_v15 = vld [vmem:[#allocation142_spill] sm:$0xff] }
 0x689   : > { %v7804_v18 = vrot.slane %v7582_v20, %v16785_v25  ;;  %v7585_v13 = vpop.permute.xlu0 %7584  ;;  %v8277_v20 = vsel %vm7831_vm7, %v8224_v5, %v8276_v57 }
 0x68a   : > { %8697 = vperm.xlu1 %10378, %v19455_v44   ;;  %v7809_v56 = vrot.slane %v7585_v13, %v16790_v43  ;;  %v8278_v50 = vsel %vm7833_vm8, %v8238_v42, %v8277_v20  ;;  %v19481_v20 = vld [vmem:[#allocation157_spill] sm:$0xff] }
 0x68b   : > { %8712 = vperm.xlu0 %10377, %v19456_v62   ;;  %v7805_v47 = vsel %vm7606_vm2, %v7804_v18, %v7800_v30  ;;  %v19461_v18 = vld [vmem:[#allocation114_spill] sm:$0xff]  ;;  %v19465_v62 = vld [vmem:[#allocation124_spill] sm:$0xff] }
 0x68c   : > { %v8030_v45 = vpop.permute.xlu1 %8029  ;;  %v7810_v51 = vsel %vm7613_vm3, %v7809_v56, %v7805_v47  ;;  %v19467_v56 = vld [vmem:[#allocation128_spill] sm:$0xff]  ;;  %v19469_v47 = vld [vmem:[#allocation19_spill] sm:$0xff] }
 0x68d   : > { %v8246_v34 = vrot.slane %v8030_v45, %v16785_v25  ;;  %v8033_v14 = vpop.permute.xlu0 %8032  ;;  %v7844_v33 = vsel %vm7835_vm9, %v7810_v51, %v7843_v22  ;;  %v19468_v45 = vld [vmem:[#allocation83_spill] sm:$0xff] }
 0x68e   : > { %8703 = vperm.xlu1 %10378, %v19457_v41   ;;  %v8251_v60 = vrot.slane %v8033_v14, %v16790_v43 }
 0x68f   : > { %8718 = vperm.xlu0 %10377, %v19458_v8   ;;  %v8247_v49 = vsel %vm7606_vm2, %v8246_v34, %v8242_v29  ;;  %v19470_v34 = vld [vmem:[#allocation78_spill] sm:$0xff] }
 0x690   : > { %v7594_v32 = vpop.permute.xlu1 %7593  ;;  %v8252_v58 = vsel %vm7613_vm3, %v8251_v60, %v8247_v49  ;;  %v19475_v8 = vld [vmem:[#allocation94_spill] sm:$0xff]  ;;  %v19477_v60 = vld [vmem:[#allocation153_spill] sm:$0xff] }
 0x691   : > { %v7823_v53 = vrot.slane %v7594_v32, %v16790_v43  ;;  %v8279_v13 = vsel %vm7835_vm9, %v8252_v58, %v8278_v50  ;;  %v19478_v32 = vld [vmem:[#allocation140_spill] sm:$0xff] }
 0x692   : > { %v17218_v23 = vpop.permute.xlu0 %8286  ;;  %8709 = vperm.xlu1 %10378, %v19459_v40  }
 0x693   : > { %v7824_v12 = vsel %vm7613_vm3, %v7823_v53, %v7819_v52  ;;  %8724 = vperm.xlu0 %10377, %v19460_v48   ;;  %v19479_v53 = vld [vmem:[#allocation156_spill] sm:$0xff]  ;;  %v8432_v40 = vrot.slane %v17218_v23, %v16782_v63 }
 0x694   : > { %v7845_v19 = vsel %vm7837_vm10, %v7824_v12, %v7844_v33  ;;  %v8042_v28 = vpop.permute.xlu1 %8041 }
 0x695   : > { %7850 = vst.msk [vmem:[%s16942_s14 + $0x8] sm:$0xff] %vm7848_vm11, %v7845_v19  ;;  %v8265_v17 = vrot.slane %v8042_v28, %v16790_v43 }
 0x696   : > { %v8296_v4 = vpop.permute.xlu0 %8295  ;;  %8715 = vperm.xlu1 %10378, %v19461_v18  }
 0x697   : > { %v8266_v10 = vsel %vm7613_vm3, %v8265_v17, %v8261_v0  ;;  %8730 = vperm.xlu0 %10377, %v19462_v24   ;;  %v8446_v22 = vrot.slane %v8296_v4, %v16782_v63  ;;  %v19482_v0 = vld [vmem:[#allocation73_spill] sm:$0xff] }
 0x698   : > { %v8280_v7 = vsel %vm7837_vm10, %v8266_v10, %v8279_v13 }
 0x699   : > { %8284 = vst.msk [vmem:[%s16966_s17 + $0x8] sm:$0xff] %vm7848_vm11, %v8280_v7  ;;  %v8290_v54 = vpop.permute.xlu1 %8289 }
 0x69a   : > { %v8302_v44 = vpop.permute.xlu0 %8301  ;;  %8721 = vperm.xlu1 %10378, %v19463_v46   ;;  %v8436_v52 = vrot.slane %v8290_v54, %v16785_v25 }
 0x69b   : > { %8736 = vperm.xlu0 %10377, %v19464_v39   ;;  %v8455_v3 = vrot.slane %v8302_v44, %v16790_v43 }
 0x69c   : > { %v8437_v23 = vsel %vm7606_vm2, %v8436_v52, %v8432_v40  ;;  %v19488_v52 = vld [vmem:[#allocation98_spill] sm:$0xff]  ;;  %v19489_v40 = vld [vmem:[#allocation39_spill] sm:$0xff] }
 0x69d   : > { %v8293_v36 = vpop.permute.xlu1 %8292 }
 0x69e   : > { %v8308_v30 = vpop.permute.xlu0 %8307  ;;  %8727 = vperm.xlu1 %10378, %v19465_v62   ;;  %v8441_v48 = vrot.slane %v8293_v36, %v16790_v43 }
 0x69f   : > { %8742 = vperm.xlu0 %10377, %v19466_v37   ;;  %v8464_v17 = vrot.slane %v8308_v30, %v16785_v25 }
 0x6a0   : > { %v8442_v39 = vsel %vm7613_vm3, %v8441_v48, %v8437_v23 }
 0x6a1   : > { %v8299_v2 = vpop.permute.xlu1 %8298 }
 0x6a2   : > { %v8314_v21 = vpop.permute.xlu0 %8313  ;;  %8733 = vperm.xlu1 %10378, %v19467_v56   ;;  %v8450_v59 = vrot.slane %v8299_v2, %v16785_v25  ;;  %v19483_v2 = vld [vmem:[#allocation31_spill] sm:$0xff] }
 0x6a3   : > { %8748 = vperm.xlu0 %10377, %v19468_v45   ;;  %v8474_v57 = vrot.slane %v8314_v21, %v16782_v63 }
 0x6a4   : > { %v8451_v42 = vsel %vm7606_vm2, %v8450_v59, %v8446_v22  ;;  %v19487_v22 = vld [vmem:[#allocation30_spill] sm:$0xff] }
 0x6a5   : > { %v8305_v1 = vpop.permute.xlu1 %8304  ;;  %v8456_v4 = vsel %vm7613_vm3, %v8455_v3, %v8451_v42  ;;  %v19490_v3 = vld [vmem:[#allocation23_spill] sm:$0xff] }
 0x6a6   : > { %v8320_v26 = vpop.permute.xlu0 %8319  ;;  %8739 = vperm.xlu1 %10378, %v19469_v47   ;;  %v8460_v33 = vrot.slane %v8305_v1, %v16782_v63  ;;  %v8653_v47 = vsel %vm7825_vm4, %v8456_v4, %v8442_v39 }
 0x6a7   : > { %8754 = vperm.xlu0 %10377, %v19470_v34   ;;  %v8483_v7 = vrot.slane %v8320_v26, %v16790_v43  ;;  %v19484_v26 = vld [vmem:[#allocation51_spill] sm:$0xff] }
 0x6a8   : > { %v8465_v24 = vsel %vm7606_vm2, %v8464_v17, %v8460_v33 }
 0x6a9   : > { %v8311_v14 = vpop.permute.xlu1 %8310 }
 0x6aa   : > { %v8326_v9 = vpop.permute.xlu0 %8325  ;;  %8745 = vperm.xlu1 %10378, %v19471_v61   ;;  %v8469_v58 = vrot.slane %v8311_v14, %v16790_v43 }
 0x6ab   : > { %8760 = vperm.xlu0 %10377, %v19472_v16   ;;  %v8492_v54 = vrot.slane %v8326_v9, %v16785_v25 }
 0x6ac   : > { %v8470_v36 = vsel %vm7613_vm3, %v8469_v58, %v8465_v24  ;;  %v19492_v58 = vld [vmem:[#allocation79_spill] sm:$0xff] }
 0x6ad   : > { %v8317_v31 = vpop.permute.xlu1 %8316  ;;  %v8654_v14 = vsel %vm7827_vm5, %v8470_v36, %v8653_v47 }
 0x6ae   : > { %v8332_v41 = vpop.permute.xlu0 %8331  ;;  %8751 = vperm.xlu1 %10378, %v19473_v11   ;;  %v8478_v6 = vrot.slane %v8317_v31, %v16785_v25 }
 0x6af   : > { %8766 = vperm.xlu0 %10377, %v19474_v38   ;;  %v8502_v13 = vrot.slane %v8332_v41, %v16782_v63 }
 0x6b0   : > { %v8479_v18 = vsel %vm7606_vm2, %v8478_v6, %v8474_v57 }
 0x6b1   : > { %v8323_v55 = vpop.permute.xlu1 %8322  ;;  %v8484_v21 = vsel %vm7613_vm3, %v8483_v7, %v8479_v18 }
 0x6b2   : > { %v8338_v29 = vpop.permute.xlu0 %8337  ;;  %8757 = vperm.xlu1 %10378, %v19475_v8   ;;  %v8488_v50 = vrot.slane %v8323_v55, %v16782_v63  ;;  %v8655_v31 = vsel %vm7829_vm6, %v8484_v21, %v8654_v14 }
 0x6b3   : > { %8772 = vperm.xlu0 %10377, %v19476_v27   ;;  %v8511_v45 = vrot.slane %v8338_v29, %v16790_v43  ;;  %v19485_v29 = vld [vmem:[#allocation97_spill] sm:$0xff] }
 0x6b4   : > { %v8493_v56 = vsel %vm7606_vm2, %v8492_v54, %v8488_v50 }
 0x6b5   : > { %v8329_v35 = vpop.permute.xlu1 %8328 }
 0x6b6   : > { %v8344_v51 = vpop.permute.xlu0 %8343  ;;  %8763 = vperm.xlu1 %10378, %v19477_v60   ;;  %v8497_v10 = vrot.slane %v8329_v35, %v16790_v43  ;;  %v19486_v35 = vld [vmem:[#allocation55_spill] sm:$0xff] }
 0x6b7   : > { %8778 = vperm.xlu0 %10377, %v19478_v32   ;;  %v8520_v1 = vrot.slane %v8344_v51, %v16785_v25 }
 0x6b8   : > { %v8498_v34 = vsel %vm7613_vm3, %v8497_v10, %v8493_v56 }
 0x6b9   : > { %v8335_v5 = vpop.permute.xlu1 %8334  ;;  %v8656_v8 = vsel %vm7831_vm7, %v8498_v34, %v8655_v31 }
 0x6ba   : > { %v8350_v49 = vpop.permute.xlu0 %8349  ;;  %8769 = vperm.xlu1 %10378, %v19479_v53   ;;  %v8506_v19 = vrot.slane %v8335_v5, %v16785_v25 }
 0x6bb   : > { %8784 = vperm.xlu0 %10377, %v19480_v15   ;;  %v8530_v41 = vrot.slane %v8350_v49, %v16782_v63 }
 0x6bc   : > { %v8507_v30 = vsel %vm7606_vm2, %v8506_v19, %v8502_v13 }
 0x6bd   : > { %v8341_v12 = vpop.permute.xlu1 %8340  ;;  %v8512_v9 = vsel %vm7613_vm3, %v8511_v45, %v8507_v30 }
 0x6be   : > { %v8356_v28 = vpop.permute.xlu0 %8355  ;;  %8775 = vperm.xlu1 %10378, %v19481_v20   ;;  %v8516_v44 = vrot.slane %v8341_v12, %v16782_v63  ;;  %v8657_v51 = vsel %vm7833_vm8, %v8512_v9, %v8656_v8  ;;  %v19491_v12 = vld [vmem:[#allocation99_spill] sm:$0xff] }
 0x6bf   : > { %8790 = vperm.xlu0 %10377, %v19482_v0   ;;  %v8539_v27 = vrot.slane %v8356_v28, %v16790_v43 }
 0x6c0   : > { %v8521_v61 = vsel %vm7606_vm2, %v8520_v1, %v8516_v44 }
 0x6c1   : > { %v8347_v46 = vpop.permute.xlu1 %8346 }
 0x6c2   : > { %v8525_v62 = vrot.slane %v8347_v46, %v16790_v43  ;;  %v17290_v37 = vpop.permute.xlu0 %8361  ;;  %8781 = vperm.xlu1 %10378, %v19483_v2  }
 0x6c3   : > { %8796 = vperm.xlu0 %10377, %v19484_v26   ;;  %v8548_v44 = vrot.slane %v17290_v37, %v16785_v25 }
 0x6c4   : > { %v8526_v11 = vsel %vm7613_vm3, %v8525_v62, %v8521_v61 }
 0x6c5   : > { %v8353_v16 = vpop.permute.xlu1 %8352  ;;  %v8658_v32 = vsel %vm7835_vm9, %v8526_v11, %v8657_v51 }
 0x6c6   : > { %v8534_v38 = vrot.slane %v8353_v16, %v16785_v25  ;;  %v8368_v55 = vpop.permute.xlu0 %8367  ;;  %8787 = vperm.xlu1 %10378, %v19485_v29  }
 0x6c7   : > { %8802 = vperm.xlu0 %10377, %v19486_v35   ;;  %v8558_v24 = vrot.slane %v8368_v55, %v16782_v63 }
 0x6c8   : > { %v8535_v60 = vsel %vm7606_vm2, %v8534_v38, %v8530_v41 }
 0x6c9   : > { %v8540_v59 = vsel %vm7613_vm3, %v8539_v27, %v8535_v60  ;;  %v8359_v5 = vpop.permute.xlu1 %8358 }
 0x6ca   : > { %v8659_v49 = vsel %vm7837_vm10, %v8540_v59, %v8658_v32  ;;  %v8374_v53 = vpop.permute.xlu0 %8373  ;;  %8793 = vperm.xlu1 %10378, %v19487_v22   ;;  %v8544_v7 = vrot.slane %v8359_v5, %v16782_v63 }
 0x6cb   : > { %9371 = vst.msk [vmem:[%s16942_s14 + $0x10] sm:$0xff] %vm7848_vm11, %v8659_v49  ;;  %8808 = vperm.xlu0 %10377, %v19488_v52   ;;  %v8567_v46 = vrot.slane %v8374_v53, %v16790_v43 }
 0x6cc   : > { %v8549_v1 = vsel %vm7606_vm2, %v8548_v44, %v8544_v7 }
 0x6cd   : > { %v8365_v15 = vpop.permute.xlu1 %8364 }
 0x6ce   : > { %v8380_v6 = vpop.permute.xlu0 %8379  ;;  %8799 = vperm.xlu1 %10378, %v19489_v40   ;;  %v8553_v62 = vrot.slane %v8365_v15, %v16790_v43 }
 0x6cf   : > { %8814 = vperm.xlu0 %10377, %v19490_v3   ;;  %v8576_v37 = vrot.slane %v8380_v6, %v16785_v25 }
 0x6d0   : > { %v8554_v38 = vsel %vm7613_vm3, %v8553_v62, %v8549_v1 }
 0x6d1   : > { %v8371_v42 = vpop.permute.xlu1 %8370 }
 0x6d2   : > { %v8386_v33 = vpop.permute.xlu0 %8385  ;;  %8805 = vperm.xlu1 %10378, %v19491_v12   ;;  %v8562_v18 = vrot.slane %v8371_v42, %v16785_v25 }
 0x6d3   : > { %v8586_v2 = vrot.slane %v8386_v33, %v16782_v63 }
 0x6d4   : > { %v8563_v39 = vsel %vm7606_vm2, %v8562_v18, %v8558_v24 }
 0x6d5   : > { %v8377_v48 = vpop.permute.xlu1 %8376  ;;  %v8568_v47 = vsel %vm7613_vm3, %v8567_v46, %v8563_v39 }
 0x6d6   : > { %v8392_v57 = vpop.permute.xlu0 %8391  ;;  %8811 = vperm.xlu1 %10378, %v19492_v58   ;;  %v8572_v36 = vrot.slane %v8377_v48, %v16782_v63  ;;  %v8660_v59 = vsel %vm7825_vm4, %v8568_v47, %v8554_v38 }
 0x6d7   : > { %v8595_v16 = vrot.slane %v8392_v57, %v16790_v43 }
 0x6d8   : > { %v8577_v61 = vsel %vm7606_vm2, %v8576_v37, %v8572_v36 }
 0x6d9   : > { %v8383_v19 = vpop.permute.xlu1 %8382 }
 0x6da   : > { %v8398_v28 = vpop.permute.xlu0 %8397  ;;  %v8581_v21 = vrot.slane %v8383_v19, %v16790_v43 }
 0x6db   : > { %v8604_v31 = vrot.slane %v8398_v28, %v16785_v25 }
 0x6dc   : > { %v8582_v55 = vsel %vm7613_vm3, %v8581_v21, %v8577_v61 }
 0x6dd   : > { %v8389_v20 = vpop.permute.xlu1 %8388  ;;  %v8661_v49 = vsel %vm7827_vm5, %v8582_v55, %v8660_v59 }
 0x6de   : > { %v8404_v23 = vpop.permute.xlu0 %8403  ;;  %v8590_v54 = vrot.slane %v8389_v20, %v16785_v25 }
 0x6df   : > { %v8614_v14 = vrot.slane %v8404_v23, %v16782_v63 }
 0x6e0   : > { %v8591_v34 = vsel %vm7606_vm2, %v8590_v54, %v8586_v2 }
 0x6e1   : > { %v8395_v17 = vpop.permute.xlu1 %8394  ;;  %v8596_v35 = vsel %vm7613_vm3, %v8595_v16, %v8591_v34 }
 0x6e2   : > { %v8410_v50 = vpop.permute.xlu0 %8409  ;;  %v8600_v26 = vrot.slane %v8395_v17, %v16782_v63  ;;  %v8662_v15 = vsel %vm7829_vm6, %v8596_v35, %v8661_v49 }
 0x6e3   : > { %v8623_v60 = vrot.slane %v8410_v50, %v16790_v43 }
 0x6e4   : > { %v8605_v51 = vsel %vm7606_vm2, %v8604_v31, %v8600_v26 }
 0x6e5   : > { %v8401_v0 = vpop.permute.xlu1 %8400 }
 0x6e6   : > { %v8416_v4 = vpop.permute.xlu0 %8415  ;;  %v8609_v9 = vrot.slane %v8401_v0, %v16790_v43 }
 0x6e7   : > { %v8632_v32 = vrot.slane %v8416_v4, %v16785_v25 }
 0x6e8   : > { %v8610_v5 = vsel %vm7613_vm3, %v8609_v9, %v8605_v51 }
 0x6e9   : > { %v8407_v13 = vpop.permute.xlu1 %8406  ;;  %v8663_v33 = vsel %vm7831_vm7, %v8610_v5, %v8662_v15 }
 0x6ea   : > { %v8422_v10 = vpop.permute.xlu0 %8421  ;;  %v8618_v56 = vrot.slane %v8407_v13, %v16785_v25 }
 0x6eb   : > { %v8642_v6 = vrot.slane %v8422_v10, %v16782_v63 }
 0x6ec   : > { %v8619_v29 = vsel %vm7606_vm2, %v8618_v56, %v8614_v14 }
 0x6ed   : > { %v8413_v30 = vpop.permute.xlu1 %8412  ;;  %v8624_v53 = vsel %vm7613_vm3, %v8623_v60, %v8619_v29 }
 0x6ee   : > { %v8428_v45 = vpop.permute.xlu0 %8427  ;;  %v8628_v41 = vrot.slane %v8413_v30, %v16782_v63  ;;  %v8664_v48 = vsel %vm7833_vm8, %v8624_v53, %v8663_v33 }
 0x6ef   : > { %v8651_v12 = vrot.slane %v8428_v45, %v16790_v43 }
 0x6f0   : > { %v8633_v22 = vsel %vm7606_vm2, %v8632_v32, %v8628_v41 }
 0x6f1   : > { %v8419_v11 = vpop.permute.xlu1 %8418 }
 0x6f2   : > { %v8637_v8 = vrot.slane %v8419_v11, %v16790_v43  ;;  %v8677_v27 = vpop.permute.xlu0 %8676 }
 0x6f3   : > { %v8823_v1 = vrot.slane %v8677_v27, %v16785_v25 }
 0x6f4   : > { %v8638_v40 = vsel %vm7613_vm3, %v8637_v8, %v8633_v22 }
 0x6f5   : > { %v8425_v52 = vpop.permute.xlu1 %8424  ;;  %v8665_v58 = vsel %vm7835_vm9, %v8638_v40, %v8664_v48 }
 0x6f6   : > { %v8646_v3 = vrot.slane %v8425_v52, %v16785_v25  ;;  %v8683_v42 = vpop.permute.xlu0 %8682 }
 0x6f7   : > { %v8833_v21 = vrot.slane %v8683_v42, %v16782_v63 }
 0x6f8   : > { %v8647_v57 = vsel %vm7606_vm2, %v8646_v3, %v8642_v6 }
 0x6f9   : > { %v8652_v19 = vsel %vm7613_vm3, %v8651_v12, %v8647_v57  ;;  %v8674_v28 = vpop.permute.xlu1 %8673 }
 0x6fa   : > { %v8666_v20 = vsel %vm7837_vm10, %v8652_v19, %v8665_v58  ;;  %v8689_v23 = vpop.permute.xlu0 %8688  ;;  %v8819_v56 = vrot.slane %v8674_v28, %v16782_v63 }
 0x6fb   : > { %9372 = vst.msk [vmem:[%s16942_s14 + $0x18] sm:$0xff] %vm7848_vm11, %v8666_v20  ;;  %v8842_v37 = vrot.slane %v8689_v23, %v16790_v43 }
 0x6fc   : > { %v8824_v41 = vsel %vm7606_vm2, %v8823_v1, %v8819_v56 }
 0x6fd   : > { %v8680_v17 = vpop.permute.xlu1 %8679 }
 0x6fe   : > { %v8695_v50 = vpop.permute.xlu0 %8694  ;;  %v8828_v14 = vrot.slane %v8680_v17, %v16790_v43 }
 0x6ff   : > { %v8851_v11 = vrot.slane %v8695_v50, %v16785_v25 }
 0x700   : > { %v8829_v5 = vsel %vm7613_vm3, %v8828_v14, %v8824_v41 }
 0x701   : > { %v8686_v0 = vpop.permute.xlu1 %8685 }
 0x702   : > { %v8701_v4 = vpop.permute.xlu0 %8700  ;;  %v8837_v30 = vrot.slane %v8686_v0, %v16785_v25 }
 0x703   : > { %v8861_v9 = vrot.slane %v8701_v4, %v16782_v63 }
 0x704   : > { %v8838_v26 = vsel %vm7606_vm2, %v8837_v30, %v8833_v21 }
 0x705   : > { %v8692_v18 = vpop.permute.xlu1 %8691  ;;  %v8843_v55 = vsel %vm7613_vm3, %v8842_v37, %v8838_v26 }
 0x706   : > { %v8707_v13 = vpop.permute.xlu0 %8706  ;;  %v8847_v47 = vrot.slane %v8692_v18, %v16782_v63  ;;  %v9040_v42 = vsel %vm7825_vm4, %v8843_v55, %v8829_v5 }
 0x707   : > { %v8870_v51 = vrot.slane %v8707_v13, %v16790_v43 }
 0x708   : > { %v8852_v35 = vsel %vm7606_vm2, %v8851_v11, %v8847_v47 }
 0x709   : > { %v8698_v10 = vpop.permute.xlu1 %8697 }
 0x70a   : > { %v8713_v24 = vpop.permute.xlu0 %8712  ;;  %v8856_v61 = vrot.slane %v8698_v10, %v16790_v43 }
 0x70b   : > { %v8879_v60 = vrot.slane %v8713_v24, %v16785_v25 }
 0x70c   : > { %v8857_v49 = vsel %vm7613_vm3, %v8856_v61, %v8852_v35 }
 0x70d   : > { %v8704_v7 = vpop.permute.xlu1 %8703  ;;  %v9041_v12 = vsel %vm7827_vm5, %v8857_v49, %v9040_v42 }
 0x70e   : > { %v8719_v54 = vpop.permute.xlu0 %8718  ;;  %v8865_v45 = vrot.slane %v8704_v7, %v16785_v25 }
 0x70f   : > { %v8889_v8 = vrot.slane %v8719_v54, %v16782_v63 }
 0x710   : > { %v8866_v29 = vsel %vm7606_vm2, %v8865_v45, %v8861_v9 }
 0x711   : > { %v8710_v44 = vpop.permute.xlu1 %8709  ;;  %v8871_v15 = vsel %vm7613_vm3, %v8870_v51, %v8866_v29 }
 0x712   : > { %v8725_v46 = vpop.permute.xlu0 %8724  ;;  %v8875_v38 = vrot.slane %v8710_v44, %v16782_v63  ;;  %v9042_v19 = vsel %vm7829_vm6, %v8871_v15, %v9041_v12 }
 0x713   : > { %v8898_v40 = vrot.slane %v8725_v46, %v16790_v43 }
 0x714   : > { %v8880_v6 = vsel %vm7606_vm2, %v8879_v60, %v8875_v38 }
 0x715   : > { %v8716_v39 = vpop.permute.xlu1 %8715 }
 0x716   : > { %v8731_v36 = vpop.permute.xlu0 %8730  ;;  %v8884_v27 = vrot.slane %v8716_v39, %v16790_v43 }
 0x717   : > { %v8907_v3 = vrot.slane %v8731_v36, %v16785_v25 }
 0x718   : > { %v8885_v33 = vsel %vm7613_vm3, %v8884_v27, %v8880_v6 }
 0x719   : > { %v8722_v62 = vpop.permute.xlu1 %8721  ;;  %v9043_v50 = vsel %vm7831_vm7, %v8885_v33, %v9042_v19 }
 0x71a   : > { %v8737_v2 = vpop.permute.xlu0 %8736  ;;  %v8893_v16 = vrot.slane %v8722_v62, %v16785_v25 }
 0x71b   : > { %v8917_v28 = vrot.slane %v8737_v2, %v16782_v63 }
 0x71c   : > { %v8894_v53 = vsel %vm7606_vm2, %v8893_v16, %v8889_v8 }
 0x71d   : > { %v8728_v34 = vpop.permute.xlu1 %8727  ;;  %v8899_v48 = vsel %vm7613_vm3, %v8898_v40, %v8894_v53 }
 0x71e   : > { %v8743_v31 = vpop.permute.xlu0 %8742  ;;  %v8903_v32 = vrot.slane %v8728_v34, %v16782_v63  ;;  %v9044_v4 = vsel %vm7833_vm8, %v8899_v48, %v9043_v50 }
 0x71f   : > { %v8926_v0 = vrot.slane %v8743_v31, %v16790_v43 }
 0x720   : > { %v8908_v57 = vsel %vm7606_vm2, %v8907_v3, %v8903_v32 }
 0x721   : > { %v8734_v59 = vpop.permute.xlu1 %8733 }
 0x722   : > { %v8912_v22 = vrot.slane %v8734_v59, %v16790_v43  ;;  %v8749_v52 = vpop.permute.xlu0 %8748 }
 0x723   : > { %v8935_v31 = vrot.slane %v8749_v52, %v16785_v25 }
 0x724   : > { %v8913_v20 = vsel %vm7613_vm3, %v8912_v22, %v8908_v57 }
 0x725   : > { %v8740_v58 = vpop.permute.xlu1 %8739  ;;  %v9045_v13 = vsel %vm7835_vm9, %v8913_v20, %v9044_v4 }
 0x726   : > { %v8921_v23 = vrot.slane %v8740_v58, %v16785_v25  ;;  %v8755_v17 = vpop.permute.xlu0 %8754 }
 0x727   : > { %v8945_v9 = vrot.slane %v8755_v17, %v16782_v63 }
 0x728   : > { %v8922_v18 = vsel %vm7606_vm2, %v8921_v23, %v8917_v28 }
 0x729   : > { %v8927_v10 = vsel %vm7613_vm3, %v8926_v0, %v8922_v18  ;;  %v8746_v24 = vpop.permute.xlu1 %8745 }
 0x72a   : > { %v9046_v7 = vsel %vm7837_vm10, %v8927_v10, %v9045_v13  ;;  %v8761_v54 = vpop.permute.xlu0 %8760  ;;  %v8931_v61 = vrot.slane %v8746_v24, %v16782_v63 }
 0x72b   : > { %9373 = vst.msk [vmem:[%s16966_s17 + $0x10] sm:$0xff] %vm7848_vm11, %v9046_v7  ;;  %v8954_v41 = vrot.slane %v8761_v54, %v16790_v43 }
 0x72c   : > { %v8936_v60 = vsel %vm7606_vm2, %v8935_v31, %v8931_v61 }
 0x72d   : > { %v8752_v44 = vpop.permute.xlu1 %8751 }
 0x72e   : > { %v8767_v46 = vpop.permute.xlu0 %8766  ;;  %v8940_v29 = vrot.slane %v8752_v44, %v16790_v43 }
 0x72f   : > { %v8963_v32 = vrot.slane %v8767_v46, %v16785_v25 }
 0x730   : > { %v8941_v42 = vsel %vm7613_vm3, %v8940_v29, %v8936_v60 }
 0x731   : > { %v8758_v39 = vpop.permute.xlu1 %8757 }
 0x732   : > { %v8773_v36 = vpop.permute.xlu0 %8772  ;;  %v8949_v34 = vrot.slane %v8758_v39, %v16785_v25 }
 0x733   : > { %v8973_v8 = vrot.slane %v8773_v36, %v16782_v63 }
 0x734   : > { %v8950_v11 = vsel %vm7606_vm2, %v8949_v34, %v8945_v9 }
 0x735   : > { %v8764_v30 = vpop.permute.xlu1 %8763  ;;  %v8955_v5 = vsel %vm7613_vm3, %v8954_v41, %v8950_v11 }
 0x736   : > { %v8779_v62 = vpop.permute.xlu0 %8778  ;;  %v8959_v38 = vrot.slane %v8764_v30, %v16782_v63  ;;  %v9047_v20 = vsel %vm7825_vm4, %v8955_v5, %v8941_v42 }
 0x737   : > { %v8982_v15 = vrot.slane %v8779_v62, %v16790_v43 }
 0x738   : > { %v8964_v52 = vsel %vm7606_vm2, %v8963_v32, %v8959_v38 }
 0x739   : > { %v8770_v2 = vpop.permute.xlu1 %8769 }
 0x73a   : > { %v8785_v21 = vpop.permute.xlu0 %8784  ;;  %v8968_v27 = vrot.slane %v8770_v2, %v16790_v43 }
 0x73b   : > { %v8991_v6 = vrot.slane %v8785_v21, %v16785_v25 }
 0x73c   : > { %v8969_v33 = vsel %vm7613_vm3, %v8968_v27, %v8964_v52 }
 0x73d   : > { %v8776_v56 = vpop.permute.xlu1 %8775  ;;  %v9048_v50 = vsel %vm7827_vm5, %v8969_v33, %v9047_v20 }
 0x73e   : > { %v8791_v45 = vpop.permute.xlu0 %8790  ;;  %v8977_v16 = vrot.slane %v8776_v56, %v16785_v25 }
 0x73f   : > { %v9001_v53 = vrot.slane %v8791_v45, %v16782_v63 }
 0x740   : > { %v8978_v49 = vsel %vm7606_vm2, %v8977_v16, %v8973_v8 }
 0x741   : > { %v8782_v1 = vpop.permute.xlu1 %8781  ;;  %v8983_v57 = vsel %vm7613_vm3, %v8982_v15, %v8978_v49 }
 0x742   : > { %v8797_v37 = vpop.permute.xlu0 %8796  ;;  %v8987_v59 = vrot.slane %v8782_v1, %v16782_v63  ;;  %v9049_v13 = vsel %vm7829_vm6, %v8983_v57, %v9048_v50 }
 0x743   : > { %v9010_v19 = vrot.slane %v8797_v37, %v16790_v43 }
 0x744   : > { %v8992_v58 = vsel %vm7606_vm2, %v8991_v6, %v8987_v59 }
 0x745   : > { %v8788_v26 = vpop.permute.xlu1 %8787 }
 0x746   : > { %v8803_v47 = vpop.permute.xlu0 %8802  ;;  %v8996_v22 = vrot.slane %v8788_v26, %v16790_v43 }
 0x747   : > { %v9019_v28 = vrot.slane %v8803_v47, %v16785_v25 }
 0x748   : > { %v8997_v23 = vsel %vm7613_vm3, %v8996_v22, %v8992_v58 }
 0x749   : > { %v8794_v14 = vpop.permute.xlu1 %8793  ;;  %v9050_v54 = vsel %vm7831_vm7, %v8997_v23, %v9049_v13 }
 0x74a   : > { %v9005_v35 = vrot.slane %v8794_v14, %v16785_v25  ;;  %v8809_v51 = vpop.permute.xlu0 %8808 }
 0x74b   : > { %v9029_v10 = vrot.slane %v8809_v51, %v16782_v63 }
 0x74c   : > { %v9006_v12 = vsel %vm7606_vm2, %v9005_v35, %v9001_v53 }
 0x74d   : > { %v8800_v55 = vpop.permute.xlu1 %8799  ;;  %v9011_v0 = vsel %vm7613_vm3, %v9010_v19, %v9006_v12 }
 0x74e   : > { %v9015_v40 = vrot.slane %v8800_v55, %v16782_v63  ;;  %v8815_v17 = vpop.permute.xlu0 %8814  ;;  %v9051_v46 = vsel %vm7833_vm8, %v9011_v0, %v9050_v54 }
 0x74f   : > { %v9038_v44 = vrot.slane %v8815_v17, %v16790_v43 }
 0x750   : > { %v9020_v4 = vsel %vm7606_vm2, %v9019_v28, %v9015_v40 }
 0x751   : > { %v8806_v3 = vpop.permute.xlu1 %8805 }
 0x752   : > { %v9024_v48 = vrot.slane %v8806_v3, %v16790_v43 }
 0x754   : > { %v9025_v24 = vsel %vm7613_vm3, %v9024_v48, %v9020_v4 }
 0x755   : > { %v8812_v18 = vpop.permute.xlu1 %8811  ;;  %v9052_v36 = vsel %vm7835_vm9, %v9025_v24, %v9051_v46 }
 0x756   : > { %v9033_v7 = vrot.slane %v8812_v18, %v16785_v25 }
 0x758   : > { %v9034_v39 = vsel %vm7606_vm2, %v9033_v7, %v9029_v10 }
 0x759   : > { %v9039_v30 = vsel %vm7613_vm3, %v9038_v44, %v9034_v39 }
 0x75a   : > { %v9053_v62 = vsel %vm7837_vm10, %v9039_v30, %v9052_v36 }
 0x75b   : > { %9374 = vst.msk [vmem:[%s16966_s17 + $0x18] sm:$0xff] %vm7848_vm11, %v9053_v62 }
 0x75c PF: > { %s19_s29 = sadd.s32 1, %s10689_s29   ;;  %s19493_s27 = smov %s10685_s28 }
 0x75d   : > { %p16_p5 = scmp.ge.s32.totalorder %s19_s29, 4   ;;  %s19494_s28 = smov %s19496_s30 }
 0x75f   :  { %18 = sbr.rel (!%p16_p5) target bundleno = 2 (0x2), region = 110 }

</bundles_post_ra>
